<compile_context>
chip_gen: v7x
topology: tpu7x:2x2x1
jax: 0.10.0
libtpu: 0.0.40
codegen_flags: <defaults>
</compile_context>

<pallas_src>
import jax
import jax.numpy as jnp
from jax import lax
from jax.experimental import pallas as pl
from jax.experimental.pallas import tpu as pltpu

_BN_EPS = 1e-5


def _round_up(x, m):
    return (x + m - 1) // m * m


# ----------------------------------------------------------------------------
# Fused kernel (one grid step == one batch element)
# ----------------------------------------------------------------------------
def _make_fused_kernel(tap_offsets, r2, r3, pool_bases, w3_len, n_pool):
    """All arguments are static Python ints / lists of ints."""
    inv_pool = 1.0 / float(n_pool)

    def kernel(p1_ref, w1_ref, b1_ref, w2_ref, b2_ref, w3_ref, b3_ref,
               wfc_ref, bfc_ref, o_ref, act1_s, act2_s, acc3_s):
        # ---- conv1: lane-dense im2col patches @ BN-folded weight, +bias, ReLU
        a1 = jnp.dot(p1_ref[0], w1_ref[...], preferred_element_type=jnp.float32)
        act1_s[...] = jnp.maximum(a1 + b1_ref[...], 0.0)           # (M1, C1) f32

        # ---- conv2: shift-and-matmul direct conv (27 taps), f32 accumulate --
        for t, off in enumerate(tap_offsets):
            lhs = act1_s[off:off + r2, :].astype(jnp.bfloat16)
            contrib = jnp.dot(lhs, w2_ref[t], preferred_element_type=jnp.float32)
            if t == 0:
                act2_s[...] = contrib
            else:
                act2_s[...] += contrib
        act2_s[...] = jnp.maximum(act2_s[...] + b2_ref[...], 0.0)  # (R2, C2) f32

        # ---- conv3 ----------------------------------------------------------
        for t, off in enumerate(tap_offsets):
            lhs = act2_s[off:off + r3, :].astype(jnp.bfloat16)
            contrib = jnp.dot(lhs, w3_ref[t], preferred_element_type=jnp.float32)
            if t == 0:
                acc3_s[...] = contrib
            else:
                acc3_s[...] += contrib
        act3 = jnp.maximum(acc3_s[...] + b3_ref[...], 0.0)         # (R3, C3) f32

        # ---- global average pool over the valid conv3 voxels ----------------
        total = jnp.zeros((1, act3.shape[1]), jnp.float32)
        for base in pool_bases:
            total = total + jnp.sum(act3[base:base + w3_len, :], axis=0,
                                    keepdims=True)
        pooled = total * inv_pool                                   # (1, C3)

        # ---- fc (output lane-padded to 128) ---------------------------------
        out = jnp.dot(pooled.astype(jnp.bfloat16), wfc_ref[...],
                      preferred_element_type=jnp.float32) + bfc_ref[...]
        o_ref[0] = out.astype(o_ref.dtype)

    return kernel


# ----------------------------------------------------------------------------
# Wrapper: layout prep (channels-last, BN folding, padding) + pallas_call
# ----------------------------------------------------------------------------
def _bn_fold(bn):
    scale = bn["gamma"] / jnp.sqrt(bn["var"] + _BN_EPS)
    bias = bn["beta"] - bn["mean"] * scale
    return scale, bias


@jax.jit
def basic_3d_cnn_forward(params, x):
    """x: (B, 1, D, H, W) float32  ->  (B, num_classes) float32."""
    B, Cin, D, H, W = x.shape
    k1, s1, k23 = 5, 2, 3

    # ---- static geometry ----------------------------------------------------
    D1, H1, W1 = [(s - k1) // s1 + 1 for s in (D, H, W)]            # after conv1
    D2, H2, W2 = D1 - (k23 - 1), H1 - (k23 - 1), W1 - (k23 - 1)     # after conv2
    D3, H3, W3 = D2 - (k23 - 1), H2 - (k23 - 1), W2 - (k23 - 1)     # after conv3
    assert min(D3, H3, W3) >= 1, "input too small for Basic3DCNN"
    HW = H1 * W1
    M1 = D1 * HW                                  # conv1 output rows per batch
    # number of flat-grid rows needed to cover all valid conv2/conv3 outputs
    R2 = (D2 - 1) * HW + (H2 - 1) * W1 + (W2 - 1) + 1
    R3 = (D3 - 1) * HW + (H3 - 1) * W1 + (W3 - 1) + 1
    tap_offsets = [kd * HW + kh * W1 + kw
                   for kd in range(k23) for kh in range(k23) for kw in range(k23)]
    pool_bases = [d * HW + h * W1 for d in range(D3) for h in range(H3)]

    C1 = params["conv1"]["w"].shape[0]
    C2 = params["conv2"]["w"].shape[0]
    C3 = params["conv3"]["w"].shape[0]
    NC = params["fc_w"].shape[0]
    K1 = Cin * k1 ** 3
    K1P = _round_up(K1, 128)                      # lane-dense patch matrix
    NCP = _round_up(NC, 128)                      # lane-dense fc output

    # ---- conv1 im2col in XLA (channels-last; Cin-major then kd,kh,kw) --------
    xf = x.astype(jnp.float32)
    cols = []
    for ci in range(Cin):
        xc = xf[:, ci]
        for kd in range(k1):
            for kh in range(k1):
                for kw in range(k1):
                    cols.append(xc[:,
                                   kd:kd + s1 * (D1 - 1) + 1:s1,
                                   kh:kh + s1 * (H1 - 1) + 1:s1,
                                   kw:kw + s1 * (W1 - 1) + 1:s1])
    p1 = jnp.stack(cols, axis=-1).reshape(B, M1, K1)
    p1 = jnp.pad(p1, ((0, 0), (0, 0), (0, K1P - K1))).astype(jnp.bfloat16)

    # ---- fold BN(eval) into weights; reshape for the kernel ------------------
    sc1, bb1 = _bn_fold(params["conv1"]["bn"])
    w1 = params["conv1"]["w"].reshape(C1, K1) * sc1[:, None]
    w1 = jnp.pad(w1.T, ((0, K1P - K1), (0, 0))).astype(jnp.bfloat16)    # (K1P, C1)
    b1 = bb1.reshape(1, C1).astype(jnp.float32)

    sc2, bb2 = _bn_fold(params["conv2"]["bn"])
    w2 = jnp.transpose(params["conv2"]["w"], (2, 3, 4, 1, 0)).reshape(k23 ** 3, C1, C2)
    w2 = (w2 * sc2[None, None, :]).astype(jnp.bfloat16)                 # (27, C1, C2)
    b2 = bb2.reshape(1, C2).astype(jnp.float32)

    sc3, bb3 = _bn_fold(params["conv3"]["bn"])
    w3 = jnp.transpose(params["conv3"]["w"], (2, 3, 4, 1, 0)).reshape(k23 ** 3, C2, C3)
    w3 = (w3 * sc3[None, None, :]).astype(jnp.bfloat16)                 # (27, C2, C3)
    b3 = bb3.reshape(1, C3).astype(jnp.float32)

    wfc = jnp.pad(params["fc_w"].T, ((0, 0), (0, NCP - NC))).astype(jnp.bfloat16)
    bfc = jnp.pad(params["fc_b"], (0, NCP - NC)).reshape(1, NCP).astype(jnp.float32)

    kernel = _make_fused_kernel(tap_offsets, R2, R3, pool_bases, W3,
                                D3 * H3 * W3)

    out = pl.pallas_call(
        kernel,
        out_shape=jax.ShapeDtypeStruct((B, 1, NCP), jnp.float32),
        grid_spec=pltpu.PrefetchScalarGridSpec(
            num_scalar_prefetch=0,
            grid=(B,),
            in_specs=[
                pl.BlockSpec((1, M1, K1P), lambda b: (b, 0, 0)),       # patches1
                pl.BlockSpec((K1P, C1), lambda b: (0, 0)),             # w1
                pl.BlockSpec((1, C1), lambda b: (0, 0)),               # b1
                pl.BlockSpec((k23 ** 3, C1, C2), lambda b: (0, 0, 0)), # w2 taps
                pl.BlockSpec((1, C2), lambda b: (0, 0)),               # b2
                pl.BlockSpec((k23 ** 3, C2, C3), lambda b: (0, 0, 0)), # w3 taps
                pl.BlockSpec((1, C3), lambda b: (0, 0)),               # b3
                pl.BlockSpec((C3, NCP), lambda b: (0, 0)),             # fc weight
                pl.BlockSpec((1, NCP), lambda b: (0, 0)),              # fc bias
            ],
            out_specs=pl.BlockSpec((1, 1, NCP), lambda b: (b, 0, 0)),
            scratch_shapes=[
                pltpu.VMEM((M1, C1), jnp.float32),   # act1 (flat spatial, C1)
                pltpu.VMEM((R2, C2), jnp.float32),   # conv2 acc / act2
                pltpu.VMEM((R3, C3), jnp.float32),   # conv3 acc
            ],
        ),
        compiler_params=pltpu.CompilerParams(
            dimension_semantics=("parallel",),
        ),
    )(p1, w1, b1, w2, b2, w3, b3, wfc, bfc)

    return out.reshape(B, NCP)[:, :NC]


# ----------------------------------------------------------------------------
# Plain-XLA f32 reference (same module semantics), used for a sanity check
# ----------------------------------------------------------------------------
def _conv_block_ref(x, w, bn, stride):
    y = lax.conv_general_dilated(
        x, w, window_strides=(stride, stride, stride), padding="VALID",
        dimension_numbers=("NCDHW", "OIDHW", "NCDHW"),
        precision=lax.Precision.HIGHEST)
    scale = bn["gamma"] / jnp.sqrt(bn["var"] + _BN_EPS)
    bias = bn["beta"] - bn["mean"] * scale
    y = y * scale[None, :, None, None, None] + bias[None, :, None, None, None]
    return jnp.maximum(y, 0.0)


@jax.jit
def _reference_forward(params, x):
    y = _conv_block_ref(x, params["conv1"]["w"], params["conv1"]["bn"], 2)
    y = _conv_block_ref(y, params["conv2"]["w"], params["conv2"]["bn"], 1)
    y = _conv_block_ref(y, params["conv3"]["w"], params["conv3"]["bn"], 1)
    y = jnp.mean(y, axis=(2, 3, 4))
    return jnp.dot(y, params["fc_w"].T, precision=lax.Precision.HIGHEST) + params["fc_b"]


# ----------------------------------------------------------------------------
# Parameter init (deterministic, matches the torch module shapes)
# ----------------------------------------------------------------------------
def init_params(key, num_classes=4):
    ks = jax.random.split(key, 5)

    def conv_w(k, cout, cin, ksz):
        return 0.1 * jax.random.normal(k, (cout, cin, ksz, ksz, ksz), jnp.float32)

    def bn(c):
        return dict(gamma=jnp.ones((c,), jnp.float32),
                    beta=jnp.zeros((c,), jnp.float32),
                    mean=jnp.zeros((c,), jnp.float32),
                    var=jnp.ones((c,), jnp.float32))

    return {
        "conv1": {"w": conv_w(ks[0], 32, 1, 5), "bn": bn(32)},
        "conv2": {"w": conv_w(ks[1], 64, 32, 3), "bn": bn(64)},
        "conv3": {"w": conv_w(ks[2], 128, 64, 3), "bn": bn(128)},
        "fc_w": 0.1 * jax.random.normal(ks[3], (num_classes, 128), jnp.float32),
        "fc_b": 0.01 * jax.random.normal(ks[4], (num_classes,), jnp.float32),
    }


if __name__ == "__main__":
    key = jax.random.PRNGKey(0)
    k_param, k_in = jax.random.split(key)
    params = init_params(k_param, num_classes=4)

    # (B=2, C=1, D=16, H=16, W=16): spatial 16 -> 6 -> 4 -> 2 -> global pool.
    x = jax.random.normal(k_in, (2, 1, 16, 16, 16), jnp.float32)

    out = jax.block_until_ready(basic_3d_cnn_forward(params, x))
    assert out.shape == (2, 4), out.shape
    assert bool(jnp.all(jnp.isfinite(out)))

    # Cross-check the fused bf16 kernel against the f32 XLA reference.
    ref = jax.block_until_ready(_reference_forward(params, x))
    err = float(jnp.max(jnp.abs(out - ref)))
    scale = float(jnp.max(jnp.abs(ref)))
    assert err <= 0.1 * scale + 0.1, f"mismatch: max|diff|={err}, max|ref|={scale}"

    print("KERNEL_OK")
</pallas_src>

<mosaic_0001>
module attributes {stable_mosaic.version = 11 : i64} {
  func.func @kernel(%arg0: i32, %arg1: memref<1x216x128xbf16, #tpu.memory_space<vmem>>, %arg2: memref<128x32xbf16, #tpu.memory_space<vmem>>, %arg3: memref<1x32xf32, #tpu.memory_space<vmem>>, %arg4: memref<27x32x64xbf16, #tpu.memory_space<vmem>>, %arg5: memref<1x64xf32, #tpu.memory_space<vmem>>, %arg6: memref<27x64x128xbf16, #tpu.memory_space<vmem>>, %arg7: memref<1x128xf32, #tpu.memory_space<vmem>>, %arg8: memref<128x128xbf16, #tpu.memory_space<vmem>>, %arg9: memref<1x128xf32, #tpu.memory_space<vmem>>, %arg10: memref<1x1x128xf32, #tpu.memory_space<vmem>>, %arg11: memref<216x32xf32, #tpu.memory_space<vmem>>, %arg12: memref<130x64xf32, #tpu.memory_space<vmem>>, %arg13: memref<44x128xf32, #tpu.memory_space<vmem>>) attributes {dimension_semantics = [#tpu.dimension_semantics<parallel>], iteration_bounds = array<i64: 2>, scalar_prefetch = 0 : i64, scratch_operands = 3 : i64, tpu.core_type = #tpu.core_type<tc>, window_params = [{transform_indices = @transform_0, window_bounds = array<i64: 1, 216, 128>}, {pipeline_mode = #tpu.pipeline_mode<synchronous>, transform_indices = @transform_1, window_bounds = array<i64: 128, 32>}, {pipeline_mode = #tpu.pipeline_mode<synchronous>, transform_indices = @transform_2, window_bounds = array<i64: 1, 32>}, {pipeline_mode = #tpu.pipeline_mode<synchronous>, transform_indices = @transform_3, window_bounds = array<i64: 27, 32, 64>}, {pipeline_mode = #tpu.pipeline_mode<synchronous>, transform_indices = @transform_4, window_bounds = array<i64: 1, 64>}, {pipeline_mode = #tpu.pipeline_mode<synchronous>, transform_indices = @transform_5, window_bounds = array<i64: 27, 64, 128>}, {pipeline_mode = #tpu.pipeline_mode<synchronous>, transform_indices = @transform_6, window_bounds = array<i64: 1, 128>}, {pipeline_mode = #tpu.pipeline_mode<synchronous>, transform_indices = @transform_7, window_bounds = array<i64: 128, 128>}, {pipeline_mode = #tpu.pipeline_mode<synchronous>, transform_indices = @transform_8, window_bounds = array<i64: 1, 128>}, {transform_indices = @transform_9, window_bounds = array<i64: 1, 1, 128>}]} {
    %c0 = arith.constant 0 : index
    %c0_0 = arith.constant 0 : index
    %c0_1 = arith.constant 0 : index
    %0 = vector.load %arg1[%c0, %c0_0, %c0_1] : memref<1x216x128xbf16, #tpu.memory_space<vmem>>, vector<1x216x128xbf16>
    %1 = vector.shape_cast %0 : vector<1x216x128xbf16> to vector<216x128xbf16>
    %c0_2 = arith.constant 0 : index
    %c0_3 = arith.constant 0 : index
    %2 = vector.load %arg2[%c0_2, %c0_3] : memref<128x32xbf16, #tpu.memory_space<vmem>>, vector<128x32xbf16>
    %cst = arith.constant dense<0.000000e+00> : vector<216x32xf32>
    %3 = tpu.matmul %1, %2, %cst {dimension_numbers = #tpu.dot_dimension_numbers<[1], [0], [0], [1], [0, 0, 1, 1], [], []>} : vector<216x128xbf16>, vector<128x32xbf16>, vector<216x32xf32> -> vector<216x32xf32>
    %c0_4 = arith.constant 0 : index
    %c0_5 = arith.constant 0 : index
    %4 = vector.load %arg3[%c0_4, %c0_5] : memref<1x32xf32, #tpu.memory_space<vmem>>, vector<1x32xf32>
    %5 = vector.broadcast %4 : vector<1x32xf32> to vector<216x32xf32>
    %6 = arith.addf %3, %5 : vector<216x32xf32>
    %cst_6 = arith.constant 0.000000e+00 : f32
    %7 = vector.broadcast %cst_6 : f32 to vector<216x32xf32>
    %8 = arith.maximumf %6, %7 : vector<216x32xf32>
    %c0_7 = arith.constant 0 : index
    %c0_8 = arith.constant 0 : index
    %9 = vector.load %arg11[%c0_7, %c0_8] : memref<216x32xf32, #tpu.memory_space<vmem>>, vector<216x32xf32>
    tpu.vector_store %arg11[%c0_7, %c0_8], %8 {strides = array<i32>} : memref<216x32xf32, #tpu.memory_space<vmem>>, vector<216x32xf32>,
    %c0_9 = arith.constant 0 : index
    %c0_10 = arith.constant 0 : index
    %10 = vector.load %arg11[%c0_9, %c0_10] : memref<216x32xf32, #tpu.memory_space<vmem>>, vector<130x32xf32>
    %11 = arith.truncf %10 : vector<130x32xf32> to vector<130x32xbf16>
    %c0_11 = arith.constant 0 : index
    %c0_12 = arith.constant 0 : index
    %c0_13 = arith.constant 0 : index
    %12 = vector.load %arg4[%c0_11, %c0_12, %c0_13] : memref<27x32x64xbf16, #tpu.memory_space<vmem>>, vector<1x32x64xbf16>
    %13 = vector.shape_cast %12 : vector<1x32x64xbf16> to vector<32x64xbf16>
    %cst_14 = arith.constant dense<0.000000e+00> : vector<130x64xf32>
    %14 = tpu.matmul %11, %13, %cst_14 {dimension_numbers = #tpu.dot_dimension_numbers<[1], [0], [0], [1], [0, 0, 1, 1], [], []>} : vector<130x32xbf16>, vector<32x64xbf16>, vector<130x64xf32> -> vector<130x64xf32>
    %c0_15 = arith.constant 0 : index
    %c0_16 = arith.constant 0 : index
    %15 = vector.load %arg12[%c0_15, %c0_16] : memref<130x64xf32, #tpu.memory_space<vmem>>, vector<130x64xf32>
    tpu.vector_store %arg12[%c0_15, %c0_16], %14 {strides = array<i32>} : memref<130x64xf32, #tpu.memory_space<vmem>>, vector<130x64xf32>,
    %c1 = arith.constant 1 : index
    %c0_17 = arith.constant 0 : index
    %16 = vector.load %arg11[%c1, %c0_17] : memref<216x32xf32, #tpu.memory_space<vmem>>, vector<130x32xf32>
    %17 = arith.truncf %16 : vector<130x32xf32> to vector<130x32xbf16>
    %c1_18 = arith.constant 1 : index
    %c0_19 = arith.constant 0 : index
    %c0_20 = arith.constant 0 : index
    %18 = vector.load %arg4[%c1_18, %c0_19, %c0_20] : memref<27x32x64xbf16, #tpu.memory_space<vmem>>, vector<1x32x64xbf16>
    %19 = vector.shape_cast %18 : vector<1x32x64xbf16> to vector<32x64xbf16>
    %cst_21 = arith.constant dense<0.000000e+00> : vector<130x64xf32>
    %20 = tpu.matmul %17, %19, %cst_21 {dimension_numbers = #tpu.dot_dimension_numbers<[1], [0], [0], [1], [0, 0, 1, 1], [], []>} : vector<130x32xbf16>, vector<32x64xbf16>, vector<130x64xf32> -> vector<130x64xf32>
    %c0_22 = arith.constant 0 : index
    %c0_23 = arith.constant 0 : index
    %21 = vector.load %arg12[%c0_22, %c0_23] : memref<130x64xf32, #tpu.memory_space<vmem>>, vector<130x64xf32>
    %22 = arith.addf %21, %20 : vector<130x64xf32>
    %c0_24 = arith.constant 0 : index
    %c0_25 = arith.constant 0 : index
    %23 = vector.load %arg12[%c0_24, %c0_25] : memref<130x64xf32, #tpu.memory_space<vmem>>, vector<130x64xf32>
    tpu.vector_store %arg12[%c0_24, %c0_25], %22 {strides = array<i32>} : memref<130x64xf32, #tpu.memory_space<vmem>>, vector<130x64xf32>,
    %c2 = arith.constant 2 : index
    %c0_26 = arith.constant 0 : index
    %24 = vector.load %arg11[%c2, %c0_26] : memref<216x32xf32, #tpu.memory_space<vmem>>, vector<130x32xf32>
    %25 = arith.truncf %24 : vector<130x32xf32> to vector<130x32xbf16>
    %c2_27 = arith.constant 2 : index
    %c0_28 = arith.constant 0 : index
    %c0_29 = arith.constant 0 : index
    %26 = vector.load %arg4[%c2_27, %c0_28, %c0_29] : memref<27x32x64xbf16, #tpu.memory_space<vmem>>, vector<1x32x64xbf16>
    %27 = vector.shape_cast %26 : vector<1x32x64xbf16> to vector<32x64xbf16>
    %cst_30 = arith.constant dense<0.000000e+00> : vector<130x64xf32>
    %28 = tpu.matmul %25, %27, %cst_30 {dimension_numbers = #tpu.dot_dimension_numbers<[1], [0], [0], [1], [0, 0, 1, 1], [], []>} : vector<130x32xbf16>, vector<32x64xbf16>, vector<130x64xf32> -> vector<130x64xf32>
    %c0_31 = arith.constant 0 : index
    %c0_32 = arith.constant 0 : index
    %29 = vector.load %arg12[%c0_31, %c0_32] : memref<130x64xf32, #tpu.memory_space<vmem>>, vector<130x64xf32>
    %30 = arith.addf %29, %28 : vector<130x64xf32>
    %c0_33 = arith.constant 0 : index
    %c0_34 = arith.constant 0 : index
    %31 = vector.load %arg12[%c0_33, %c0_34] : memref<130x64xf32, #tpu.memory_space<vmem>>, vector<130x64xf32>
    tpu.vector_store %arg12[%c0_33, %c0_34], %30 {strides = array<i32>} : memref<130x64xf32, #tpu.memory_space<vmem>>, vector<130x64xf32>,
    %c6 = arith.constant 6 : index
    %c0_35 = arith.constant 0 : index
    %32 = vector.load %arg11[%c6, %c0_35] : memref<216x32xf32, #tpu.memory_space<vmem>>, vector<130x32xf32>
    %33 = arith.truncf %32 : vector<130x32xf32> to vector<130x32xbf16>
    %c3 = arith.constant 3 : index
    %c0_36 = arith.constant 0 : index
    %c0_37 = arith.constant 0 : index
    %34 = vector.load %arg4[%c3, %c0_36, %c0_37] : memref<27x32x64xbf16, #tpu.memory_space<vmem>>, vector<1x32x64xbf16>
    %35 = vector.shape_cast %34 : vector<1x32x64xbf16> to vector<32x64xbf16>
    %cst_38 = arith.constant dense<0.000000e+00> : vector<130x64xf32>
    %36 = tpu.matmul %33, %35, %cst_38 {dimension_numbers = #tpu.dot_dimension_numbers<[1], [0], [0], [1], [0, 0, 1, 1], [], []>} : vector<130x32xbf16>, vector<32x64xbf16>, vector<130x64xf32> -> vector<130x64xf32>
    %c0_39 = arith.constant 0 : index
    %c0_40 = arith.constant 0 : index
    %37 = vector.load %arg12[%c0_39, %c0_40] : memref<130x64xf32, #tpu.memory_space<vmem>>, vector<130x64xf32>
    %38 = arith.addf %37, %36 : vector<130x64xf32>
    %c0_41 = arith.constant 0 : index
    %c0_42 = arith.constant 0 : index
    %39 = vector.load %arg12[%c0_41, %c0_42] : memref<130x64xf32, #tpu.memory_space<vmem>>, vector<130x64xf32>
    tpu.vector_store %arg12[%c0_41, %c0_42], %38 {strides = array<i32>} : memref<130x64xf32, #tpu.memory_space<vmem>>, vector<130x64xf32>,
    %c7 = arith.constant 7 : index
    %c0_43 = arith.constant 0 : index
    %40 = vector.load %arg11[%c7, %c0_43] : memref<216x32xf32, #tpu.memory_space<vmem>>, vector<130x32xf32>
    %41 = arith.truncf %40 : vector<130x32xf32> to vector<130x32xbf16>
    %c4 = arith.constant 4 : index
    %c0_44 = arith.constant 0 : index
    %c0_45 = arith.constant 0 : index
    %42 = vector.load %arg4[%c4, %c0_44, %c0_45] : memref<27x32x64xbf16, #tpu.memory_space<vmem>>, vector<1x32x64xbf16>
    %43 = vector.shape_cast %42 : vector<1x32x64xbf16> to vector<32x64xbf16>
    %cst_46 = arith.constant dense<0.000000e+00> : vector<130x64xf32>
    %44 = tpu.matmul %41, %43, %cst_46 {dimension_numbers = #tpu.dot_dimension_numbers<[1], [0], [0], [1], [0, 0, 1, 1], [], []>} : vector<130x32xbf16>, vector<32x64xbf16>, vector<130x64xf32> -> vector<130x64xf32>
    %c0_47 = arith.constant 0 : index
    %c0_48 = arith.constant 0 : index
    %45 = vector.load %arg12[%c0_47, %c0_48] : memref<130x64xf32, #tpu.memory_space<vmem>>, vector<130x64xf32>
    %46 = arith.addf %45, %44 : vector<130x64xf32>
    %c0_49 = arith.constant 0 : index
    %c0_50 = arith.constant 0 : index
    %47 = vector.load %arg12[%c0_49, %c0_50] : memref<130x64xf32, #tpu.memory_space<vmem>>, vector<130x64xf32>
    tpu.vector_store %arg12[%c0_49, %c0_50], %46 {strides = array<i32>} : memref<130x64xf32, #tpu.memory_space<vmem>>, vector<130x64xf32>,
    %c8 = arith.constant 8 : index
    %c0_51 = arith.constant 0 : index
    %48 = vector.load %arg11[%c8, %c0_51] : memref<216x32xf32, #tpu.memory_space<vmem>>, vector<130x32xf32>
    %49 = arith.truncf %48 : vector<130x32xf32> to vector<130x32xbf16>
    %c5 = arith.constant 5 : index
    %c0_52 = arith.constant 0 : index
    %c0_53 = arith.constant 0 : index
    %50 = vector.load %arg4[%c5, %c0_52, %c0_53] : memref<27x32x64xbf16, #tpu.memory_space<vmem>>, vector<1x32x64xbf16>
    %51 = vector.shape_cast %50 : vector<1x32x64xbf16> to vector<32x64xbf16>
    %cst_54 = arith.constant dense<0.000000e+00> : vector<130x64xf32>
    %52 = tpu.matmul %49, %51, %cst_54 {dimension_numbers = #tpu.dot_dimension_numbers<[1], [0], [0], [1], [0, 0, 1, 1], [], []>} : vector<130x32xbf16>, vector<32x64xbf16>, vector<130x64xf32> -> vector<130x64xf32>
    %c0_55 = arith.constant 0 : index
    %c0_56 = arith.constant 0 : index
    %53 = vector.load %arg12[%c0_55, %c0_56] : memref<130x64xf32, #tpu.memory_space<vmem>>, vector<130x64xf32>
    %54 = arith.addf %53, %52 : vector<130x64xf32>
    %c0_57 = arith.constant 0 : index
    %c0_58 = arith.constant 0 : index
    %55 = vector.load %arg12[%c0_57, %c0_58] : memref<130x64xf32, #tpu.memory_space<vmem>>, vector<130x64xf32>
    tpu.vector_store %arg12[%c0_57, %c0_58], %54 {strides = array<i32>} : memref<130x64xf32, #tpu.memory_space<vmem>>, vector<130x64xf32>,
    %c12 = arith.constant 12 : index
    %c0_59 = arith.constant 0 : index
    %56 = vector.load %arg11[%c12, %c0_59] : memref<216x32xf32, #tpu.memory_space<vmem>>, vector<130x32xf32>
    %57 = arith.truncf %56 : vector<130x32xf32> to vector<130x32xbf16>
    %c6_60 = arith.constant 6 : index
    %c0_61 = arith.constant 0 : index
    %c0_62 = arith.constant 0 : index
    %58 = vector.load %arg4[%c6_60, %c0_61, %c0_62] : memref<27x32x64xbf16, #tpu.memory_space<vmem>>, vector<1x32x64xbf16>
    %59 = vector.shape_cast %58 : vector<1x32x64xbf16> to vector<32x64xbf16>
    %cst_63 = arith.constant dense<0.000000e+00> : vector<130x64xf32>
    %60 = tpu.matmul %57, %59, %cst_63 {dimension_numbers = #tpu.dot_dimension_numbers<[1], [0], [0], [1], [0, 0, 1, 1], [], []>} : vector<130x32xbf16>, vector<32x64xbf16>, vector<130x64xf32> -> vector<130x64xf32>
    %c0_64 = arith.constant 0 : index
    %c0_65 = arith.constant 0 : index
    %61 = vector.load %arg12[%c0_64, %c0_65] : memref<130x64xf32, #tpu.memory_space<vmem>>, vector<130x64xf32>
    %62 = arith.addf %61, %60 : vector<130x64xf32>
    %c0_66 = arith.constant 0 : index
    %c0_67 = arith.constant 0 : index
    %63 = vector.load %arg12[%c0_66, %c0_67] : memref<130x64xf32, #tpu.memory_space<vmem>>, vector<130x64xf32>
    tpu.vector_store %arg12[%c0_66, %c0_67], %62 {strides = array<i32>} : memref<130x64xf32, #tpu.memory_space<vmem>>, vector<130x64xf32>,
    %c13 = arith.constant 13 : index
    %c0_68 = arith.constant 0 : index
    %64 = vector.load %arg11[%c13, %c0_68] : memref<216x32xf32, #tpu.memory_space<vmem>>, vector<130x32xf32>
    %65 = arith.truncf %64 : vector<130x32xf32> to vector<130x32xbf16>
    %c7_69 = arith.constant 7 : index
    %c0_70 = arith.constant 0 : index
    %c0_71 = arith.constant 0 : index
    %66 = vector.load %arg4[%c7_69, %c0_70, %c0_71] : memref<27x32x64xbf16, #tpu.memory_space<vmem>>, vector<1x32x64xbf16>
    %67 = vector.shape_cast %66 : vector<1x32x64xbf16> to vector<32x64xbf16>
    %cst_72 = arith.constant dense<0.000000e+00> : vector<130x64xf32>
    %68 = tpu.matmul %65, %67, %cst_72 {dimension_numbers = #tpu.dot_dimension_numbers<[1], [0], [0], [1], [0, 0, 1, 1], [], []>} : vector<130x32xbf16>, vector<32x64xbf16>, vector<130x64xf32> -> vector<130x64xf32>
    %c0_73 = arith.constant 0 : index
    %c0_74 = arith.constant 0 : index
    %69 = vector.load %arg12[%c0_73, %c0_74] : memref<130x64xf32, #tpu.memory_space<vmem>>, vector<130x64xf32>
    %70 = arith.addf %69, %68 : vector<130x64xf32>
    %c0_75 = arith.constant 0 : index
    %c0_76 = arith.constant 0 : index
    %71 = vector.load %arg12[%c0_75, %c0_76] : memref<130x64xf32, #tpu.memory_space<vmem>>, vector<130x64xf32>
    tpu.vector_store %arg12[%c0_75, %c0_76], %70 {strides = array<i32>} : memref<130x64xf32, #tpu.memory_space<vmem>>, vector<130x64xf32>,
    %c14 = arith.constant 14 : index
    %c0_77 = arith.constant 0 : index
    %72 = vector.load %arg11[%c14, %c0_77] : memref<216x32xf32, #tpu.memory_space<vmem>>, vector<130x32xf32>
    %73 = arith.truncf %72 : vector<130x32xf32> to vector<130x32xbf16>
    %c8_78 = arith.constant 8 : index
    %c0_79 = arith.constant 0 : index
    %c0_80 = arith.constant 0 : index
    %74 = vector.load %arg4[%c8_78, %c0_79, %c0_80] : memref<27x32x64xbf16, #tpu.memory_space<vmem>>, vector<1x32x64xbf16>
    %75 = vector.shape_cast %74 : vector<1x32x64xbf16> to vector<32x64xbf16>
    %cst_81 = arith.constant dense<0.000000e+00> : vector<130x64xf32>
    %76 = tpu.matmul %73, %75, %cst_81 {dimension_numbers = #tpu.dot_dimension_numbers<[1], [0], [0], [1], [0, 0, 1, 1], [], []>} : vector<130x32xbf16>, vector<32x64xbf16>, vector<130x64xf32> -> vector<130x64xf32>
    %c0_82 = arith.constant 0 : index
    %c0_83 = arith.constant 0 : index
    %77 = vector.load %arg12[%c0_82, %c0_83] : memref<130x64xf32, #tpu.memory_space<vmem>>, vector<130x64xf32>
    %78 = arith.addf %77, %76 : vector<130x64xf32>
    %c0_84 = arith.constant 0 : index
    %c0_85 = arith.constant 0 : index
    %79 = vector.load %arg12[%c0_84, %c0_85] : memref<130x64xf32, #tpu.memory_space<vmem>>, vector<130x64xf32>
    tpu.vector_store %arg12[%c0_84, %c0_85], %78 {strides = array<i32>} : memref<130x64xf32, #tpu.memory_space<vmem>>, vector<130x64xf32>,
    %c36 = arith.constant 36 : index
    %c0_86 = arith.constant 0 : index
    %80 = vector.load %arg11[%c36, %c0_86] : memref<216x32xf32, #tpu.memory_space<vmem>>, vector<130x32xf32>
    %81 = arith.truncf %80 : vector<130x32xf32> to vector<130x32xbf16>
    %c9 = arith.constant 9 : index
    %c0_87 = arith.constant 0 : index
    %c0_88 = arith.constant 0 : index
    %82 = vector.load %arg4[%c9, %c0_87, %c0_88] : memref<27x32x64xbf16, #tpu.memory_space<vmem>>, vector<1x32x64xbf16>
    %83 = vector.shape_cast %82 : vector<1x32x64xbf16> to vector<32x64xbf16>
    %cst_89 = arith.constant dense<0.000000e+00> : vector<130x64xf32>
    %84 = tpu.matmul %81, %83, %cst_89 {dimension_numbers = #tpu.dot_dimension_numbers<[1], [0], [0], [1], [0, 0, 1, 1], [], []>} : vector<130x32xbf16>, vector<32x64xbf16>, vector<130x64xf32> -> vector<130x64xf32>
    %c0_90 = arith.constant 0 : index
    %c0_91 = arith.constant 0 : index
    %85 = vector.load %arg12[%c0_90, %c0_91] : memref<130x64xf32, #tpu.memory_space<vmem>>, vector<130x64xf32>
    %86 = arith.addf %85, %84 : vector<130x64xf32>
    %c0_92 = arith.constant 0 : index
    %c0_93 = arith.constant 0 : index
    %87 = vector.load %arg12[%c0_92, %c0_93] : memref<130x64xf32, #tpu.memory_space<vmem>>, vector<130x64xf32>
    tpu.vector_store %arg12[%c0_92, %c0_93], %86 {strides = array<i32>} : memref<130x64xf32, #tpu.memory_space<vmem>>, vector<130x64xf32>,
    %c37 = arith.constant 37 : index
    %c0_94 = arith.constant 0 : index
    %88 = vector.load %arg11[%c37, %c0_94] : memref<216x32xf32, #tpu.memory_space<vmem>>, vector<130x32xf32>
    %89 = arith.truncf %88 : vector<130x32xf32> to vector<130x32xbf16>
    %c10 = arith.constant 10 : index
    %c0_95 = arith.constant 0 : index
    %c0_96 = arith.constant 0 : index
    %90 = vector.load %arg4[%c10, %c0_95, %c0_96] : memref<27x32x64xbf16, #tpu.memory_space<vmem>>, vector<1x32x64xbf16>
    %91 = vector.shape_cast %90 : vector<1x32x64xbf16> to vector<32x64xbf16>
    %cst_97 = arith.constant dense<0.000000e+00> : vector<130x64xf32>
    %92 = tpu.matmul %89, %91, %cst_97 {dimension_numbers = #tpu.dot_dimension_numbers<[1], [0], [0], [1], [0, 0, 1, 1], [], []>} : vector<130x32xbf16>, vector<32x64xbf16>, vector<130x64xf32> -> vector<130x64xf32>
    %c0_98 = arith.constant 0 : index
    %c0_99 = arith.constant 0 : index
    %93 = vector.load %arg12[%c0_98, %c0_99] : memref<130x64xf32, #tpu.memory_space<vmem>>, vector<130x64xf32>
    %94 = arith.addf %93, %92 : vector<130x64xf32>
    %c0_100 = arith.constant 0 : index
    %c0_101 = arith.constant 0 : index
    %95 = vector.load %arg12[%c0_100, %c0_101] : memref<130x64xf32, #tpu.memory_space<vmem>>, vector<130x64xf32>
    tpu.vector_store %arg12[%c0_100, %c0_101], %94 {strides = array<i32>} : memref<130x64xf32, #tpu.memory_space<vmem>>, vector<130x64xf32>,
    %c38 = arith.constant 38 : index
    %c0_102 = arith.constant 0 : index
    %96 = vector.load %arg11[%c38, %c0_102] : memref<216x32xf32, #tpu.memory_space<vmem>>, vector<130x32xf32>
    %97 = arith.truncf %96 : vector<130x32xf32> to vector<130x32xbf16>
    %c11 = arith.constant 11 : index
    %c0_103 = arith.constant 0 : index
    %c0_104 = arith.constant 0 : index
    %98 = vector.load %arg4[%c11, %c0_103, %c0_104] : memref<27x32x64xbf16, #tpu.memory_space<vmem>>, vector<1x32x64xbf16>
    %99 = vector.shape_cast %98 : vector<1x32x64xbf16> to vector<32x64xbf16>
    %cst_105 = arith.constant dense<0.000000e+00> : vector<130x64xf32>
    %100 = tpu.matmul %97, %99, %cst_105 {dimension_numbers = #tpu.dot_dimension_numbers<[1], [0], [0], [1], [0, 0, 1, 1], [], []>} : vector<130x32xbf16>, vector<32x64xbf16>, vector<130x64xf32> -> vector<130x64xf32>
    %c0_106 = arith.constant 0 : index
    %c0_107 = arith.constant 0 : index
    %101 = vector.load %arg12[%c0_106, %c0_107] : memref<130x64xf32, #tpu.memory_space<vmem>>, vector<130x64xf32>
    %102 = arith.addf %101, %100 : vector<130x64xf32>
    %c0_108 = arith.constant 0 : index
    %c0_109 = arith.constant 0 : index
    %103 = vector.load %arg12[%c0_108, %c0_109] : memref<130x64xf32, #tpu.memory_space<vmem>>, vector<130x64xf32>
    tpu.vector_store %arg12[%c0_108, %c0_109], %102 {strides = array<i32>} : memref<130x64xf32, #tpu.memory_space<vmem>>, vector<130x64xf32>,
    %c42 = arith.constant 42 : index
    %c0_110 = arith.constant 0 : index
    %104 = vector.load %arg11[%c42, %c0_110] : memref<216x32xf32, #tpu.memory_space<vmem>>, vector<130x32xf32>
    %105 = arith.truncf %104 : vector<130x32xf32> to vector<130x32xbf16>
    %c12_111 = arith.constant 12 : index
    %c0_112 = arith.constant 0 : index
    %c0_113 = arith.constant 0 : index
    %106 = vector.load %arg4[%c12_111, %c0_112, %c0_113] : memref<27x32x64xbf16, #tpu.memory_space<vmem>>, vector<1x32x64xbf16>
    %107 = vector.shape_cast %106 : vector<1x32x64xbf16> to vector<32x64xbf16>
    %cst_114 = arith.constant dense<0.000000e+00> : vector<130x64xf32>
    %108 = tpu.matmul %105, %107, %cst_114 {dimension_numbers = #tpu.dot_dimension_numbers<[1], [0], [0], [1], [0, 0, 1, 1], [], []>} : vector<130x32xbf16>, vector<32x64xbf16>, vector<130x64xf32> -> vector<130x64xf32>
    %c0_115 = arith.constant 0 : index
    %c0_116 = arith.constant 0 : index
    %109 = vector.load %arg12[%c0_115, %c0_116] : memref<130x64xf32, #tpu.memory_space<vmem>>, vector<130x64xf32>
    %110 = arith.addf %109, %108 : vector<130x64xf32>
    %c0_117 = arith.constant 0 : index
    %c0_118 = arith.constant 0 : index
    %111 = vector.load %arg12[%c0_117, %c0_118] : memref<130x64xf32, #tpu.memory_space<vmem>>, vector<130x64xf32>
    tpu.vector_store %arg12[%c0_117, %c0_118], %110 {strides = array<i32>} : memref<130x64xf32, #tpu.memory_space<vmem>>, vector<130x64xf32>,
    %c43 = arith.constant 43 : index
    %c0_119 = arith.constant 0 : index
    %112 = vector.load %arg11[%c43, %c0_119] : memref<216x32xf32, #tpu.memory_space<vmem>>, vector<130x32xf32>
    %113 = arith.truncf %112 : vector<130x32xf32> to vector<130x32xbf16>
    %c13_120 = arith.constant 13 : index
    %c0_121 = arith.constant 0 : index
    %c0_122 = arith.constant 0 : index
    %114 = vector.load %arg4[%c13_120, %c0_121, %c0_122] : memref<27x32x64xbf16, #tpu.memory_space<vmem>>, vector<1x32x64xbf16>
    %115 = vector.shape_cast %114 : vector<1x32x64xbf16> to vector<32x64xbf16>
    %cst_123 = arith.constant dense<0.000000e+00> : vector<130x64xf32>
    %116 = tpu.matmul %113, %115, %cst_123 {dimension_numbers = #tpu.dot_dimension_numbers<[1], [0], [0], [1], [0, 0, 1, 1], [], []>} : vector<130x32xbf16>, vector<32x64xbf16>, vector<130x64xf32> -> vector<130x64xf32>
    %c0_124 = arith.constant 0 : index
    %c0_125 = arith.constant 0 : index
    %117 = vector.load %arg12[%c0_124, %c0_125] : memref<130x64xf32, #tpu.memory_space<vmem>>, vector<130x64xf32>
    %118 = arith.addf %117, %116 : vector<130x64xf32>
    %c0_126 = arith.constant 0 : index
    %c0_127 = arith.constant 0 : index
    %119 = vector.load %arg12[%c0_126, %c0_127] : memref<130x64xf32, #tpu.memory_space<vmem>>, vector<130x64xf32>
    tpu.vector_store %arg12[%c0_126, %c0_127], %118 {strides = array<i32>} : memref<130x64xf32, #tpu.memory_space<vmem>>, vector<130x64xf32>,
    %c44 = arith.constant 44 : index
    %c0_128 = arith.constant 0 : index
    %120 = vector.load %arg11[%c44, %c0_128] : memref<216x32xf32, #tpu.memory_space<vmem>>, vector<130x32xf32>
    %121 = arith.truncf %120 : vector<130x32xf32> to vector<130x32xbf16>
    %c14_129 = arith.constant 14 : index
    %c0_130 = arith.constant 0 : index
    %c0_131 = arith.constant 0 : index
    %122 = vector.load %arg4[%c14_129, %c0_130, %c0_131] : memref<27x32x64xbf16, #tpu.memory_space<vmem>>, vector<1x32x64xbf16>
    %123 = vector.shape_cast %122 : vector<1x32x64xbf16> to vector<32x64xbf16>
    %cst_132 = arith.constant dense<0.000000e+00> : vector<130x64xf32>
    %124 = tpu.matmul %121, %123, %cst_132 {dimension_numbers = #tpu.dot_dimension_numbers<[1], [0], [0], [1], [0, 0, 1, 1], [], []>} : vector<130x32xbf16>, vector<32x64xbf16>, vector<130x64xf32> -> vector<130x64xf32>
    %c0_133 = arith.constant 0 : index
    %c0_134 = arith.constant 0 : index
    %125 = vector.load %arg12[%c0_133, %c0_134] : memref<130x64xf32, #tpu.memory_space<vmem>>, vector<130x64xf32>
    %126 = arith.addf %125, %124 : vector<130x64xf32>
    %c0_135 = arith.constant 0 : index
    %c0_136 = arith.constant 0 : index
    %127 = vector.load %arg12[%c0_135, %c0_136] : memref<130x64xf32, #tpu.memory_space<vmem>>, vector<130x64xf32>
    tpu.vector_store %arg12[%c0_135, %c0_136], %126 {strides = array<i32>} : memref<130x64xf32, #tpu.memory_space<vmem>>, vector<130x64xf32>,
    %c48 = arith.constant 48 : index
    %c0_137 = arith.constant 0 : index
    %128 = vector.load %arg11[%c48, %c0_137] : memref<216x32xf32, #tpu.memory_space<vmem>>, vector<130x32xf32>
    %129 = arith.truncf %128 : vector<130x32xf32> to vector<130x32xbf16>
    %c15 = arith.constant 15 : index
    %c0_138 = arith.constant 0 : index
    %c0_139 = arith.constant 0 : index
    %130 = vector.load %arg4[%c15, %c0_138, %c0_139] : memref<27x32x64xbf16, #tpu.memory_space<vmem>>, vector<1x32x64xbf16>
    %131 = vector.shape_cast %130 : vector<1x32x64xbf16> to vector<32x64xbf16>
    %cst_140 = arith.constant dense<0.000000e+00> : vector<130x64xf32>
    %132 = tpu.matmul %129, %131, %cst_140 {dimension_numbers = #tpu.dot_dimension_numbers<[1], [0], [0], [1], [0, 0, 1, 1], [], []>} : vector<130x32xbf16>, vector<32x64xbf16>, vector<130x64xf32> -> vector<130x64xf32>
    %c0_141 = arith.constant 0 : index
    %c0_142 = arith.constant 0 : index
    %133 = vector.load %arg12[%c0_141, %c0_142] : memref<130x64xf32, #tpu.memory_space<vmem>>, vector<130x64xf32>
    %134 = arith.addf %133, %132 : vector<130x64xf32>
    %c0_143 = arith.constant 0 : index
    %c0_144 = arith.constant 0 : index
    %135 = vector.load %arg12[%c0_143, %c0_144] : memref<130x64xf32, #tpu.memory_space<vmem>>, vector<130x64xf32>
    tpu.vector_store %arg12[%c0_143, %c0_144], %134 {strides = array<i32>} : memref<130x64xf32, #tpu.memory_space<vmem>>, vector<130x64xf32>,
    %c49 = arith.constant 49 : index
    %c0_145 = arith.constant 0 : index
    %136 = vector.load %arg11[%c49, %c0_145] : memref<216x32xf32, #tpu.memory_space<vmem>>, vector<130x32xf32>
    %137 = arith.truncf %136 : vector<130x32xf32> to vector<130x32xbf16>
    %c16 = arith.constant 16 : index
    %c0_146 = arith.constant 0 : index
    %c0_147 = arith.constant 0 : index
    %138 = vector.load %arg4[%c16, %c0_146, %c0_147] : memref<27x32x64xbf16, #tpu.memory_space<vmem>>, vector<1x32x64xbf16>
    %139 = vector.shape_cast %138 : vector<1x32x64xbf16> to vector<32x64xbf16>
    %cst_148 = arith.constant dense<0.000000e+00> : vector<130x64xf32>
    %140 = tpu.matmul %137, %139, %cst_148 {dimension_numbers = #tpu.dot_dimension_numbers<[1], [0], [0], [1], [0, 0, 1, 1], [], []>} : vector<130x32xbf16>, vector<32x64xbf16>, vector<130x64xf32> -> vector<130x64xf32>
    %c0_149 = arith.constant 0 : index
    %c0_150 = arith.constant 0 : index
    %141 = vector.load %arg12[%c0_149, %c0_150] : memref<130x64xf32, #tpu.memory_space<vmem>>, vector<130x64xf32>
    %142 = arith.addf %141, %140 : vector<130x64xf32>
    %c0_151 = arith.constant 0 : index
    %c0_152 = arith.constant 0 : index
    %143 = vector.load %arg12[%c0_151, %c0_152] : memref<130x64xf32, #tpu.memory_space<vmem>>, vector<130x64xf32>
    tpu.vector_store %arg12[%c0_151, %c0_152], %142 {strides = array<i32>} : memref<130x64xf32, #tpu.memory_space<vmem>>, vector<130x64xf32>,
    %c50 = arith.constant 50 : index
    %c0_153 = arith.constant 0 : index
    %144 = vector.load %arg11[%c50, %c0_153] : memref<216x32xf32, #tpu.memory_space<vmem>>, vector<130x32xf32>
    %145 = arith.truncf %144 : vector<130x32xf32> to vector<130x32xbf16>
    %c17 = arith.constant 17 : index
    %c0_154 = arith.constant 0 : index
    %c0_155 = arith.constant 0 : index
    %146 = vector.load %arg4[%c17, %c0_154, %c0_155] : memref<27x32x64xbf16, #tpu.memory_space<vmem>>, vector<1x32x64xbf16>
    %147 = vector.shape_cast %146 : vector<1x32x64xbf16> to vector<32x64xbf16>
    %cst_156 = arith.constant dense<0.000000e+00> : vector<130x64xf32>
    %148 = tpu.matmul %145, %147, %cst_156 {dimension_numbers = #tpu.dot_dimension_numbers<[1], [0], [0], [1], [0, 0, 1, 1], [], []>} : vector<130x32xbf16>, vector<32x64xbf16>, vector<130x64xf32> -> vector<130x64xf32>
    %c0_157 = arith.constant 0 : index
    %c0_158 = arith.constant 0 : index
    %149 = vector.load %arg12[%c0_157, %c0_158] : memref<130x64xf32, #tpu.memory_space<vmem>>, vector<130x64xf32>
    %150 = arith.addf %149, %148 : vector<130x64xf32>
    %c0_159 = arith.constant 0 : index
    %c0_160 = arith.constant 0 : index
    %151 = vector.load %arg12[%c0_159, %c0_160] : memref<130x64xf32, #tpu.memory_space<vmem>>, vector<130x64xf32>
    tpu.vector_store %arg12[%c0_159, %c0_160], %150 {strides = array<i32>} : memref<130x64xf32, #tpu.memory_space<vmem>>, vector<130x64xf32>,
    %c72 = arith.constant 72 : index
    %c0_161 = arith.constant 0 : index
    %152 = vector.load %arg11[%c72, %c0_161] : memref<216x32xf32, #tpu.memory_space<vmem>>, vector<130x32xf32>
    %153 = arith.truncf %152 : vector<130x32xf32> to vector<130x32xbf16>
    %c18 = arith.constant 18 : index
    %c0_162 = arith.constant 0 : index
    %c0_163 = arith.constant 0 : index
    %154 = vector.load %arg4[%c18, %c0_162, %c0_163] : memref<27x32x64xbf16, #tpu.memory_space<vmem>>, vector<1x32x64xbf16>
    %155 = vector.shape_cast %154 : vector<1x32x64xbf16> to vector<32x64xbf16>
    %cst_164 = arith.constant dense<0.000000e+00> : vector<130x64xf32>
    %156 = tpu.matmul %153, %155, %cst_164 {dimension_numbers = #tpu.dot_dimension_numbers<[1], [0], [0], [1], [0, 0, 1, 1], [], []>} : vector<130x32xbf16>, vector<32x64xbf16>, vector<130x64xf32> -> vector<130x64xf32>
    %c0_165 = arith.constant 0 : index
    %c0_166 = arith.constant 0 : index
    %157 = vector.load %arg12[%c0_165, %c0_166] : memref<130x64xf32, #tpu.memory_space<vmem>>, vector<130x64xf32>
    %158 = arith.addf %157, %156 : vector<130x64xf32>
    %c0_167 = arith.constant 0 : index
    %c0_168 = arith.constant 0 : index
    %159 = vector.load %arg12[%c0_167, %c0_168] : memref<130x64xf32, #tpu.memory_space<vmem>>, vector<130x64xf32>
    tpu.vector_store %arg12[%c0_167, %c0_168], %158 {strides = array<i32>} : memref<130x64xf32, #tpu.memory_space<vmem>>, vector<130x64xf32>,
    %c73 = arith.constant 73 : index
    %c0_169 = arith.constant 0 : index
    %160 = vector.load %arg11[%c73, %c0_169] : memref<216x32xf32, #tpu.memory_space<vmem>>, vector<130x32xf32>
    %161 = arith.truncf %160 : vector<130x32xf32> to vector<130x32xbf16>
    %c19 = arith.constant 19 : index
    %c0_170 = arith.constant 0 : index
    %c0_171 = arith.constant 0 : index
    %162 = vector.load %arg4[%c19, %c0_170, %c0_171] : memref<27x32x64xbf16, #tpu.memory_space<vmem>>, vector<1x32x64xbf16>
    %163 = vector.shape_cast %162 : vector<1x32x64xbf16> to vector<32x64xbf16>
    %cst_172 = arith.constant dense<0.000000e+00> : vector<130x64xf32>
    %164 = tpu.matmul %161, %163, %cst_172 {dimension_numbers = #tpu.dot_dimension_numbers<[1], [0], [0], [1], [0, 0, 1, 1], [], []>} : vector<130x32xbf16>, vector<32x64xbf16>, vector<130x64xf32> -> vector<130x64xf32>
    %c0_173 = arith.constant 0 : index
    %c0_174 = arith.constant 0 : index
    %165 = vector.load %arg12[%c0_173, %c0_174] : memref<130x64xf32, #tpu.memory_space<vmem>>, vector<130x64xf32>
    %166 = arith.addf %165, %164 : vector<130x64xf32>
    %c0_175 = arith.constant 0 : index
    %c0_176 = arith.constant 0 : index
    %167 = vector.load %arg12[%c0_175, %c0_176] : memref<130x64xf32, #tpu.memory_space<vmem>>, vector<130x64xf32>
    tpu.vector_store %arg12[%c0_175, %c0_176], %166 {strides = array<i32>} : memref<130x64xf32, #tpu.memory_space<vmem>>, vector<130x64xf32>,
    %c74 = arith.constant 74 : index
    %c0_177 = arith.constant 0 : index
    %168 = vector.load %arg11[%c74, %c0_177] : memref<216x32xf32, #tpu.memory_space<vmem>>, vector<130x32xf32>
    %169 = arith.truncf %168 : vector<130x32xf32> to vector<130x32xbf16>
    %c20 = arith.constant 20 : index
    %c0_178 = arith.constant 0 : index
    %c0_179 = arith.constant 0 : index
    %170 = vector.load %arg4[%c20, %c0_178, %c0_179] : memref<27x32x64xbf16, #tpu.memory_space<vmem>>, vector<1x32x64xbf16>
    %171 = vector.shape_cast %170 : vector<1x32x64xbf16> to vector<32x64xbf16>
    %cst_180 = arith.constant dense<0.000000e+00> : vector<130x64xf32>
    %172 = tpu.matmul %169, %171, %cst_180 {dimension_numbers = #tpu.dot_dimension_numbers<[1], [0], [0], [1], [0, 0, 1, 1], [], []>} : vector<130x32xbf16>, vector<32x64xbf16>, vector<130x64xf32> -> vector<130x64xf32>
    %c0_181 = arith.constant 0 : index
    %c0_182 = arith.constant 0 : index
    %173 = vector.load %arg12[%c0_181, %c0_182] : memref<130x64xf32, #tpu.memory_space<vmem>>, vector<130x64xf32>
    %174 = arith.addf %173, %172 : vector<130x64xf32>
    %c0_183 = arith.constant 0 : index
    %c0_184 = arith.constant 0 : index
    %175 = vector.load %arg12[%c0_183, %c0_184] : memref<130x64xf32, #tpu.memory_space<vmem>>, vector<130x64xf32>
    tpu.vector_store %arg12[%c0_183, %c0_184], %174 {strides = array<i32>} : memref<130x64xf32, #tpu.memory_space<vmem>>, vector<130x64xf32>,
    %c78 = arith.constant 78 : index
    %c0_185 = arith.constant 0 : index
    %176 = vector.load %arg11[%c78, %c0_185] : memref<216x32xf32, #tpu.memory_space<vmem>>, vector<130x32xf32>
    %177 = arith.truncf %176 : vector<130x32xf32> to vector<130x32xbf16>
    %c21 = arith.constant 21 : index
    %c0_186 = arith.constant 0 : index
    %c0_187 = arith.constant 0 : index
    %178 = vector.load %arg4[%c21, %c0_186, %c0_187] : memref<27x32x64xbf16, #tpu.memory_space<vmem>>, vector<1x32x64xbf16>
    %179 = vector.shape_cast %178 : vector<1x32x64xbf16> to vector<32x64xbf16>
    %cst_188 = arith.constant dense<0.000000e+00> : vector<130x64xf32>
    %180 = tpu.matmul %177, %179, %cst_188 {dimension_numbers = #tpu.dot_dimension_numbers<[1], [0], [0], [1], [0, 0, 1, 1], [], []>} : vector<130x32xbf16>, vector<32x64xbf16>, vector<130x64xf32> -> vector<130x64xf32>
    %c0_189 = arith.constant 0 : index
    %c0_190 = arith.constant 0 : index
    %181 = vector.load %arg12[%c0_189, %c0_190] : memref<130x64xf32, #tpu.memory_space<vmem>>, vector<130x64xf32>
    %182 = arith.addf %181, %180 : vector<130x64xf32>
    %c0_191 = arith.constant 0 : index
    %c0_192 = arith.constant 0 : index
    %183 = vector.load %arg12[%c0_191, %c0_192] : memref<130x64xf32, #tpu.memory_space<vmem>>, vector<130x64xf32>
    tpu.vector_store %arg12[%c0_191, %c0_192], %182 {strides = array<i32>} : memref<130x64xf32, #tpu.memory_space<vmem>>, vector<130x64xf32>,
    %c79 = arith.constant 79 : index
    %c0_193 = arith.constant 0 : index
    %184 = vector.load %arg11[%c79, %c0_193] : memref<216x32xf32, #tpu.memory_space<vmem>>, vector<130x32xf32>
    %185 = arith.truncf %184 : vector<130x32xf32> to vector<130x32xbf16>
    %c22 = arith.constant 22 : index
    %c0_194 = arith.constant 0 : index
    %c0_195 = arith.constant 0 : index
    %186 = vector.load %arg4[%c22, %c0_194, %c0_195] : memref<27x32x64xbf16, #tpu.memory_space<vmem>>, vector<1x32x64xbf16>
    %187 = vector.shape_cast %186 : vector<1x32x64xbf16> to vector<32x64xbf16>
    %cst_196 = arith.constant dense<0.000000e+00> : vector<130x64xf32>
    %188 = tpu.matmul %185, %187, %cst_196 {dimension_numbers = #tpu.dot_dimension_numbers<[1], [0], [0], [1], [0, 0, 1, 1], [], []>} : vector<130x32xbf16>, vector<32x64xbf16>, vector<130x64xf32> -> vector<130x64xf32>
    %c0_197 = arith.constant 0 : index
    %c0_198 = arith.constant 0 : index
    %189 = vector.load %arg12[%c0_197, %c0_198] : memref<130x64xf32, #tpu.memory_space<vmem>>, vector<130x64xf32>
    %190 = arith.addf %189, %188 : vector<130x64xf32>
    %c0_199 = arith.constant 0 : index
    %c0_200 = arith.constant 0 : index
    %191 = vector.load %arg12[%c0_199, %c0_200] : memref<130x64xf32, #tpu.memory_space<vmem>>, vector<130x64xf32>
    tpu.vector_store %arg12[%c0_199, %c0_200], %190 {strides = array<i32>} : memref<130x64xf32, #tpu.memory_space<vmem>>, vector<130x64xf32>,
    %c80 = arith.constant 80 : index
    %c0_201 = arith.constant 0 : index
    %192 = vector.load %arg11[%c80, %c0_201] : memref<216x32xf32, #tpu.memory_space<vmem>>, vector<130x32xf32>
    %193 = arith.truncf %192 : vector<130x32xf32> to vector<130x32xbf16>
    %c23 = arith.constant 23 : index
    %c0_202 = arith.constant 0 : index
    %c0_203 = arith.constant 0 : index
    %194 = vector.load %arg4[%c23, %c0_202, %c0_203] : memref<27x32x64xbf16, #tpu.memory_space<vmem>>, vector<1x32x64xbf16>
    %195 = vector.shape_cast %194 : vector<1x32x64xbf16> to vector<32x64xbf16>
    %cst_204 = arith.constant dense<0.000000e+00> : vector<130x64xf32>
    %196 = tpu.matmul %193, %195, %cst_204 {dimension_numbers = #tpu.dot_dimension_numbers<[1], [0], [0], [1], [0, 0, 1, 1], [], []>} : vector<130x32xbf16>, vector<32x64xbf16>, vector<130x64xf32> -> vector<130x64xf32>
    %c0_205 = arith.constant 0 : index
    %c0_206 = arith.constant 0 : index
    %197 = vector.load %arg12[%c0_205, %c0_206] : memref<130x64xf32, #tpu.memory_space<vmem>>, vector<130x64xf32>
    %198 = arith.addf %197, %196 : vector<130x64xf32>
    %c0_207 = arith.constant 0 : index
    %c0_208 = arith.constant 0 : index
    %199 = vector.load %arg12[%c0_207, %c0_208] : memref<130x64xf32, #tpu.memory_space<vmem>>, vector<130x64xf32>
    tpu.vector_store %arg12[%c0_207, %c0_208], %198 {strides = array<i32>} : memref<130x64xf32, #tpu.memory_space<vmem>>, vector<130x64xf32>,
    %c84 = arith.constant 84 : index
    %c0_209 = arith.constant 0 : index
    %200 = vector.load %arg11[%c84, %c0_209] : memref<216x32xf32, #tpu.memory_space<vmem>>, vector<130x32xf32>
    %201 = arith.truncf %200 : vector<130x32xf32> to vector<130x32xbf16>
    %c24 = arith.constant 24 : index
    %c0_210 = arith.constant 0 : index
    %c0_211 = arith.constant 0 : index
    %202 = vector.load %arg4[%c24, %c0_210, %c0_211] : memref<27x32x64xbf16, #tpu.memory_space<vmem>>, vector<1x32x64xbf16>
    %203 = vector.shape_cast %202 : vector<1x32x64xbf16> to vector<32x64xbf16>
    %cst_212 = arith.constant dense<0.000000e+00> : vector<130x64xf32>
    %204 = tpu.matmul %201, %203, %cst_212 {dimension_numbers = #tpu.dot_dimension_numbers<[1], [0], [0], [1], [0, 0, 1, 1], [], []>} : vector<130x32xbf16>, vector<32x64xbf16>, vector<130x64xf32> -> vector<130x64xf32>
    %c0_213 = arith.constant 0 : index
    %c0_214 = arith.constant 0 : index
    %205 = vector.load %arg12[%c0_213, %c0_214] : memref<130x64xf32, #tpu.memory_space<vmem>>, vector<130x64xf32>
    %206 = arith.addf %205, %204 : vector<130x64xf32>
    %c0_215 = arith.constant 0 : index
    %c0_216 = arith.constant 0 : index
    %207 = vector.load %arg12[%c0_215, %c0_216] : memref<130x64xf32, #tpu.memory_space<vmem>>, vector<130x64xf32>
    tpu.vector_store %arg12[%c0_215, %c0_216], %206 {strides = array<i32>} : memref<130x64xf32, #tpu.memory_space<vmem>>, vector<130x64xf32>,
    %c85 = arith.constant 85 : index
    %c0_217 = arith.constant 0 : index
    %208 = vector.load %arg11[%c85, %c0_217] : memref<216x32xf32, #tpu.memory_space<vmem>>, vector<130x32xf32>
    %209 = arith.truncf %208 : vector<130x32xf32> to vector<130x32xbf16>
    %c25 = arith.constant 25 : index
    %c0_218 = arith.constant 0 : index
    %c0_219 = arith.constant 0 : index
    %210 = vector.load %arg4[%c25, %c0_218, %c0_219] : memref<27x32x64xbf16, #tpu.memory_space<vmem>>, vector<1x32x64xbf16>
    %211 = vector.shape_cast %210 : vector<1x32x64xbf16> to vector<32x64xbf16>
    %cst_220 = arith.constant dense<0.000000e+00> : vector<130x64xf32>
    %212 = tpu.matmul %209, %211, %cst_220 {dimension_numbers = #tpu.dot_dimension_numbers<[1], [0], [0], [1], [0, 0, 1, 1], [], []>} : vector<130x32xbf16>, vector<32x64xbf16>, vector<130x64xf32> -> vector<130x64xf32>
    %c0_221 = arith.constant 0 : index
    %c0_222 = arith.constant 0 : index
    %213 = vector.load %arg12[%c0_221, %c0_222] : memref<130x64xf32, #tpu.memory_space<vmem>>, vector<130x64xf32>
    %214 = arith.addf %213, %212 : vector<130x64xf32>
    %c0_223 = arith.constant 0 : index
    %c0_224 = arith.constant 0 : index
    %215 = vector.load %arg12[%c0_223, %c0_224] : memref<130x64xf32, #tpu.memory_space<vmem>>, vector<130x64xf32>
    tpu.vector_store %arg12[%c0_223, %c0_224], %214 {strides = array<i32>} : memref<130x64xf32, #tpu.memory_space<vmem>>, vector<130x64xf32>,
    %c86 = arith.constant 86 : index
    %c0_225 = arith.constant 0 : index
    %216 = vector.load %arg11[%c86, %c0_225] : memref<216x32xf32, #tpu.memory_space<vmem>>, vector<130x32xf32>
    %217 = arith.truncf %216 : vector<130x32xf32> to vector<130x32xbf16>
    %c26 = arith.constant 26 : index
    %c0_226 = arith.constant 0 : index
    %c0_227 = arith.constant 0 : index
    %218 = vector.load %arg4[%c26, %c0_226, %c0_227] : memref<27x32x64xbf16, #tpu.memory_space<vmem>>, vector<1x32x64xbf16>
    %219 = vector.shape_cast %218 : vector<1x32x64xbf16> to vector<32x64xbf16>
    %cst_228 = arith.constant dense<0.000000e+00> : vector<130x64xf32>
    %220 = tpu.matmul %217, %219, %cst_228 {dimension_numbers = #tpu.dot_dimension_numbers<[1], [0], [0], [1], [0, 0, 1, 1], [], []>} : vector<130x32xbf16>, vector<32x64xbf16>, vector<130x64xf32> -> vector<130x64xf32>
    %c0_229 = arith.constant 0 : index
    %c0_230 = arith.constant 0 : index
    %221 = vector.load %arg12[%c0_229, %c0_230] : memref<130x64xf32, #tpu.memory_space<vmem>>, vector<130x64xf32>
    %222 = arith.addf %221, %220 : vector<130x64xf32>
    %c0_231 = arith.constant 0 : index
    %c0_232 = arith.constant 0 : index
    %223 = vector.load %arg12[%c0_231, %c0_232] : memref<130x64xf32, #tpu.memory_space<vmem>>, vector<130x64xf32>
    tpu.vector_store %arg12[%c0_231, %c0_232], %222 {strides = array<i32>} : memref<130x64xf32, #tpu.memory_space<vmem>>, vector<130x64xf32>,
    %c0_233 = arith.constant 0 : index
    %c0_234 = arith.constant 0 : index
    %224 = vector.load %arg12[%c0_233, %c0_234] : memref<130x64xf32, #tpu.memory_space<vmem>>, vector<130x64xf32>
    %c0_235 = arith.constant 0 : index
    %c0_236 = arith.constant 0 : index
    %225 = vector.load %arg5[%c0_235, %c0_236] : memref<1x64xf32, #tpu.memory_space<vmem>>, vector<1x64xf32>
    %226 = vector.broadcast %225 : vector<1x64xf32> to vector<130x64xf32>
    %227 = arith.addf %224, %226 : vector<130x64xf32>
    %cst_237 = arith.constant 0.000000e+00 : f32
    %228 = vector.broadcast %cst_237 : f32 to vector<130x64xf32>
    %229 = arith.maximumf %227, %228 : vector<130x64xf32>
    %c0_238 = arith.constant 0 : index
    %c0_239 = arith.constant 0 : index
    %230 = vector.load %arg12[%c0_238, %c0_239] : memref<130x64xf32, #tpu.memory_space<vmem>>, vector<130x64xf32>
    tpu.vector_store %arg12[%c0_238, %c0_239], %229 {strides = array<i32>} : memref<130x64xf32, #tpu.memory_space<vmem>>, vector<130x64xf32>,
    %c0_240 = arith.constant 0 : index
    %c0_241 = arith.constant 0 : index
    %231 = vector.load %arg12[%c0_240, %c0_241] : memref<130x64xf32, #tpu.memory_space<vmem>>, vector<44x64xf32>
    %232 = arith.truncf %231 : vector<44x64xf32> to vector<44x64xbf16>
    %c0_242 = arith.constant 0 : index
    %c0_243 = arith.constant 0 : index
    %c0_244 = arith.constant 0 : index
    %233 = vector.load %arg6[%c0_242, %c0_243, %c0_244] : memref<27x64x128xbf16, #tpu.memory_space<vmem>>, vector<1x64x128xbf16>
    %234 = vector.shape_cast %233 : vector<1x64x128xbf16> to vector<64x128xbf16>
    %cst_245 = arith.constant dense<0.000000e+00> : vector<44x128xf32>
    %235 = tpu.matmul %232, %234, %cst_245 {dimension_numbers = #tpu.dot_dimension_numbers<[1], [0], [0], [1], [0, 0, 1, 1], [], []>} : vector<44x64xbf16>, vector<64x128xbf16>, vector<44x128xf32> -> vector<44x128xf32>
    %c0_246 = arith.constant 0 : index
    %c0_247 = arith.constant 0 : index
    %236 = vector.load %arg13[%c0_246, %c0_247] : memref<44x128xf32, #tpu.memory_space<vmem>>, vector<44x128xf32>
    tpu.vector_store %arg13[%c0_246, %c0_247], %235 {strides = array<i32>} : memref<44x128xf32, #tpu.memory_space<vmem>>, vector<44x128xf32>,
    %c1_248 = arith.constant 1 : index
    %c0_249 = arith.constant 0 : index
    %237 = vector.load %arg12[%c1_248, %c0_249] : memref<130x64xf32, #tpu.memory_space<vmem>>, vector<44x64xf32>
    %238 = arith.truncf %237 : vector<44x64xf32> to vector<44x64xbf16>
    %c1_250 = arith.constant 1 : index
    %c0_251 = arith.constant 0 : index
    %c0_252 = arith.constant 0 : index
    %239 = vector.load %arg6[%c1_250, %c0_251, %c0_252] : memref<27x64x128xbf16, #tpu.memory_space<vmem>>, vector<1x64x128xbf16>
    %240 = vector.shape_cast %239 : vector<1x64x128xbf16> to vector<64x128xbf16>
    %cst_253 = arith.constant dense<0.000000e+00> : vector<44x128xf32>
    %241 = tpu.matmul %238, %240, %cst_253 {dimension_numbers = #tpu.dot_dimension_numbers<[1], [0], [0], [1], [0, 0, 1, 1], [], []>} : vector<44x64xbf16>, vector<64x128xbf16>, vector<44x128xf32> -> vector<44x128xf32>
    %c0_254 = arith.constant 0 : index
    %c0_255 = arith.constant 0 : index
    %242 = vector.load %arg13[%c0_254, %c0_255] : memref<44x128xf32, #tpu.memory_space<vmem>>, vector<44x128xf32>
    %243 = arith.addf %242, %241 : vector<44x128xf32>
    %c0_256 = arith.constant 0 : index
    %c0_257 = arith.constant 0 : index
    %244 = vector.load %arg13[%c0_256, %c0_257] : memref<44x128xf32, #tpu.memory_space<vmem>>, vector<44x128xf32>
    tpu.vector_store %arg13[%c0_256, %c0_257], %243 {strides = array<i32>} : memref<44x128xf32, #tpu.memory_space<vmem>>, vector<44x128xf32>,
    %c2_258 = arith.constant 2 : index
    %c0_259 = arith.constant 0 : index
    %245 = vector.load %arg12[%c2_258, %c0_259] : memref<130x64xf32, #tpu.memory_space<vmem>>, vector<44x64xf32>
    %246 = arith.truncf %245 : vector<44x64xf32> to vector<44x64xbf16>
    %c2_260 = arith.constant 2 : index
    %c0_261 = arith.constant 0 : index
    %c0_262 = arith.constant 0 : index
    %247 = vector.load %arg6[%c2_260, %c0_261, %c0_262] : memref<27x64x128xbf16, #tpu.memory_space<vmem>>, vector<1x64x128xbf16>
    %248 = vector.shape_cast %247 : vector<1x64x128xbf16> to vector<64x128xbf16>
    %cst_263 = arith.constant dense<0.000000e+00> : vector<44x128xf32>
    %249 = tpu.matmul %246, %248, %cst_263 {dimension_numbers = #tpu.dot_dimension_numbers<[1], [0], [0], [1], [0, 0, 1, 1], [], []>} : vector<44x64xbf16>, vector<64x128xbf16>, vector<44x128xf32> -> vector<44x128xf32>
    %c0_264 = arith.constant 0 : index
    %c0_265 = arith.constant 0 : index
    %250 = vector.load %arg13[%c0_264, %c0_265] : memref<44x128xf32, #tpu.memory_space<vmem>>, vector<44x128xf32>
    %251 = arith.addf %250, %249 : vector<44x128xf32>
    %c0_266 = arith.constant 0 : index
    %c0_267 = arith.constant 0 : index
    %252 = vector.load %arg13[%c0_266, %c0_267] : memref<44x128xf32, #tpu.memory_space<vmem>>, vector<44x128xf32>
    tpu.vector_store %arg13[%c0_266, %c0_267], %251 {strides = array<i32>} : memref<44x128xf32, #tpu.memory_space<vmem>>, vector<44x128xf32>,
    %c6_268 = arith.constant 6 : index
    %c0_269 = arith.constant 0 : index
    %253 = vector.load %arg12[%c6_268, %c0_269] : memref<130x64xf32, #tpu.memory_space<vmem>>, vector<44x64xf32>
    %254 = arith.truncf %253 : vector<44x64xf32> to vector<44x64xbf16>
    %c3_270 = arith.constant 3 : index
    %c0_271 = arith.constant 0 : index
    %c0_272 = arith.constant 0 : index
    %255 = vector.load %arg6[%c3_270, %c0_271, %c0_272] : memref<27x64x128xbf16, #tpu.memory_space<vmem>>, vector<1x64x128xbf16>
    %256 = vector.shape_cast %255 : vector<1x64x128xbf16> to vector<64x128xbf16>
    %cst_273 = arith.constant dense<0.000000e+00> : vector<44x128xf32>
    %257 = tpu.matmul %254, %256, %cst_273 {dimension_numbers = #tpu.dot_dimension_numbers<[1], [0], [0], [1], [0, 0, 1, 1], [], []>} : vector<44x64xbf16>, vector<64x128xbf16>, vector<44x128xf32> -> vector<44x128xf32>
    %c0_274 = arith.constant 0 : index
    %c0_275 = arith.constant 0 : index
    %258 = vector.load %arg13[%c0_274, %c0_275] : memref<44x128xf32, #tpu.memory_space<vmem>>, vector<44x128xf32>
    %259 = arith.addf %258, %257 : vector<44x128xf32>
    %c0_276 = arith.constant 0 : index
    %c0_277 = arith.constant 0 : index
    %260 = vector.load %arg13[%c0_276, %c0_277] : memref<44x128xf32, #tpu.memory_space<vmem>>, vector<44x128xf32>
    tpu.vector_store %arg13[%c0_276, %c0_277], %259 {strides = array<i32>} : memref<44x128xf32, #tpu.memory_space<vmem>>, vector<44x128xf32>,
    %c7_278 = arith.constant 7 : index
    %c0_279 = arith.constant 0 : index
    %261 = vector.load %arg12[%c7_278, %c0_279] : memref<130x64xf32, #tpu.memory_space<vmem>>, vector<44x64xf32>
    %262 = arith.truncf %261 : vector<44x64xf32> to vector<44x64xbf16>
    %c4_280 = arith.constant 4 : index
    %c0_281 = arith.constant 0 : index
    %c0_282 = arith.constant 0 : index
    %263 = vector.load %arg6[%c4_280, %c0_281, %c0_282] : memref<27x64x128xbf16, #tpu.memory_space<vmem>>, vector<1x64x128xbf16>
    %264 = vector.shape_cast %263 : vector<1x64x128xbf16> to vector<64x128xbf16>
    %cst_283 = arith.constant dense<0.000000e+00> : vector<44x128xf32>
    %265 = tpu.matmul %262, %264, %cst_283 {dimension_numbers = #tpu.dot_dimension_numbers<[1], [0], [0], [1], [0, 0, 1, 1], [], []>} : vector<44x64xbf16>, vector<64x128xbf16>, vector<44x128xf32> -> vector<44x128xf32>
    %c0_284 = arith.constant 0 : index
    %c0_285 = arith.constant 0 : index
    %266 = vector.load %arg13[%c0_284, %c0_285] : memref<44x128xf32, #tpu.memory_space<vmem>>, vector<44x128xf32>
    %267 = arith.addf %266, %265 : vector<44x128xf32>
    %c0_286 = arith.constant 0 : index
    %c0_287 = arith.constant 0 : index
    %268 = vector.load %arg13[%c0_286, %c0_287] : memref<44x128xf32, #tpu.memory_space<vmem>>, vector<44x128xf32>
    tpu.vector_store %arg13[%c0_286, %c0_287], %267 {strides = array<i32>} : memref<44x128xf32, #tpu.memory_space<vmem>>, vector<44x128xf32>,
    %c8_288 = arith.constant 8 : index
    %c0_289 = arith.constant 0 : index
    %269 = vector.load %arg12[%c8_288, %c0_289] : memref<130x64xf32, #tpu.memory_space<vmem>>, vector<44x64xf32>
    %270 = arith.truncf %269 : vector<44x64xf32> to vector<44x64xbf16>
    %c5_290 = arith.constant 5 : index
    %c0_291 = arith.constant 0 : index
    %c0_292 = arith.constant 0 : index
    %271 = vector.load %arg6[%c5_290, %c0_291, %c0_292] : memref<27x64x128xbf16, #tpu.memory_space<vmem>>, vector<1x64x128xbf16>
    %272 = vector.shape_cast %271 : vector<1x64x128xbf16> to vector<64x128xbf16>
    %cst_293 = arith.constant dense<0.000000e+00> : vector<44x128xf32>
    %273 = tpu.matmul %270, %272, %cst_293 {dimension_numbers = #tpu.dot_dimension_numbers<[1], [0], [0], [1], [0, 0, 1, 1], [], []>} : vector<44x64xbf16>, vector<64x128xbf16>, vector<44x128xf32> -> vector<44x128xf32>
    %c0_294 = arith.constant 0 : index
    %c0_295 = arith.constant 0 : index
    %274 = vector.load %arg13[%c0_294, %c0_295] : memref<44x128xf32, #tpu.memory_space<vmem>>, vector<44x128xf32>
    %275 = arith.addf %274, %273 : vector<44x128xf32>
    %c0_296 = arith.constant 0 : index
    %c0_297 = arith.constant 0 : index
    %276 = vector.load %arg13[%c0_296, %c0_297] : memref<44x128xf32, #tpu.memory_space<vmem>>, vector<44x128xf32>
    tpu.vector_store %arg13[%c0_296, %c0_297], %275 {strides = array<i32>} : memref<44x128xf32, #tpu.memory_space<vmem>>, vector<44x128xf32>,
    %c12_298 = arith.constant 12 : index
    %c0_299 = arith.constant 0 : index
    %277 = vector.load %arg12[%c12_298, %c0_299] : memref<130x64xf32, #tpu.memory_space<vmem>>, vector<44x64xf32>
    %278 = arith.truncf %277 : vector<44x64xf32> to vector<44x64xbf16>
    %c6_300 = arith.constant 6 : index
    %c0_301 = arith.constant 0 : index
    %c0_302 = arith.constant 0 : index
    %279 = vector.load %arg6[%c6_300, %c0_301, %c0_302] : memref<27x64x128xbf16, #tpu.memory_space<vmem>>, vector<1x64x128xbf16>
    %280 = vector.shape_cast %279 : vector<1x64x128xbf16> to vector<64x128xbf16>
    %cst_303 = arith.constant dense<0.000000e+00> : vector<44x128xf32>
    %281 = tpu.matmul %278, %280, %cst_303 {dimension_numbers = #tpu.dot_dimension_numbers<[1], [0], [0], [1], [0, 0, 1, 1], [], []>} : vector<44x64xbf16>, vector<64x128xbf16>, vector<44x128xf32> -> vector<44x128xf32>
    %c0_304 = arith.constant 0 : index
    %c0_305 = arith.constant 0 : index
    %282 = vector.load %arg13[%c0_304, %c0_305] : memref<44x128xf32, #tpu.memory_space<vmem>>, vector<44x128xf32>
    %283 = arith.addf %282, %281 : vector<44x128xf32>
    %c0_306 = arith.constant 0 : index
    %c0_307 = arith.constant 0 : index
    %284 = vector.load %arg13[%c0_306, %c0_307] : memref<44x128xf32, #tpu.memory_space<vmem>>, vector<44x128xf32>
    tpu.vector_store %arg13[%c0_306, %c0_307], %283 {strides = array<i32>} : memref<44x128xf32, #tpu.memory_space<vmem>>, vector<44x128xf32>,
    %c13_308 = arith.constant 13 : index
    %c0_309 = arith.constant 0 : index
    %285 = vector.load %arg12[%c13_308, %c0_309] : memref<130x64xf32, #tpu.memory_space<vmem>>, vector<44x64xf32>
    %286 = arith.truncf %285 : vector<44x64xf32> to vector<44x64xbf16>
    %c7_310 = arith.constant 7 : index
    %c0_311 = arith.constant 0 : index
    %c0_312 = arith.constant 0 : index
    %287 = vector.load %arg6[%c7_310, %c0_311, %c0_312] : memref<27x64x128xbf16, #tpu.memory_space<vmem>>, vector<1x64x128xbf16>
    %288 = vector.shape_cast %287 : vector<1x64x128xbf16> to vector<64x128xbf16>
    %cst_313 = arith.constant dense<0.000000e+00> : vector<44x128xf32>
    %289 = tpu.matmul %286, %288, %cst_313 {dimension_numbers = #tpu.dot_dimension_numbers<[1], [0], [0], [1], [0, 0, 1, 1], [], []>} : vector<44x64xbf16>, vector<64x128xbf16>, vector<44x128xf32> -> vector<44x128xf32>
    %c0_314 = arith.constant 0 : index
    %c0_315 = arith.constant 0 : index
    %290 = vector.load %arg13[%c0_314, %c0_315] : memref<44x128xf32, #tpu.memory_space<vmem>>, vector<44x128xf32>
    %291 = arith.addf %290, %289 : vector<44x128xf32>
    %c0_316 = arith.constant 0 : index
    %c0_317 = arith.constant 0 : index
    %292 = vector.load %arg13[%c0_316, %c0_317] : memref<44x128xf32, #tpu.memory_space<vmem>>, vector<44x128xf32>
    tpu.vector_store %arg13[%c0_316, %c0_317], %291 {strides = array<i32>} : memref<44x128xf32, #tpu.memory_space<vmem>>, vector<44x128xf32>,
    %c14_318 = arith.constant 14 : index
    %c0_319 = arith.constant 0 : index
    %293 = vector.load %arg12[%c14_318, %c0_319] : memref<130x64xf32, #tpu.memory_space<vmem>>, vector<44x64xf32>
    %294 = arith.truncf %293 : vector<44x64xf32> to vector<44x64xbf16>
    %c8_320 = arith.constant 8 : index
    %c0_321 = arith.constant 0 : index
    %c0_322 = arith.constant 0 : index
    %295 = vector.load %arg6[%c8_320, %c0_321, %c0_322] : memref<27x64x128xbf16, #tpu.memory_space<vmem>>, vector<1x64x128xbf16>
    %296 = vector.shape_cast %295 : vector<1x64x128xbf16> to vector<64x128xbf16>
    %cst_323 = arith.constant dense<0.000000e+00> : vector<44x128xf32>
    %297 = tpu.matmul %294, %296, %cst_323 {dimension_numbers = #tpu.dot_dimension_numbers<[1], [0], [0], [1], [0, 0, 1, 1], [], []>} : vector<44x64xbf16>, vector<64x128xbf16>, vector<44x128xf32> -> vector<44x128xf32>
    %c0_324 = arith.constant 0 : index
    %c0_325 = arith.constant 0 : index
    %298 = vector.load %arg13[%c0_324, %c0_325] : memref<44x128xf32, #tpu.memory_space<vmem>>, vector<44x128xf32>
    %299 = arith.addf %298, %297 : vector<44x128xf32>
    %c0_326 = arith.constant 0 : index
    %c0_327 = arith.constant 0 : index
    %300 = vector.load %arg13[%c0_326, %c0_327] : memref<44x128xf32, #tpu.memory_space<vmem>>, vector<44x128xf32>
    tpu.vector_store %arg13[%c0_326, %c0_327], %299 {strides = array<i32>} : memref<44x128xf32, #tpu.memory_space<vmem>>, vector<44x128xf32>,
    %c36_328 = arith.constant 36 : index
    %c0_329 = arith.constant 0 : index
    %301 = vector.load %arg12[%c36_328, %c0_329] : memref<130x64xf32, #tpu.memory_space<vmem>>, vector<44x64xf32>
    %302 = arith.truncf %301 : vector<44x64xf32> to vector<44x64xbf16>
    %c9_330 = arith.constant 9 : index
    %c0_331 = arith.constant 0 : index
    %c0_332 = arith.constant 0 : index
    %303 = vector.load %arg6[%c9_330, %c0_331, %c0_332] : memref<27x64x128xbf16, #tpu.memory_space<vmem>>, vector<1x64x128xbf16>
    %304 = vector.shape_cast %303 : vector<1x64x128xbf16> to vector<64x128xbf16>
    %cst_333 = arith.constant dense<0.000000e+00> : vector<44x128xf32>
    %305 = tpu.matmul %302, %304, %cst_333 {dimension_numbers = #tpu.dot_dimension_numbers<[1], [0], [0], [1], [0, 0, 1, 1], [], []>} : vector<44x64xbf16>, vector<64x128xbf16>, vector<44x128xf32> -> vector<44x128xf32>
    %c0_334 = arith.constant 0 : index
    %c0_335 = arith.constant 0 : index
    %306 = vector.load %arg13[%c0_334, %c0_335] : memref<44x128xf32, #tpu.memory_space<vmem>>, vector<44x128xf32>
    %307 = arith.addf %306, %305 : vector<44x128xf32>
    %c0_336 = arith.constant 0 : index
    %c0_337 = arith.constant 0 : index
    %308 = vector.load %arg13[%c0_336, %c0_337] : memref<44x128xf32, #tpu.memory_space<vmem>>, vector<44x128xf32>
    tpu.vector_store %arg13[%c0_336, %c0_337], %307 {strides = array<i32>} : memref<44x128xf32, #tpu.memory_space<vmem>>, vector<44x128xf32>,
    %c37_338 = arith.constant 37 : index
    %c0_339 = arith.constant 0 : index
    %309 = vector.load %arg12[%c37_338, %c0_339] : memref<130x64xf32, #tpu.memory_space<vmem>>, vector<44x64xf32>
    %310 = arith.truncf %309 : vector<44x64xf32> to vector<44x64xbf16>
    %c10_340 = arith.constant 10 : index
    %c0_341 = arith.constant 0 : index
    %c0_342 = arith.constant 0 : index
    %311 = vector.load %arg6[%c10_340, %c0_341, %c0_342] : memref<27x64x128xbf16, #tpu.memory_space<vmem>>, vector<1x64x128xbf16>
    %312 = vector.shape_cast %311 : vector<1x64x128xbf16> to vector<64x128xbf16>
    %cst_343 = arith.constant dense<0.000000e+00> : vector<44x128xf32>
    %313 = tpu.matmul %310, %312, %cst_343 {dimension_numbers = #tpu.dot_dimension_numbers<[1], [0], [0], [1], [0, 0, 1, 1], [], []>} : vector<44x64xbf16>, vector<64x128xbf16>, vector<44x128xf32> -> vector<44x128xf32>
    %c0_344 = arith.constant 0 : index
    %c0_345 = arith.constant 0 : index
    %314 = vector.load %arg13[%c0_344, %c0_345] : memref<44x128xf32, #tpu.memory_space<vmem>>, vector<44x128xf32>
    %315 = arith.addf %314, %313 : vector<44x128xf32>
    %c0_346 = arith.constant 0 : index
    %c0_347 = arith.constant 0 : index
    %316 = vector.load %arg13[%c0_346, %c0_347] : memref<44x128xf32, #tpu.memory_space<vmem>>, vector<44x128xf32>
    tpu.vector_store %arg13[%c0_346, %c0_347], %315 {strides = array<i32>} : memref<44x128xf32, #tpu.memory_space<vmem>>, vector<44x128xf32>,
    %c38_348 = arith.constant 38 : index
    %c0_349 = arith.constant 0 : index
    %317 = vector.load %arg12[%c38_348, %c0_349] : memref<130x64xf32, #tpu.memory_space<vmem>>, vector<44x64xf32>
    %318 = arith.truncf %317 : vector<44x64xf32> to vector<44x64xbf16>
    %c11_350 = arith.constant 11 : index
    %c0_351 = arith.constant 0 : index
    %c0_352 = arith.constant 0 : index
    %319 = vector.load %arg6[%c11_350, %c0_351, %c0_352] : memref<27x64x128xbf16, #tpu.memory_space<vmem>>, vector<1x64x128xbf16>
    %320 = vector.shape_cast %319 : vector<1x64x128xbf16> to vector<64x128xbf16>
    %cst_353 = arith.constant dense<0.000000e+00> : vector<44x128xf32>
    %321 = tpu.matmul %318, %320, %cst_353 {dimension_numbers = #tpu.dot_dimension_numbers<[1], [0], [0], [1], [0, 0, 1, 1], [], []>} : vector<44x64xbf16>, vector<64x128xbf16>, vector<44x128xf32> -> vector<44x128xf32>
    %c0_354 = arith.constant 0 : index
    %c0_355 = arith.constant 0 : index
    %322 = vector.load %arg13[%c0_354, %c0_355] : memref<44x128xf32, #tpu.memory_space<vmem>>, vector<44x128xf32>
    %323 = arith.addf %322, %321 : vector<44x128xf32>
    %c0_356 = arith.constant 0 : index
    %c0_357 = arith.constant 0 : index
    %324 = vector.load %arg13[%c0_356, %c0_357] : memref<44x128xf32, #tpu.memory_space<vmem>>, vector<44x128xf32>
    tpu.vector_store %arg13[%c0_356, %c0_357], %323 {strides = array<i32>} : memref<44x128xf32, #tpu.memory_space<vmem>>, vector<44x128xf32>,
    %c42_358 = arith.constant 42 : index
    %c0_359 = arith.constant 0 : index
    %325 = vector.load %arg12[%c42_358, %c0_359] : memref<130x64xf32, #tpu.memory_space<vmem>>, vector<44x64xf32>
    %326 = arith.truncf %325 : vector<44x64xf32> to vector<44x64xbf16>
    %c12_360 = arith.constant 12 : index
    %c0_361 = arith.constant 0 : index
    %c0_362 = arith.constant 0 : index
    %327 = vector.load %arg6[%c12_360, %c0_361, %c0_362] : memref<27x64x128xbf16, #tpu.memory_space<vmem>>, vector<1x64x128xbf16>
    %328 = vector.shape_cast %327 : vector<1x64x128xbf16> to vector<64x128xbf16>
    %cst_363 = arith.constant dense<0.000000e+00> : vector<44x128xf32>
    %329 = tpu.matmul %326, %328, %cst_363 {dimension_numbers = #tpu.dot_dimension_numbers<[1], [0], [0], [1], [0, 0, 1, 1], [], []>} : vector<44x64xbf16>, vector<64x128xbf16>, vector<44x128xf32> -> vector<44x128xf32>
    %c0_364 = arith.constant 0 : index
    %c0_365 = arith.constant 0 : index
    %330 = vector.load %arg13[%c0_364, %c0_365] : memref<44x128xf32, #tpu.memory_space<vmem>>, vector<44x128xf32>
    %331 = arith.addf %330, %329 : vector<44x128xf32>
    %c0_366 = arith.constant 0 : index
    %c0_367 = arith.constant 0 : index
    %332 = vector.load %arg13[%c0_366, %c0_367] : memref<44x128xf32, #tpu.memory_space<vmem>>, vector<44x128xf32>
    tpu.vector_store %arg13[%c0_366, %c0_367], %331 {strides = array<i32>} : memref<44x128xf32, #tpu.memory_space<vmem>>, vector<44x128xf32>,
    %c43_368 = arith.constant 43 : index
    %c0_369 = arith.constant 0 : index
    %333 = vector.load %arg12[%c43_368, %c0_369] : memref<130x64xf32, #tpu.memory_space<vmem>>, vector<44x64xf32>
    %334 = arith.truncf %333 : vector<44x64xf32> to vector<44x64xbf16>
    %c13_370 = arith.constant 13 : index
    %c0_371 = arith.constant 0 : index
    %c0_372 = arith.constant 0 : index
    %335 = vector.load %arg6[%c13_370, %c0_371, %c0_372] : memref<27x64x128xbf16, #tpu.memory_space<vmem>>, vector<1x64x128xbf16>
    %336 = vector.shape_cast %335 : vector<1x64x128xbf16> to vector<64x128xbf16>
    %cst_373 = arith.constant dense<0.000000e+00> : vector<44x128xf32>
    %337 = tpu.matmul %334, %336, %cst_373 {dimension_numbers = #tpu.dot_dimension_numbers<[1], [0], [0], [1], [0, 0, 1, 1], [], []>} : vector<44x64xbf16>, vector<64x128xbf16>, vector<44x128xf32> -> vector<44x128xf32>
    %c0_374 = arith.constant 0 : index
    %c0_375 = arith.constant 0 : index
    %338 = vector.load %arg13[%c0_374, %c0_375] : memref<44x128xf32, #tpu.memory_space<vmem>>, vector<44x128xf32>
    %339 = arith.addf %338, %337 : vector<44x128xf32>
    %c0_376 = arith.constant 0 : index
    %c0_377 = arith.constant 0 : index
    %340 = vector.load %arg13[%c0_376, %c0_377] : memref<44x128xf32, #tpu.memory_space<vmem>>, vector<44x128xf32>
    tpu.vector_store %arg13[%c0_376, %c0_377], %339 {strides = array<i32>} : memref<44x128xf32, #tpu.memory_space<vmem>>, vector<44x128xf32>,
    %c44_378 = arith.constant 44 : index
    %c0_379 = arith.constant 0 : index
    %341 = vector.load %arg12[%c44_378, %c0_379] : memref<130x64xf32, #tpu.memory_space<vmem>>, vector<44x64xf32>
    %342 = arith.truncf %341 : vector<44x64xf32> to vector<44x64xbf16>
    %c14_380 = arith.constant 14 : index
    %c0_381 = arith.constant 0 : index
    %c0_382 = arith.constant 0 : index
    %343 = vector.load %arg6[%c14_380, %c0_381, %c0_382] : memref<27x64x128xbf16, #tpu.memory_space<vmem>>, vector<1x64x128xbf16>
    %344 = vector.shape_cast %343 : vector<1x64x128xbf16> to vector<64x128xbf16>
    %cst_383 = arith.constant dense<0.000000e+00> : vector<44x128xf32>
    %345 = tpu.matmul %342, %344, %cst_383 {dimension_numbers = #tpu.dot_dimension_numbers<[1], [0], [0], [1], [0, 0, 1, 1], [], []>} : vector<44x64xbf16>, vector<64x128xbf16>, vector<44x128xf32> -> vector<44x128xf32>
    %c0_384 = arith.constant 0 : index
    %c0_385 = arith.constant 0 : index
    %346 = vector.load %arg13[%c0_384, %c0_385] : memref<44x128xf32, #tpu.memory_space<vmem>>, vector<44x128xf32>
    %347 = arith.addf %346, %345 : vector<44x128xf32>
    %c0_386 = arith.constant 0 : index
    %c0_387 = arith.constant 0 : index
    %348 = vector.load %arg13[%c0_386, %c0_387] : memref<44x128xf32, #tpu.memory_space<vmem>>, vector<44x128xf32>
    tpu.vector_store %arg13[%c0_386, %c0_387], %347 {strides = array<i32>} : memref<44x128xf32, #tpu.memory_space<vmem>>, vector<44x128xf32>,
    %c48_388 = arith.constant 48 : index
    %c0_389 = arith.constant 0 : index
    %349 = vector.load %arg12[%c48_388, %c0_389] : memref<130x64xf32, #tpu.memory_space<vmem>>, vector<44x64xf32>
    %350 = arith.truncf %349 : vector<44x64xf32> to vector<44x64xbf16>
    %c15_390 = arith.constant 15 : index
    %c0_391 = arith.constant 0 : index
    %c0_392 = arith.constant 0 : index
    %351 = vector.load %arg6[%c15_390, %c0_391, %c0_392] : memref<27x64x128xbf16, #tpu.memory_space<vmem>>, vector<1x64x128xbf16>
    %352 = vector.shape_cast %351 : vector<1x64x128xbf16> to vector<64x128xbf16>
    %cst_393 = arith.constant dense<0.000000e+00> : vector<44x128xf32>
    %353 = tpu.matmul %350, %352, %cst_393 {dimension_numbers = #tpu.dot_dimension_numbers<[1], [0], [0], [1], [0, 0, 1, 1], [], []>} : vector<44x64xbf16>, vector<64x128xbf16>, vector<44x128xf32> -> vector<44x128xf32>
    %c0_394 = arith.constant 0 : index
    %c0_395 = arith.constant 0 : index
    %354 = vector.load %arg13[%c0_394, %c0_395] : memref<44x128xf32, #tpu.memory_space<vmem>>, vector<44x128xf32>
    %355 = arith.addf %354, %353 : vector<44x128xf32>
    %c0_396 = arith.constant 0 : index
    %c0_397 = arith.constant 0 : index
    %356 = vector.load %arg13[%c0_396, %c0_397] : memref<44x128xf32, #tpu.memory_space<vmem>>, vector<44x128xf32>
    tpu.vector_store %arg13[%c0_396, %c0_397], %355 {strides = array<i32>} : memref<44x128xf32, #tpu.memory_space<vmem>>, vector<44x128xf32>,
    %c49_398 = arith.constant 49 : index
    %c0_399 = arith.constant 0 : index
    %357 = vector.load %arg12[%c49_398, %c0_399] : memref<130x64xf32, #tpu.memory_space<vmem>>, vector<44x64xf32>
    %358 = arith.truncf %357 : vector<44x64xf32> to vector<44x64xbf16>
    %c16_400 = arith.constant 16 : index
    %c0_401 = arith.constant 0 : index
    %c0_402 = arith.constant 0 : index
    %359 = vector.load %arg6[%c16_400, %c0_401, %c0_402] : memref<27x64x128xbf16, #tpu.memory_space<vmem>>, vector<1x64x128xbf16>
    %360 = vector.shape_cast %359 : vector<1x64x128xbf16> to vector<64x128xbf16>
    %cst_403 = arith.constant dense<0.000000e+00> : vector<44x128xf32>
    %361 = tpu.matmul %358, %360, %cst_403 {dimension_numbers = #tpu.dot_dimension_numbers<[1], [0], [0], [1], [0, 0, 1, 1], [], []>} : vector<44x64xbf16>, vector<64x128xbf16>, vector<44x128xf32> -> vector<44x128xf32>
    %c0_404 = arith.constant 0 : index
    %c0_405 = arith.constant 0 : index
    %362 = vector.load %arg13[%c0_404, %c0_405] : memref<44x128xf32, #tpu.memory_space<vmem>>, vector<44x128xf32>
    %363 = arith.addf %362, %361 : vector<44x128xf32>
    %c0_406 = arith.constant 0 : index
    %c0_407 = arith.constant 0 : index
    %364 = vector.load %arg13[%c0_406, %c0_407] : memref<44x128xf32, #tpu.memory_space<vmem>>, vector<44x128xf32>
    tpu.vector_store %arg13[%c0_406, %c0_407], %363 {strides = array<i32>} : memref<44x128xf32, #tpu.memory_space<vmem>>, vector<44x128xf32>,
    %c50_408 = arith.constant 50 : index
    %c0_409 = arith.constant 0 : index
    %365 = vector.load %arg12[%c50_408, %c0_409] : memref<130x64xf32, #tpu.memory_space<vmem>>, vector<44x64xf32>
    %366 = arith.truncf %365 : vector<44x64xf32> to vector<44x64xbf16>
    %c17_410 = arith.constant 17 : index
    %c0_411 = arith.constant 0 : index
    %c0_412 = arith.constant 0 : index
    %367 = vector.load %arg6[%c17_410, %c0_411, %c0_412] : memref<27x64x128xbf16, #tpu.memory_space<vmem>>, vector<1x64x128xbf16>
    %368 = vector.shape_cast %367 : vector<1x64x128xbf16> to vector<64x128xbf16>
    %cst_413 = arith.constant dense<0.000000e+00> : vector<44x128xf32>
    %369 = tpu.matmul %366, %368, %cst_413 {dimension_numbers = #tpu.dot_dimension_numbers<[1], [0], [0], [1], [0, 0, 1, 1], [], []>} : vector<44x64xbf16>, vector<64x128xbf16>, vector<44x128xf32> -> vector<44x128xf32>
    %c0_414 = arith.constant 0 : index
    %c0_415 = arith.constant 0 : index
    %370 = vector.load %arg13[%c0_414, %c0_415] : memref<44x128xf32, #tpu.memory_space<vmem>>, vector<44x128xf32>
    %371 = arith.addf %370, %369 : vector<44x128xf32>
    %c0_416 = arith.constant 0 : index
    %c0_417 = arith.constant 0 : index
    %372 = vector.load %arg13[%c0_416, %c0_417] : memref<44x128xf32, #tpu.memory_space<vmem>>, vector<44x128xf32>
    tpu.vector_store %arg13[%c0_416, %c0_417], %371 {strides = array<i32>} : memref<44x128xf32, #tpu.memory_space<vmem>>, vector<44x128xf32>,
    %c72_418 = arith.constant 72 : index
    %c0_419 = arith.constant 0 : index
    %373 = vector.load %arg12[%c72_418, %c0_419] : memref<130x64xf32, #tpu.memory_space<vmem>>, vector<44x64xf32>
    %374 = arith.truncf %373 : vector<44x64xf32> to vector<44x64xbf16>
    %c18_420 = arith.constant 18 : index
    %c0_421 = arith.constant 0 : index
    %c0_422 = arith.constant 0 : index
    %375 = vector.load %arg6[%c18_420, %c0_421, %c0_422] : memref<27x64x128xbf16, #tpu.memory_space<vmem>>, vector<1x64x128xbf16>
    %376 = vector.shape_cast %375 : vector<1x64x128xbf16> to vector<64x128xbf16>
    %cst_423 = arith.constant dense<0.000000e+00> : vector<44x128xf32>
    %377 = tpu.matmul %374, %376, %cst_423 {dimension_numbers = #tpu.dot_dimension_numbers<[1], [0], [0], [1], [0, 0, 1, 1], [], []>} : vector<44x64xbf16>, vector<64x128xbf16>, vector<44x128xf32> -> vector<44x128xf32>
    %c0_424 = arith.constant 0 : index
    %c0_425 = arith.constant 0 : index
    %378 = vector.load %arg13[%c0_424, %c0_425] : memref<44x128xf32, #tpu.memory_space<vmem>>, vector<44x128xf32>
    %379 = arith.addf %378, %377 : vector<44x128xf32>
    %c0_426 = arith.constant 0 : index
    %c0_427 = arith.constant 0 : index
    %380 = vector.load %arg13[%c0_426, %c0_427] : memref<44x128xf32, #tpu.memory_space<vmem>>, vector<44x128xf32>
    tpu.vector_store %arg13[%c0_426, %c0_427], %379 {strides = array<i32>} : memref<44x128xf32, #tpu.memory_space<vmem>>, vector<44x128xf32>,
    %c73_428 = arith.constant 73 : index
    %c0_429 = arith.constant 0 : index
    %381 = vector.load %arg12[%c73_428, %c0_429] : memref<130x64xf32, #tpu.memory_space<vmem>>, vector<44x64xf32>
    %382 = arith.truncf %381 : vector<44x64xf32> to vector<44x64xbf16>
    %c19_430 = arith.constant 19 : index
    %c0_431 = arith.constant 0 : index
    %c0_432 = arith.constant 0 : index
    %383 = vector.load %arg6[%c19_430, %c0_431, %c0_432] : memref<27x64x128xbf16, #tpu.memory_space<vmem>>, vector<1x64x128xbf16>
    %384 = vector.shape_cast %383 : vector<1x64x128xbf16> to vector<64x128xbf16>
    %cst_433 = arith.constant dense<0.000000e+00> : vector<44x128xf32>
    %385 = tpu.matmul %382, %384, %cst_433 {dimension_numbers = #tpu.dot_dimension_numbers<[1], [0], [0], [1], [0, 0, 1, 1], [], []>} : vector<44x64xbf16>, vector<64x128xbf16>, vector<44x128xf32> -> vector<44x128xf32>
    %c0_434 = arith.constant 0 : index
    %c0_435 = arith.constant 0 : index
    %386 = vector.load %arg13[%c0_434, %c0_435] : memref<44x128xf32, #tpu.memory_space<vmem>>, vector<44x128xf32>
    %387 = arith.addf %386, %385 : vector<44x128xf32>
    %c0_436 = arith.constant 0 : index
    %c0_437 = arith.constant 0 : index
    %388 = vector.load %arg13[%c0_436, %c0_437] : memref<44x128xf32, #tpu.memory_space<vmem>>, vector<44x128xf32>
    tpu.vector_store %arg13[%c0_436, %c0_437], %387 {strides = array<i32>} : memref<44x128xf32, #tpu.memory_space<vmem>>, vector<44x128xf32>,
    %c74_438 = arith.constant 74 : index
    %c0_439 = arith.constant 0 : index
    %389 = vector.load %arg12[%c74_438, %c0_439] : memref<130x64xf32, #tpu.memory_space<vmem>>, vector<44x64xf32>
    %390 = arith.truncf %389 : vector<44x64xf32> to vector<44x64xbf16>
    %c20_440 = arith.constant 20 : index
    %c0_441 = arith.constant 0 : index
    %c0_442 = arith.constant 0 : index
    %391 = vector.load %arg6[%c20_440, %c0_441, %c0_442] : memref<27x64x128xbf16, #tpu.memory_space<vmem>>, vector<1x64x128xbf16>
    %392 = vector.shape_cast %391 : vector<1x64x128xbf16> to vector<64x128xbf16>
    %cst_443 = arith.constant dense<0.000000e+00> : vector<44x128xf32>
    %393 = tpu.matmul %390, %392, %cst_443 {dimension_numbers = #tpu.dot_dimension_numbers<[1], [0], [0], [1], [0, 0, 1, 1], [], []>} : vector<44x64xbf16>, vector<64x128xbf16>, vector<44x128xf32> -> vector<44x128xf32>
    %c0_444 = arith.constant 0 : index
    %c0_445 = arith.constant 0 : index
    %394 = vector.load %arg13[%c0_444, %c0_445] : memref<44x128xf32, #tpu.memory_space<vmem>>, vector<44x128xf32>
    %395 = arith.addf %394, %393 : vector<44x128xf32>
    %c0_446 = arith.constant 0 : index
    %c0_447 = arith.constant 0 : index
    %396 = vector.load %arg13[%c0_446, %c0_447] : memref<44x128xf32, #tpu.memory_space<vmem>>, vector<44x128xf32>
    tpu.vector_store %arg13[%c0_446, %c0_447], %395 {strides = array<i32>} : memref<44x128xf32, #tpu.memory_space<vmem>>, vector<44x128xf32>,
    %c78_448 = arith.constant 78 : index
    %c0_449 = arith.constant 0 : index
    %397 = vector.load %arg12[%c78_448, %c0_449] : memref<130x64xf32, #tpu.memory_space<vmem>>, vector<44x64xf32>
    %398 = arith.truncf %397 : vector<44x64xf32> to vector<44x64xbf16>
    %c21_450 = arith.constant 21 : index
    %c0_451 = arith.constant 0 : index
    %c0_452 = arith.constant 0 : index
    %399 = vector.load %arg6[%c21_450, %c0_451, %c0_452] : memref<27x64x128xbf16, #tpu.memory_space<vmem>>, vector<1x64x128xbf16>
    %400 = vector.shape_cast %399 : vector<1x64x128xbf16> to vector<64x128xbf16>
    %cst_453 = arith.constant dense<0.000000e+00> : vector<44x128xf32>
    %401 = tpu.matmul %398, %400, %cst_453 {dimension_numbers = #tpu.dot_dimension_numbers<[1], [0], [0], [1], [0, 0, 1, 1], [], []>} : vector<44x64xbf16>, vector<64x128xbf16>, vector<44x128xf32> -> vector<44x128xf32>
    %c0_454 = arith.constant 0 : index
    %c0_455 = arith.constant 0 : index
    %402 = vector.load %arg13[%c0_454, %c0_455] : memref<44x128xf32, #tpu.memory_space<vmem>>, vector<44x128xf32>
    %403 = arith.addf %402, %401 : vector<44x128xf32>
    %c0_456 = arith.constant 0 : index
    %c0_457 = arith.constant 0 : index
    %404 = vector.load %arg13[%c0_456, %c0_457] : memref<44x128xf32, #tpu.memory_space<vmem>>, vector<44x128xf32>
    tpu.vector_store %arg13[%c0_456, %c0_457], %403 {strides = array<i32>} : memref<44x128xf32, #tpu.memory_space<vmem>>, vector<44x128xf32>,
    %c79_458 = arith.constant 79 : index
    %c0_459 = arith.constant 0 : index
    %405 = vector.load %arg12[%c79_458, %c0_459] : memref<130x64xf32, #tpu.memory_space<vmem>>, vector<44x64xf32>
    %406 = arith.truncf %405 : vector<44x64xf32> to vector<44x64xbf16>
    %c22_460 = arith.constant 22 : index
    %c0_461 = arith.constant 0 : index
    %c0_462 = arith.constant 0 : index
    %407 = vector.load %arg6[%c22_460, %c0_461, %c0_462] : memref<27x64x128xbf16, #tpu.memory_space<vmem>>, vector<1x64x128xbf16>
    %408 = vector.shape_cast %407 : vector<1x64x128xbf16> to vector<64x128xbf16>
    %cst_463 = arith.constant dense<0.000000e+00> : vector<44x128xf32>
    %409 = tpu.matmul %406, %408, %cst_463 {dimension_numbers = #tpu.dot_dimension_numbers<[1], [0], [0], [1], [0, 0, 1, 1], [], []>} : vector<44x64xbf16>, vector<64x128xbf16>, vector<44x128xf32> -> vector<44x128xf32>
    %c0_464 = arith.constant 0 : index
    %c0_465 = arith.constant 0 : index
    %410 = vector.load %arg13[%c0_464, %c0_465] : memref<44x128xf32, #tpu.memory_space<vmem>>, vector<44x128xf32>
    %411 = arith.addf %410, %409 : vector<44x128xf32>
    %c0_466 = arith.constant 0 : index
    %c0_467 = arith.constant 0 : index
    %412 = vector.load %arg13[%c0_466, %c0_467] : memref<44x128xf32, #tpu.memory_space<vmem>>, vector<44x128xf32>
    tpu.vector_store %arg13[%c0_466, %c0_467], %411 {strides = array<i32>} : memref<44x128xf32, #tpu.memory_space<vmem>>, vector<44x128xf32>,
    %c80_468 = arith.constant 80 : index
    %c0_469 = arith.constant 0 : index
    %413 = vector.load %arg12[%c80_468, %c0_469] : memref<130x64xf32, #tpu.memory_space<vmem>>, vector<44x64xf32>
    %414 = arith.truncf %413 : vector<44x64xf32> to vector<44x64xbf16>
    %c23_470 = arith.constant 23 : index
    %c0_471 = arith.constant 0 : index
    %c0_472 = arith.constant 0 : index
    %415 = vector.load %arg6[%c23_470, %c0_471, %c0_472] : memref<27x64x128xbf16, #tpu.memory_space<vmem>>, vector<1x64x128xbf16>
    %416 = vector.shape_cast %415 : vector<1x64x128xbf16> to vector<64x128xbf16>
    %cst_473 = arith.constant dense<0.000000e+00> : vector<44x128xf32>
    %417 = tpu.matmul %414, %416, %cst_473 {dimension_numbers = #tpu.dot_dimension_numbers<[1], [0], [0], [1], [0, 0, 1, 1], [], []>} : vector<44x64xbf16>, vector<64x128xbf16>, vector<44x128xf32> -> vector<44x128xf32>
    %c0_474 = arith.constant 0 : index
    %c0_475 = arith.constant 0 : index
    %418 = vector.load %arg13[%c0_474, %c0_475] : memref<44x128xf32, #tpu.memory_space<vmem>>, vector<44x128xf32>
    %419 = arith.addf %418, %417 : vector<44x128xf32>
    %c0_476 = arith.constant 0 : index
    %c0_477 = arith.constant 0 : index
    %420 = vector.load %arg13[%c0_476, %c0_477] : memref<44x128xf32, #tpu.memory_space<vmem>>, vector<44x128xf32>
    tpu.vector_store %arg13[%c0_476, %c0_477], %419 {strides = array<i32>} : memref<44x128xf32, #tpu.memory_space<vmem>>, vector<44x128xf32>,
    %c84_478 = arith.constant 84 : index
    %c0_479 = arith.constant 0 : index
    %421 = vector.load %arg12[%c84_478, %c0_479] : memref<130x64xf32, #tpu.memory_space<vmem>>, vector<44x64xf32>
    %422 = arith.truncf %421 : vector<44x64xf32> to vector<44x64xbf16>
    %c24_480 = arith.constant 24 : index
    %c0_481 = arith.constant 0 : index
    %c0_482 = arith.constant 0 : index
    %423 = vector.load %arg6[%c24_480, %c0_481, %c0_482] : memref<27x64x128xbf16, #tpu.memory_space<vmem>>, vector<1x64x128xbf16>
    %424 = vector.shape_cast %423 : vector<1x64x128xbf16> to vector<64x128xbf16>
    %cst_483 = arith.constant dense<0.000000e+00> : vector<44x128xf32>
    %425 = tpu.matmul %422, %424, %cst_483 {dimension_numbers = #tpu.dot_dimension_numbers<[1], [0], [0], [1], [0, 0, 1, 1], [], []>} : vector<44x64xbf16>, vector<64x128xbf16>, vector<44x128xf32> -> vector<44x128xf32>
    %c0_484 = arith.constant 0 : index
    %c0_485 = arith.constant 0 : index
    %426 = vector.load %arg13[%c0_484, %c0_485] : memref<44x128xf32, #tpu.memory_space<vmem>>, vector<44x128xf32>
    %427 = arith.addf %426, %425 : vector<44x128xf32>
    %c0_486 = arith.constant 0 : index
    %c0_487 = arith.constant 0 : index
    %428 = vector.load %arg13[%c0_486, %c0_487] : memref<44x128xf32, #tpu.memory_space<vmem>>, vector<44x128xf32>
    tpu.vector_store %arg13[%c0_486, %c0_487], %427 {strides = array<i32>} : memref<44x128xf32, #tpu.memory_space<vmem>>, vector<44x128xf32>,
    %c85_488 = arith.constant 85 : index
    %c0_489 = arith.constant 0 : index
    %429 = vector.load %arg12[%c85_488, %c0_489] : memref<130x64xf32, #tpu.memory_space<vmem>>, vector<44x64xf32>
    %430 = arith.truncf %429 : vector<44x64xf32> to vector<44x64xbf16>
    %c25_490 = arith.constant 25 : index
    %c0_491 = arith.constant 0 : index
    %c0_492 = arith.constant 0 : index
    %431 = vector.load %arg6[%c25_490, %c0_491, %c0_492] : memref<27x64x128xbf16, #tpu.memory_space<vmem>>, vector<1x64x128xbf16>
    %432 = vector.shape_cast %431 : vector<1x64x128xbf16> to vector<64x128xbf16>
    %cst_493 = arith.constant dense<0.000000e+00> : vector<44x128xf32>
    %433 = tpu.matmul %430, %432, %cst_493 {dimension_numbers = #tpu.dot_dimension_numbers<[1], [0], [0], [1], [0, 0, 1, 1], [], []>} : vector<44x64xbf16>, vector<64x128xbf16>, vector<44x128xf32> -> vector<44x128xf32>
    %c0_494 = arith.constant 0 : index
    %c0_495 = arith.constant 0 : index
    %434 = vector.load %arg13[%c0_494, %c0_495] : memref<44x128xf32, #tpu.memory_space<vmem>>, vector<44x128xf32>
    %435 = arith.addf %434, %433 : vector<44x128xf32>
    %c0_496 = arith.constant 0 : index
    %c0_497 = arith.constant 0 : index
    %436 = vector.load %arg13[%c0_496, %c0_497] : memref<44x128xf32, #tpu.memory_space<vmem>>, vector<44x128xf32>
    tpu.vector_store %arg13[%c0_496, %c0_497], %435 {strides = array<i32>} : memref<44x128xf32, #tpu.memory_space<vmem>>, vector<44x128xf32>,
    %c86_498 = arith.constant 86 : index
    %c0_499 = arith.constant 0 : index
    %437 = vector.load %arg12[%c86_498, %c0_499] : memref<130x64xf32, #tpu.memory_space<vmem>>, vector<44x64xf32>
    %438 = arith.truncf %437 : vector<44x64xf32> to vector<44x64xbf16>
    %c26_500 = arith.constant 26 : index
    %c0_501 = arith.constant 0 : index
    %c0_502 = arith.constant 0 : index
    %439 = vector.load %arg6[%c26_500, %c0_501, %c0_502] : memref<27x64x128xbf16, #tpu.memory_space<vmem>>, vector<1x64x128xbf16>
    %440 = vector.shape_cast %439 : vector<1x64x128xbf16> to vector<64x128xbf16>
    %cst_503 = arith.constant dense<0.000000e+00> : vector<44x128xf32>
    %441 = tpu.matmul %438, %440, %cst_503 {dimension_numbers = #tpu.dot_dimension_numbers<[1], [0], [0], [1], [0, 0, 1, 1], [], []>} : vector<44x64xbf16>, vector<64x128xbf16>, vector<44x128xf32> -> vector<44x128xf32>
    %c0_504 = arith.constant 0 : index
    %c0_505 = arith.constant 0 : index
    %442 = vector.load %arg13[%c0_504, %c0_505] : memref<44x128xf32, #tpu.memory_space<vmem>>, vector<44x128xf32>
    %443 = arith.addf %442, %441 : vector<44x128xf32>
    %c0_506 = arith.constant 0 : index
    %c0_507 = arith.constant 0 : index
    %444 = vector.load %arg13[%c0_506, %c0_507] : memref<44x128xf32, #tpu.memory_space<vmem>>, vector<44x128xf32>
    tpu.vector_store %arg13[%c0_506, %c0_507], %443 {strides = array<i32>} : memref<44x128xf32, #tpu.memory_space<vmem>>, vector<44x128xf32>,
    %c0_508 = arith.constant 0 : index
    %c0_509 = arith.constant 0 : index
    %445 = vector.load %arg13[%c0_508, %c0_509] : memref<44x128xf32, #tpu.memory_space<vmem>>, vector<44x128xf32>
    %c0_510 = arith.constant 0 : index
    %c0_511 = arith.constant 0 : index
    %446 = vector.load %arg7[%c0_510, %c0_511] : memref<1x128xf32, #tpu.memory_space<vmem>>, vector<1x128xf32>
    %447 = vector.broadcast %446 : vector<1x128xf32> to vector<44x128xf32>
    %448 = arith.addf %445, %447 : vector<44x128xf32>
    %cst_512 = arith.constant 0.000000e+00 : f32
    %449 = vector.broadcast %cst_512 : f32 to vector<44x128xf32>
    %450 = arith.maximumf %448, %449 : vector<44x128xf32>
    %cst_513 = arith.constant 0.000000e+00 : f32
    %451 = vector.broadcast %cst_513 : f32 to vector<1x128xf32>
    %452 = vector.extract_strided_slice %450 {offsets = [0, 0], sizes = [2, 128], strides = [1, 1]} : vector<44x128xf32> to vector<2x128xf32>
    %cst_514 = arith.constant dense<0.000000e+00> : vector<128xf32>
    %453 = vector.multi_reduction <add>, %452, %cst_514 [0] : vector<2x128xf32> to vector<128xf32>
    %454 = vector.shape_cast %453 : vector<128xf32> to vector<1x128xf32>
    %455 = arith.addf %451, %454 : vector<1x128xf32>
    %456 = vector.extract_strided_slice %450 {offsets = [6, 0], sizes = [2, 128], strides = [1, 1]} : vector<44x128xf32> to vector<2x128xf32>
    %cst_515 = arith.constant dense<0.000000e+00> : vector<128xf32>
    %457 = vector.multi_reduction <add>, %456, %cst_515 [0] : vector<2x128xf32> to vector<128xf32>
    %458 = vector.shape_cast %457 : vector<128xf32> to vector<1x128xf32>
    %459 = arith.addf %455, %458 : vector<1x128xf32>
    %460 = vector.extract_strided_slice %450 {offsets = [36, 0], sizes = [2, 128], strides = [1, 1]} : vector<44x128xf32> to vector<2x128xf32>
    %cst_516 = arith.constant dense<0.000000e+00> : vector<128xf32>
    %461 = vector.multi_reduction <add>, %460, %cst_516 [0] : vector<2x128xf32> to vector<128xf32>
    %462 = vector.shape_cast %461 : vector<128xf32> to vector<1x128xf32>
    %463 = arith.addf %459, %462 : vector<1x128xf32>
    %464 = vector.extract_strided_slice %450 {offsets = [42, 0], sizes = [2, 128], strides = [1, 1]} : vector<44x128xf32> to vector<2x128xf32>
    %cst_517 = arith.constant dense<0.000000e+00> : vector<128xf32>
    %465 = vector.multi_reduction <add>, %464, %cst_517 [0] : vector<2x128xf32> to vector<128xf32>
    %466 = vector.shape_cast %465 : vector<128xf32> to vector<1x128xf32>
    %467 = arith.addf %463, %466 : vector<1x128xf32>
    %cst_518 = arith.constant 1.250000e-01 : f32
    %468 = vector.broadcast %cst_518 : f32 to vector<1x128xf32>
    %469 = arith.mulf %467, %468 : vector<1x128xf32>
    %470 = arith.truncf %469 : vector<1x128xf32> to vector<1x128xbf16>
    %c0_519 = arith.constant 0 : index
    %c0_520 = arith.constant 0 : index
    %471 = vector.load %arg8[%c0_519, %c0_520] : memref<128x128xbf16, #tpu.memory_space<vmem>>, vector<128x128xbf16>
    %cst_521 = arith.constant dense<0.000000e+00> : vector<1x128xf32>
    %472 = tpu.matmul %470, %471, %cst_521 {dimension_numbers = #tpu.dot_dimension_numbers<[1], [0], [0], [1], [0, 0, 1, 1], [], []>} : vector<1x128xbf16>, vector<128x128xbf16>, vector<1x128xf32> -> vector<1x128xf32>
    %c0_522 = arith.constant 0 : index
    %c0_523 = arith.constant 0 : index
    %473 = vector.load %arg9[%c0_522, %c0_523] : memref<1x128xf32, #tpu.memory_space<vmem>>, vector<1x128xf32>
    %474 = arith.addf %472, %473 : vector<1x128xf32>
    %c0_524 = arith.constant 0 : index
    %c0_525 = arith.constant 0 : index
    %c0_526 = arith.constant 0 : index
    %475 = vector.load %arg10[%c0_524, %c0_525, %c0_526] : memref<1x1x128xf32, #tpu.memory_space<vmem>>, vector<1x1x128xf32>
    %476 = vector.shape_cast %475 : vector<1x1x128xf32> to vector<1x128xf32>
    %477 = vector.shape_cast %474 : vector<1x128xf32> to vector<1x1x128xf32>
    tpu.vector_store %arg10[%c0_524, %c0_525, %c0_526], %477 {strides = array<i32>} : memref<1x1x128xf32, #tpu.memory_space<vmem>>, vector<1x1x128xf32>,
    return
  }
  func.func @transform_0(%arg0: i32) -> (i32, i32, i32) {
    %c0_i32 = arith.constant 0 : i32
    %c0_i32_0 = arith.constant 0 : i32
    %c0_i32_1 = arith.constant 0 : i32
    return %arg0, %c0_i32, %c0_i32_0 : i32, i32, i32
  }
  func.func @transform_1(%arg0: i32) -> (i32, i32) {
    %c0_i32 = arith.constant 0 : i32
    %c0_i32_0 = arith.constant 0 : i32
    %c0_i32_1 = arith.constant 0 : i32
    return %c0_i32, %c0_i32_0 : i32, i32
  }
  func.func @transform_2(%arg0: i32) -> (i32, i32) {
    %c0_i32 = arith.constant 0 : i32
    %c0_i32_0 = arith.constant 0 : i32
    %c0_i32_1 = arith.constant 0 : i32
    return %c0_i32, %c0_i32_0 : i32, i32
  }
  func.func @transform_3(%arg0: i32) -> (i32, i32, i32) {
    %c0_i32 = arith.constant 0 : i32
    %c0_i32_0 = arith.constant 0 : i32
    %c0_i32_1 = arith.constant 0 : i32
    %c0_i32_2 = arith.constant 0 : i32
    return %c0_i32, %c0_i32_0, %c0_i32_1 : i32, i32, i32
  }
  func.func @transform_4(%arg0: i32) -> (i32, i32) {
    %c0_i32 = arith.constant 0 : i32
    %c0_i32_0 = arith.constant 0 : i32
    %c0_i32_1 = arith.constant 0 : i32
    return %c0_i32, %c0_i32_0 : i32, i32
  }
  func.func @transform_5(%arg0: i32) -> (i32, i32, i32) {
    %c0_i32 = arith.constant 0 : i32
    %c0_i32_0 = arith.constant 0 : i32
    %c0_i32_1 = arith.constant 0 : i32
    %c0_i32_2 = arith.constant 0 : i32
    return %c0_i32, %c0_i32_0, %c0_i32_1 : i32, i32, i32
  }
  func.func @transform_6(%arg0: i32) -> (i32, i32) {
    %c0_i32 = arith.constant 0 : i32
    %c0_i32_0 = arith.constant 0 : i32
    %c0_i32_1 = arith.constant 0 : i32
    return %c0_i32, %c0_i32_0 : i32, i32
  }
  func.func @transform_7(%arg0: i32) -> (i32, i32) {
    %c0_i32 = arith.constant 0 : i32
    %c0_i32_0 = arith.constant 0 : i32
    %c0_i32_1 = arith.constant 0 : i32
    return %c0_i32, %c0_i32_0 : i32, i32
  }
  func.func @transform_8(%arg0: i32) -> (i32, i32) {
    %c0_i32 = arith.constant 0 : i32
    %c0_i32_0 = arith.constant 0 : i32
    %c0_i32_1 = arith.constant 0 : i32
    return %c0_i32, %c0_i32_0 : i32, i32
  }
  func.func @transform_9(%arg0: i32) -> (i32, i32, i32) {
    %c0_i32 = arith.constant 0 : i32
    %c0_i32_0 = arith.constant 0 : i32
    %c0_i32_1 = arith.constant 0 : i32
    return %arg0, %c0_i32, %c0_i32_0 : i32, i32, i32
  }
}

</mosaic_0001>

<bundles_post_ra>
// kernel: basic_3d_cnn_forward.1
= control target key start
LH: loop header
LB: loop body
LE: loop exit
PB: predicated region body
PF: predicated region fallthrough
CT: control target
= control target key end

     0   :  { %14 = vsyncpa [#allocation6], 0  ;;  %s17085_s0 = inlined_call_operand.vmem [shape: bf16[2,216,128], index: 0, kind: input, shape index: {}]   ;;  %s17086_s1 = inlined_call_operand.vmem [shape: bf16[128,32], index: 1, kind: input, shape index: {}]   ;;  %s17087_s2 = inlined_call_operand.vmem [shape: f32[1,32], index: 2, kind: input, shape index: {}]   ;;  %s17088_s3 = inlined_call_operand.vmem [shape: bf16[27,32,64], index: 3, kind: input, shape index: {}]   ;;  %s17089_s4 = inlined_call_operand.vmem [shape: f32[1,64], index: 4, kind: input, shape index: {}]   ;;  %s17090_s5 = inlined_call_operand.vmem [shape: bf16[27,64,128], index: 5, kind: input, shape index: {}]   ;;  %s17091_s6 = inlined_call_operand.vmem [shape: f32[1,128], index: 6, kind: input, shape index: {}]   ;;  %s17092_s7 = inlined_call_operand.vmem [shape: bf16[128,128], index: 7, kind: input, shape index: {}]   ;;  %s17093_s8 = inlined_call_operand.vmem [shape: f32[1,128], index: 8, kind: input, shape index: {}]   ;;  %s17094_s9 = inlined_call_operand.hbm [shape: f32[2,1,128], index: 9, kind: output, shape index: {}]  }
   0x1   :  { %16 = vsyncpa [#allocation6 + $0x1], 0  ;;  %s13956_s30 = smov 0   ;;  %s13958_s10 = smov 0  }
   0x2   :  { %s13960_s11 = smov 0   ;;  %s13962_s12 = smov 0  }
   0x3 LB: > { %s13977_s13 = sadd.s32 4294967295, %s13901_s12   ;;  %s10450_s14 = sadd.s32 4294967294, %s13901_s12   ;;  %s13901_s12 = sphi %s13962_s12, %s17282_s12   ;;  %s13897_s11 = sphi %s13960_s11, %s17281_s11   ;;  %s13893_s10 = sphi %s13958_s10, %s17280_s10   ;;  %s13889_s30 = sphi %s13956_s30, %s17279_s30  }
   0x4   : > { %s13981_s15 = sadd.s32 1, %s13901_s12   ;;  %s223_s16 = sadd.s32 1, %s13897_s11 }
   0x5   : > { %s220_s17 = ssub.s32 %s13901_s12, %s13981_s15  ;;  %p233_p0 = scmp.ne.s32.totalorder %s13897_s11, %s13893_s10 }
   0x6   : > { %p221_p1 = scmp.eq.s32.totalorder %s220_s17, 0  ;;  %p234_p2 = scmp.eq.s32.totalorder %s13977_s13, 1 }
   0x7   : > { %p239_p3 = scmp.ne.s32.totalorder %s13893_s10, %s13889_s30  ;;  %p240_p4 = scmp.eq.s32.totalorder %s10450_s14, 1 }
   0x8   : > { %s13992_s18 = scalar_select %p221_p1, %s13897_s11, %s223_s16  }
   0x9   : > { %p13994_p5 = por %p234_p2, %p233_p0  ;;  %p13998_p6 = por %p240_p4, %p239_p3 }
   0xa   : > { %p10453_p7 = scmp.ge.s32.totalorder %s13901_s12, 1  ;;  %p290_p8 = scmp.lt.s32.totalorder %s13901_s12, 3 }
   0xc   : > { %p291_p9 = pnand %p10453_p7, %p290_p8 }
   0xe   : > { %294 = sbr.rel (%p291_p9) target bundleno = 2816 (0xb00), region = 56 }
  0x15   : > { %v13640_v0 = vld [vmem:[%s17086_s1] sm:$0xff]   ;;  %p325_p10 = scmp.lt.s32.totalorder %s13977_s13, 1  ;;  %v13641_v1 = vld [vmem:[%s17086_s1 + $0x8] sm:$0xff]   ;;  %v17096_v2 = vmov 0.0   ;;  %v13642_v3 = vld [vmem:[%s17086_s1 + $0x10] sm:$0xff]   ;;  %vm13904_vm0 = vmmov 0  }
  0x16   : > { %11806 = vmatprep.subr.bf16.mxu0 %v13640_v0  ;;  %13490 = vmatprep.subr.bf16.mxu1 %v17096_v2  ;;  %v13643_v4 = vld [vmem:[%s17086_s1 + $0x18] sm:$0xff]   ;;  %v13644_v6 = vld [vmem:[%s17086_s1 + $0x20] sm:$0xff]   ;;  %v13645_v7 = vld [vmem:[%s17086_s1 + $0x28] sm:$0xff]   ;;  %vm682_vm1 = vcmask 261120   ;;  %vm883_vm2 = vcmask 523264   ;;  %vm900_vm3 = vcmask 517120  }
  0x17   : > { %s326_s25 = scalar_select %p325_p10, %s13977_s13, 1  ;;  %11807 = vmatpush3.bf16.msra.mxu0 %v13640_v0  ;;  %v13646_v8 = vld [vmem:[%s17086_s1 + $0x30] sm:$0xff]   ;;  %v13647_v9 = vld [vmem:[%s17086_s1 + $0x38] sm:$0xff]   ;;  %v13660_v12 = vld [vmem:[%s17088_s3] sm:$0xff]   ;;  %12146 = vmatprep.mubr.msk.bf16.mxu1 %vm13904_vm0, %v17096_v2  ;;  %vm10232_vm4 = vcmask 1041408  }
  0x18   : > { %11808 = vmatprep.subr.bf16.mxu0 %v13641_v1  ;;  %v13661_v13 = vld [vmem:[%s17088_s3 + $0x8] sm:$0xff]   ;;  %v13665_v25 = vld [vmem:[%s17088_s3 + $0x70] sm:$0xff]   ;;  %v13666_v26 = vld [vmem:[%s17088_s3 + $0x78] sm:$0xff]   ;;  %s323_s21 = sand.u32 1, %s13893_s10   ;;  %s11286_s24 = sshll.u32 %s13977_s13, 4 }
  0x19   : > { %s13598_s28 = smul.u32 108, %s326_s25  ;;  %13492 = vmatpush3.bf16.msra.mxu1 %v13665_v25  ;;  %v14074_v27 = vld [vmem:[%s17087_s2] ss:$0 sm:$0xff]  ;;  %v13664_v53 = vld [vmem:[%s17088_s3 + $0x10] sm:$0xff]   ;;  %s324_s25 = scalar_lea.vmem [#allocation5], %s323_s21 }
  0x1a   : > { %13491 = vmatprep.subr.bf16.mxu1 %v17096_v2  ;;  %s10395_s26 = sshll.u32 %s324_s25, 4  ;;  %s10383_s29 = scalar_lea.sflag [#allocation6], %s323_s21  ;;  %s17045_s26 = int_to_ptr.vmem [resolvable:$true] %s10395_s26 }
  0x1b   : > { %s14019_s16 = scalar_lea.vmem %s17085_s0, %s13598_s28  ;;  %11809 = vmatpush3.bf16.msra.mxu0 %v13641_v1  ;;  %s17043_s28 = scalar_lea.hbm %s17094_s9, %s11286_s24 }
  0x1c   : > { %11810 = vmatprep.subr.bf16.mxu0 %v13642_v3  ;;  %v13648_v5 = vld [vmem:[%s14019_s16] sm:$0xff]   ;;  %v13649_v10 = vld [vmem:[%s14019_s16 + $0x8] sm:$0xff]   ;;  %v13650_v11 = vld [vmem:[%s14019_s16 + $0x10] sm:$0xff]   ;;  %s13839_s13 = scalar_lea.vmem %s17045_s26, 16  ;;  %s13905_s14 = smov [#allocation5]  }
  0x1d   : > { %11822 = vmatprep.mubr.bf16.mxu0 %v13648_v5  ;;  %v13651_v14 = vld [vmem:[%s14019_s16 + $0x18] sm:$0xff]   ;;  %v13652_v15 = vld [vmem:[%s14019_s16 + $0x20] sm:$0xff]   ;;  %v13653_v16 = vld [vmem:[%s14019_s16 + $0x28] sm:$0xff]   ;;  %13493 = vmatpush3.bf16.msra.mxu1 %v13666_v26  ;;  %p13840_p11 = scmp.ne.s32.totalorder %s17045_s26, %s13839_s13  ;;  %s13843_s17 = sshll.u32 %s13905_s14, 4  ;;  %s13844_s17 = int_to_ptr.vmem [resolvable:$false] %s13843_s17 }
  0x1e   : > { %v13654_v17 = vld [vmem:[%s14019_s16 + $0x30] sm:$0xff]   ;;  %v13655_v18 = vld [vmem:[%s14019_s16 + $0x38] sm:$0xff]   ;;  %v13656_v19 = vld [vmem:[%s14019_s16 + $0x40] sm:$0xff]   ;;  %12210 = vmatprep.subr.bf16.mxu1 %v17096_v2  ;;  %s13845_s22 = scalar_lea.vmem %s13844_s17, 32  ;;  %p13846_p0 = scmp.lt.s32.totalorder %s17045_s26, %s13844_s17 }
  0x1f   : > { %11811 = vmatpush3.bf16.msra.mxu0 %v13642_v3  ;;  %v13657_v20 = vld [vmem:[%s14019_s16 + $0x48] sm:$0xff]   ;;  %v13658_v21 = vld [vmem:[%s14019_s16 + $0x50] sm:$0xff]   ;;  %v13659_v22 = vld [vmem:[%s14019_s16 + $0x58] sm:$0xff]   ;;  %p13841_p12 = pnand %p13840_p11, %p13994_p5  ;;  %p13847_p1 = scmp.lt.s32.totalorder %s13845_s22, %s13839_s13 }
  0x20   : > { %11812 = vmatprep.subr.bf16.mxu0 %v13643_v4  ;;  %v13662_v23 = vld [vmem:[%s14019_s16 + $0x60] sm:$0xff]   ;;  %v13663_v24 = vld [vmem:[%s14019_s16 + $0x68] ss:$0 sps:$4 sm:$0xff]  }
  0x21   : > { %p13842_p13 = pneg %p13841_p12  ;;  %p13848_p2 = por %p13847_p1, %p13846_p0 }
  0x23   : > { %11813 = vmatpush3.bf16.msra.mxu0 %v13643_v4  ;;  %v13667_v4 = vld [vmem:[%s17088_s3 + $0x18] sm:$0xff]   ;;  %p13849_p3 = pnand %p13848_p2, %p13842_p13 }
  0x24   : > { %11814 = vmatprep.subr.bf16.mxu0 %v13644_v6 }
  0x27   : > { %11815 = vmatpush3.bf16.msra.mxu0 %v13644_v6 }
  0x28   : > { %11816 = vmatprep.subr.bf16.mxu0 %v13645_v7 }
  0x2b   : > { %11817 = vmatpush3.bf16.msra.mxu0 %v13645_v7 }
  0x2c   : > { %11818 = vmatprep.subr.bf16.mxu0 %v13646_v8 }
  0x2f   : > { %11819 = vmatpush3.bf16.msra.mxu0 %v13646_v8 }
  0x30   : > { %11820 = vmatprep.subr.bf16.mxu0 %v13647_v9 }
  0x33   : > { %11821 = vmatpush3.bf16.msra.mxu0 %v13647_v9 }
  0x34   : > { %11850 = vmatprep.subr.bf16.mxu0 %v17096_v2 }
  0x36   : > { %11823 = vmatmul.mubr.bf16.vlgmr.msra.gmra.mrb[0].mxu0 %v13649_v10 }
  0x37   : > { %11826 = vmatprep.mubr.bf16.mxu0 %v13650_v11  ;;  %11851 = vmatpush3.bf16.msra.mxu0 %v13660_v12 }
  0x38   : > { %11852 = vmatprep.subr.bf16.mxu0 %v17096_v2 }
  0x3b   : > { %11853 = vmatpush3.bf16.msra.mxu0 %v13661_v13 }
  0x3c   : > { %11890 = vmatprep.subr.bf16.mxu0 %v17096_v2 }
  0x3e   : > { %11827 = vmatmul.mubr.bf16.gmra.mrb[4].mxu0 %v13651_v14 }
  0x3f   : > { %11830 = vmatprep.mubr.bf16.mxu0 %v13652_v15 }
  0x46   : > { %11831 = vmatmul.mubr.bf16.gmra.mrb[8].mxu0 %v13653_v16 }
  0x47   : > { %11834 = vmatprep.mubr.bf16.mxu0 %v13654_v17 }
  0x4e   : > { %11835 = vmatmul.mubr.bf16.gmra.mrb[12].mxu0 %v13655_v18 }
  0x4f   : > { %11838 = vmatprep.mubr.bf16.mxu0 %v13656_v19 }
  0x56   : > { %11839 = vmatmul.mubr.bf16.gmra.mrb[16].mxu0 %v13657_v20 }
  0x57   : > { %11842 = vmatprep.mubr.bf16.mxu0 %v13658_v21 }
  0x5e   : > { %11843 = vmatmul.mubr.bf16.gmra.mrb[20].mxu0 %v13659_v22 }
  0x5f   : > { %11846 = vmatprep.mubr.bf16.mxu0 %v13662_v23 }
  0x66   : > { %11847 = vmatmul.mubr.bf16.gmra.mrb[24].mxu0 %v13663_v24 }
  0x67   : > { %11854 = vmatprep.mubr.msk.bf16.mxu0 %vm13904_vm0, %v17096_v2 }
 0x109   : > { %v11824_v28 = vpop.f32.mrb[0].mxu0 }
 0x10a   : > { %v554_v29 = vadd.f32 %v11824_v28, %v14074_v27  ;;  %v545_v30 = vpop.f32.mrb[1].mxu0 }
 0x10b   : > { %v546_v31 = vadd.f32 %v14074_v27, %v545_v30  ;;  %v11825_v32 = vpop.f32.mrb[2].mxu0 }
 0x10c   : > { %v657_v33 = vmax.f32 %v554_v29, 0.0  ;;  %v557_v34 = vadd.f32 %v11825_v32, %v14074_v27  ;;  %v548_v35 = vpop.f32.mrb[3].mxu0 }
 0x10d   : > { %v655_v36 = vmax.f32 %v546_v31, 0.0  ;;  %v549_v37 = vadd.f32 %v14074_v27, %v548_v35 }
 0x10e   : > { %685 = vst.msk [vmem:[#allocation2 + $0x10] sm:$0xff] %vm682_vm1, %v657_v33  ;;  %v658_v38 = vmax.f32 %v557_v34, 0.0 }
 0x10f   : > { %683 = vst.msk [vmem:[#allocation2] sm:$0xff] %vm682_vm1, %v655_v36  ;;  %v656_v39 = vmax.f32 %v549_v37, 0.0 }
 0x110   : > { %686 = vst.msk [vmem:[#allocation2 + $0x18] sm:$0xff] %vm682_vm1, %v658_v38  ;;  %v13668_v38 = vld [vmem:[%s17088_s3 + $0x90] sm:$0xff]  }
 0x111   : > { %684 = vst.msk [vmem:[#allocation2 + $0x8] sm:$0xff] %vm682_vm1, %v656_v39  ;;  %v11828_v40 = vpop.f32.mrb[4].mxu0 }
 0x112   : > { %v570_v41 = vadd.f32 %v11828_v40, %v14074_v27  ;;  %v561_v42 = vpop.f32.mrb[5].mxu0 }
 0x113   : > { %v562_v43 = vadd.f32 %v14074_v27, %v561_v42  ;;  %v11829_v44 = vpop.f32.mrb[6].mxu0 }
 0x114   : > { %v661_v45 = vmax.f32 %v570_v41, 0.0  ;;  %v573_v46 = vadd.f32 %v11829_v44, %v14074_v27  ;;  %v564_v47 = vpop.f32.mrb[7].mxu0 }
 0x115   : > { %v659_v48 = vmax.f32 %v562_v43, 0.0  ;;  %v565_v49 = vadd.f32 %v14074_v27, %v564_v47  ;;  %v712_v13 = vld [vmem:[#allocation2 + $0x10] sm:$0xff] }
 0x116   : > { %689 = vst.msk [vmem:[#allocation2 + $0x30] sm:$0xff] %vm682_vm1, %v661_v45  ;;  %v662_v50 = vmax.f32 %v573_v46, 0.0  ;;  %v710_v55 = vld [vmem:[#allocation2] sm:$0xff] }
 0x117   : > { %v14089_v51 = vld [vmem:[#allocation2 + $0x16] sm:$0xff]  ;;  %687 = vst.msk [vmem:[#allocation2 + $0x20] sm:$0xff] %vm682_vm1, %v659_v48  ;;  %v660_v52 = vmax.f32 %v565_v49, 0.0 }
 0x118   : > { %v14095_v54 = vld [vmem:[#allocation2 + $0xe] sm:$0xff]  ;;  %690 = vst.msk [vmem:[#allocation2 + $0x38] sm:$0xff] %vm682_vm1, %v662_v50  ;;  %v713_v8 = vld [vmem:[#allocation2 + $0x18] sm:$0xff] }
 0x119   : > { %v711_v56 = vld [vmem:[#allocation2 + $0x8] sm:$0xff]  ;;  %688 = vst.msk [vmem:[#allocation2 + $0x28] sm:$0xff] %vm682_vm1, %v660_v52  ;;  %v11832_v58 = vpop.f32.mrb[8].mxu0  ;;  %v728_v16 = vpack.c.bf16 %v713_v8, %v712_v13  ;;  %v13669_v50 = vld [vmem:[%s17088_s3 + $0x98] sm:$0xff]  }
 0x11a   : > { %v727_v59 = vpack.c.bf16 %v711_v56, %v710_v55  ;;  %v586_v60 = vadd.f32 %v11832_v58, %v14074_v27  ;;  %v577_v61 = vpop.f32.mrb[9].mxu0 }
 0x11b   : > { %v578_v62 = vadd.f32 %v14074_v27, %v577_v61  ;;  %v11833_v63 = vpop.f32.mrb[10].mxu0 }
 0x11c   : > { %11855 = vmatmul.mubr.msk.bf16.vlgmr.msra.gmra.mrb[28].mxu0 %vm682_vm1, %v727_v59  ;;  %v665_v0 = vmax.f32 %v586_v60, 0.0  ;;  %v589_v1 = vadd.f32 %v11833_v63, %v14074_v27  ;;  %v580_v3 = vpop.f32.mrb[11].mxu0 }
 0x11d   : > { %11891 = vmatpush3.bf16.msra.mxu0 %v13664_v53  ;;  %11858 = vmatprep.mubr.msk.bf16.mxu0 %vm13904_vm0, %v17096_v2  ;;  %v663_v5 = vmax.f32 %v578_v62, 0.0  ;;  %v581_v6 = vadd.f32 %v14074_v27, %v580_v3  ;;  %v716_v52 = vld [vmem:[#allocation2 + $0x30] sm:$0xff] }
 0x11e   : > { %11892 = vmatprep.subr.bf16.mxu0 %v17096_v2  ;;  %693 = vst.msk [vmem:[#allocation2 + $0x50] sm:$0xff] %vm682_vm1, %v665_v0  ;;  %v666_v7 = vmax.f32 %v589_v1, 0.0  ;;  %v714_v30 = vld [vmem:[#allocation2 + $0x20] sm:$0xff] }
 0x11f   : > { %v14113_v9 = vld [vmem:[#allocation2 + $0x32] sm:$0xff]  ;;  %691 = vst.msk [vmem:[#allocation2 + $0x40] sm:$0xff] %vm682_vm1, %v663_v5  ;;  %v664_v11 = vmax.f32 %v581_v6, 0.0 }
 0x120   : > { %v14115_v10 = vld [vmem:[#allocation2 + $0x34] sm:$0xff]  ;;  %v14118_v12 = vld [vmem:[#allocation2 + $0x2a] sm:$0xff]  ;;  %694 = vst.msk [vmem:[#allocation2 + $0x58] sm:$0xff] %vm682_vm1, %v666_v7 }
 0x121   : > { %11893 = vmatpush3.bf16.msra.mxu0 %v13667_v4  ;;  %v14123_v15 = vld [vmem:[#allocation2 + $0x2c] sm:$0xff]  ;;  %692 = vst.msk [vmem:[#allocation2 + $0x48] sm:$0xff] %vm682_vm1, %v664_v11  ;;  %v11836_v17 = vpop.f32.mrb[12].mxu0  ;;  %v717_v53 = vld [vmem:[#allocation2 + $0x38] sm:$0xff] }
 0x122   : > { %11930 = vmatprep.subr.bf16.mxu0 %v17096_v2  ;;  %v602_v19 = vadd.f32 %v11836_v17, %v14074_v27  ;;  %v593_v20 = vpop.f32.mrb[13].mxu0  ;;  %v715_v31 = vld [vmem:[#allocation2 + $0x28] sm:$0xff]  ;;  %v730_v59 = vpack.c.bf16 %v717_v53, %v716_v52 }
 0x123   : > { %v594_v21 = vadd.f32 %v14074_v27, %v593_v20  ;;  %v11837_v22 = vpop.f32.mrb[14].mxu0  ;;  %v729_v35 = vpack.c.bf16 %v715_v31, %v714_v30 }
 0x124   : > { %11859 = vmatmul.mubr.msk.bf16.gmra.mrb[32].mxu0 %vm682_vm1, %v728_v16  ;;  %v669_v23 = vmax.f32 %v602_v19, 0.0  ;;  %v605_v24 = vadd.f32 %v11837_v22, %v14074_v27  ;;  %v596_v25 = vpop.f32.mrb[15].mxu0 }
 0x125   : > { %11862 = vmatprep.mubr.msk.bf16.mxu0 %vm13904_vm0, %v17096_v2  ;;  %v667_v26 = vmax.f32 %v594_v21, 0.0  ;;  %v597_v28 = vadd.f32 %v14074_v27, %v596_v25  ;;  %v14188_v31 = vld [vmem:[#allocation2 + $0x50] sm:$0xff] }
 0x126   : > { %697 = vst.msk [vmem:[#allocation2 + $0x70] sm:$0xff] %vm682_vm1, %v669_v23  ;;  %v670_v29 = vmax.f32 %v605_v24, 0.0  ;;  %v2258_v33 = vld [vmem:[#allocation2 + $0x3d] sm:$0xff]  ;;  %v720_v23 = vld [vmem:[#allocation2 + $0x50] sm:$0xff] }
 0x127   : > { %695 = vst.msk [vmem:[#allocation2 + $0x60] sm:$0xff] %vm682_vm1, %v667_v26  ;;  %v668_v32 = vmax.f32 %v597_v28, 0.0  ;;  %v2261_v44 = vld [vmem:[#allocation2 + $0x55] sm:$0xff]  ;;  %v718_v5 = vld [vmem:[#allocation2 + $0x40] sm:$0xff] }
 0x128   : > { %698 = vst.msk [vmem:[#allocation2 + $0x78] sm:$0xff] %vm682_vm1, %v670_v29  ;;  %v2259_v34 = vld [vmem:[#allocation2 + $0x45] sm:$0xff]  ;;  %v2260_v43 = vld [vmem:[#allocation2 + $0x4d] sm:$0xff]  ;;  %v721_v24 = vld [vmem:[#allocation2 + $0x58] sm:$0xff] }
 0x129   : > { %696 = vst.msk [vmem:[#allocation2 + $0x68] sm:$0xff] %vm682_vm1, %v668_v32  ;;  %v2272_v36 = vpack.c.bf16 %v2259_v34, %v2258_v33  ;;  %v11840_v37 = vpop.f32.mrb[16].mxu0  ;;  %v2273_v56 = vpack.c.bf16 %v2261_v44, %v2260_v43  ;;  %v719_v8 = vld [vmem:[#allocation2 + $0x48] sm:$0xff]  ;;  %v14182_v26 = vld [vmem:[#allocation2 + $0x38] sm:$0xff]  ;;  %v732_v28 = vpack.c.bf16 %v721_v24, %v720_v23  ;;  %v14184_v29 = vld [vmem:[#allocation2 + $0x40] sm:$0xff] }
 0x12a   : > { %v618_v39 = vadd.f32 %v11840_v37, %v14074_v27  ;;  %v609_v40 = vpop.f32.mrb[17].mxu0  ;;  %v731_v19 = vpack.c.bf16 %v719_v8, %v718_v5  ;;  %v14186_v30 = vld [vmem:[#allocation2 + $0x48] sm:$0xff]  ;;  %v14190_v32 = vld [vmem:[#allocation2 + $0x58] sm:$0xff] }
 0x12b   : > { %12147 = vmatmul.mubr.msk.bf16.vlgmr.msra.gmra.mrb[0].mxu1 %vm682_vm1, %v2272_v36  ;;  %v610_v41 = vadd.f32 %v14074_v27, %v609_v40  ;;  %v11841_v42 = vpop.f32.mrb[18].mxu0  ;;  %v13673_v5 = vld [vmem:[%s17088_s3 + $0xb8] sm:$0xff]   ;;  %v903_v8 = vld [vmem:[#allocation2 + $0x9] sm:$0xff] }
 0x12c   : > { %11863 = vmatmul.mubr.msk.bf16.gmra.mrb[36].mxu0 %vm682_vm1, %v729_v35  ;;  %12150 = vmatprep.mubr.msk.bf16.mxu1 %vm13904_vm0, %v17096_v2  ;;  %v673_v45 = vmax.f32 %v618_v39, 0.0  ;;  %v621_v46 = vadd.f32 %v11841_v42, %v14074_v27  ;;  %v612_v47 = vpop.f32.mrb[19].mxu0  ;;  %v2706_v23 = vld [vmem:[#allocation2 + $0x44] sm:$0xff]  ;;  %v2707_v24 = vld [vmem:[#allocation2 + $0x4c] sm:$0xff] }
 0x12d   : > { %11866 = vmatprep.mubr.msk.bf16.mxu0 %vm13904_vm0, %v17096_v2  ;;  %v671_v48 = vmax.f32 %v610_v41, 0.0  ;;  %v613_v49 = vadd.f32 %v14074_v27, %v612_v47  ;;  %12211 = vmatpush3.bf16.msra.mxu1 %v13668_v38  ;;  %v14208_v40 = vld [vmem:[#allocation2 + $0x70] sm:$0xff] }
 0x12e   : > { %701 = vst.msk [vmem:[#allocation2 + $0x90] sm:$0xff] %vm682_vm1, %v673_v45  ;;  %v674_v55 = vmax.f32 %v621_v46, 0.0  ;;  %12212 = vmatprep.subr.bf16.mxu1 %v17096_v2  ;;  %v2262_v11 = vld [vmem:[#allocation2 + $0x5d] sm:$0xff] }
 0x12f   : > { %699 = vst.msk [vmem:[#allocation2 + $0x80] sm:$0xff] %vm682_vm1, %v671_v48  ;;  %v672_v58 = vmax.f32 %v613_v49, 0.0  ;;  %v2265_v22 = vld [vmem:[#allocation2 + $0x75] sm:$0xff]  ;;  %v14196_v34 = vld [vmem:[#allocation2 + $0x60] sm:$0xff] }
 0x130   : > { %702 = vst.msk [vmem:[#allocation2 + $0x98] sm:$0xff] %vm682_vm1, %v674_v55  ;;  %v2263_v13 = vld [vmem:[#allocation2 + $0x65] sm:$0xff]  ;;  %v2264_v21 = vld [vmem:[#allocation2 + $0x6d] sm:$0xff]  ;;  %v14210_v41 = vld [vmem:[#allocation2 + $0x78] sm:$0xff] }
 0x131   : > { %700 = vst.msk [vmem:[#allocation2 + $0x88] sm:$0xff] %vm682_vm1, %v672_v58  ;;  %v11844_v60 = vpop.f32.mrb[20].mxu0  ;;  %12213 = vmatpush3.bf16.msra.mxu1 %v13669_v50  ;;  %v2274_v20 = vpack.c.bf16 %v2263_v13, %v2262_v11  ;;  %v2275_v25 = vpack.c.bf16 %v2265_v22, %v2264_v21  ;;  %v722_v36 = vld [vmem:[#allocation2 + $0x60] sm:$0xff]  ;;  %v14204_v37 = vld [vmem:[#allocation2 + $0x68] sm:$0xff]  ;;  %v724_v50 = vld [vmem:[#allocation2 + $0x70] sm:$0xff] }
 0x132   : > { %v634_v61 = vadd.f32 %v11844_v60, %v14074_v27  ;;  %v625_v62 = vpop.f32.mrb[21].mxu0  ;;  %12290 = vmatprep.subr.bf16.mxu1 %v17096_v2  ;;  %v723_v39 = vld [vmem:[#allocation2 + $0x68] sm:$0xff]  ;;  %v725_v52 = vld [vmem:[#allocation2 + $0x78] sm:$0xff] }
 0x133   : > { %12151 = vmatmul.mubr.msk.bf16.gmra.mrb[4].mxu1 %vm682_vm1, %v2273_v56  ;;  %v626_v63 = vadd.f32 %v14074_v27, %v625_v62  ;;  %v11845_v0 = vpop.f32.mrb[22].mxu0  ;;  %v733_v47 = vpack.c.bf16 %v723_v39, %v722_v36  ;;  %v734_v55 = vpack.c.bf16 %v725_v52, %v724_v50  ;;  %v2702_v60 = vld [vmem:[#allocation2 + $0x24] sm:$0xff]  ;;  %v2705_v11 = vld [vmem:[#allocation2 + $0x3c] sm:$0xff]  ;;  %v2721_v36 = vpack.c.bf16 %v2707_v24, %v2706_v23  ;;  %v4277_v50 = vld [vmem:[#allocation2 + $0x31] sm:$0xff] }
 0x134   : > { %11867 = vmatmul.mubr.msk.bf16.gmra.mrb[40].mxu0 %vm682_vm1, %v730_v59  ;;  %12154 = vmatprep.mubr.msk.bf16.mxu1 %vm13904_vm0, %v17096_v2  ;;  %v677_v1 = vmax.f32 %v634_v61, 0.0  ;;  %v637_v3 = vadd.f32 %v11845_v0, %v14074_v27  ;;  %v628_v4 = vpop.f32.mrb[23].mxu0  ;;  %v13672_v0 = vld [vmem:[%s17088_s3 + $0xb0] sm:$0xff]   ;;  %v2720_v21 = vpack.c.bf16 %v2705_v11, %v14115_v10  ;;  %v905_v22 = vld [vmem:[#allocation2 + $0x19] sm:$0xff]  ;;  %v906_v39 = vld [vmem:[#allocation2 + $0x21] sm:$0xff] }
 0x135   : > { %11870 = vmatprep.mubr.msk.bf16.mxu0 %vm13904_vm0, %v17096_v2  ;;  %v675_v6 = vmax.f32 %v626_v63, 0.0  ;;  %v629_v7 = vadd.f32 %v14074_v27, %v628_v4  ;;  %v2719_v63 = vpack.c.bf16 %v14123_v15, %v2702_v60  ;;  %v4278_v52 = vld [vmem:[#allocation2 + $0x39] sm:$0xff]  ;;  %v911_v60 = vld [vmem:[#allocation2 + $0x49] sm:$0xff] }
 0x136   : > { %705 = vst.msk [vmem:[#allocation2 + $0xb0] sm:$0xff] %vm682_vm1, %v677_v1  ;;  %v678_v16 = vmax.f32 %v637_v3, 0.0  ;;  %v2266_v42 = vld [vmem:[#allocation2 + $0x7d] sm:$0xff]  ;;  %v915_v11 = vld [vmem:[#allocation2 + $0x69] sm:$0xff] }
 0x137   : > { %703 = vst.msk [vmem:[#allocation2 + $0xa0] sm:$0xff] %vm682_vm1, %v675_v6  ;;  %v676_v17 = vmax.f32 %v629_v7, 0.0  ;;  %v14212_v44 = vld [vmem:[#allocation2 + $0x80] sm:$0xff] }
 0x138   : > { %706 = vst.msk [vmem:[#allocation2 + $0xb8] sm:$0xff] %vm682_vm1, %v678_v16  ;;  %v2267_v43 = vld [vmem:[#allocation2 + $0x85] sm:$0xff]  ;;  %v2268_v49 = vld [vmem:[#allocation2 + $0x8d] sm:$0x3]  ;;  %v726_v56 = vld [vmem:[#allocation2 + $0x80] sm:$0x3] }
 0x139   : > { %704 = vst.msk [vmem:[#allocation2 + $0xa8] sm:$0xff] %vm682_vm1, %v676_v17  ;;  %v2276_v48 = vpack.c.bf16 %v2267_v43, %v2266_v42  ;;  %v2277_v53 = vpack.c.bf16 %v2268_v49, %v2268_v49  ;;  %v11848_v58 = vpop.f32.mrb[24].mxu0  ;;  %v735_v61 = vpack.c.bf16 %v726_v56, %v726_v56  ;;  %v902_v7 = vld [vmem:[#allocation2 + $0x1] sm:$0xff]  ;;  %v907_v42 = vld [vmem:[#allocation2 + $0x29] sm:$0xff]  ;;  %v2708_v43 = vld [vmem:[#allocation2 + $0x54] sm:$0xff]  ;;  %v14278_v56 = vpack.c.bf16 %v4278_v52, %v4277_v50 }
 0x13a   : > { %v650_v59 = vadd.f32 %v11848_v58, %v14074_v27  ;;  %v641_v1 = vpop.f32.mrb[25].mxu0  ;;  %v13670_v17 = vld [vmem:[%s17088_s3 + $0x20] sm:$0xff]   ;;  %v13674_v52 = vld [vmem:[%s17088_s3 + $0x30] sm:$0xff]  }
 0x13b   : > { %12155 = vmatmul.mubr.msk.bf16.gmra.mrb[8].mxu1 %vm682_vm1, %v2274_v20  ;;  %v642_v3 = vadd.f32 %v14074_v27, %v641_v1  ;;  %v11849_v4 = vpop.f32.mrb[26].mxu0  ;;  %v919_v20 = vpack.c.bf16 %v903_v8, %v902_v7  ;;  %17100 = vst [vmem:[#allocation8_spill] sm:$0xff] %v14278_v56  ;;  %v912_v1 = vld [vmem:[#allocation2 + $0x51] sm:$0xff]  ;;  %v914_v8 = vld [vmem:[#allocation2 + $0x61] sm:$0xff] }
 0x13c   : > { %11871 = vmatmul.mubr.msk.bf16.gmra.mrb[44].mxu0 %vm682_vm1, %v731_v19  ;;  %12158 = vmatprep.mubr.msk.bf16.mxu1 %vm13904_vm0, %v17096_v2  ;;  %v681_v62 = vmax.f32 %v650_v59, 0.0  ;;  %v644_v6 = vpop.f32.mrb[27].mxu0  ;;  %v910_v59 = vld [vmem:[#allocation2 + $0x41] sm:$0xff] }
 0x13d   : > { %11874 = vmatprep.mubr.msk.bf16.mxu0 %vm13904_vm0, %v17096_v2  ;;  %v679_v13 = vmax.f32 %v642_v3, 0.0  ;;  %v645_v16 = vadd.f32 %v14074_v27, %v644_v6  ;;  %v13671_v27 = vld [vmem:[%s17088_s3 + $0x28] sm:$0xff]   ;;  %v913_v3 = vld [vmem:[#allocation2 + $0x59] sm:$0xff]  ;;  %v918_v24 = vld [vmem:[#allocation2 + $0x81] sm:$0x3] }
 0x13e   : > { %709 = vst.msk [vmem:[#allocation2 + $0xd0] sm:$0xff] %vm682_vm1, %v681_v62  ;;  %v2713_v62 = vld [vmem:[#allocation2 + $0x7c] sm:$0xff]  ;;  %v2714_v4 = vld [vmem:[#allocation2 + $0x84] sm:$0xff]  ;;  %v924_v6 = vpack.c.bf16 %v913_v3, %v912_v1 }
 0x13f   : > { %707 = vst.msk [vmem:[#allocation2 + $0xc0] sm:$0xff] %vm682_vm1, %v679_v13  ;;  %v680_v19 = vmax.f32 %v645_v16, 0.0  ;;  %v2716_v13 = vld [vmem:[#allocation2 + $0x94] sm:$0xff]  ;;  %v2717_v16 = vld [vmem:[#allocation2 + $0x9c] sm:$0xff] }
 0x140   : > { %v3155_v50 = vld [vmem:[#allocation2 + $0x3e] sm:$0xff]  ;;  %v3158_v3 = vld [vmem:[#allocation2 + $0x56] sm:$0xff] }
 0x141   : > { %708 = vst.msk [vmem:[#allocation2 + $0xc8] sm:$0xff] %vm682_vm1, %v680_v19  ;;  %v2726_v19 = vpack.c.bf16 %v2717_v16, %v2716_v13  ;;  %v1131_v1 = vld [vmem:[#allocation2 + $0x22] sm:$0xff] }
 0x142   : > { %v13832_v14 = vld [vmem:[#allocation2 + $0x80] sm:$0xff] }
 0x143   : > { %12159 = vmatmul.mubr.msk.bf16.gmra.mrb[12].mxu1 %vm682_vm1, %v2275_v25  ;;  %v904_v25 = vld [vmem:[#allocation2 + $0x11] sm:$0xff] }
 0x144   : > { %11875 = vmatmul.mubr.msk.bf16.gmra.mrb[48].mxu0 %vm682_vm1, %v732_v28  ;;  %12162 = vmatprep.mubr.msk.bf16.mxu1 %vm13904_vm0, %v17096_v2  ;;  %v920_v28 = vpack.c.bf16 %v905_v22, %v904_v25  ;;  %v3152_v25 = vld [vmem:[#allocation2 + $0x26] sm:$0xff] }
 0x145   : > { %11878 = vmatprep.mubr.msk.bf16.mxu0 %vm13904_vm0, %v17096_v2 }
 0x14b   : > { %12163 = vmatmul.mubr.msk.bf16.gmra.mrb[16].mxu1 %vm682_vm1, %v2276_v48  ;;  %v921_v48 = vpack.c.bf16 %v907_v42, %v906_v39  ;;  %v13676_v42 = vld [vmem:[%s17088_s3 + $0xd0] sm:$0xff]  }
 0x14c   : > { %11879 = vmatmul.mubr.msk.bf16.gmra.mrb[52].mxu0 %vm682_vm1, %v733_v47  ;;  %12166 = vmatprep.mubr.msk.bf16.mxu1 %vm13904_vm0, %v17096_v2  ;;  %v2709_v47 = vld [vmem:[#allocation2 + $0x5c] sm:$0xff] }
 0x14d   : > { %11882 = vmatprep.mubr.msk.bf16.mxu0 %vm13904_vm0, %v17096_v2  ;;  %v2722_v49 = vpack.c.bf16 %v2709_v47, %v2708_v43  ;;  %v1127_v43 = vld [vmem:[#allocation2 + $0x2] sm:$0xff]  ;;  %v13677_v47 = vld [vmem:[%s17088_s3 + $0xd8] sm:$0xff]  }
 0x153   : > { %12167 = vmatmul.mubr.msk.bf16.gmra.mrb[20].mxu1 %vm682_vm1, %v2277_v53  ;;  %v2710_v53 = vld [vmem:[#allocation2 + $0x64] sm:$0xff] }
 0x154   : > { %11883 = vmatmul.mubr.msk.bf16.gmra.mrb[56].mxu0 %vm682_vm1, %v734_v55  ;;  %12214 = vmatprep.mubr.msk.bf16.mxu1 %vm13904_vm0, %v17096_v2  ;;  %v2711_v55 = vld [vmem:[#allocation2 + $0x6c] sm:$0xff] }
 0x155   : > { %11886 = vmatprep.mubr.msk.bf16.mxu0 %vm13904_vm0, %v17096_v2  ;;  %v2723_v58 = vpack.c.bf16 %v2711_v55, %v2710_v53 }
 0x15b   : > { %12215 = vmatmul.mubr.msk.bf16.vlgmr.msra.gmra.mrb[24].mxu1 %vm682_vm1, %v2719_v63  ;;  %v923_v63 = vpack.c.bf16 %v911_v60, %v910_v59  ;;  %v1130_v59 = vld [vmem:[#allocation2 + $0x1a] sm:$0xff]  ;;  %v3156_v60 = vld [vmem:[#allocation2 + $0x46] sm:$0xff] }
 0x15c   : > { %11887 = vmatmul.mubr.msk.bf16.gmra.mrb[60].mxu0 %vm682_vm1, %v735_v61  ;;  %12218 = vmatprep.mubr.msk.bf16.mxu1 %vm13904_vm0, %v17096_v2  ;;  %v2712_v61 = vld [vmem:[#allocation2 + $0x74] sm:$0xff] }
 0x15d   : > { %11894 = vmatprep.mubr.msk.bf16.mxu0 %vm13904_vm0, %v17096_v2  ;;  %12291 = vmatpush3.bf16.msra.mxu1 %v13672_v0  ;;  %v2724_v0 = vpack.c.bf16 %v2713_v62, %v2712_v61  ;;  %v3157_v61 = vld [vmem:[#allocation2 + $0x4e] sm:$0xff] }
 0x15e   : > { %12292 = vmatprep.subr.bf16.mxu1 %v17096_v2  ;;  %v1129_v62 = vld [vmem:[#allocation2 + $0x12] sm:$0xff] }
 0x161   : > { %12293 = vmatpush3.bf16.msra.mxu1 %v13673_v5  ;;  %v2715_v5 = vld [vmem:[#allocation2 + $0x8c] sm:$0xff] }
 0x162   : > { %12370 = vmatprep.subr.bf16.mxu1 %v17096_v2  ;;  %v2725_v7 = vpack.c.bf16 %v2715_v5, %v2714_v4  ;;  %v3159_v4 = vld [vmem:[#allocation2 + $0x5e] sm:$0xff]  ;;  %v1146_v5 = vpack.c.bf16 %v14118_v12, %v1131_v1  ;;  %v3603_v1 = vld [vmem:[#allocation2 + $0x33] sm:$0xff] }
 0x163   : > { %12219 = vmatmul.mubr.msk.bf16.gmra.mrb[28].mxu1 %vm682_vm1, %v2720_v21  ;;  %v916_v21 = vld [vmem:[#allocation2 + $0x71] sm:$0xff] }
 0x164   : > { %11895 = vmatmul.mubr.msk.bf16.vlgmr.msra.gmra.mrb[64].mxu0 %vm682_vm1, %v919_v20  ;;  %12222 = vmatprep.mubr.msk.bf16.mxu1 %vm13904_vm0, %v17096_v2  ;;  %v2718_v20 = vld [vmem:[#allocation2 + $0xa4] sm:$0x3] }
 0x165   : > { %11931 = vmatpush3.bf16.msra.mxu0 %v13670_v17  ;;  %11898 = vmatprep.mubr.msk.bf16.mxu0 %vm13904_vm0, %v17096_v2  ;;  %v925_v17 = vpack.c.bf16 %v915_v11, %v914_v8  ;;  %v2727_v22 = vpack.c.bf16 %v2718_v20, %v2718_v20  ;;  %v3160_v8 = vld [vmem:[#allocation2 + $0x66] sm:$0xff]  ;;  %v3161_v11 = vld [vmem:[#allocation2 + $0x6e] sm:$0xff]  ;;  %v3162_v20 = vld [vmem:[#allocation2 + $0x76] sm:$0xff] }
 0x166   : > { %11932 = vmatprep.subr.bf16.mxu0 %v17096_v2  ;;  %v14368_v16 = vpack.c.bf16 %v3161_v11, %v3160_v8  ;;  %v13681_v8 = vld [vmem:[%s17088_s3 + $0xf8] sm:$0xff]  }
 0x169   : > { %11933 = vmatpush3.bf16.msra.mxu0 %v13671_v27  ;;  %v917_v27 = vld [vmem:[#allocation2 + $0x79] sm:$0xff] }
 0x16a   : > { %11970 = vmatprep.subr.bf16.mxu0 %v17096_v2  ;;  %v926_v23 = vpack.c.bf16 %v917_v27, %v916_v21  ;;  %v3163_v21 = vld [vmem:[#allocation2 + $0x7e] sm:$0xff] }
 0x16b   : > { %12223 = vmatmul.mubr.msk.bf16.gmra.mrb[32].mxu1 %vm682_vm1, %v2721_v36  ;;  %v927_v36 = vpack.c.bf16 %v918_v24, %v918_v24  ;;  %v1138_v24 = vld [vmem:[#allocation2 + $0x5a] sm:$0xff] }
 0x16c   : > { %11899 = vmatmul.mubr.msk.bf16.gmra.mrb[68].mxu0 %vm682_vm1, %v920_v28  ;;  %12226 = vmatprep.mubr.msk.bf16.mxu1 %vm13904_vm0, %v17096_v2  ;;  %v3153_v28 = vld [vmem:[#allocation2 + $0x2e] sm:$0xff] }
 0x16d   : > { %11902 = vmatprep.mubr.msk.bf16.mxu0 %vm13904_vm0, %v17096_v2  ;;  %v14311_v39 = vpack.c.bf16 %v3153_v28, %v3152_v25  ;;  %v3164_v25 = vld [vmem:[#allocation2 + $0x86] sm:$0xff]  ;;  %v3165_v28 = vld [vmem:[#allocation2 + $0x8e] sm:$0xff] }
 0x173   : > { %12227 = vmatmul.mubr.msk.bf16.gmra.mrb[36].mxu1 %vm682_vm1, %v2722_v49  ;;  %v3154_v49 = vld [vmem:[#allocation2 + $0x36] sm:$0xff] }
 0x174   : > { %11903 = vmatmul.mubr.msk.bf16.gmra.mrb[72].mxu0 %vm682_vm1, %v921_v48  ;;  %12230 = vmatprep.mubr.msk.bf16.mxu1 %vm13904_vm0, %v17096_v2  ;;  %v1128_v48 = vld [vmem:[#allocation2 + $0xa] sm:$0xff]  ;;  %v14330_v55 = vpack.c.bf16 %v3155_v50, %v3154_v49  ;;  %v3167_v49 = vld [vmem:[#allocation2 + $0x9e] sm:$0xff] }
 0x175   : > { %11906 = vmatprep.mubr.msk.bf16.mxu0 %vm13904_vm0, %v17096_v2  ;;  %v1144_v53 = vpack.c.bf16 %v1128_v48, %v1127_v43  ;;  %v1139_v43 = vld [vmem:[#allocation2 + $0x62] sm:$0xff]  ;;  %v3166_v48 = vld [vmem:[#allocation2 + $0x96] sm:$0xff] }
 0x17b   : > { %12231 = vmatmul.mubr.msk.bf16.gmra.mrb[40].mxu1 %vm682_vm1, %v2723_v58  ;;  %v13675_v58 = vld [vmem:[%s17088_s3 + $0x38] sm:$0xff]  }
 0x17c   : > { %11907 = vmatmul.mubr.msk.bf16.gmra.mrb[76].mxu0 %vm682_vm1, %v14278_v56  ;;  %12234 = vmatprep.mubr.msk.bf16.mxu1 %vm13904_vm0, %v17096_v2 }
 0x17d   : > { %11910 = vmatprep.mubr.msk.bf16.mxu0 %vm13904_vm0, %v17096_v2 }
 0x183   : > { %12235 = vmatmul.mubr.msk.bf16.gmra.mrb[44].mxu1 %vm682_vm1, %v2724_v0  ;;  %v14344_v0 = vpack.c.bf16 %v3157_v61, %v3156_v60 }
 0x184   : > { %11911 = vmatmul.mubr.msk.bf16.gmra.mrb[80].mxu0 %vm682_vm1, %v923_v63  ;;  %12238 = vmatprep.mubr.msk.bf16.mxu1 %vm13904_vm0, %v17096_v2  ;;  %v1145_v63 = vpack.c.bf16 %v1130_v59, %v1129_v62  ;;  %v1142_v59 = vld [vmem:[#allocation2 + $0x7a] sm:$0xff]  ;;  %v1143_v62 = vld [vmem:[#allocation2 + $0x82] sm:$0x3] }
 0x185   : > { %11914 = vmatprep.mubr.msk.bf16.mxu0 %vm13904_vm0, %v17096_v2 }
 0x18b   : > { %12239 = vmatmul.mubr.msk.bf16.gmra.mrb[48].mxu1 %vm682_vm1, %v2725_v7  ;;  %v14364_v7 = vld [vmem:[#allocation2 + $0x3a] sm:$0xff] }
 0x18c   : > { %11915 = vmatmul.mubr.msk.bf16.gmra.mrb[84].mxu0 %vm682_vm1, %v924_v6  ;;  %12242 = vmatprep.mubr.msk.bf16.mxu1 %vm13904_vm0, %v17096_v2  ;;  %v14355_v6 = vpack.c.bf16 %v3159_v4, %v3158_v3  ;;  %v1147_v13 = vpack.c.bf16 %v14364_v7, %v14113_v9  ;;  %v1152_v3 = vpack.c.bf16 %v1143_v62, %v1143_v62 }
 0x18d   : > { %11918 = vmatprep.mubr.msk.bf16.mxu0 %vm13904_vm0, %v17096_v2 }
 0x193   : > { %12243 = vmatmul.mubr.msk.bf16.gmra.mrb[52].mxu1 %vm682_vm1, %v2726_v19  ;;  %v1136_v19 = vld [vmem:[#allocation2 + $0x4a] sm:$0xff] }
 0x194   : > { %11919 = vmatmul.mubr.msk.bf16.gmra.mrb[88].mxu0 %vm682_vm1, %v925_v17  ;;  %12246 = vmatprep.mubr.msk.bf16.mxu1 %vm13904_vm0, %v17096_v2  ;;  %v1135_v17 = vld [vmem:[#allocation2 + $0x42] sm:$0xff] }
 0x195   : > { %11922 = vmatprep.mubr.msk.bf16.mxu0 %vm13904_vm0, %v17096_v2  ;;  %v1148_v27 = vpack.c.bf16 %v1136_v19, %v1135_v17  ;;  %v3605_v17 = vld [vmem:[#allocation2 + $0x43] sm:$0xff] }
 0x19b   : > { %12247 = vmatmul.mubr.msk.bf16.gmra.mrb[56].mxu1 %vm682_vm1, %v2727_v22  ;;  %v14377_v22 = vpack.c.bf16 %v3163_v21, %v3162_v20  ;;  %v13678_v21 = vld [vmem:[%s17088_s3 + $0x40] sm:$0xff]  }
 0x19c   : > { %11923 = vmatmul.mubr.msk.bf16.gmra.mrb[92].mxu0 %vm682_vm1, %v926_v23  ;;  %12294 = vmatprep.mubr.msk.bf16.mxu1 %vm13904_vm0, %v17096_v2  ;;  %v1137_v23 = vld [vmem:[#allocation2 + $0x52] sm:$0xff] }
 0x19d   : > { %11926 = vmatprep.mubr.msk.bf16.mxu0 %vm13904_vm0, %v17096_v2 }
 0x1a3   : > { %12295 = vmatmul.mubr.msk.bf16.vlgmr.msra.gmra.mrb[60].mxu1 %vm682_vm1, %v14311_v39 }
 0x1a4   : > { %11927 = vmatmul.mubr.msk.bf16.gmra.mrb[96].mxu0 %vm682_vm1, %v927_v36  ;;  %12298 = vmatprep.mubr.msk.bf16.mxu1 %vm13904_vm0, %v17096_v2  ;;  %v1149_v36 = vpack.c.bf16 %v1138_v24, %v1137_v23 }
 0x1a5   : > { %11934 = vmatprep.mubr.msk.bf16.mxu0 %vm13904_vm0, %v17096_v2  ;;  %12371 = vmatpush3.bf16.msra.mxu1 %v13676_v42  ;;  %v3175_v42 = vpack.c.bf16 %v3165_v28, %v3164_v25  ;;  %v13679_v28 = vld [vmem:[%s17088_s3 + $0x48] sm:$0xff]  }
 0x1a6   : > { %12372 = vmatprep.subr.bf16.mxu1 %v17096_v2 }
 0x1a9   : > { %12373 = vmatpush3.bf16.msra.mxu1 %v13677_v47  ;;  %v1140_v47 = vld [vmem:[#allocation2 + $0x6a] sm:$0xff] }
 0x1aa   : > { %12450 = vmatprep.subr.bf16.mxu1 %v17096_v2  ;;  %v1150_v50 = vpack.c.bf16 %v1140_v47, %v1139_v43  ;;  %v3606_v43 = vld [vmem:[#allocation2 + $0x4b] sm:$0xff]  ;;  %v3607_v47 = vld [vmem:[#allocation2 + $0x53] sm:$0xff] }
 0x1ab   : > { %12299 = vmatmul.mubr.msk.bf16.gmra.mrb[64].mxu1 %vm682_vm1, %v14330_v55 }
 0x1ac   : > { %11935 = vmatmul.mubr.msk.bf16.vlgmr.msra.gmra.mrb[100].mxu0 %vm682_vm1, %v1144_v53  ;;  %12302 = vmatprep.mubr.msk.bf16.mxu1 %vm13904_vm0, %v17096_v2  ;;  %v3168_v53 = vld [vmem:[#allocation2 + $0xa6] sm:$0x3] }
 0x1ad   : > { %11971 = vmatpush3.bf16.msra.mxu0 %v13674_v52  ;;  %11938 = vmatprep.mubr.msk.bf16.mxu0 %vm13904_vm0, %v17096_v2  ;;  %v3176_v52 = vpack.c.bf16 %v3167_v49, %v3166_v48  ;;  %v3177_v60 = vpack.c.bf16 %v3168_v53, %v3168_v53  ;;  %v3621_v53 = vpack.c.bf16 %v3607_v47, %v3606_v43  ;;  %v3613_v43 = vld [vmem:[#allocation2 + $0x83] sm:$0xff] }
 0x1ae   : > { %11972 = vmatprep.subr.bf16.mxu0 %v17096_v2 }
 0x1b1   : > { %11973 = vmatpush3.bf16.msra.mxu0 %v13675_v58  ;;  %v1141_v58 = vld [vmem:[#allocation2 + $0x72] sm:$0xff] }
 0x1b2   : > { %12010 = vmatprep.subr.bf16.mxu0 %v17096_v2  ;;  %v1151_v61 = vpack.c.bf16 %v1142_v59, %v1141_v58 }
 0x1b3   : > { %12303 = vmatmul.mubr.msk.bf16.gmra.mrb[68].mxu1 %vm682_vm1, %v14344_v0 }
 0x1b4   : > { %11939 = vmatmul.mubr.msk.bf16.gmra.mrb[104].mxu0 %vm682_vm1, %v1145_v63  ;;  %12306 = vmatprep.mubr.msk.bf16.mxu1 %vm13904_vm0, %v17096_v2  ;;  %v3602_v63 = vld [vmem:[#allocation2 + $0x2b] sm:$0xff] }
 0x1b5   : > { %11942 = vmatprep.mubr.msk.bf16.mxu0 %vm13904_vm0, %v17096_v2  ;;  %v3619_v4 = vpack.c.bf16 %v3603_v1, %v3602_v63 }
 0x1bb   : > { %12307 = vmatmul.mubr.msk.bf16.gmra.mrb[72].mxu1 %vm682_vm1, %v14355_v6 }
 0x1bc   : > { %11943 = vmatmul.mubr.msk.bf16.gmra.mrb[108].mxu0 %vm682_vm1, %v1146_v5  ;;  %12310 = vmatprep.mubr.msk.bf16.mxu1 %vm13904_vm0, %v17096_v2  ;;  %v13680_v5 = vld [vmem:[%s17088_s3 + $0xf0] sm:$0xff]  }
 0x1bd   : > { %11946 = vmatprep.mubr.msk.bf16.mxu0 %vm13904_vm0, %v17096_v2 }
 0x1c3   : > { %12311 = vmatmul.mubr.msk.bf16.gmra.mrb[76].mxu1 %vm682_vm1, %v14368_v16 }
 0x1c4   : > { %11947 = vmatmul.mubr.msk.bf16.gmra.mrb[112].mxu0 %vm682_vm1, %v1147_v13  ;;  %12314 = vmatprep.mubr.msk.bf16.mxu1 %vm13904_vm0, %v17096_v2  ;;  %v1352_v13 = vld [vmem:[#allocation2 + $0x6] sm:$0xff] }
 0x1c5   : > { %11950 = vmatprep.mubr.msk.bf16.mxu0 %vm13904_vm0, %v17096_v2  ;;  %v1369_v24 = vpack.c.bf16 %v14095_v54, %v1352_v13 }
 0x1cb   : > { %12315 = vmatmul.mubr.msk.bf16.gmra.mrb[80].mxu1 %vm682_vm1, %v14377_v22 }
 0x1cc   : > { %11951 = vmatmul.mubr.msk.bf16.gmra.mrb[116].mxu0 %vm682_vm1, %v1148_v27  ;;  %12318 = vmatprep.mubr.msk.bf16.mxu1 %vm13904_vm0, %v17096_v2  ;;  %v3604_v27 = vld [vmem:[#allocation2 + $0x3b] sm:$0xff] }
 0x1cd   : > { %11954 = vmatprep.mubr.msk.bf16.mxu0 %vm13904_vm0, %v17096_v2  ;;  %v3620_v25 = vpack.c.bf16 %v3605_v17, %v3604_v27  ;;  %v3610_v17 = vld [vmem:[#allocation2 + $0x6b] sm:$0xff] }
 0x1d3   : > { %12319 = vmatmul.mubr.msk.bf16.gmra.mrb[84].mxu1 %vm682_vm1, %v3175_v42  ;;  %v1355_v42 = vld [vmem:[#allocation2 + $0x1e] sm:$0xff] }
 0x1d4   : > { %11955 = vmatmul.mubr.msk.bf16.gmra.mrb[120].mxu0 %vm682_vm1, %v1149_v36  ;;  %12322 = vmatprep.mubr.msk.bf16.mxu1 %vm13904_vm0, %v17096_v2 }
 0x1d5   : > { %11958 = vmatprep.mubr.msk.bf16.mxu0 %vm13904_vm0, %v17096_v2 }
 0x1db   : > { %12323 = vmatmul.mubr.msk.bf16.gmra.mrb[88].mxu1 %vm682_vm1, %v3176_v52  ;;  %v1370_v52 = vpack.c.bf16 %v1355_v42, %v14089_v51  ;;  %v3612_v42 = vld [vmem:[#allocation2 + $0x7b] sm:$0xff] }
 0x1dc   : > { %11959 = vmatmul.mubr.msk.bf16.gmra.mrb[124].mxu0 %vm682_vm1, %v1150_v50  ;;  %12326 = vmatprep.mubr.msk.bf16.mxu1 %vm13904_vm0, %v17096_v2 }
 0x1dd   : > { %11962 = vmatprep.mubr.msk.bf16.mxu0 %vm13904_vm0, %v17096_v2 }
 0x1e3   : > { %12327 = vmatmul.mubr.msk.bf16.gmra.mrb[92].mxu1 %vm682_vm1, %v3177_v60  ;;  %v3608_v60 = vld [vmem:[#allocation2 + $0x5b] sm:$0xff] }
 0x1e4   : > { %11963 = vmatmul.mubr.msk.bf16.gmra.mrb[128].mxu0 %vm682_vm1, %v1151_v61  ;;  %12374 = vmatprep.mubr.msk.bf16.mxu1 %vm13904_vm0, %v17096_v2  ;;  %v3609_v61 = vld [vmem:[#allocation2 + $0x63] sm:$0xff] }
 0x1e5   : > { %11966 = vmatprep.mubr.msk.bf16.mxu0 %vm13904_vm0, %v17096_v2 }
 0x1eb   : > { %12375 = vmatmul.mubr.msk.bf16.vlgmr.msra.gmra.mrb[96].mxu1 %vm682_vm1, %v3619_v4 }
 0x1ec   : > { %11967 = vmatmul.mubr.msk.bf16.gmra.mrb[132].mxu0 %vm682_vm1, %v1152_v3  ;;  %12378 = vmatprep.mubr.msk.bf16.mxu1 %vm13904_vm0, %v17096_v2 }
 0x1ed   : > { %11974 = vmatprep.mubr.msk.bf16.mxu0 %vm13904_vm0, %v17096_v2  ;;  %12451 = vmatpush3.bf16.msra.mxu1 %v13680_v5 }
 0x1ee   : > { %12452 = vmatprep.subr.bf16.mxu1 %v17096_v2 }
 0x1ef   : > { %v813_v11 = vpop.f32.mrb[28].mxu0 }
 0x1f0   : > { %884 = vst.msk [vmem:[#allocation3] sm:$0xff] %vm883_vm2, %v813_v11  ;;  %v11856_v19 = vpop.f32.mrb[29].mxu0 }
 0x1f1   : > { %v816_v20 = vpop.f32.mrb[30].mxu0  ;;  %12453 = vmatpush3.bf16.msra.mxu1 %v13681_v8  ;;  %v3622_v8 = vpack.c.bf16 %v3609_v61, %v3608_v60  ;;  %v3611_v19 = vld [vmem:[#allocation2 + $0x73] sm:$0xff]  ;;  %v3614_v61 = vld [vmem:[#allocation2 + $0x8b] sm:$0xff] }
 0x1f2   : > { %885 = vst.msk [vmem:[#allocation3 + $0x8] sm:$0xff] %vm883_vm2, %v816_v20  ;;  %v11857_v23 = vpop.f32.mrb[31].mxu0  ;;  %12530 = vmatprep.subr.bf16.mxu1 %v17096_v2 }
 0x1f3   : > { %12379 = vmatmul.mubr.msk.bf16.gmra.mrb[100].mxu1 %vm682_vm1, %v3620_v25  ;;  %v3623_v25 = vpack.c.bf16 %v3611_v19, %v3610_v17 }
 0x1f4   : > { %11975 = vmatmul.mubr.msk.bf16.vlgmr.msra.gmra.mrb[136].mxu0 %vm682_vm1, %v1369_v24  ;;  %12382 = vmatprep.mubr.msk.bf16.mxu1 %vm13904_vm0, %v17096_v2 }
 0x1f5   : > { %12011 = vmatpush3.bf16.msra.mxu0 %v13678_v21  ;;  %11978 = vmatprep.mubr.msk.bf16.mxu0 %vm13904_vm0, %v17096_v2 }
 0x1f6   : > { %12012 = vmatprep.subr.bf16.mxu0 %v17096_v2 }
 0x1f7   : > { %v821_v36 = vpop.f32.mrb[32].mxu0 }
 0x1f8   : > { %886 = vst.msk [vmem:[#allocation3 + $0x10] sm:$0xff] %vm883_vm2, %v821_v36  ;;  %v11860_v48 = vpop.f32.mrb[33].mxu0 }
 0x1f9   : > { %v824_v49 = vpop.f32.mrb[34].mxu0  ;;  %12013 = vmatpush3.bf16.msra.mxu0 %v13679_v28 }
 0x1fa   : > { %887 = vst.msk [vmem:[#allocation3 + $0x18] sm:$0xff] %vm883_vm2, %v824_v49  ;;  %v11861_v50 = vpop.f32.mrb[35].mxu0  ;;  %12050 = vmatprep.subr.bf16.mxu0 %v17096_v2 }
 0x1fb   : > { %12383 = vmatmul.mubr.msk.bf16.gmra.mrb[104].mxu1 %vm682_vm1, %v3621_v53  ;;  %v3624_v53 = vpack.c.bf16 %v3613_v43, %v3612_v42 }
 0x1fc   : > { %11979 = vmatmul.mubr.msk.bf16.gmra.mrb[140].mxu0 %vm682_vm1, %v1370_v52  ;;  %12386 = vmatprep.mubr.msk.bf16.mxu1 %vm13904_vm0, %v17096_v2 }
 0x1fd   : > { %11982 = vmatprep.mubr.msk.bf16.mxu0 %vm13904_vm0, %v17096_v2 }
 0x1fe   : > { %v14444_v59 = vpop.f32.mrb[0].mxu1 }
 0x1ff   : > { %v829_v58 = vpop.f32.mrb[36].mxu0  ;;  %v12148_v63 = vpop.f32.mrb[1].mxu1 }
 0x200   : > { %888 = vst.msk [vmem:[#allocation3 + $0x20] sm:$0xff] %vm883_vm2, %v829_v58  ;;  %v11864_v62 = vpop.f32.mrb[37].mxu0  ;;  %v14447_v3 = vpop.f32.mrb[2].mxu1 }
 0x201   : > { %v832_v1 = vpop.f32.mrb[38].mxu0  ;;  %v12149_v5 = vpop.f32.mrb[3].mxu1  ;;  %v3615_v62 = vld [vmem:[#allocation2 + $0x93] sm:$0xff] }
 0x202   : > { %889 = vst.msk [vmem:[#allocation3 + $0x28] sm:$0xff] %vm883_vm2, %v832_v1  ;;  %v11865_v4 = vpop.f32.mrb[39].mxu0 }
 0x203   : > { %12387 = vmatmul.mubr.msk.bf16.gmra.mrb[108].mxu1 %vm682_vm1, %v3622_v8 }
 0x204   : > { %11983 = vmatmul.mubr.msk.bf16.gmra.mrb[144].mxu0 %vm682_vm1, %v14311_v39  ;;  %12390 = vmatprep.mubr.msk.bf16.mxu1 %vm13904_vm0, %v17096_v2 }
 0x205   : > { %11986 = vmatprep.mubr.msk.bf16.mxu0 %vm13904_vm0, %v17096_v2 }
 0x206   : > { %v14457_v13 = vpop.f32.mrb[4].mxu1 }
 0x207   : > { %v837_v11 = vpop.f32.mrb[40].mxu0  ;;  %v12152_v21 = vpop.f32.mrb[5].mxu1 }
 0x208   : > { %890 = vst.msk [vmem:[#allocation3 + $0x30] sm:$0xff] %vm883_vm2, %v837_v11  ;;  %v11868_v20 = vpop.f32.mrb[41].mxu0  ;;  %v14460_v23 = vpop.f32.mrb[6].mxu1  ;;  %v3625_v11 = vpack.c.bf16 %v3615_v62, %v3614_v61  ;;  %v3617_v21 = vld [vmem:[#allocation2 + $0xa3] sm:$0xff] }
 0x209   : > { %v840_v27 = vpop.f32.mrb[42].mxu0  ;;  %v12153_v24 = vpop.f32.mrb[7].mxu1  ;;  %v3616_v20 = vld [vmem:[#allocation2 + $0x9b] sm:$0xff] }
 0x20a   : > { %891 = vst.msk [vmem:[#allocation3 + $0x38] sm:$0xff] %vm883_vm2, %v840_v27  ;;  %v11869_v39 = vpop.f32.mrb[43].mxu0  ;;  %v3626_v42 = vpack.c.bf16 %v3617_v21, %v3616_v20 }
 0x20b   : > { %12391 = vmatmul.mubr.msk.bf16.gmra.mrb[112].mxu1 %vm682_vm1, %v3623_v25 }
 0x20c   : > { %11987 = vmatmul.mubr.msk.bf16.gmra.mrb[148].mxu0 %vm682_vm1, %v14330_v55  ;;  %12394 = vmatprep.mubr.msk.bf16.mxu1 %vm13904_vm0, %v17096_v2 }
 0x20d   : > { %11990 = vmatprep.mubr.msk.bf16.mxu0 %vm13904_vm0, %v17096_v2 }
 0x20e   : > { %v14470_v36 = vpop.f32.mrb[8].mxu1 }
 0x20f   : > { %v845_v28 = vpop.f32.mrb[44].mxu0  ;;  %v12156_v48 = vpop.f32.mrb[9].mxu1 }
 0x210   : > { %892 = vst.msk [vmem:[#allocation3 + $0x40] sm:$0xff] %vm883_vm2, %v845_v28  ;;  %v11872_v47 = vpop.f32.mrb[45].mxu0  ;;  %v14473_v50 = vpop.f32.mrb[10].mxu1  ;;  %v3618_v48 = vld [vmem:[#allocation2 + $0xab] sm:$0x3] }
 0x211   : > { %v848_v49 = vpop.f32.mrb[46].mxu0  ;;  %v12157_v52 = vpop.f32.mrb[11].mxu1 }
 0x212   : > { %893 = vst.msk [vmem:[#allocation3 + $0x48] sm:$0xff] %vm883_vm2, %v848_v49  ;;  %v11873_v55 = vpop.f32.mrb[47].mxu0 }
 0x213   : > { %12395 = vmatmul.mubr.msk.bf16.gmra.mrb[116].mxu1 %vm682_vm1, %v3624_v53 }
 0x214   : > { %11991 = vmatmul.mubr.msk.bf16.gmra.mrb[152].mxu0 %vm682_vm1, %v14344_v0  ;;  %12398 = vmatprep.mubr.msk.bf16.mxu1 %vm13904_vm0, %v17096_v2 }
 0x215   : > { %11994 = vmatprep.mubr.msk.bf16.mxu0 %vm13904_vm0, %v17096_v2 }
 0x216   : > { %v14483_v60 = vpop.f32.mrb[12].mxu1 }
 0x217   : > { %v853_v58 = vpop.f32.mrb[48].mxu0  ;;  %v12160_v1 = vpop.f32.mrb[13].mxu1 }
 0x218   : > { %894 = vst.msk [vmem:[#allocation3 + $0x50] sm:$0xff] %vm883_vm2, %v853_v58  ;;  %v11876_v63 = vpop.f32.mrb[49].mxu0  ;;  %v14486_v5 = vpop.f32.mrb[14].mxu1  ;;  %v3627_v58 = vpack.c.bf16 %v3618_v48, %v3618_v48  ;;  %v1368_v1 = vld [vmem:[#allocation2 + $0x86] sm:$0x3]  ;;  %v1578_v48 = vld [vmem:[#allocation2 + $0xf] sm:$0xff] }
 0x219   : > { %v856_v4 = vpop.f32.mrb[50].mxu0  ;;  %v12161_v8 = vpop.f32.mrb[15].mxu1  ;;  %v1377_v21 = vpack.c.bf16 %v1368_v1, %v1368_v1 }
 0x21a   : > { %895 = vst.msk [vmem:[#allocation3 + $0x58] sm:$0xff] %vm883_vm2, %v856_v4  ;;  %v11877_v0 = vpop.f32.mrb[51].mxu0  ;;  %v14522_v4 = vld [vmem:[#allocation2 + $0x30] sm:$0xff] }
 0x21b   : > { %12399 = vmatmul.mubr.msk.bf16.gmra.mrb[120].mxu1 %vm682_vm1, %v3625_v11 }
 0x21c   : > { %11995 = vmatmul.mubr.msk.bf16.gmra.mrb[156].mxu0 %vm682_vm1, %v14355_v6  ;;  %12402 = vmatprep.mubr.msk.bf16.mxu1 %vm13904_vm0, %v17096_v2 }
 0x21d   : > { %11998 = vmatprep.mubr.msk.bf16.mxu0 %vm13904_vm0, %v17096_v2 }
 0x21e   : > { %v14496_v19 = vpop.f32.mrb[16].mxu1 }
 0x21f   : > { %v861_v17 = vpop.f32.mrb[52].mxu0  ;;  %v12164_v39 = vpop.f32.mrb[17].mxu1 }
 0x220   : > { %896 = vst.msk [vmem:[#allocation3 + $0x60] sm:$0xff] %vm883_vm2, %v861_v17  ;;  %v11880_v27 = vpop.f32.mrb[53].mxu0  ;;  %v14499_v25 = vpop.f32.mrb[18].mxu1  ;;  %v13684_v39 = vld [vmem:[%s17088_s3 + $0x110] sm:$0xff]  }
 0x221   : > { %v864_v24 = vpop.f32.mrb[54].mxu0  ;;  %v12165_v28 = vpop.f32.mrb[19].mxu1  ;;  %v4069_v27 = vpack.c.bf16 %v14182_v26, %v14522_v4 }
 0x222   : > { %897 = vst.msk [vmem:[#allocation3 + $0x68] sm:$0xff] %vm883_vm2, %v864_v24  ;;  %v11881_v6 = vpop.f32.mrb[55].mxu0  ;;  %v13685_v24 = vld [vmem:[%s17088_s3 + $0x118] sm:$0xff]  }
 0x223   : > { %12403 = vmatmul.mubr.msk.bf16.gmra.mrb[124].mxu1 %vm682_vm1, %v3626_v42  ;;  %v1076_v28 = vld [vmem:[#allocation3] sm:$0xff] }
 0x224   : > { %11999 = vmatmul.mubr.msk.bf16.gmra.mrb[160].mxu0 %vm682_vm1, %v14368_v16  ;;  %12406 = vmatprep.mubr.msk.bf16.mxu1 %vm13904_vm0, %v17096_v2 }
 0x225   : > { %12002 = vmatprep.mubr.msk.bf16.mxu0 %vm13904_vm0, %v17096_v2 }
 0x226   : > { %v14509_v47 = vpop.f32.mrb[20].mxu1 }
 0x227   : > { %v869_v43 = vpop.f32.mrb[56].mxu0  ;;  %v12168_v55 = vpop.f32.mrb[21].mxu1 }
 0x228   : > { %898 = vst.msk [vmem:[#allocation3 + $0x70] sm:$0xff] %vm883_vm2, %v869_v43  ;;  %v11884_v49 = vpop.f32.mrb[57].mxu0  ;;  %v2423_v53 = vpop.f32.mrb[22].mxu1  ;;  %v1577_v43 = vld [vmem:[#allocation2 + $0x7] sm:$0xff] }
 0x229   : > { %v872_v52 = vpop.f32.mrb[58].mxu0  ;;  %v12169_v61 = vpop.f32.mrb[23].mxu1 }
 0x22a   : > { %899 = vst.msk [vmem:[#allocation3 + $0x78] sm:$0xff] %vm883_vm2, %v872_v52  ;;  %v11885_v16 = vpop.f32.mrb[59].mxu0  ;;  %v13682_v61 = vld [vmem:[%s17088_s3 + $0x50] sm:$0xff]  }
 0x22b   : > { %12407 = vmatmul.mubr.msk.bf16.gmra.mrb[128].mxu1 %vm682_vm1, %v3627_v58  ;;  %v1077_v16 = vld [vmem:[#allocation3 + $0x8] sm:$0xff] }
 0x22c   : > { %12003 = vmatmul.mubr.msk.bf16.gmra.mrb[164].mxu0 %vm682_vm1, %v14377_v22  ;;  %12454 = vmatprep.mubr.msk.bf16.mxu1 %vm13904_vm0, %v17096_v2 }
 0x22d   : > { %12006 = vmatprep.mubr.msk.bf16.mxu0 %vm13904_vm0, %v17096_v2 }
 0x22e   : > { %v14520_v63 = vpop.f32.mrb[24].mxu1 }
 0x22f   : > { %v877_v62 = vpop.f32.mrb[60].mxu0  ;;  %v12216_v8 = vpop.f32.mrb[25].mxu1 }
 0x230   : > { %901 = vst.msk [vmem:[#allocation3 + $0x80] sm:$0x3] %vm900_vm3, %v877_v62  ;;  %v11888_v0 = vpop.f32.mrb[61].mxu0  ;;  %v14525_v11 = vpop.f32.mrb[26].mxu1  ;;  %v1594_v8 = vpack.c.bf16 %v1578_v48, %v1577_v43  ;;  %v1079_v48 = vld [vmem:[#allocation3 + $0x18] sm:$0xff] }
 0x231   : > { %v880_v22 = vpop.f32.mrb[62].mxu0  ;;  %v12217_v20 = vpop.f32.mrb[27].mxu1 }
 0x232   : > { %v11889_v17 = vpop.f32.mrb[63].mxu0  ;;  %v4070_v22 = vpack.c.bf16 %v14186_v30, %v14184_v29 }
 0x233   : > { %12455 = vmatmul.mubr.msk.bf16.vlgmr.msra.gmra.mrb[132].mxu1 %vm682_vm1, %v4069_v27  ;;  %v13683_v17 = vld [vmem:[%s17088_s3 + $0x58] sm:$0xff]  }
 0x234   : > { %12007 = vmatmul.mubr.msk.bf16.gmra.mrb[168].mxu0 %vm682_vm1, %v1377_v21  ;;  %12458 = vmatprep.mubr.msk.bf16.mxu1 %vm13904_vm0, %v17096_v2  ;;  %v1078_v21 = vld [vmem:[#allocation3 + $0x10] sm:$0xff] }
 0x235   : > { %12014 = vmatprep.mubr.msk.bf16.mxu0 %vm13904_vm0, %v17096_v2  ;;  %12531 = vmatpush3.bf16.msra.mxu1 %v13684_v39  ;;  %v1580_v39 = vld [vmem:[#allocation2 + $0x1f] sm:$0xff] }
 0x236   : > { %v14541_v42 = vpop.f32.mrb[28].mxu1  ;;  %12532 = vmatprep.subr.bf16.mxu1 %v17096_v2 }
 0x237   : > { %v1006_v6 = vpop.f32.mrb[64].mxu0  ;;  %v12220_v52 = vpop.f32.mrb[29].mxu1 }
 0x238   : > { %v1093_v49 = vadd.f32 %v1076_v28, %v1006_v6  ;;  %v11896_v55 = vpop.f32.mrb[65].mxu0  ;;  %v14544_v58 = vpop.f32.mrb[30].mxu1 }
 0x239   : > { %v1009_v53 = vpop.f32.mrb[66].mxu0  ;;  %v12221_v0 = vpop.f32.mrb[31].mxu1  ;;  %12533 = vmatpush3.bf16.msra.mxu1 %v13685_v24  ;;  %v1579_v55 = vld [vmem:[#allocation2 + $0x17] sm:$0xff] }
 0x23a   : > { %1110 = vst.msk [vmem:[#allocation3] sm:$0xff] %vm883_vm2, %v1093_v49  ;;  %v1094_v62 = vadd.f32 %v1077_v16, %v1009_v53  ;;  %v11897_v1 = vpop.f32.mrb[67].mxu0  ;;  %12610 = vmatprep.subr.bf16.mxu1 %v17096_v2  ;;  %v1080_v0 = vld [vmem:[#allocation3 + $0x20] sm:$0xff] }
 0x23b   : > { %12459 = vmatmul.mubr.msk.bf16.gmra.mrb[136].mxu1 %vm682_vm1, %v4070_v22  ;;  %v1581_v22 = vld [vmem:[#allocation2 + $0x27] sm:$0xff] }
 0x23c   : > { %1111 = vst.msk [vmem:[#allocation3 + $0x8] sm:$0xff] %vm883_vm2, %v1094_v62  ;;  %12015 = vmatmul.mubr.msk.bf16.vlgmr.msra.gmra.mrb[172].mxu0 %vm682_vm1, %v1594_v8  ;;  %12462 = vmatprep.mubr.msk.bf16.mxu1 %vm13904_vm0, %v17096_v2  ;;  %v4071_v62 = vpack.c.bf16 %v14190_v32, %v14188_v31 }
 0x23d   : > { %12051 = vmatpush3.bf16.msra.mxu0 %v13682_v61  ;;  %12018 = vmatprep.mubr.msk.bf16.mxu0 %vm13904_vm0, %v17096_v2  ;;  %v1595_v61 = vpack.c.bf16 %v1580_v39, %v1579_v55 }
 0x23e   : > { %12052 = vmatprep.subr.bf16.mxu0 %v17096_v2  ;;  %v14564_v27 = vpop.f32.mrb[32].mxu1 }
 0x23f   : > { %v1014_v20 = vpop.f32.mrb[68].mxu0  ;;  %v12224_v28 = vpop.f32.mrb[33].mxu1 }
 0x240   : > { %v1095_v24 = vadd.f32 %v1078_v21, %v1014_v20  ;;  %v11900_v6 = vpop.f32.mrb[69].mxu0  ;;  %v14566_v49 = vpop.f32.mrb[34].mxu1 }
 0x241   : > { %v1017_v43 = vpop.f32.mrb[70].mxu0  ;;  %12053 = vmatpush3.bf16.msra.mxu0 %v13683_v17  ;;  %v12225_v16 = vpop.f32.mrb[35].mxu1  ;;  %v1582_v17 = vld [vmem:[#allocation2 + $0x2f] sm:$0xff]  ;;  %v1081_v6 = vld [vmem:[#allocation3 + $0x28] sm:$0xff] }
 0x242   : > { %1112 = vst.msk [vmem:[#allocation3 + $0x10] sm:$0xff] %vm883_vm2, %v1095_v24  ;;  %v1096_v52 = vadd.f32 %v1079_v48, %v1017_v43  ;;  %v11901_v53 = vpop.f32.mrb[71].mxu0  ;;  %12090 = vmatprep.subr.bf16.mxu0 %v17096_v2 }
 0x243   : > { %12463 = vmatmul.mubr.msk.bf16.gmra.mrb[140].mxu1 %vm682_vm1, %v4071_v62  ;;  %v4072_v53 = vpack.c.bf16 %v14204_v37, %v14196_v34 }
 0x244   : > { %1113 = vst.msk [vmem:[#allocation3 + $0x18] sm:$0xff] %vm883_vm2, %v1096_v52  ;;  %12019 = vmatmul.mubr.msk.bf16.gmra.mrb[176].mxu0 %vm682_vm1, %v1595_v61  ;;  %12466 = vmatprep.mubr.msk.bf16.mxu1 %vm13904_vm0, %v17096_v2  ;;  %v1596_v52 = vpack.c.bf16 %v1582_v17, %v1581_v22  ;;  %v1082_v61 = vld [vmem:[#allocation3 + $0x30] sm:$0xff] }
 0x245   : > { %12022 = vmatprep.mubr.msk.bf16.mxu0 %vm13904_vm0, %v17096_v2 }
 0x246   : > { %v14579_v8 = vpop.f32.mrb[36].mxu1 }
 0x247   : > { %v1022_v1 = vpop.f32.mrb[72].mxu0  ;;  %v12228_v39 = vpop.f32.mrb[37].mxu1 }
 0x248   : > { %v1097_v20 = vadd.f32 %v1080_v0, %v1022_v1  ;;  %v11904_v21 = vpop.f32.mrb[73].mxu0  ;;  %v14581_v28 = vpop.f32.mrb[38].mxu1  ;;  %v1583_v1 = vld [vmem:[#allocation2 + $0x37] sm:$0xff]  ;;  %v1584_v0 = vld [vmem:[#allocation2 + $0x3f] sm:$0xff] }
 0x249   : > { %v1025_v24 = vpop.f32.mrb[74].mxu0  ;;  %v12229_v55 = vpop.f32.mrb[39].mxu1  ;;  %v1083_v39 = vld [vmem:[#allocation3 + $0x38] sm:$0xff] }
 0x24a   : > { %1114 = vst.msk [vmem:[#allocation3 + $0x20] sm:$0xff] %vm883_vm2, %v1097_v20  ;;  %v1098_v43 = vadd.f32 %v1081_v6, %v1025_v24  ;;  %v11905_v48 = vpop.f32.mrb[75].mxu0  ;;  %v1597_v55 = vpack.c.bf16 %v1584_v0, %v1583_v1  ;;  %v1586_v1 = vld [vmem:[#allocation2 + $0x4f] sm:$0xff] }
 0x24b   : > { %12467 = vmatmul.mubr.msk.bf16.gmra.mrb[144].mxu1 %vm682_vm1, %v4072_v53  ;;  %v1585_v53 = vld [vmem:[#allocation2 + $0x47] sm:$0xff] }
 0x24c   : > { %1115 = vst.msk [vmem:[#allocation3 + $0x28] sm:$0xff] %vm883_vm2, %v1098_v43  ;;  %12023 = vmatmul.mubr.msk.bf16.gmra.mrb[180].mxu0 %vm682_vm1, %v1596_v52  ;;  %12470 = vmatprep.mubr.msk.bf16.mxu1 %vm13904_vm0, %v17096_v2  ;;  %v4073_v52 = vpack.c.bf16 %v14210_v41, %v14208_v40  ;;  %v4063_v0 = vld [vmem:[#allocation2 + $0x88] sm:$0xff]  ;;  %v1598_v18 = vpack.c.bf16 %v1586_v1, %v1585_v53  ;;  %v4064_v53 = vld [vmem:[#allocation2 + $0x90] sm:$0xff] }
 0x24d   : > { %12026 = vmatprep.mubr.msk.bf16.mxu0 %vm13904_vm0, %v17096_v2  ;;  %v4074_v57 = vpack.c.bf16 %v4063_v0, %v13832_v14  ;;  %v4065_v14 = vld [vmem:[#allocation2 + $0x98] sm:$0xff] }
 0x24e   : > { %v14593_v62 = vpop.f32.mrb[40].mxu1  ;;  %v4075_v45 = vpack.c.bf16 %v4065_v14, %v4064_v53 }
 0x24f   : > { %v1030_v16 = vpop.f32.mrb[76].mxu0  ;;  %v12232_v20 = vpop.f32.mrb[41].mxu1 }
 0x250   : > { %v1099_v22 = vadd.f32 %v1082_v61, %v1030_v16  ;;  %v11908_v17 = vpop.f32.mrb[77].mxu0  ;;  %v14595_v24 = vpop.f32.mrb[42].mxu1  ;;  %v1084_v61 = vld [vmem:[#allocation3 + $0x40] sm:$0xff] }
 0x251   : > { %v1033_v21 = vpop.f32.mrb[78].mxu0  ;;  %v12233_v48 = vpop.f32.mrb[43].mxu1 }
 0x252   : > { %1116 = vst.msk [vmem:[#allocation3 + $0x30] sm:$0xff] %vm883_vm2, %v1099_v22  ;;  %v1100_v6 = vadd.f32 %v1083_v39, %v1033_v21  ;;  %v11909_v43 = vpop.f32.mrb[79].mxu0 }
 0x253   : > { %12471 = vmatmul.mubr.msk.bf16.gmra.mrb[148].mxu1 %vm682_vm1, %v4073_v52 }
 0x254   : > { %1117 = vst.msk [vmem:[#allocation3 + $0x38] sm:$0xff] %vm883_vm2, %v1100_v6  ;;  %12027 = vmatmul.mubr.msk.bf16.gmra.mrb[184].mxu0 %vm682_vm1, %v1597_v55  ;;  %12474 = vmatprep.mubr.msk.bf16.mxu1 %vm13904_vm0, %v17096_v2  ;;  %v1085_v6 = vld [vmem:[#allocation3 + $0x48] sm:$0xff] }
 0x255   : > { %12030 = vmatprep.mubr.msk.bf16.mxu0 %vm13904_vm0, %v17096_v2 }
 0x256   : > { %v14607_v22 = vpop.f32.mrb[44].mxu1 }
 0x257   : > { %v1038_v16 = vpop.f32.mrb[80].mxu0  ;;  %v12236_v21 = vpop.f32.mrb[45].mxu1 }
 0x258   : > { %v1101_v17 = vadd.f32 %v1084_v61, %v1038_v16  ;;  %v11912_v20 = vpop.f32.mrb[81].mxu0  ;;  %v14609_v43 = vpop.f32.mrb[46].mxu1  ;;  %v1587_v16 = vld [vmem:[#allocation2 + $0x57] sm:$0xff]  ;;  %v1588_v61 = vld [vmem:[#allocation2 + $0x5f] sm:$0xff] }
 0x259   : > { %v1041_v39 = vpop.f32.mrb[82].mxu0  ;;  %v12237_v52 = vpop.f32.mrb[47].mxu1  ;;  %v1086_v20 = vld [vmem:[#allocation3 + $0x50] sm:$0xff]  ;;  %v1599_v46 = vpack.c.bf16 %v1588_v61, %v1587_v16  ;;  %v4066_v16 = vld [vmem:[#allocation2 + $0xa0] sm:$0xff] }
 0x25a   : > { %1118 = vst.msk [vmem:[#allocation3 + $0x40] sm:$0xff] %vm883_vm2, %v1101_v17  ;;  %v1102_v48 = vadd.f32 %v1085_v6, %v1041_v39  ;;  %v11913_v55 = vpop.f32.mrb[83].mxu0  ;;  %v1087_v6 = vld [vmem:[#allocation3 + $0x58] sm:$0xff]  ;;  %v4067_v61 = vld [vmem:[#allocation2 + $0xa8] sm:$0xff] }
 0x25b   : > { %12475 = vmatmul.mubr.msk.bf16.gmra.mrb[152].mxu1 %vm682_vm1, %v4074_v57  ;;  %v4076_v35 = vpack.c.bf16 %v4067_v61, %v4066_v16 }
 0x25c   : > { %1119 = vst.msk [vmem:[#allocation3 + $0x48] sm:$0xff] %vm883_vm2, %v1102_v48  ;;  %12031 = vmatmul.mubr.msk.bf16.gmra.mrb[188].mxu0 %vm682_vm1, %v1598_v18  ;;  %12478 = vmatprep.mubr.msk.bf16.mxu1 %vm13904_vm0, %v17096_v2 }
 0x25d   : > { %12034 = vmatprep.mubr.msk.bf16.mxu0 %vm13904_vm0, %v17096_v2 }
 0x25e   : > { %v14619_v21 = vpop.f32.mrb[48].mxu1 }
 0x25f   : > { %v1046_v17 = vpop.f32.mrb[84].mxu0  ;;  %v12240_v39 = vpop.f32.mrb[49].mxu1 }
 0x260   : > { %v1103_v1 = vadd.f32 %v1086_v20, %v1046_v17  ;;  %v11916_v0 = vpop.f32.mrb[85].mxu0  ;;  %v14621_v57 = vpop.f32.mrb[50].mxu1  ;;  %v1589_v17 = vld [vmem:[#allocation2 + $0x67] sm:$0xff]  ;;  %v1590_v20 = vld [vmem:[#allocation2 + $0x6f] sm:$0xff] }
 0x261   : > { %v1049_v18 = vpop.f32.mrb[86].mxu0  ;;  %v12241_v52 = vpop.f32.mrb[51].mxu1  ;;  %v1088_v0 = vld [vmem:[#allocation3 + $0x60] sm:$0xff]  ;;  %v1600_v38 = vpack.c.bf16 %v1590_v20, %v1589_v17  ;;  %v4068_v17 = vld [vmem:[#allocation2 + $0xb0] sm:$0x3] }
 0x262   : > { %1120 = vst.msk [vmem:[#allocation3 + $0x50] sm:$0xff] %vm883_vm2, %v1103_v1  ;;  %v1104_v48 = vadd.f32 %v1087_v6, %v1049_v18  ;;  %v11917_v55 = vpop.f32.mrb[87].mxu0  ;;  %v1089_v6 = vld [vmem:[#allocation3 + $0x68] sm:$0xff] }
 0x263   : > { %12479 = vmatmul.mubr.msk.bf16.gmra.mrb[156].mxu1 %vm682_vm1, %v4075_v45 }
 0x264   : > { %1121 = vst.msk [vmem:[#allocation3 + $0x58] sm:$0xff] %vm883_vm2, %v1104_v48  ;;  %12035 = vmatmul.mubr.msk.bf16.gmra.mrb[192].mxu0 %vm682_vm1, %v1599_v46  ;;  %12482 = vmatprep.mubr.msk.bf16.mxu1 %vm13904_vm0, %v17096_v2 }
 0x265   : > { %12038 = vmatprep.mubr.msk.bf16.mxu0 %vm13904_vm0, %v17096_v2 }
 0x266   : > { %v14631_v39 = vpop.f32.mrb[52].mxu1 }
 0x267   : > { %v1054_v1 = vpop.f32.mrb[88].mxu0  ;;  %v12244_v18 = vpop.f32.mrb[53].mxu1 }
 0x268   : > { %v1105_v53 = vadd.f32 %v1088_v0, %v1054_v1  ;;  %v11920_v14 = vpop.f32.mrb[89].mxu0  ;;  %v14633_v45 = vpop.f32.mrb[54].mxu1  ;;  %v1591_v1 = vld [vmem:[#allocation2 + $0x77] sm:$0xff]  ;;  %v1592_v18 = vld [vmem:[#allocation2 + $0x7f] sm:$0xff] }
 0x269   : > { %v1057_v46 = vpop.f32.mrb[90].mxu0  ;;  %v12245_v52 = vpop.f32.mrb[55].mxu1 }
 0x26a   : > { %1122 = vst.msk [vmem:[#allocation3 + $0x60] sm:$0xff] %vm883_vm2, %v1105_v53  ;;  %v1106_v48 = vadd.f32 %v1089_v6, %v1057_v46  ;;  %v11921_v55 = vpop.f32.mrb[91].mxu0  ;;  %v1090_v53 = vld [vmem:[#allocation3 + $0x70] sm:$0xff]  ;;  %v4077_v52 = vpack.c.bf16 %v4068_v17, %v4068_v17 }
 0x26b   : > { %12483 = vmatmul.mubr.msk.bf16.gmra.mrb[160].mxu1 %vm682_vm1, %v4076_v35  ;;  %v1601_v55 = vpack.c.bf16 %v1592_v18, %v1591_v1  ;;  %v4502_v1 = vld [vmem:[#allocation2 + $0x32] sm:$0xff] }
 0x26c   : > { %1123 = vst.msk [vmem:[#allocation3 + $0x68] sm:$0xff] %vm883_vm2, %v1106_v48  ;;  %12039 = vmatmul.mubr.msk.bf16.gmra.mrb[196].mxu0 %vm682_vm1, %v1600_v38  ;;  %12486 = vmatprep.mubr.msk.bf16.mxu1 %vm13904_vm0, %v17096_v2  ;;  %v1091_v38 = vld [vmem:[#allocation3 + $0x78] sm:$0xff] }
 0x26d   : > { %12042 = vmatprep.mubr.msk.bf16.mxu0 %vm13904_vm0, %v17096_v2 }
 0x26e   : > { %v14643_v14 = vpop.f32.mrb[56].mxu1 }
 0x26f   : > { %v1062_v0 = vpop.f32.mrb[92].mxu0  ;;  %17101 = vst [vmem:[#allocation9_spill] sm:$0xff] %v14643_v14  ;;  %v12248_v61 = vpop.f32.mrb[57].mxu1 }
 0x270   : > { %v1107_v20 = vadd.f32 %v1090_v53, %v1062_v0  ;;  %v11924_v16 = vpop.f32.mrb[93].mxu0  ;;  %v2873_v6 = vpop.f32.mrb[58].mxu1  ;;  %v1593_v0 = vld [vmem:[#allocation2 + $0x87] sm:$0x3]  ;;  %v1092_v53 = vld [vmem:[#allocation3 + $0x80] sm:$0x3] }
 0x271   : > { %v1065_v46 = vpop.f32.mrb[94].mxu0  ;;  %v12249_v33 = vpop.f32.mrb[59].mxu1 }
 0x272   : > { %1124 = vst.msk [vmem:[#allocation3 + $0x70] sm:$0xff] %vm883_vm2, %v1107_v20  ;;  %v1108_v35 = vadd.f32 %v1091_v38, %v1065_v46  ;;  %v11925_v48 = vpop.f32.mrb[95].mxu0 }
 0x273   : > { %12487 = vmatmul.mubr.msk.bf16.gmra.mrb[164].mxu1 %vm682_vm1, %v4077_v52  ;;  %v4519_v48 = vpack.c.bf16 %v14364_v7, %v4502_v1  ;;  %v1802_v52 = vld [vmem:[#allocation2 + $0x8] sm:$0xff]  ;;  %v13689_v7 = vld [vmem:[%s17088_s3 + $0x138] sm:$0xff]  }
 0x274   : > { %1125 = vst.msk [vmem:[#allocation3 + $0x78] sm:$0xff] %vm883_vm2, %v1108_v35  ;;  %12043 = vmatmul.mubr.msk.bf16.gmra.mrb[200].mxu0 %vm682_vm1, %v1601_v55  ;;  %12534 = vmatprep.mubr.msk.bf16.mxu1 %vm13904_vm0, %v17096_v2  ;;  %v1602_v35 = vpack.c.bf16 %v1593_v0, %v1593_v0  ;;  %v13688_v55 = vld [vmem:[%s17088_s3 + $0x130] sm:$0xff]   ;;  %v4504_v1 = vld [vmem:[#allocation2 + $0x42] sm:$0xff] }
 0x275   : > { %12046 = vmatprep.mubr.msk.bf16.mxu0 %vm13904_vm0, %v17096_v2 }
 0x276   : > { %v14653_v16 = vpop.f32.mrb[60].mxu1 }
 0x277   : > { %v1070_v20 = vpop.f32.mrb[96].mxu0  ;;  %17102 = vst [vmem:[#allocation10_spill] sm:$0xff] %v14653_v16  ;;  %v12296_v17 = vpop.f32.mrb[61].mxu1 }
 0x278   : > { %v1109_v18 = vadd.f32 %v1092_v53, %v1070_v20  ;;  %v11928_v33 = vpop.f32.mrb[97].mxu0  ;;  %v14655_v46 = vpop.f32.mrb[62].mxu1  ;;  %v1301_v53 = vld [vmem:[#allocation3] sm:$0xff] }
 0x279   : > { %v1073_v61 = vpop.f32.mrb[98].mxu0  ;;  %17103 = vst [vmem:[#allocation11_spill] sm:$0xff] %v14655_v46  ;;  %v12297_v6 = vpop.f32.mrb[63].mxu1 }
 0x27a   : > { %1126 = vst.msk [vmem:[#allocation3 + $0x80] sm:$0x3] %vm900_vm3, %v1109_v18  ;;  %v11929_v38 = vpop.f32.mrb[99].mxu0  ;;  %v4505_v18 = vld [vmem:[#allocation2 + $0x4a] sm:$0xff]  ;;  %v1302_v6 = vld [vmem:[#allocation3 + $0x8] sm:$0xff] }
 0x27b   : > { %12535 = vmatmul.mubr.msk.bf16.vlgmr.msra.gmra.mrb[168].mxu1 %vm682_vm1, %v4519_v48  ;;  %v1803_v48 = vld [vmem:[#allocation2 + $0x10] sm:$0xff]  ;;  %v4520_v14 = vpack.c.bf16 %v4505_v18, %v4504_v1 }
 0x27c   : > { %12047 = vmatmul.mubr.msk.bf16.gmra.mrb[204].mxu0 %vm682_vm1, %v1602_v35  ;;  %12538 = vmatprep.mubr.msk.bf16.mxu1 %vm13904_vm0, %v17096_v2  ;;  %v1819_v56 = vpack.c.bf16 %v1803_v48, %v1802_v52 }
 0x27d   : > { %12054 = vmatprep.mubr.msk.bf16.mxu0 %vm13904_vm0, %v17096_v2  ;;  %12611 = vmatpush3.bf16.msra.mxu1 %v13688_v55  ;;  %v13686_v55 = vld [vmem:[%s17088_s3 + $0x60] sm:$0xff]  }
 0x27e   : > { %v14671_v20 = vpop.f32.mrb[64].mxu1  ;;  %12612 = vmatprep.subr.bf16.mxu1 %v17096_v2 }
 0x27f   : > { %v1231_v0 = vpop.f32.mrb[100].mxu0  ;;  %17104 = vst [vmem:[#allocation12_spill] sm:$0xff] %v14671_v20  ;;  %v12300_v61 = vpop.f32.mrb[65].mxu1 }
 0x280   : > { %v1318_v33 = vadd.f32 %v1301_v53, %v1231_v0  ;;  %v11936_v17 = vpop.f32.mrb[101].mxu0  ;;  %v14674_v35 = vpop.f32.mrb[66].mxu1  ;;  %v13687_v0 = vld [vmem:[%s17088_s3 + $0x68] sm:$0xff]   ;;  %v1804_v61 = vld [vmem:[#allocation2 + $0x18] sm:$0xff] }
 0x281   : > { %v1234_v38 = vpop.f32.mrb[102].mxu0  ;;  %17105 = vst [vmem:[#allocation13_spill] sm:$0xff] %v14674_v35  ;;  %v12301_v16 = vpop.f32.mrb[67].mxu1  ;;  %12613 = vmatpush3.bf16.msra.mxu1 %v13689_v7  ;;  %v17106_v35 = vmov 0.0  }
 0x282   : > { %1335 = vst.msk [vmem:[#allocation3] sm:$0xff] %vm883_vm2, %v1318_v33  ;;  %v1319_v46 = vadd.f32 %v1302_v6, %v1234_v38  ;;  %v11937_v20 = vpop.f32.mrb[103].mxu0  ;;  %12690 = vmatprep.subr.bf16.mxu1 %v17096_v2  ;;  %v1805_v16 = vld [vmem:[#allocation2 + $0x20] sm:$0xff]  ;;  %v1304_v33 = vld [vmem:[#allocation3 + $0x18] sm:$0xff] }
 0x283   : > { %12539 = vmatmul.mubr.msk.bf16.gmra.mrb[172].mxu1 %vm682_vm1, %v4520_v14  ;;  %v4507_v14 = vld [vmem:[#allocation2 + $0x5a] sm:$0xff] }
 0x284   : > { %1336 = vst.msk [vmem:[#allocation3 + $0x8] sm:$0xff] %vm883_vm2, %v1319_v46  ;;  %12055 = vmatmul.mubr.msk.bf16.vlgmr.msra.gmra.mrb[208].mxu0 %vm682_vm1, %v1819_v56  ;;  %12542 = vmatprep.mubr.msk.bf16.mxu1 %vm13904_vm0, %v17096_v2  ;;  %v1303_v46 = vld [vmem:[#allocation3 + $0x10] sm:$0xff]  ;;  %v4506_v56 = vld [vmem:[#allocation2 + $0x52] sm:$0xff] }
 0x285   : > { %12091 = vmatpush3.bf16.msra.mxu0 %v13686_v55  ;;  %12058 = vmatprep.mubr.msk.bf16.mxu0 %vm13904_vm0, %v17096_v2  ;;  %v1820_v55 = vpack.c.bf16 %v1805_v16, %v1804_v61  ;;  %v4508_v16 = vld [vmem:[#allocation2 + $0x62] sm:$0xff] }
 0x286   : > { %12092 = vmatprep.subr.bf16.mxu0 %v17096_v2  ;;  %v14692_v7 = vpop.f32.mrb[68].mxu1  ;;  %v4521_v2 = vpack.c.bf16 %v4507_v14, %v4506_v56  ;;  %v4509_v56 = vld [vmem:[#allocation2 + $0x6a] sm:$0xff] }
 0x287   : > { %v1239_v52 = vpop.f32.mrb[104].mxu0  ;;  %v12304_v1 = vpop.f32.mrb[69].mxu1 }
 0x288   : > { %v1320_v53 = vadd.f32 %v1303_v46, %v1239_v52  ;;  %v11940_v20 = vpop.f32.mrb[105].mxu0  ;;  %v14694_v17 = vpop.f32.mrb[70].mxu1  ;;  %v1305_v46 = vld [vmem:[#allocation3 + $0x20] sm:$0xff] }
 0x289   : > { %v1242_v18 = vpop.f32.mrb[106].mxu0  ;;  %12093 = vmatpush3.bf16.msra.mxu0 %v13687_v0  ;;  %v12305_v48 = vpop.f32.mrb[71].mxu1  ;;  %v1806_v0 = vld [vmem:[#allocation2 + $0x28] sm:$0xff] }
 0x28a   : > { %1337 = vst.msk [vmem:[#allocation3 + $0x10] sm:$0xff] %vm883_vm2, %v1320_v53  ;;  %v1321_v38 = vadd.f32 %v1304_v33, %v1242_v18  ;;  %v11941_v6 = vpop.f32.mrb[107].mxu0  ;;  %12130 = vmatprep.subr.bf16.mxu0 %v17106_v35  ;;  %v1306_v33 = vld [vmem:[#allocation3 + $0x28] sm:$0xff]  ;;  %v1821_v48 = vpack.c.bf16 %v14522_v4, %v1806_v0 }
 0x28b   : > { %12543 = vmatmul.mubr.msk.bf16.gmra.mrb[176].mxu1 %vm682_vm1, %v4521_v2 }
 0x28c   : > { %1338 = vst.msk [vmem:[#allocation3 + $0x18] sm:$0xff] %vm883_vm2, %v1321_v38  ;;  %12059 = vmatmul.mubr.msk.bf16.gmra.mrb[212].mxu0 %vm682_vm1, %v1820_v55  ;;  %12546 = vmatprep.mubr.msk.bf16.mxu1 %vm13904_vm0, %v17106_v35  ;;  %v4522_v55 = vpack.c.bf16 %v4509_v56, %v4508_v16 }
 0x28d   : > { %12062 = vmatprep.mubr.msk.bf16.mxu0 %vm13904_vm0, %v17106_v35 }
 0x28e   : > { %v14705_v53 = vpop.f32.mrb[72].mxu1 }
 0x28f   : > { %v1247_v52 = vpop.f32.mrb[108].mxu0  ;;  %v12308_v1 = vpop.f32.mrb[73].mxu1 }
 0x290   : > { %v1322_v14 = vadd.f32 %v1305_v46, %v1247_v52  ;;  %v11944_v20 = vpop.f32.mrb[109].mxu0  ;;  %v14707_v61 = vpop.f32.mrb[74].mxu1  ;;  %v1307_v46 = vld [vmem:[#allocation3 + $0x30] sm:$0xff]  ;;  %v4511_v1 = vld [vmem:[#allocation2 + $0x7a] sm:$0xff] }
 0x291   : > { %v1250_v18 = vpop.f32.mrb[110].mxu0  ;;  %v12309_v6 = vpop.f32.mrb[75].mxu1  ;;  %v4510_v20 = vld [vmem:[#allocation2 + $0x72] sm:$0xff] }
 0x292   : > { %1339 = vst.msk [vmem:[#allocation3 + $0x20] sm:$0xff] %vm883_vm2, %v1322_v14  ;;  %v1323_v2 = vadd.f32 %v1306_v33, %v1250_v18  ;;  %v11945_v38 = vpop.f32.mrb[111].mxu0  ;;  %v1308_v18 = vld [vmem:[#allocation3 + $0x38] sm:$0xff] }
 0x293   : > { %12547 = vmatmul.mubr.msk.bf16.gmra.mrb[180].mxu1 %vm682_vm1, %v4522_v55  ;;  %v17107_v55 = vpack.c.bf16 %v14184_v29, %v14182_v26  ;;  %v1310_v29 = vld [vmem:[#allocation3 + $0x48] sm:$0xff] }
 0x294   : > { %1340 = vst.msk [vmem:[#allocation3 + $0x28] sm:$0xff] %vm883_vm2, %v1323_v2  ;;  %12063 = vmatmul.mubr.msk.bf16.gmra.mrb[216].mxu0 %vm682_vm1, %v1821_v48  ;;  %12550 = vmatprep.mubr.msk.bf16.mxu1 %vm13904_vm0, %v17106_v35  ;;  %v4523_v48 = vpack.c.bf16 %v4511_v1, %v4510_v20  ;;  %v4512_v20 = vld [vmem:[#allocation2 + $0x82] sm:$0xff]  ;;  %v4513_v1 = vld [vmem:[#allocation2 + $0x8a] sm:$0xff] }
 0x295   : > { %12066 = vmatprep.mubr.msk.bf16.mxu0 %vm13904_vm0, %v17106_v35 }
 0x296   : > { %v14718_v14 = vpop.f32.mrb[76].mxu1 }
 0x297   : > { %v1255_v52 = vpop.f32.mrb[112].mxu0  ;;  %v12312_v16 = vpop.f32.mrb[77].mxu1 }
 0x298   : > { %v1324_v4 = vadd.f32 %v1307_v46, %v1255_v52  ;;  %v11948_v0 = vpop.f32.mrb[113].mxu0  ;;  %v14720_v33 = vpop.f32.mrb[78].mxu1  ;;  %v1309_v46 = vld [vmem:[#allocation3 + $0x40] sm:$0xff] }
 0x299   : > { %v1258_v56 = vpop.f32.mrb[114].mxu0  ;;  %v12313_v6 = vpop.f32.mrb[79].mxu1 }
 0x29a   : > { %1341 = vst.msk [vmem:[#allocation3 + $0x30] sm:$0xff] %vm883_vm2, %v1324_v4  ;;  %v1325_v2 = vadd.f32 %v1308_v18, %v1258_v56  ;;  %v11949_v38 = vpop.f32.mrb[115].mxu0 }
 0x29b   : > { %12551 = vmatmul.mubr.msk.bf16.gmra.mrb[184].mxu1 %vm682_vm1, %v4523_v48  ;;  %v4524_v48 = vpack.c.bf16 %v4513_v1, %v4512_v20  ;;  %v4514_v20 = vld [vmem:[#allocation2 + $0x92] sm:$0xff]  ;;  %v4515_v1 = vld [vmem:[#allocation2 + $0x9a] sm:$0xff] }
 0x29c   : > { %1342 = vst.msk [vmem:[#allocation3 + $0x38] sm:$0xff] %vm883_vm2, %v1325_v2  ;;  %12067 = vmatmul.mubr.msk.bf16.gmra.mrb[220].mxu0 %vm682_vm1, %v17107_v55  ;;  %12554 = vmatprep.mubr.msk.bf16.mxu1 %vm13904_vm0, %v17106_v35  ;;  %v17108_v55 = vpack.c.bf16 %v14188_v31, %v14186_v30  ;;  %v1312_v31 = vld [vmem:[#allocation3 + $0x58] sm:$0xff] }
 0x29d   : > { %12070 = vmatprep.mubr.msk.bf16.mxu0 %vm13904_vm0, %v17106_v35 }
 0x29e   : > { %v14733_v4 = vpop.f32.mrb[80].mxu1 }
 0x29f   : > { %v1263_v52 = vpop.f32.mrb[116].mxu0  ;;  %v12316_v56 = vpop.f32.mrb[81].mxu1 }
 0x2a0   : > { %v1326_v0 = vadd.f32 %v1309_v46, %v1263_v52  ;;  %v11952_v16 = vpop.f32.mrb[117].mxu0  ;;  %v14735_v18 = vpop.f32.mrb[82].mxu1  ;;  %v1311_v46 = vld [vmem:[#allocation3 + $0x50] sm:$0xff] }
 0x2a1   : > { %v1266_v26 = vpop.f32.mrb[118].mxu0  ;;  %v12317_v6 = vpop.f32.mrb[83].mxu1 }
 0x2a2   : > { %1343 = vst.msk [vmem:[#allocation3 + $0x40] sm:$0xff] %vm883_vm2, %v1326_v0  ;;  %v1327_v2 = vadd.f32 %v1310_v29, %v1266_v26  ;;  %v11953_v38 = vpop.f32.mrb[119].mxu0 }
 0x2a3   : > { %12555 = vmatmul.mubr.msk.bf16.gmra.mrb[188].mxu1 %vm682_vm1, %v4524_v48  ;;  %v4525_v48 = vpack.c.bf16 %v4515_v1, %v4514_v20  ;;  %v4516_v20 = vld [vmem:[#allocation2 + $0xa2] sm:$0xff]  ;;  %v4517_v1 = vld [vmem:[#allocation2 + $0xaa] sm:$0xff] }
 0x2a4   : > { %1344 = vst.msk [vmem:[#allocation3 + $0x48] sm:$0xff] %vm883_vm2, %v1327_v2  ;;  %12071 = vmatmul.mubr.msk.bf16.gmra.mrb[224].mxu0 %vm682_vm1, %v17108_v55  ;;  %12558 = vmatprep.mubr.msk.bf16.mxu1 %vm13904_vm0, %v17106_v35  ;;  %v17111_v55 = vpack.c.bf16 %v14196_v34, %v14190_v32  ;;  %v1314_v34 = vld [vmem:[#allocation3 + $0x68] sm:$0xff] }
 0x2a5   : > { %12074 = vmatprep.mubr.msk.bf16.mxu0 %vm13904_vm0, %v17106_v35 }
 0x2a6   : > { %v14748_v0 = vpop.f32.mrb[84].mxu1 }
 0x2a7   : > { %v1271_v52 = vpop.f32.mrb[120].mxu0  ;;  %17109 = vst [vmem:[#allocation14_spill] sm:$0xff] %v14748_v0  ;;  %v12320_v26 = vpop.f32.mrb[85].mxu1 }
 0x2a8   : > { %v1328_v16 = vadd.f32 %v1311_v46, %v1271_v52  ;;  %v11956_v56 = vpop.f32.mrb[121].mxu0  ;;  %v14750_v29 = vpop.f32.mrb[86].mxu1  ;;  %v1313_v46 = vld [vmem:[#allocation3 + $0x60] sm:$0xff] }
 0x2a9   : > { %v1274_v30 = vpop.f32.mrb[122].mxu0  ;;  %17110 = vst [vmem:[#allocation15_spill] sm:$0xff] %v14750_v29  ;;  %v12321_v6 = vpop.f32.mrb[87].mxu1 }
 0x2aa   : > { %1345 = vst.msk [vmem:[#allocation3 + $0x50] sm:$0xff] %vm883_vm2, %v1328_v16  ;;  %v1329_v2 = vadd.f32 %v1312_v31, %v1274_v30  ;;  %v11957_v38 = vpop.f32.mrb[123].mxu0 }
 0x2ab   : > { %12559 = vmatmul.mubr.msk.bf16.gmra.mrb[192].mxu1 %vm682_vm1, %v4525_v48  ;;  %v4526_v48 = vpack.c.bf16 %v4517_v1, %v4516_v20  ;;  %v4518_v20 = vld [vmem:[#allocation2 + $0xb2] sm:$0x3] }
 0x2ac   : > { %1346 = vst.msk [vmem:[#allocation3 + $0x58] sm:$0xff] %vm883_vm2, %v1329_v2  ;;  %12075 = vmatmul.mubr.msk.bf16.gmra.mrb[228].mxu0 %vm682_vm1, %v17111_v55  ;;  %12562 = vmatprep.mubr.msk.bf16.mxu1 %vm13904_vm0, %v17106_v35  ;;  %v17114_v55 = vpack.c.bf16 %v14208_v40, %v14204_v37  ;;  %v1316_v37 = vld [vmem:[#allocation3 + $0x78] sm:$0xff] }
 0x2ad   : > { %12078 = vmatprep.mubr.msk.bf16.mxu0 %vm13904_vm0, %v17106_v35 }
 0x2ae   : > { %v14763_v16 = vpop.f32.mrb[88].mxu1 }
 0x2af   : > { %v1279_v52 = vpop.f32.mrb[124].mxu0  ;;  %17112 = vst [vmem:[#allocation16_spill] sm:$0xff] %v14763_v16  ;;  %v12324_v30 = vpop.f32.mrb[89].mxu1 }
 0x2b0   : > { %v1330_v56 = vadd.f32 %v1313_v46, %v1279_v52  ;;  %v11960_v26 = vpop.f32.mrb[125].mxu0  ;;  %v14765_v31 = vpop.f32.mrb[90].mxu1  ;;  %v1315_v46 = vld [vmem:[#allocation3 + $0x70] sm:$0xff] }
 0x2b1   : > { %v1282_v32 = vpop.f32.mrb[126].mxu0  ;;  %17113 = vst [vmem:[#allocation17_spill] sm:$0xff] %v14765_v31  ;;  %v12325_v6 = vpop.f32.mrb[91].mxu1 }
 0x2b2   : > { %1347 = vst.msk [vmem:[#allocation3 + $0x60] sm:$0xff] %vm883_vm2, %v1330_v56  ;;  %v1331_v2 = vadd.f32 %v1314_v34, %v1282_v32  ;;  %v11961_v38 = vpop.f32.mrb[127].mxu0 }
 0x2b3   : > { %12563 = vmatmul.mubr.msk.bf16.gmra.mrb[196].mxu1 %vm682_vm1, %v4526_v48  ;;  %v4527_v38 = vpack.c.bf16 %v4518_v20, %v4518_v20  ;;  %v17116_v48 = vpack.c.bf16 %v14212_v44, %v14210_v41 }
 0x2b4   : > { %1348 = vst.msk [vmem:[#allocation3 + $0x68] sm:$0xff] %vm883_vm2, %v1331_v2  ;;  %12079 = vmatmul.mubr.msk.bf16.gmra.mrb[232].mxu0 %vm682_vm1, %v17114_v55  ;;  %12566 = vmatprep.mubr.msk.bf16.mxu1 %vm13904_vm0, %v17106_v35  ;;  %v1818_v55 = vld [vmem:[#allocation2 + $0x88] sm:$0x3] }
 0x2b5   : > { %12082 = vmatprep.mubr.msk.bf16.mxu0 %vm13904_vm0, %v17106_v35 }
 0x2b6   : > { %v14778_v56 = vpop.f32.mrb[92].mxu1 }
 0x2b7   : > { %v1287_v52 = vpop.f32.mrb[128].mxu0  ;;  %17115 = vst [vmem:[#allocation18_spill] sm:$0xff] %v14778_v56  ;;  %v12328_v30 = vpop.f32.mrb[93].mxu1 }
 0x2b8   : > { %v1332_v1 = vadd.f32 %v1315_v46, %v1287_v52  ;;  %v11964_v26 = vpop.f32.mrb[129].mxu0  ;;  %v3323_v40 = vpop.f32.mrb[94].mxu1  ;;  %v1317_v52 = vld [vmem:[#allocation3 + $0x80] sm:$0x3] }
 0x2b9   : > { %v1290_v32 = vpop.f32.mrb[130].mxu0  ;;  %v12329_v6 = vpop.f32.mrb[95].mxu1  ;;  %v4953_v26 = vld [vmem:[#allocation2 + $0x51] sm:$0xff] }
 0x2ba   : > { %1349 = vst.msk [vmem:[#allocation3 + $0x70] sm:$0xff] %vm883_vm2, %v1332_v1  ;;  %v1333_v34 = vadd.f32 %v1316_v37, %v1290_v32  ;;  %v11965_v2 = vpop.f32.mrb[131].mxu0  ;;  %v4952_v1 = vld [vmem:[#allocation2 + $0x49] sm:$0xff] }
 0x2bb   : > { %12567 = vmatmul.mubr.msk.bf16.gmra.mrb[200].mxu1 %vm682_vm1, %v4527_v38  ;;  %v1827_v2 = vpack.c.bf16 %v1818_v55, %v1818_v55  ;;  %v4969_v38 = vpack.c.bf16 %v4953_v26, %v4952_v1  ;;  %v13690_v6 = vld [vmem:[%s17088_s3 + $0x150] sm:$0xff]   ;;  %v13691_v55 = vld [vmem:[%s17088_s3 + $0x158] sm:$0xff]  }
 0x2bc   : > { %1350 = vst.msk [vmem:[#allocation3 + $0x78] sm:$0xff] %vm883_vm2, %v1333_v34  ;;  %12083 = vmatmul.mubr.msk.bf16.gmra.mrb[236].mxu0 %vm682_vm1, %v17116_v48  ;;  %12614 = vmatprep.mubr.msk.bf16.mxu1 %vm13904_vm0, %v17106_v35  ;;  %v2027_v48 = vld [vmem:[#allocation2 + $0xc] sm:$0xff]  ;;  %v1526_v1 = vld [vmem:[#allocation3] sm:$0xff] }
 0x2bd   : > { %12086 = vmatprep.mubr.msk.bf16.mxu0 %vm13904_vm0, %v17106_v35 }
 0x2be   : > { %v14791_v20 = vpop.f32.mrb[96].mxu1 }
 0x2bf   : > { %v1295_v46 = vpop.f32.mrb[132].mxu0  ;;  %17117 = vst [vmem:[#allocation19_spill] sm:$0xff] %v14791_v20  ;;  %v12376_v41 = vpop.f32.mrb[97].mxu1 }
 0x2c0   : > { %v1334_v30 = vadd.f32 %v1317_v52, %v1295_v46  ;;  %v11968_v32 = vpop.f32.mrb[133].mxu0  ;;  %v14793_v37 = vpop.f32.mrb[98].mxu1  ;;  %v2028_v52 = vld [vmem:[#allocation2 + $0x14] sm:$0xff] }
 0x2c1   : > { %v1298_v44 = vpop.f32.mrb[134].mxu0  ;;  %17118 = vst [vmem:[#allocation20_spill] sm:$0xff] %v14793_v37  ;;  %v12377_v34 = vpop.f32.mrb[99].mxu1  ;;  %v4955_v32 = vld [vmem:[#allocation2 + $0x61] sm:$0xff]  ;;  %v2044_v56 = vpack.c.bf16 %v2028_v52, %v2027_v48 }
 0x2c2   : > { %1351 = vst.msk [vmem:[#allocation3 + $0x80] sm:$0x3] %vm900_vm3, %v1334_v30  ;;  %v11969_v40 = vpop.f32.mrb[135].mxu0  ;;  %v4954_v30 = vld [vmem:[#allocation2 + $0x59] sm:$0xff]  ;;  %v1528_v48 = vld [vmem:[#allocation3 + $0x10] sm:$0xff] }
 0x2c3   : > { %12615 = vmatmul.mubr.msk.bf16.vlgmr.msra.gmra.mrb[204].mxu1 %vm682_vm1, %v4969_v38  ;;  %v4970_v31 = vpack.c.bf16 %v4955_v32, %v4954_v30 }
 0x2c4   : > { %12087 = vmatmul.mubr.msk.bf16.gmra.mrb[240].mxu0 %vm682_vm1, %v1827_v2  ;;  %12618 = vmatprep.mubr.msk.bf16.mxu1 %vm13904_vm0, %v17106_v35  ;;  %v1527_v2 = vld [vmem:[#allocation3 + $0x8] sm:$0xff] }
 0x2c5   : > { %12094 = vmatprep.mubr.msk.bf16.mxu0 %vm13904_vm0, %v17106_v35  ;;  %12691 = vmatpush3.bf16.msra.mxu1 %v13690_v6 }
 0x2c6   : > { %v14808_v26 = vpop.f32.mrb[100].mxu1  ;;  %12692 = vmatprep.subr.bf16.mxu1 %v17106_v35 }
 0x2c7   : > { %v1456_v46 = vpop.f32.mrb[136].mxu0  ;;  %17119 = vst [vmem:[#allocation21_spill] sm:$0xff] %v14808_v26  ;;  %v12380_v40 = vpop.f32.mrb[101].mxu1 }
 0x2c8   : > { %v1543_v41 = vadd.f32 %v1526_v1, %v1456_v46  ;;  %v11976_v44 = vpop.f32.mrb[137].mxu0  ;;  %v14811_v38 = vpop.f32.mrb[102].mxu1  ;;  %v13833_v46 = vld [vmem:[%s17088_s3 + $0x70] sm:$0xff]   ;;  %v2029_v40 = vld [vmem:[#allocation2 + $0x1c] sm:$0xff] }
 0x2c9   : > { %v1459_v34 = vpop.f32.mrb[138].mxu0  ;;  %17120 = vst [vmem:[#allocation22_spill] sm:$0xff] %v14811_v38  ;;  %v12381_v20 = vpop.f32.mrb[103].mxu1  ;;  %12693 = vmatpush3.bf16.msra.mxu1 %v13691_v55 }
 0x2ca   : > { %1560 = vst.msk [vmem:[#allocation3] sm:$0xff] %vm883_vm2, %v1543_v41  ;;  %v1544_v6 = vadd.f32 %v1527_v2, %v1459_v34  ;;  %v11977_v37 = vpop.f32.mrb[139].mxu0  ;;  %12770 = vmatprep.subr.bf16.mxu1 %v17106_v35  ;;  %v2030_v20 = vld [vmem:[#allocation2 + $0x24] sm:$0xff]  ;;  %v1529_v41 = vld [vmem:[#allocation3 + $0x18] sm:$0xff]  ;;  %v13834_v34 = vld [vmem:[%s17088_s3 + $0x78] sm:$0xff]  }
 0x2cb   : > { %12619 = vmatmul.mubr.msk.bf16.gmra.mrb[208].mxu1 %vm682_vm1, %v4970_v31  ;;  %v4957_v31 = vld [vmem:[#allocation2 + $0x71] sm:$0xff] }
 0x2cc   : > { %1561 = vst.msk [vmem:[#allocation3 + $0x8] sm:$0xff] %vm883_vm2, %v1544_v6  ;;  %12095 = vmatmul.mubr.msk.bf16.vlgmr.msra.gmra.mrb[244].mxu0 %vm682_vm1, %v2044_v56  ;;  %12622 = vmatprep.mubr.msk.bf16.mxu1 %vm13904_vm0, %v17106_v35  ;;  %v4956_v56 = vld [vmem:[#allocation2 + $0x69] sm:$0xff] }
 0x2cd   : > { %12131 = vmatpush3.bf16.msra.mxu0 %v13833_v46  ;;  %12098 = vmatprep.mubr.msk.bf16.mxu0 %vm13904_vm0, %v17106_v35  ;;  %v4971_v38 = vpack.c.bf16 %v4957_v31, %v4956_v56  ;;  %v4958_v56 = vld [vmem:[#allocation2 + $0x79] sm:$0xff]  ;;  %v4959_v31 = vld [vmem:[#allocation2 + $0x81] sm:$0xff] }
 0x2ce   : > { %12132 = vmatprep.subr.bf16.mxu0 %v17106_v35  ;;  %v14826_v52 = vpop.f32.mrb[104].mxu1 }
 0x2cf   : > { %v1464_v37 = vpop.f32.mrb[140].mxu0  ;;  %17121 = vst [vmem:[#allocation23_spill] sm:$0xff] %v14826_v52  ;;  %v12384_v30 = vpop.f32.mrb[105].mxu1  ;;  %v2045_v52 = vpack.c.bf16 %v2030_v20, %v2029_v40  ;;  %v1531_v40 = vld [vmem:[#allocation3 + $0x28] sm:$0xff] }
 0x2d0   : > { %v1545_v55 = vadd.f32 %v1528_v48, %v1464_v37  ;;  %v11980_v1 = vpop.f32.mrb[141].mxu0  ;;  %v14828_v44 = vpop.f32.mrb[106].mxu1  ;;  %v2031_v37 = vld [vmem:[#allocation2 + $0x2c] sm:$0xff]  ;;  %v2032_v48 = vld [vmem:[#allocation2 + $0x34] sm:$0xff] }
 0x2d1   : > { %v1467_v32 = vpop.f32.mrb[142].mxu0  ;;  %17122 = vst [vmem:[#allocation24_spill] sm:$0xff] %v14828_v44  ;;  %12133 = vmatpush3.bf16.msra.mxu0 %v13834_v34  ;;  %v12385_v46 = vpop.f32.mrb[107].mxu1  ;;  %v1530_v1 = vld [vmem:[#allocation3 + $0x20] sm:$0xff]  ;;  %v4972_v44 = vpack.c.bf16 %v4959_v31, %v4958_v56 }
 0x2d2   : > { %1562 = vst.msk [vmem:[#allocation3 + $0x10] sm:$0xff] %vm883_vm2, %v1545_v55  ;;  %v1546_v2 = vadd.f32 %v1529_v41, %v1467_v32  ;;  %v11981_v6 = vpop.f32.mrb[143].mxu0  ;;  %12170 = vmatprep.subr.bf16.mxu0 %v17106_v35  ;;  %v2046_v46 = vpack.c.bf16 %v2032_v48, %v2031_v37  ;;  %v4961_v37 = vld [vmem:[#allocation2 + $0x91] sm:$0xff] }
 0x2d3   : > { %12623 = vmatmul.mubr.msk.bf16.gmra.mrb[212].mxu1 %vm682_vm1, %v4971_v38 }
 0x2d4   : > { %1563 = vst.msk [vmem:[#allocation3 + $0x18] sm:$0xff] %vm883_vm2, %v1546_v2  ;;  %12099 = vmatmul.mubr.msk.bf16.gmra.mrb[248].mxu0 %vm682_vm1, %v2045_v52  ;;  %12626 = vmatprep.mubr.msk.bf16.mxu1 %vm13904_vm0, %v17106_v35 }
 0x2d5   : > { %12102 = vmatprep.mubr.msk.bf16.mxu0 %vm13904_vm0, %v17106_v35 }
 0x2d6   : > { %v14842_v20 = vpop.f32.mrb[108].mxu1 }
 0x2d7   : > { %v1472_v55 = vpop.f32.mrb[144].mxu0  ;;  %17123 = vst [vmem:[#allocation25_spill] sm:$0xff] %v14842_v20  ;;  %v12388_v41 = vpop.f32.mrb[109].mxu1 }
 0x2d8   : > { %v1547_v30 = vadd.f32 %v1530_v1, %v1472_v55  ;;  %v11984_v32 = vpop.f32.mrb[145].mxu0  ;;  %v14844_v38 = vpop.f32.mrb[110].mxu1  ;;  %v2034_v55 = vld [vmem:[#allocation2 + $0x44] sm:$0xff] }
 0x2d9   : > { %v1475_v52 = vpop.f32.mrb[146].mxu0  ;;  %17124 = vst [vmem:[#allocation26_spill] sm:$0xff] %v14844_v38  ;;  %v12389_v6 = vpop.f32.mrb[111].mxu1  ;;  %v4960_v41 = vld [vmem:[#allocation2 + $0x89] sm:$0xff] }
 0x2da   : > { %1564 = vst.msk [vmem:[#allocation3 + $0x20] sm:$0xff] %vm883_vm2, %v1547_v30  ;;  %v1548_v34 = vadd.f32 %v1531_v40, %v1475_v52  ;;  %v11985_v2 = vpop.f32.mrb[147].mxu0  ;;  %v1532_v30 = vld [vmem:[#allocation3 + $0x30] sm:$0xff]  ;;  %v1533_v40 = vld [vmem:[#allocation3 + $0x38] sm:$0xff]  ;;  %v4973_v20 = vpack.c.bf16 %v4961_v37, %v4960_v41 }
 0x2db   : > { %12627 = vmatmul.mubr.msk.bf16.gmra.mrb[216].mxu1 %vm682_vm1, %v4972_v44  ;;  %v2033_v44 = vld [vmem:[#allocation2 + $0x3c] sm:$0xff] }
 0x2dc   : > { %1565 = vst.msk [vmem:[#allocation3 + $0x28] sm:$0xff] %vm883_vm2, %v1548_v34  ;;  %12103 = vmatmul.mubr.msk.bf16.gmra.mrb[252].mxu0 %vm682_vm1, %v2046_v46  ;;  %12630 = vmatprep.mubr.msk.bf16.mxu1 %vm13904_vm0, %v17106_v35  ;;  %v2047_v38 = vpack.c.bf16 %v2034_v55, %v2033_v44  ;;  %v4962_v55 = vld [vmem:[#allocation2 + $0x99] sm:$0xff]  ;;  %v4963_v41 = vld [vmem:[#allocation2 + $0xa1] sm:$0xff] }
 0x2dd   : > { %12106 = vmatprep.mubr.msk.bf16.mxu0 %vm13904_vm0, %v17106_v35  ;;  %v1535_v44 = vld [vmem:[#allocation3 + $0x48] sm:$0xff] }
 0x2de   : > { %v14854_v32 = vpop.f32.mrb[112].mxu1 }
 0x2df   : > { %v1480_v1 = vpop.f32.mrb[148].mxu0  ;;  %17125 = vst [vmem:[#allocation27_spill] sm:$0xff] %v14854_v32  ;;  %v12392_v31 = vpop.f32.mrb[113].mxu1  ;;  %v4974_v32 = vpack.c.bf16 %v4963_v41, %v4962_v55 }
 0x2e0   : > { %v1549_v48 = vadd.f32 %v1532_v30, %v1480_v1  ;;  %v11988_v56 = vpop.f32.mrb[149].mxu0  ;;  %v14856_v34 = vpop.f32.mrb[114].mxu1  ;;  %v2035_v1 = vld [vmem:[#allocation2 + $0x4c] sm:$0xff]  ;;  %v2036_v30 = vld [vmem:[#allocation2 + $0x54] sm:$0xff] }
 0x2e1   : > { %v1483_v52 = vpop.f32.mrb[150].mxu0  ;;  %17126 = vst [vmem:[#allocation28_spill] sm:$0xff] %v14856_v34  ;;  %v12393_v46 = vpop.f32.mrb[115].mxu1  ;;  %v1534_v56 = vld [vmem:[#allocation3 + $0x40] sm:$0xff]  ;;  %v2048_v34 = vpack.c.bf16 %v2036_v30, %v2035_v1  ;;  %v4964_v1 = vld [vmem:[#allocation2 + $0xa9] sm:$0xff] }
 0x2e2   : > { %1566 = vst.msk [vmem:[#allocation3 + $0x30] sm:$0xff] %vm883_vm2, %v1549_v48  ;;  %v1550_v2 = vadd.f32 %v1533_v40, %v1483_v52  ;;  %v11989_v6 = vpop.f32.mrb[151].mxu0  ;;  %v4965_v30 = vld [vmem:[#allocation2 + $0xb1] sm:$0xff] }
 0x2e3   : > { %12631 = vmatmul.mubr.msk.bf16.gmra.mrb[220].mxu1 %vm682_vm1, %v4973_v20 }
 0x2e4   : > { %1567 = vst.msk [vmem:[#allocation3 + $0x38] sm:$0xff] %vm883_vm2, %v1550_v2  ;;  %12107 = vmatmul.mubr.msk.bf16.gmra.mrb[0].mxu0 %vm682_vm1, %v2047_v38  ;;  %12634 = vmatprep.mubr.msk.bf16.mxu1 %vm13904_vm0, %v17106_v35 }
 0x2e5   : > { %12110 = vmatprep.mubr.msk.bf16.mxu0 %vm13904_vm0, %v17106_v35 }
 0x2e6   : > { %v14866_v31 = vpop.f32.mrb[116].mxu1 }
 0x2e7   : > { %v1488_v48 = vpop.f32.mrb[152].mxu0  ;;  %17127 = vst [vmem:[#allocation29_spill] sm:$0xff] %v14866_v31  ;;  %v12396_v40 = vpop.f32.mrb[117].mxu1  ;;  %v4975_v31 = vpack.c.bf16 %v4965_v30, %v4964_v1 }
 0x2e8   : > { %v1551_v37 = vadd.f32 %v1534_v56, %v1488_v48  ;;  %v11992_v52 = vpop.f32.mrb[153].mxu0  ;;  %v14868_v20 = vpop.f32.mrb[118].mxu1  ;;  %v2037_v48 = vld [vmem:[#allocation2 + $0x5c] sm:$0xff]  ;;  %v2038_v56 = vld [vmem:[#allocation2 + $0x64] sm:$0xff] }
 0x2e9   : > { %v1491_v38 = vpop.f32.mrb[154].mxu0  ;;  %17128 = vst [vmem:[#allocation30_spill] sm:$0xff] %v14868_v20  ;;  %v12397_v46 = vpop.f32.mrb[119].mxu1  ;;  %v1536_v52 = vld [vmem:[#allocation3 + $0x50] sm:$0xff]  ;;  %v2049_v20 = vpack.c.bf16 %v2038_v56, %v2037_v48  ;;  %v4966_v48 = vld [vmem:[#allocation2 + $0xb9] sm:$0xff] }
 0x2ea   : > { %1568 = vst.msk [vmem:[#allocation3 + $0x40] sm:$0xff] %vm883_vm2, %v1551_v37  ;;  %v1552_v2 = vadd.f32 %v1535_v44, %v1491_v38  ;;  %v11993_v6 = vpop.f32.mrb[155].mxu0  ;;  %v1537_v44 = vld [vmem:[#allocation3 + $0x58] sm:$0xff]  ;;  %v4967_v56 = vld [vmem:[#allocation2 + $0xc1] sm:$0xff] }
 0x2eb   : > { %12635 = vmatmul.mubr.msk.bf16.gmra.mrb[224].mxu1 %vm682_vm1, %v4974_v32 }
 0x2ec   : > { %1569 = vst.msk [vmem:[#allocation3 + $0x48] sm:$0xff] %vm883_vm2, %v1552_v2  ;;  %12111 = vmatmul.mubr.msk.bf16.gmra.mrb[4].mxu0 %vm682_vm1, %v2048_v34  ;;  %12638 = vmatprep.mubr.msk.bf16.mxu1 %vm13904_vm0, %v17106_v35 }
 0x2ed   : > { %12114 = vmatprep.mubr.msk.bf16.mxu0 %vm13904_vm0, %v17106_v35 }
 0x2ee   : > { %v14878_v40 = vpop.f32.mrb[120].mxu1 }
 0x2ef   : > { %v1496_v37 = vpop.f32.mrb[156].mxu0  ;;  %17129 = vst [vmem:[#allocation31_spill] sm:$0xff] %v14878_v40  ;;  %v12400_v38 = vpop.f32.mrb[121].mxu1  ;;  %v4976_v40 = vpack.c.bf16 %v4967_v56, %v4966_v48 }
 0x2f0   : > { %v1553_v55 = vadd.f32 %v1536_v52, %v1496_v37  ;;  %v11996_v41 = vpop.f32.mrb[157].mxu0  ;;  %v14880_v32 = vpop.f32.mrb[122].mxu1  ;;  %v2039_v37 = vld [vmem:[#allocation2 + $0x6c] sm:$0xff]  ;;  %v2040_v52 = vld [vmem:[#allocation2 + $0x74] sm:$0xff] }
 0x2f1   : > { %v1499_v34 = vpop.f32.mrb[158].mxu0  ;;  %17130 = vst [vmem:[#allocation32_spill] sm:$0xff] %v14880_v32  ;;  %v12401_v46 = vpop.f32.mrb[123].mxu1  ;;  %v1538_v41 = vld [vmem:[#allocation3 + $0x60] sm:$0xff]  ;;  %v2050_v32 = vpack.c.bf16 %v2040_v52, %v2039_v37  ;;  %v4968_v37 = vld [vmem:[#allocation2 + $0xc9] sm:$0x3] }
 0x2f2   : > { %1570 = vst.msk [vmem:[#allocation3 + $0x50] sm:$0xff] %vm883_vm2, %v1553_v55  ;;  %v1554_v2 = vadd.f32 %v1537_v44, %v1499_v34  ;;  %v11997_v6 = vpop.f32.mrb[159].mxu0  ;;  %v1539_v44 = vld [vmem:[#allocation3 + $0x68] sm:$0xff] }
 0x2f3   : > { %12639 = vmatmul.mubr.msk.bf16.gmra.mrb[228].mxu1 %vm682_vm1, %v4975_v31 }
 0x2f4   : > { %1571 = vst.msk [vmem:[#allocation3 + $0x58] sm:$0xff] %vm883_vm2, %v1554_v2  ;;  %12115 = vmatmul.mubr.msk.bf16.gmra.mrb[8].mxu0 %vm682_vm1, %v2049_v20  ;;  %12642 = vmatprep.mubr.msk.bf16.mxu1 %vm13904_vm0, %v17106_v35 }
 0x2f5   : > { %12118 = vmatprep.mubr.msk.bf16.mxu0 %vm13904_vm0, %v17106_v35 }
 0x2f6   : > { %v14890_v38 = vpop.f32.mrb[124].mxu1 }
 0x2f7   : > { %v1504_v55 = vpop.f32.mrb[160].mxu0  ;;  %17131 = vst [vmem:[#allocation33_spill] sm:$0xff] %v14890_v38  ;;  %v12404_v34 = vpop.f32.mrb[125].mxu1 }
 0x2f8   : > { %v1555_v1 = vadd.f32 %v1538_v41, %v1504_v55  ;;  %v12000_v30 = vpop.f32.mrb[161].mxu0  ;;  %v14892_v31 = vpop.f32.mrb[126].mxu1  ;;  %v2041_v55 = vld [vmem:[#allocation2 + $0x7c] sm:$0xff]  ;;  %v2042_v34 = vld [vmem:[#allocation2 + $0x84] sm:$0xff] }
 0x2f9   : > { %v1507_v20 = vpop.f32.mrb[162].mxu0  ;;  %17132 = vst [vmem:[#allocation34_spill] sm:$0xff] %v14892_v31  ;;  %v12405_v46 = vpop.f32.mrb[127].mxu1  ;;  %v4977_v31 = vpack.c.bf16 %v4968_v37, %v4968_v37 }
 0x2fa   : > { %1572 = vst.msk [vmem:[#allocation3 + $0x60] sm:$0xff] %vm883_vm2, %v1555_v1  ;;  %v1556_v2 = vadd.f32 %v1539_v44, %v1507_v20  ;;  %v12001_v6 = vpop.f32.mrb[163].mxu0  ;;  %v1540_v1 = vld [vmem:[#allocation3 + $0x70] sm:$0xff]  ;;  %v2051_v46 = vpack.c.bf16 %v2042_v34, %v2041_v55  ;;  %v5403_v55 = vld [vmem:[#allocation2 + $0x56] sm:$0xff] }
 0x2fb   : > { %12643 = vmatmul.mubr.msk.bf16.gmra.mrb[232].mxu1 %vm682_vm1, %v4976_v40 }
 0x2fc   : > { %1573 = vst.msk [vmem:[#allocation3 + $0x68] sm:$0xff] %vm883_vm2, %v1556_v2  ;;  %12119 = vmatmul.mubr.msk.bf16.gmra.mrb[12].mxu0 %vm682_vm1, %v2050_v32  ;;  %12646 = vmatprep.mubr.msk.bf16.mxu1 %vm13904_vm0, %v17106_v35  ;;  %v1541_v32 = vld [vmem:[#allocation3 + $0x78] sm:$0xff] }
 0x2fd   : > { %12122 = vmatprep.mubr.msk.bf16.mxu0 %vm13904_vm0, %v17106_v35 }
 0x2fe   : > { %v14902_v30 = vpop.f32.mrb[128].mxu1 }
 0x2ff   : > { %v1512_v41 = vpop.f32.mrb[164].mxu0  ;;  %17133 = vst [vmem:[#allocation35_spill] sm:$0xff] %v14902_v30  ;;  %v12408_v56 = vpop.f32.mrb[129].mxu1 }
 0x300   : > { %v1557_v52 = vadd.f32 %v1540_v1, %v1512_v41  ;;  %v12004_v48 = vpop.f32.mrb[165].mxu0  ;;  %v3773_v44 = vpop.f32.mrb[130].mxu1  ;;  %v2043_v41 = vld [vmem:[#allocation2 + $0x8c] sm:$0x3]  ;;  %v1542_v1 = vld [vmem:[#allocation3 + $0x80] sm:$0x3] }
 0x301   : > { %v1515_v20 = vpop.f32.mrb[166].mxu0  ;;  %v12409_v6 = vpop.f32.mrb[131].mxu1  ;;  %v5402_v56 = vld [vmem:[#allocation2 + $0x4e] sm:$0xff] }
 0x302   : > { %1574 = vst.msk [vmem:[#allocation3 + $0x70] sm:$0xff] %vm883_vm2, %v1557_v52  ;;  %v1558_v40 = vadd.f32 %v1541_v32, %v1515_v20  ;;  %v12005_v2 = vpop.f32.mrb[167].mxu0  ;;  %v14917_v6 = vpack.c.bf16 %v5403_v55, %v5402_v56  ;;  %v1751_v55 = vld [vmem:[#allocation3] sm:$0xff] }
 0x303   : > { %12647 = vmatmul.mubr.msk.bf16.gmra.mrb[236].mxu1 %vm682_vm1, %v4977_v31  ;;  %v2052_v2 = vpack.c.bf16 %v2043_v41, %v2043_v41  ;;  %v13697_v41 = vld [vmem:[%s17088_s3 + $0x178] sm:$0xff]  }
 0x304   : > { %1575 = vst.msk [vmem:[#allocation3 + $0x78] sm:$0xff] %vm883_vm2, %v1558_v40  ;;  %12123 = vmatmul.mubr.msk.bf16.gmra.mrb[16].mxu0 %vm682_vm1, %v2051_v46  ;;  %12694 = vmatprep.mubr.msk.bf16.mxu1 %vm13904_vm0, %v17106_v35  ;;  %v13695_v46 = vld [vmem:[%s17088_s3 + $0x170] sm:$0xff]  }
 0x305   : > { %12126 = vmatprep.mubr.msk.bf16.mxu0 %vm13904_vm0, %v17106_v35 }
 0x306   : > { %v14912_v48 = vpop.f32.mrb[132].mxu1 }
 0x307   : > { %v1520_v52 = vpop.f32.mrb[168].mxu0  ;;  %17134 = vst [vmem:[#allocation36_spill] sm:$0xff] %v14912_v48  ;;  %v12456_v20 = vpop.f32.mrb[133].mxu1 }
 0x308   : > { %v1559_v34 = vadd.f32 %v1542_v1, %v1520_v52  ;;  %v12008_v37 = vpop.f32.mrb[169].mxu0  ;;  %v14914_v44 = vpop.f32.mrb[134].mxu1  ;;  %v2253_v1 = vld [vmem:[#allocation2 + $0x15] sm:$0xff]  ;;  %v2252_v52 = vld [vmem:[#allocation2 + $0xd] sm:$0xff] }
 0x309   : > { %v1523_v32 = vpop.f32.mrb[170].mxu0  ;;  %17135 = vst [vmem:[#allocation37_spill] sm:$0xff] %v14914_v44  ;;  %v12457_v40 = vpop.f32.mrb[135].mxu1  ;;  %v5404_v37 = vld [vmem:[#allocation2 + $0x5e] sm:$0xff]  ;;  %v5405_v20 = vld [vmem:[#allocation2 + $0x66] sm:$0xff]  ;;  %v2269_v30 = vpack.c.bf16 %v2253_v1, %v2252_v52  ;;  %v5406_v52 = vld [vmem:[#allocation2 + $0x6e] sm:$0xff] }
 0x30a   : > { %1576 = vst.msk [vmem:[#allocation3 + $0x80] sm:$0x3] %vm900_vm3, %v1559_v34  ;;  %v12009_v31 = vpop.f32.mrb[171].mxu0  ;;  %v1752_v44 = vld [vmem:[#allocation3 + $0x8] sm:$0xff]  ;;  %v14941_v16 = vpack.c.bf16 %v5405_v20, %v5404_v37  ;;  %v1753_v1 = vld [vmem:[#allocation3 + $0x10] sm:$0xff]  ;;  %v1754_v20 = vld [vmem:[#allocation3 + $0x18] sm:$0xff] }
 0x30b   : > { %12695 = vmatmul.mubr.msk.bf16.vlgmr.msra.gmra.mrb[240].mxu1 %vm682_vm1, %v14917_v6 }
 0x30c   : > { %12127 = vmatmul.mubr.msk.bf16.gmra.mrb[20].mxu0 %vm682_vm1, %v2052_v2  ;;  %12698 = vmatprep.mubr.msk.bf16.mxu1 %vm13904_vm0, %v17106_v35 }
 0x30d   : > { %12134 = vmatprep.mubr.msk.bf16.mxu0 %vm13904_vm0, %v17106_v35  ;;  %12771 = vmatpush3.bf16.msra.mxu1 %v13695_v46  ;;  %v13692_v46 = vld [vmem:[%s17088_s3 + $0x80] sm:$0xff]  }
 0x30e   : > { %v14932_v34 = vpop.f32.mrb[136].mxu1  ;;  %12772 = vmatprep.subr.bf16.mxu1 %v17106_v35 }
 0x30f   : > { %v1681_v56 = vpop.f32.mrb[172].mxu0  ;;  %17136 = vst [vmem:[#allocation38_spill] sm:$0xff] %v14932_v34  ;;  %v12460_v40 = vpop.f32.mrb[137].mxu1 }
 0x310   : > { %v1768_v32 = vadd.f32 %v1751_v55, %v1681_v56  ;;  %v12016_v31 = vpop.f32.mrb[173].mxu0  ;;  %v14935_v48 = vpop.f32.mrb[138].mxu1 }
 0x311   : > { %v1684_v2 = vpop.f32.mrb[174].mxu0  ;;  %17137 = vst [vmem:[#allocation39_spill] sm:$0xff] %v14935_v48  ;;  %v12461_v26 = vpop.f32.mrb[139].mxu1  ;;  %12773 = vmatpush3.bf16.msra.mxu1 %v13697_v41  ;;  %v5407_v41 = vld [vmem:[#allocation2 + $0x76] sm:$0xff] }
 0x312   : > { %1785 = vst.msk [vmem:[#allocation3] sm:$0xff] %vm883_vm2, %v1768_v32  ;;  %v1769_v38 = vadd.f32 %v1752_v44, %v1684_v2  ;;  %v12017_v34 = vpop.f32.mrb[175].mxu0  ;;  %12850 = vmatprep.subr.bf16.mxu1 %v17106_v35  ;;  %v13693_v26 = vld [vmem:[%s17088_s3 + $0x88] sm:$0xff]   ;;  %v2254_v31 = vld [vmem:[#allocation2 + $0x1d] sm:$0xff]  ;;  %v14961_v29 = vpack.c.bf16 %v5407_v41, %v5406_v52 }
 0x313   : > { %12699 = vmatmul.mubr.msk.bf16.gmra.mrb[244].mxu1 %vm682_vm1, %v14941_v16  ;;  %v2255_v44 = vld [vmem:[#allocation2 + $0x25] sm:$0xff] }
 0x314   : > { %1786 = vst.msk [vmem:[#allocation3 + $0x8] sm:$0xff] %vm883_vm2, %v1769_v38  ;;  %12135 = vmatmul.mubr.msk.bf16.vlgmr.msra.gmra.mrb[24].mxu0 %vm682_vm1, %v2269_v30  ;;  %12702 = vmatprep.mubr.msk.bf16.mxu1 %vm13904_vm0, %v17106_v35  ;;  %v2270_v48 = vpack.c.bf16 %v2255_v44, %v2254_v31  ;;  %v5408_v41 = vld [vmem:[#allocation2 + $0x7e] sm:$0xff] }
 0x315   : > { %12171 = vmatpush3.bf16.msra.mxu0 %v13692_v46  ;;  %12138 = vmatprep.mubr.msk.bf16.mxu0 %vm13904_vm0, %v17106_v35 }
 0x316   : > { %12172 = vmatprep.subr.bf16.mxu0 %v17106_v35  ;;  %v14956_v30 = vpop.f32.mrb[140].mxu1 }
 0x317   : > { %v1689_v38 = vpop.f32.mrb[176].mxu0  ;;  %17138 = vst [vmem:[#allocation40_spill] sm:$0xff] %v14956_v30  ;;  %v12464_v34 = vpop.f32.mrb[141].mxu1 }
 0x318   : > { %v1770_v56 = vadd.f32 %v1753_v1, %v1689_v38  ;;  %v12020_v55 = vpop.f32.mrb[177].mxu0  ;;  %v14958_v32 = vpop.f32.mrb[142].mxu1  ;;  %v14972_v38 = vld [vmem:[#allocation2 + $0x35] sm:$0xff] }
 0x319   : > { %v1692_v37 = vpop.f32.mrb[178].mxu0  ;;  %17139 = vst [vmem:[#allocation41_spill] sm:$0xff] %v14958_v32  ;;  %12173 = vmatpush3.bf16.msra.mxu0 %v13693_v26  ;;  %v12465_v46 = vpop.f32.mrb[143].mxu1  ;;  %v2256_v26 = vld [vmem:[#allocation2 + $0x2d] sm:$0xff]  ;;  %v1755_v1 = vld [vmem:[#allocation3 + $0x20] sm:$0xff] }
 0x31a   : > { %1787 = vst.msk [vmem:[#allocation3 + $0x10] sm:$0xff] %vm883_vm2, %v1770_v56  ;;  %v1771_v40 = vadd.f32 %v1754_v20, %v1692_v37  ;;  %v12021_v2 = vpop.f32.mrb[179].mxu0  ;;  %12250 = vmatprep.subr.bf16.mxu0 %v17106_v35  ;;  %v5409_v56 = vld [vmem:[#allocation2 + $0x86] sm:$0xff]  ;;  %v2271_v32 = vpack.c.bf16 %v14972_v38, %v2256_v26  ;;  %v5410_v26 = vld [vmem:[#allocation2 + $0x8e] sm:$0xff] }
 0x31b   : > { %12703 = vmatmul.mubr.msk.bf16.gmra.mrb[248].mxu1 %vm682_vm1, %v14961_v29  ;;  %v1756_v20 = vld [vmem:[#allocation3 + $0x28] sm:$0xff]  ;;  %v14980_v30 = vpack.c.bf16 %v5409_v56, %v5408_v41  ;;  %v5411_v41 = vld [vmem:[#allocation2 + $0x96] sm:$0xff] }
 0x31c   : > { %1788 = vst.msk [vmem:[#allocation3 + $0x18] sm:$0xff] %vm883_vm2, %v1771_v40  ;;  %12139 = vmatmul.mubr.msk.bf16.gmra.mrb[28].mxu0 %vm682_vm1, %v2270_v48  ;;  %12706 = vmatprep.mubr.msk.bf16.mxu1 %vm13904_vm0, %v17106_v35 }
 0x31d   : > { %12142 = vmatprep.mubr.msk.bf16.mxu0 %vm13904_vm0, %v17106_v35 }
 0x31e   : > { %v14974_v52 = vpop.f32.mrb[144].mxu1 }
 0x31f   : > { %v1697_v44 = vpop.f32.mrb[180].mxu0  ;;  %17140 = vst [vmem:[#allocation42_spill] sm:$0xff] %v14974_v52  ;;  %v12468_v34 = vpop.f32.mrb[145].mxu1  ;;  %v5423_v52 = vpack.c.bf16 %v5411_v41, %v5410_v26  ;;  %v5412_v41 = vld [vmem:[#allocation2 + $0x9e] sm:$0xff] }
 0x320   : > { %v1772_v55 = vadd.f32 %v1755_v1, %v1697_v44  ;;  %v12024_v48 = vpop.f32.mrb[181].mxu0  ;;  %v14976_v31 = vpop.f32.mrb[146].mxu1  ;;  %v1757_v1 = vld [vmem:[#allocation3 + $0x30] sm:$0xff] }
 0x321   : > { %v1700_v37 = vpop.f32.mrb[182].mxu0  ;;  %17141 = vst [vmem:[#allocation43_spill] sm:$0xff] %v14976_v31  ;;  %v12469_v46 = vpop.f32.mrb[147].mxu1 }
 0x322   : > { %1789 = vst.msk [vmem:[#allocation3 + $0x20] sm:$0xff] %vm883_vm2, %v1772_v55  ;;  %v1773_v40 = vadd.f32 %v1756_v20, %v1700_v37  ;;  %v12025_v2 = vpop.f32.mrb[183].mxu0 }
 0x323   : > { %12707 = vmatmul.mubr.msk.bf16.gmra.mrb[252].mxu1 %vm682_vm1, %v14980_v30 }
 0x324   : > { %1790 = vst.msk [vmem:[#allocation3 + $0x28] sm:$0xff] %vm883_vm2, %v1773_v40  ;;  %12143 = vmatmul.mubr.msk.bf16.gmra.mrb[32].mxu0 %vm682_vm1, %v2271_v32  ;;  %12710 = vmatprep.mubr.msk.bf16.mxu1 %vm13904_vm0, %v17106_v35  ;;  %v1758_v32 = vld [vmem:[#allocation3 + $0x38] sm:$0xff]  ;;  %v13694_v40 = vld [vmem:[%s17088_s3 + $0xa0] sm:$0xff]  }
 0x325   : > { %12174 = vmatprep.mubr.msk.bf16.mxu0 %vm13904_vm0, %v17106_v35 }
 0x326   : > { %v14990_v55 = vpop.f32.mrb[148].mxu1 }
 0x327   : > { %v1705_v44 = vpop.f32.mrb[184].mxu0  ;;  %17142 = vst [vmem:[#allocation44_spill] sm:$0xff] %v14990_v55  ;;  %v12472_v34 = vpop.f32.mrb[149].mxu1 }
 0x328   : > { %v1774_v56 = vadd.f32 %v1757_v1, %v1705_v44  ;;  %v12028_v48 = vpop.f32.mrb[185].mxu0  ;;  %v14992_v20 = vpop.f32.mrb[150].mxu1  ;;  %v17144_v44 = vpack.c.bf16 %v14089_v51, %v14095_v54  ;;  %v13696_v1 = vld [vmem:[%s17088_s3 + $0xa8] sm:$0xff]   ;;  %v1759_v51 = vld [vmem:[#allocation3 + $0x40] sm:$0xff] }
 0x329   : > { %v1708_v37 = vpop.f32.mrb[186].mxu0  ;;  %17143 = vst [vmem:[#allocation45_spill] sm:$0xff] %v14992_v20  ;;  %v12473_v31 = vpop.f32.mrb[151].mxu1 }
 0x32a   : > { %1791 = vst.msk [vmem:[#allocation3 + $0x30] sm:$0xff] %vm883_vm2, %v1774_v56  ;;  %v1775_v2 = vadd.f32 %v1758_v32, %v1708_v37  ;;  %v12029_v46 = vpop.f32.mrb[187].mxu0  ;;  %v2480_v31 = vld [vmem:[#allocation2 + $0x26] sm:$0xff] }
 0x32b   : > { %12711 = vmatmul.mubr.msk.bf16.gmra.mrb[0].mxu1 %vm682_vm1, %v5423_v52  ;;  %v5413_v52 = vld [vmem:[#allocation2 + $0xa6] sm:$0xff] }
 0x32c   : > { %1792 = vst.msk [vmem:[#allocation3 + $0x38] sm:$0xff] %vm883_vm2, %v1775_v2  ;;  %12175 = vmatmul.mubr.msk.bf16.vlgmr.msra.gmra.mrb[36].mxu0 %vm682_vm1, %v17144_v44  ;;  %12714 = vmatprep.mubr.msk.bf16.mxu1 %vm13904_vm0, %v17106_v35  ;;  %v1760_v32 = vld [vmem:[#allocation3 + $0x48] sm:$0xff]  ;;  %v5424_v0 = vpack.c.bf16 %v5413_v52, %v5412_v41  ;;  %v5414_v41 = vld [vmem:[#allocation2 + $0xae] sm:$0xff]  ;;  %v5415_v52 = vld [vmem:[#allocation2 + $0xb6] sm:$0xff] }
 0x32d   : > { %12251 = vmatpush3.bf16.msra.mxu0 %v13694_v40  ;;  %12178 = vmatprep.mubr.msk.bf16.mxu0 %vm13904_vm0, %v17106_v35  ;;  %v2479_v2 = vld [vmem:[#allocation2 + $0x1e] sm:$0xff] }
 0x32e   : > { %12252 = vmatprep.subr.bf16.mxu0 %v17106_v35  ;;  %v15012_v54 = vpop.f32.mrb[152].mxu1  ;;  %v2495_v55 = vpack.c.bf16 %v2480_v31, %v2479_v2 }
 0x32f   : > { %v1713_v26 = vpop.f32.mrb[188].mxu0  ;;  %v12476_v34 = vpop.f32.mrb[153].mxu1 }
 0x330   : > { %v1776_v56 = vadd.f32 %v1759_v51, %v1713_v26  ;;  %v12032_v48 = vpop.f32.mrb[189].mxu0  ;;  %v15014_v40 = vpop.f32.mrb[154].mxu1  ;;  %v2482_v26 = vld [vmem:[#allocation2 + $0x36] sm:$0xff] }
 0x331   : > { %v1716_v37 = vpop.f32.mrb[190].mxu0  ;;  %17145 = vst [vmem:[#allocation46_spill] sm:$0xff] %v15014_v40  ;;  %12253 = vmatpush3.bf16.msra.mxu0 %v13696_v1  ;;  %v12477_v20 = vpop.f32.mrb[155].mxu1  ;;  %v2481_v1 = vld [vmem:[#allocation2 + $0x2e] sm:$0xff]  ;;  %v5425_v40 = vpack.c.bf16 %v5415_v52, %v5414_v41 }
 0x332   : > { %1793 = vst.msk [vmem:[#allocation3 + $0x40] sm:$0xff] %vm883_vm2, %v1776_v56  ;;  %v1777_v46 = vadd.f32 %v1760_v32, %v1716_v37  ;;  %v12033_v44 = vpop.f32.mrb[191].mxu0  ;;  %12330 = vmatprep.subr.bf16.mxu0 %v17106_v35  ;;  %v1761_v20 = vld [vmem:[#allocation3 + $0x50] sm:$0xff]  ;;  %v1762_v37 = vld [vmem:[#allocation3 + $0x58] sm:$0xff] }
 0x333   : > { %12715 = vmatmul.mubr.msk.bf16.gmra.mrb[4].mxu1 %vm682_vm1, %v5424_v0  ;;  %v2496_v44 = vpack.c.bf16 %v2482_v26, %v2481_v1  ;;  %v5417_v1 = vld [vmem:[#allocation2 + $0xc6] sm:$0xff] }
 0x334   : > { %1794 = vst.msk [vmem:[#allocation3 + $0x48] sm:$0xff] %vm883_vm2, %v1777_v46  ;;  %12179 = vmatmul.mubr.msk.bf16.gmra.mrb[40].mxu0 %vm682_vm1, %v2495_v55  ;;  %12718 = vmatprep.mubr.msk.bf16.mxu1 %vm13904_vm0, %v17106_v35 }
 0x335   : > { %12182 = vmatprep.mubr.msk.bf16.mxu0 %vm13904_vm0, %v17106_v35 }
 0x336   : > { %v15025_v31 = vpop.f32.mrb[156].mxu1 }
 0x337   : > { %v1721_v51 = vpop.f32.mrb[192].mxu0  ;;  %17146 = vst [vmem:[#allocation47_spill] sm:$0xff] %v15025_v31  ;;  %v12480_v34 = vpop.f32.mrb[157].mxu1 }
 0x338   : > { %v1778_v56 = vadd.f32 %v1761_v20, %v1721_v51  ;;  %v12036_v48 = vpop.f32.mrb[193].mxu0  ;;  %v15027_v0 = vpop.f32.mrb[158].mxu1  ;;  %v2484_v51 = vld [vmem:[#allocation2 + $0x46] sm:$0xff]  ;;  %v5416_v34 = vld [vmem:[#allocation2 + $0xbe] sm:$0xff] }
 0x339   : > { %v1724_v55 = vpop.f32.mrb[194].mxu0  ;;  %17147 = vst [vmem:[#allocation48_spill] sm:$0xff] %v15027_v0  ;;  %v12481_v46 = vpop.f32.mrb[159].mxu1  ;;  %v5426_v31 = vpack.c.bf16 %v5417_v1, %v5416_v34 }
 0x33a   : > { %1795 = vst.msk [vmem:[#allocation3 + $0x50] sm:$0xff] %vm883_vm2, %v1778_v56  ;;  %v1779_v32 = vadd.f32 %v1762_v37, %v1724_v55  ;;  %v12037_v2 = vpop.f32.mrb[195].mxu0  ;;  %v1763_v56 = vld [vmem:[#allocation3 + $0x60] sm:$0xff]  ;;  %v1764_v37 = vld [vmem:[#allocation3 + $0x68] sm:$0xff] }
 0x33b   : > { %12719 = vmatmul.mubr.msk.bf16.gmra.mrb[8].mxu1 %vm682_vm1, %v5425_v40  ;;  %v2483_v40 = vld [vmem:[#allocation2 + $0x3e] sm:$0xff] }
 0x33c   : > { %1796 = vst.msk [vmem:[#allocation3 + $0x58] sm:$0xff] %vm883_vm2, %v1779_v32  ;;  %12183 = vmatmul.mubr.msk.bf16.gmra.mrb[44].mxu0 %vm682_vm1, %v2496_v44  ;;  %12722 = vmatprep.mubr.msk.bf16.mxu1 %vm13904_vm0, %v17106_v35  ;;  %v2497_v0 = vpack.c.bf16 %v2484_v51, %v2483_v40 }
 0x33d   : > { %12186 = vmatprep.mubr.msk.bf16.mxu0 %vm13904_vm0, %v17106_v35 }
 0x33e   : > { %v15037_v48 = vpop.f32.mrb[160].mxu1 }
 0x33f   : > { %v1729_v20 = vpop.f32.mrb[196].mxu0  ;;  %v12484_v52 = vpop.f32.mrb[161].mxu1 }
 0x340   : > { %v1780_v26 = vadd.f32 %v1763_v56, %v1729_v20  ;;  %v12040_v41 = vpop.f32.mrb[197].mxu0  ;;  %v15039_v32 = vpop.f32.mrb[162].mxu1  ;;  %v1765_v56 = vld [vmem:[#allocation3 + $0x70] sm:$0xff] }
 0x341   : > { %v1732_v55 = vpop.f32.mrb[198].mxu0  ;;  %v12485_v44 = vpop.f32.mrb[163].mxu1  ;;  %v5418_v41 = vld [vmem:[#allocation2 + $0xce] sm:$0x3] }
 0x342   : > { %1797 = vst.msk [vmem:[#allocation3 + $0x60] sm:$0xff] %vm883_vm2, %v1780_v26  ;;  %v1781_v2 = vadd.f32 %v1764_v37, %v1732_v55  ;;  %v12041_v46 = vpop.f32.mrb[199].mxu0  ;;  %v1766_v55 = vld [vmem:[#allocation3 + $0x78] sm:$0xff] }
 0x343   : > { %12723 = vmatmul.mubr.msk.bf16.gmra.mrb[12].mxu1 %vm682_vm1, %v5426_v31  ;;  %v1767_v46 = vld [vmem:[#allocation3 + $0x80] sm:$0x3] }
 0x344   : > { %1798 = vst.msk [vmem:[#allocation3 + $0x68] sm:$0xff] %vm883_vm2, %v1781_v2  ;;  %12187 = vmatmul.mubr.msk.bf16.gmra.mrb[48].mxu0 %vm682_vm1, %v2497_v0  ;;  %12726 = vmatprep.mubr.msk.bf16.mxu1 %vm13904_vm0, %v17106_v35  ;;  %v5427_v2 = vpack.c.bf16 %v5418_v41, %v5418_v41 }
 0x345   : > { %12190 = vmatprep.mubr.msk.bf16.mxu0 %vm13904_vm0, %v17106_v35 }
 0x346   : > { %v15049_v26 = vpop.f32.mrb[164].mxu1 }
 0x347   : > { %v1737_v20 = vpop.f32.mrb[200].mxu0  ;;  %v12488_v34 = vpop.f32.mrb[165].mxu1 }
 0x348   : > { %v1782_v52 = vadd.f32 %v1765_v56, %v1737_v20  ;;  %v12044_v51 = vpop.f32.mrb[201].mxu0  ;;  %v4223_v37 = vpop.f32.mrb[166].mxu1  ;;  %v5852_v56 = vld [vmem:[#allocation2 + $0x50] sm:$0xff] }
 0x349   : > { %v1740_v1 = vpop.f32.mrb[202].mxu0  ;;  %v12489_v40 = vpop.f32.mrb[167].mxu1 }
 0x34a   : > { %1799 = vst.msk [vmem:[#allocation3 + $0x70] sm:$0xff] %vm883_vm2, %v1782_v52  ;;  %v1783_v31 = vadd.f32 %v1766_v55, %v1740_v1  ;;  %v12045_v0 = vpop.f32.mrb[203].mxu0  ;;  %v5853_v52 = vld [vmem:[#allocation2 + $0x58] sm:$0xff] }
 0x34b   : > { %12727 = vmatmul.mubr.msk.bf16.gmra.mrb[16].mxu1 %vm682_vm1, %v5427_v2  ;;  %v13699_v0 = vld [vmem:[%s17088_s3 + $0x190] sm:$0xff]   ;;  %v13701_v40 = vld [vmem:[%s17088_s3 + $0x198] sm:$0xff]  }
 0x34c   : > { %1800 = vst.msk [vmem:[#allocation3 + $0x78] sm:$0xff] %vm883_vm2, %v1783_v31  ;;  %12191 = vmatmul.mubr.msk.bf16.gmra.mrb[52].mxu0 %vm682_vm1, %v14917_v6  ;;  %12774 = vmatprep.mubr.msk.bf16.mxu1 %vm13904_vm0, %v17106_v35  ;;  %v5869_v31 = vpack.c.bf16 %v5853_v52, %v5852_v56  ;;  %v5854_v56 = vld [vmem:[#allocation2 + $0x60] sm:$0xff]  ;;  %v5855_v52 = vld [vmem:[#allocation2 + $0x68] sm:$0xff] }
 0x34d   : > { %12194 = vmatprep.mubr.msk.bf16.mxu0 %vm13904_vm0, %v17106_v35 }
 0x34e   : > { %v15060_v20 = vpop.f32.mrb[168].mxu1 }
 0x34f   : > { %v1745_v44 = vpop.f32.mrb[204].mxu0  ;;  %v12536_v34 = vpop.f32.mrb[169].mxu1 }
 0x350   : > { %v1784_v41 = vadd.f32 %v1767_v46, %v1745_v44  ;;  %v12048_v51 = vpop.f32.mrb[205].mxu0  ;;  %v15062_v55 = vpop.f32.mrb[170].mxu1  ;;  %v1976_v46 = vld [vmem:[#allocation3] sm:$0xff] }
 0x351   : > { %v1748_v1 = vpop.f32.mrb[206].mxu0  ;;  %17148 = vst [vmem:[#allocation49_spill] sm:$0xff] %v15062_v55  ;;  %v12537_v37 = vpop.f32.mrb[171].mxu1  ;;  %v5870_v55 = vpack.c.bf16 %v5855_v52, %v5854_v56  ;;  %v5857_v56 = vld [vmem:[#allocation2 + $0x78] sm:$0xff] }
 0x352   : > { %1801 = vst.msk [vmem:[#allocation3 + $0x80] sm:$0x3] %vm900_vm3, %v1784_v41  ;;  %v12049_v6 = vpop.f32.mrb[207].mxu0  ;;  %v1977_v1 = vld [vmem:[#allocation3 + $0x8] sm:$0xff] }
 0x353   : > { %12775 = vmatmul.mubr.msk.bf16.vlgmr.msra.gmra.mrb[20].mxu1 %vm682_vm1, %v5869_v31 }
 0x354   : > { %12195 = vmatmul.mubr.msk.bf16.gmra.mrb[56].mxu0 %vm682_vm1, %v14941_v16  ;;  %12778 = vmatprep.mubr.msk.bf16.mxu1 %vm13904_vm0, %v17106_v35 }
 0x355   : > { %12198 = vmatprep.mubr.msk.bf16.mxu0 %vm13904_vm0, %v17106_v35  ;;  %12851 = vmatpush3.bf16.msra.mxu1 %v13699_v0 }
 0x356   : > { %v15078_v44 = vpop.f32.mrb[172].mxu1  ;;  %12852 = vmatprep.subr.bf16.mxu1 %v17106_v35 }
 0x357   : > { %v1906_v2 = vpop.f32.mrb[208].mxu0  ;;  %17149 = vst [vmem:[#allocation50_spill] sm:$0xff] %v15078_v44  ;;  %v12540_v51 = vpop.f32.mrb[173].mxu1 }
 0x358   : > { %v1993_v16 = vadd.f32 %v1976_v46, %v1906_v2  ;;  %v12056_v41 = vpop.f32.mrb[209].mxu0  ;;  %v15081_v6 = vpop.f32.mrb[174].mxu1  ;;  %v1978_v46 = vld [vmem:[#allocation3 + $0x10] sm:$0xff] }
 0x359   : > { %v1909_v34 = vpop.f32.mrb[210].mxu0  ;;  %17150 = vst [vmem:[#allocation51_spill] sm:$0xff] %v15081_v6  ;;  %v12541_v0 = vpop.f32.mrb[175].mxu1  ;;  %12853 = vmatpush3.bf16.msra.mxu1 %v13701_v40  ;;  %v5856_v40 = vld [vmem:[#allocation2 + $0x70] sm:$0xff] }
 0x35a   : > { %2010 = vst.msk [vmem:[#allocation3] sm:$0xff] %vm883_vm2, %v1993_v16  ;;  %v1994_v37 = vadd.f32 %v1977_v1, %v1909_v34  ;;  %v12057_v31 = vpop.f32.mrb[211].mxu0  ;;  %12930 = vmatprep.subr.bf16.mxu1 %v17106_v35  ;;  %v1979_v1 = vld [vmem:[#allocation3 + $0x18] sm:$0xff]  ;;  %v5871_v0 = vpack.c.bf16 %v5857_v56, %v5856_v40  ;;  %v5859_v40 = vld [vmem:[#allocation2 + $0x88] sm:$0xff] }
 0x35b   : > { %12779 = vmatmul.mubr.msk.bf16.gmra.mrb[24].mxu1 %vm682_vm1, %v5870_v55 }
 0x35c   : > { %2011 = vst.msk [vmem:[#allocation3 + $0x8] sm:$0xff] %vm883_vm2, %v1994_v37  ;;  %12199 = vmatmul.mubr.msk.bf16.gmra.mrb[60].mxu0 %vm682_vm1, %v14961_v29  ;;  %12782 = vmatprep.mubr.msk.bf16.mxu1 %vm13904_vm0, %v17106_v35 }
 0x35d   : > { %12202 = vmatprep.mubr.msk.bf16.mxu0 %vm13904_vm0, %v17106_v35 }
 0x35e   : > { %v15093_v16 = vpop.f32.mrb[176].mxu1 }
 0x35f   : > { %v1914_v2 = vpop.f32.mrb[212].mxu0  ;;  %17151 = vst [vmem:[#allocation52_spill] sm:$0xff] %v15093_v16  ;;  %v12544_v51 = vpop.f32.mrb[177].mxu1 }
 0x360   : > { %v1995_v52 = vadd.f32 %v1978_v46, %v1914_v2  ;;  %v12060_v41 = vpop.f32.mrb[213].mxu0  ;;  %v15095_v29 = vpop.f32.mrb[178].mxu1  ;;  %v2493_v2 = vld [vmem:[#allocation2 + $0x8e] sm:$0x3]  ;;  %v5858_v51 = vld [vmem:[#allocation2 + $0x80] sm:$0xff] }
 0x361   : > { %v1917_v34 = vpop.f32.mrb[214].mxu0  ;;  %17152 = vst [vmem:[#allocation53_spill] sm:$0xff] %v15095_v29  ;;  %v12545_v31 = vpop.f32.mrb[179].mxu1  ;;  %v2502_v16 = vpack.c.bf16 %v2493_v2, %v2493_v2  ;;  %v5872_v6 = vpack.c.bf16 %v5859_v40, %v5858_v51  ;;  %v5861_v2 = vld [vmem:[#allocation2 + $0x98] sm:$0xff] }
 0x362   : > { %2012 = vst.msk [vmem:[#allocation3 + $0x10] sm:$0xff] %vm883_vm2, %v1995_v52  ;;  %v1996_v55 = vadd.f32 %v1979_v1, %v1917_v34  ;;  %v12061_v37 = vpop.f32.mrb[215].mxu0  ;;  %v1980_v52 = vld [vmem:[#allocation3 + $0x20] sm:$0xff] }
 0x363   : > { %12783 = vmatmul.mubr.msk.bf16.gmra.mrb[28].mxu1 %vm682_vm1, %v5871_v0 }
 0x364   : > { %2013 = vst.msk [vmem:[#allocation3 + $0x18] sm:$0xff] %vm883_vm2, %v1996_v55  ;;  %12203 = vmatmul.mubr.msk.bf16.gmra.mrb[64].mxu0 %vm682_vm1, %v14980_v30  ;;  %12786 = vmatprep.mubr.msk.bf16.mxu1 %vm13904_vm0, %v17106_v35  ;;  %v1981_v30 = vld [vmem:[#allocation3 + $0x28] sm:$0xff] }
 0x365   : > { %12206 = vmatprep.mubr.msk.bf16.mxu0 %vm13904_vm0, %v17106_v35 }
 0x366   : > { %v15106_v41 = vpop.f32.mrb[180].mxu1 }
 0x367   : > { %v1922_v46 = vpop.f32.mrb[216].mxu0  ;;  %17153 = vst [vmem:[#allocation54_spill] sm:$0xff] %v15106_v41  ;;  %v12548_v1 = vpop.f32.mrb[181].mxu1 }
 0x368   : > { %v1997_v56 = vadd.f32 %v1980_v52, %v1922_v46  ;;  %v12064_v34 = vpop.f32.mrb[217].mxu0  ;;  %v15108_v37 = vpop.f32.mrb[182].mxu1  ;;  %v2927_v46 = vld [vmem:[#allocation2 + $0x25] sm:$0xff]  ;;  %v2928_v52 = vld [vmem:[#allocation2 + $0x2d] sm:$0xff] }
 0x369   : > { %v1925_v55 = vpop.f32.mrb[218].mxu0  ;;  %17154 = vst [vmem:[#allocation55_spill] sm:$0xff] %v15108_v37  ;;  %v12549_v29 = vpop.f32.mrb[183].mxu1  ;;  %v1982_v34 = vld [vmem:[#allocation3 + $0x30] sm:$0xff] }
 0x36a   : > { %2014 = vst.msk [vmem:[#allocation3 + $0x20] sm:$0xff] %vm883_vm2, %v1997_v56  ;;  %v1998_v31 = vadd.f32 %v1981_v30, %v1925_v55  ;;  %v12065_v0 = vpop.f32.mrb[219].mxu0  ;;  %v5860_v29 = vld [vmem:[#allocation2 + $0x90] sm:$0xff] }
 0x36b   : > { %12787 = vmatmul.mubr.msk.bf16.gmra.mrb[32].mxu1 %vm682_vm1, %v5872_v6  ;;  %v1983_v30 = vld [vmem:[#allocation3 + $0x38] sm:$0xff]  ;;  %v2944_v0 = vpack.c.bf16 %v2928_v52, %v2927_v46  ;;  %v13700_v46 = vld [vmem:[%s17088_s3 + $0xc8] sm:$0xff]  }
 0x36c   : > { %2015 = vst.msk [vmem:[#allocation3 + $0x28] sm:$0xff] %vm883_vm2, %v1998_v31  ;;  %12207 = vmatmul.mubr.msk.bf16.gmra.mrb[68].mxu0 %vm682_vm1, %v2502_v16  ;;  %12790 = vmatprep.mubr.msk.bf16.mxu1 %vm13904_vm0, %v17106_v35  ;;  %v13698_v31 = vld [vmem:[%s17088_s3 + $0xc0] sm:$0xff]  }
 0x36d   : > { %12254 = vmatprep.mubr.msk.bf16.mxu0 %vm13904_vm0, %v17106_v35 }
 0x36e   : > { %v15118_v1 = vpop.f32.mrb[184].mxu1 }
 0x36f   : > { %v1930_v56 = vpop.f32.mrb[220].mxu0  ;;  %17155 = vst [vmem:[#allocation56_spill] sm:$0xff] %v15118_v1  ;;  %v12552_v55 = vpop.f32.mrb[185].mxu1  ;;  %v5873_v1 = vpack.c.bf16 %v5861_v2, %v5860_v29 }
 0x370   : > { %v1999_v51 = vadd.f32 %v1982_v34, %v1930_v56  ;;  %v12068_v40 = vpop.f32.mrb[221].mxu0  ;;  %v15120_v6 = vpop.f32.mrb[186].mxu1  ;;  %v5862_v56 = vld [vmem:[#allocation2 + $0xa0] sm:$0xff]  ;;  %v5863_v34 = vld [vmem:[#allocation2 + $0xa8] sm:$0xff] }
 0x371   : > { %v1933_v16 = vpop.f32.mrb[222].mxu0  ;;  %17156 = vst [vmem:[#allocation57_spill] sm:$0xff] %v15120_v6  ;;  %v12553_v44 = vpop.f32.mrb[187].mxu1  ;;  %v1985_v40 = vld [vmem:[#allocation3 + $0x48] sm:$0xff]  ;;  %v5874_v6 = vpack.c.bf16 %v5863_v34, %v5862_v56  ;;  %v5865_v56 = vld [vmem:[#allocation2 + $0xb8] sm:$0xff] }
 0x372   : > { %2016 = vst.msk [vmem:[#allocation3 + $0x30] sm:$0xff] %vm883_vm2, %v1999_v51  ;;  %v2000_v37 = vadd.f32 %v1983_v30, %v1933_v16  ;;  %v12069_v41 = vpop.f32.mrb[223].mxu0 }
 0x373   : > { %12791 = vmatmul.mubr.msk.bf16.gmra.mrb[36].mxu1 %vm682_vm1, %v5873_v1  ;;  %v2930_v41 = vld [vmem:[#allocation2 + $0x3d] sm:$0xff] }
 0x374   : > { %2017 = vst.msk [vmem:[#allocation3 + $0x38] sm:$0xff] %vm883_vm2, %v2000_v37  ;;  %12255 = vmatmul.mubr.msk.bf16.vlgmr.msra.gmra.mrb[72].mxu0 %vm682_vm1, %v2944_v0  ;;  %12794 = vmatprep.mubr.msk.bf16.mxu1 %vm13904_vm0, %v17106_v35  ;;  %v1984_v37 = vld [vmem:[#allocation3 + $0x40] sm:$0xff]  ;;  %v2945_v0 = vpack.c.bf16 %v2930_v41, %v14972_v38  ;;  %v5864_v41 = vld [vmem:[#allocation2 + $0xb0] sm:$0xff] }
 0x375   : > { %12331 = vmatpush3.bf16.msra.mxu0 %v13698_v31  ;;  %12258 = vmatprep.mubr.msk.bf16.mxu0 %vm13904_vm0, %v17106_v35 }
 0x376   : > { %12332 = vmatprep.subr.bf16.mxu0 %v17106_v35  ;;  %v15137_v52 = vpop.f32.mrb[188].mxu1 }
 0x377   : > { %v1938_v44 = vpop.f32.mrb[224].mxu0  ;;  %v12556_v2 = vpop.f32.mrb[189].mxu1 }
 0x378   : > { %v2001_v1 = vadd.f32 %v1984_v37, %v1938_v44  ;;  %v12072_v29 = vpop.f32.mrb[225].mxu0  ;;  %v15139_v55 = vpop.f32.mrb[190].mxu1  ;;  %v2932_v44 = vld [vmem:[#allocation2 + $0x4d] sm:$0xff] }
 0x379   : > { %v1941_v51 = vpop.f32.mrb[226].mxu0  ;;  %17157 = vst [vmem:[#allocation58_spill] sm:$0xff] %v15139_v55  ;;  %12333 = vmatpush3.bf16.msra.mxu0 %v13700_v46  ;;  %v12557_v31 = vpop.f32.mrb[191].mxu1  ;;  %v2931_v46 = vld [vmem:[#allocation2 + $0x45] sm:$0xff]  ;;  %v5875_v55 = vpack.c.bf16 %v5865_v56, %v5864_v41 }
 0x37a   : > { %2018 = vst.msk [vmem:[#allocation3 + $0x40] sm:$0xff] %vm883_vm2, %v2001_v1  ;;  %v2002_v16 = vadd.f32 %v1985_v40, %v1941_v51  ;;  %v12073_v30 = vpop.f32.mrb[227].mxu0  ;;  %12410 = vmatprep.subr.bf16.mxu0 %v17106_v35  ;;  %v1986_v1 = vld [vmem:[#allocation3 + $0x50] sm:$0xff]  ;;  %v1987_v40 = vld [vmem:[#allocation3 + $0x58] sm:$0xff] }
 0x37b   : > { %12795 = vmatmul.mubr.msk.bf16.gmra.mrb[40].mxu1 %vm682_vm1, %v5874_v6 }
 0x37c   : > { %2019 = vst.msk [vmem:[#allocation3 + $0x48] sm:$0xff] %vm883_vm2, %v2002_v16  ;;  %12259 = vmatmul.mubr.msk.bf16.gmra.mrb[76].mxu0 %vm682_vm1, %v2945_v0  ;;  %12798 = vmatprep.mubr.msk.bf16.mxu1 %vm13904_vm0, %v17106_v35  ;;  %v2946_v0 = vpack.c.bf16 %v2932_v44, %v2931_v46  ;;  %v5866_v46 = vld [vmem:[#allocation2 + $0xc0] sm:$0xff]  ;;  %v5867_v44 = vld [vmem:[#allocation2 + $0xc8] sm:$0xff] }
 0x37d   : > { %12262 = vmatprep.mubr.msk.bf16.mxu0 %vm13904_vm0, %v17106_v35 }
 0x37e   : > { %v15151_v38 = vpop.f32.mrb[192].mxu1 }
 0x37f   : > { %v1946_v37 = vpop.f32.mrb[228].mxu0  ;;  %17158 = vst [vmem:[#allocation59_spill] sm:$0xff] %v15151_v38  ;;  %v12560_v2 = vpop.f32.mrb[193].mxu1  ;;  %v5876_v38 = vpack.c.bf16 %v5867_v44, %v5866_v46 }
 0x380   : > { %v2003_v34 = vadd.f32 %v1986_v1, %v1946_v37  ;;  %v12076_v29 = vpop.f32.mrb[229].mxu0  ;;  %v15153_v6 = vpop.f32.mrb[194].mxu1  ;;  %v2933_v37 = vld [vmem:[#allocation2 + $0x55] sm:$0xff]  ;;  %v2934_v1 = vld [vmem:[#allocation2 + $0x5d] sm:$0xff] }
 0x381   : > { %v1949_v51 = vpop.f32.mrb[230].mxu0  ;;  %17159 = vst [vmem:[#allocation60_spill] sm:$0xff] %v15153_v6  ;;  %v12561_v31 = vpop.f32.mrb[195].mxu1  ;;  %v1988_v29 = vld [vmem:[#allocation3 + $0x60] sm:$0xff]  ;;  %v2947_v6 = vpack.c.bf16 %v2934_v1, %v2933_v37  ;;  %v5868_v37 = vld [vmem:[#allocation2 + $0xd0] sm:$0x3] }
 0x382   : > { %2020 = vst.msk [vmem:[#allocation3 + $0x50] sm:$0xff] %vm883_vm2, %v2003_v34  ;;  %v2004_v16 = vadd.f32 %v1987_v40, %v1949_v51  ;;  %v12077_v30 = vpop.f32.mrb[231].mxu0 }
 0x383   : > { %12799 = vmatmul.mubr.msk.bf16.gmra.mrb[44].mxu1 %vm682_vm1, %v5875_v55 }
 0x384   : > { %2021 = vst.msk [vmem:[#allocation3 + $0x58] sm:$0xff] %vm883_vm2, %v2004_v16  ;;  %12263 = vmatmul.mubr.msk.bf16.gmra.mrb[80].mxu0 %vm682_vm1, %v2946_v0  ;;  %12802 = vmatprep.mubr.msk.bf16.mxu1 %vm13904_vm0, %v17106_v35  ;;  %v1989_v16 = vld [vmem:[#allocation3 + $0x68] sm:$0xff] }
 0x385   : > { %12266 = vmatprep.mubr.msk.bf16.mxu0 %vm13904_vm0, %v17106_v35 }
 0x386   : > { %v15163_v2 = vpop.f32.mrb[196].mxu1 }
 0x387   : > { %v1954_v34 = vpop.f32.mrb[232].mxu0  ;;  %17160 = vst [vmem:[#allocation61_spill] sm:$0xff] %v15163_v2  ;;  %v12564_v51 = vpop.f32.mrb[197].mxu1  ;;  %v5877_v2 = vpack.c.bf16 %v5868_v37, %v5868_v37 }
 0x388   : > { %v2005_v41 = vadd.f32 %v1988_v29, %v1954_v34  ;;  %v12080_v56 = vpop.f32.mrb[233].mxu0  ;;  %v15165_v55 = vpop.f32.mrb[198].mxu1  ;;  %v2935_v34 = vld [vmem:[#allocation2 + $0x65] sm:$0xff]  ;;  %v2936_v51 = vld [vmem:[#allocation2 + $0x6d] sm:$0xff] }
 0x389   : > { %v1957_v40 = vpop.f32.mrb[234].mxu0  ;;  %17161 = vst [vmem:[#allocation62_spill] sm:$0xff] %v15165_v55  ;;  %v12565_v0 = vpop.f32.mrb[199].mxu1  ;;  %v2948_v55 = vpack.c.bf16 %v2936_v51, %v2935_v34 }
 0x38a   : > { %2022 = vst.msk [vmem:[#allocation3 + $0x60] sm:$0xff] %vm883_vm2, %v2005_v41  ;;  %v2006_v30 = vadd.f32 %v1989_v16, %v1957_v40  ;;  %v12081_v31 = vpop.f32.mrb[235].mxu0  ;;  %v1990_v41 = vld [vmem:[#allocation3 + $0x70] sm:$0xff]  ;;  %v1991_v16 = vld [vmem:[#allocation3 + $0x78] sm:$0xff] }
 0x38b   : > { %12803 = vmatmul.mubr.msk.bf16.gmra.mrb[48].mxu1 %vm682_vm1, %v5876_v38 }
 0x38c   : > { %2023 = vst.msk [vmem:[#allocation3 + $0x68] sm:$0xff] %vm883_vm2, %v2006_v30  ;;  %12267 = vmatmul.mubr.msk.bf16.gmra.mrb[84].mxu0 %vm682_vm1, %v2947_v6  ;;  %12806 = vmatprep.mubr.msk.bf16.mxu1 %vm13904_vm0, %v17106_v35 }
 0x38d   : > { %12270 = vmatprep.mubr.msk.bf16.mxu0 %vm13904_vm0, %v17106_v35 }
 0x38e   : > { %v15175_v56 = vpop.f32.mrb[200].mxu1 }
 0x38f   : > { %v1962_v29 = vpop.f32.mrb[236].mxu0  ;;  %17162 = vst [vmem:[#allocation63_spill] sm:$0xff] %v15175_v56  ;;  %v12568_v44 = vpop.f32.mrb[201].mxu1 }
 0x390   : > { %v2007_v1 = vadd.f32 %v1990_v41, %v1962_v29  ;;  %v12084_v46 = vpop.f32.mrb[237].mxu0  ;;  %v4673_v30 = vpop.f32.mrb[202].mxu1  ;;  %v1992_v29 = vld [vmem:[#allocation3 + $0x80] sm:$0x3]  ;;  %v2938_v44 = vld [vmem:[#allocation2 + $0x7d] sm:$0xff] }
 0x391   : > { %v1965_v40 = vpop.f32.mrb[238].mxu0  ;;  %v12569_v0 = vpop.f32.mrb[203].mxu1  ;;  %v2937_v46 = vld [vmem:[#allocation2 + $0x75] sm:$0xff] }
 0x392   : > { %2024 = vst.msk [vmem:[#allocation3 + $0x70] sm:$0xff] %vm883_vm2, %v2007_v1  ;;  %v2008_v38 = vadd.f32 %v1991_v16, %v1965_v40  ;;  %v12085_v31 = vpop.f32.mrb[239].mxu0  ;;  %v2201_v0 = vld [vmem:[#allocation3] sm:$0xff] }
 0x393   : > { %12807 = vmatmul.mubr.msk.bf16.gmra.mrb[52].mxu1 %vm682_vm1, %v5877_v2 }
 0x394   : > { %2025 = vst.msk [vmem:[#allocation3 + $0x78] sm:$0xff] %vm883_vm2, %v2008_v38  ;;  %12271 = vmatmul.mubr.msk.bf16.gmra.mrb[88].mxu0 %vm682_vm1, %v2948_v55  ;;  %12854 = vmatprep.mubr.msk.bf16.mxu1 %vm13904_vm0, %v17106_v35  ;;  %v2949_v38 = vpack.c.bf16 %v2938_v44, %v2937_v46  ;;  %v2202_v44 = vld [vmem:[#allocation3 + $0x8] sm:$0xff] }
 0x395   : > { %12274 = vmatprep.mubr.msk.bf16.mxu0 %vm13904_vm0, %v17106_v35 }
 0x396   : > { %v15185_v1 = vpop.f32.mrb[204].mxu1 }
 0x397   : > { %v1970_v41 = vpop.f32.mrb[240].mxu0  ;;  %17163 = vst [vmem:[#allocation64_spill] sm:$0xff] %v15185_v1  ;;  %v12616_v37 = vpop.f32.mrb[205].mxu1 }
 0x398   : > { %v2009_v34 = vadd.f32 %v1992_v29, %v1970_v41  ;;  %v12088_v51 = vpop.f32.mrb[241].mxu0  ;;  %v15187_v16 = vpop.f32.mrb[206].mxu1  ;;  %v2939_v41 = vld [vmem:[#allocation2 + $0x85] sm:$0xff] }
 0x399   : > { %v1973_v40 = vpop.f32.mrb[242].mxu0  ;;  %17164 = vst [vmem:[#allocation65_spill] sm:$0xff] %v15187_v16  ;;  %v12617_v30 = vpop.f32.mrb[207].mxu1  ;;  %v2940_v51 = vld [vmem:[#allocation2 + $0x8d] sm:$0xff] }
 0x39a   : > { %2026 = vst.msk [vmem:[#allocation3 + $0x80] sm:$0x3] %vm900_vm3, %v2009_v34  ;;  %v12089_v2 = vpop.f32.mrb[243].mxu0  ;;  %v2950_v1 = vpack.c.bf16 %v2940_v51, %v2939_v41 }
 0x39b   : > { %12855 = vmatmul.mubr.msk.bf16.vlgmr.msra.gmra.mrb[56].mxu1 %vm682_vm1, %v2947_v6 }
 0x39c   : > { %12275 = vmatmul.mubr.msk.bf16.gmra.mrb[92].mxu0 %vm682_vm1, %v2949_v38  ;;  %12858 = vmatprep.mubr.msk.bf16.mxu1 %vm13904_vm0, %v17106_v35 }
 0x39d   : > { %12278 = vmatprep.mubr.msk.bf16.mxu0 %vm13904_vm0, %v17106_v35 }
 0x39e   : > { %v15196_v29 = vpop.f32.mrb[208].mxu1 }
 0x39f   : > { %v2131_v31 = vpop.f32.mrb[244].mxu0  ;;  %17165 = vst [vmem:[#allocation66_spill] sm:$0xff] %v15196_v29  ;;  %v12620_v40 = vpop.f32.mrb[209].mxu1 }
 0x3a0   : > { %v2218_v34 = vadd.f32 %v2201_v0, %v2131_v31  ;;  %v12096_v37 = vpop.f32.mrb[245].mxu0  ;;  %v15198_v2 = vpop.f32.mrb[210].mxu1  ;;  %v2203_v0 = vld [vmem:[#allocation3 + $0x10] sm:$0xff]  ;;  %v2942_v40 = vld [vmem:[#allocation2 + $0x9d] sm:$0xff] }
 0x3a1   : > { %v2134_v46 = vpop.f32.mrb[246].mxu0  ;;  %17166 = vst [vmem:[#allocation67_spill] sm:$0xff] %v15198_v2  ;;  %v12621_v16 = vpop.f32.mrb[211].mxu1 }
 0x3a2   : > { %2235 = vst.msk [vmem:[#allocation3] sm:$0xff] %vm883_vm2, %v2218_v34  ;;  %v2219_v6 = vadd.f32 %v2202_v44, %v2134_v46  ;;  %v12097_v30 = vpop.f32.mrb[247].mxu0  ;;  %v2941_v34 = vld [vmem:[#allocation2 + $0x95] sm:$0xff] }
 0x3a3   : > { %12859 = vmatmul.mubr.msk.bf16.gmra.mrb[60].mxu1 %vm682_vm1, %v2948_v55  ;;  %v2204_v44 = vld [vmem:[#allocation3 + $0x18] sm:$0xff]  ;;  %v2951_v29 = vpack.c.bf16 %v2942_v40, %v2941_v34 }
 0x3a4   : > { %2236 = vst.msk [vmem:[#allocation3 + $0x8] sm:$0xff] %vm883_vm2, %v2219_v6  ;;  %12279 = vmatmul.mubr.msk.bf16.gmra.mrb[96].mxu0 %vm682_vm1, %v2950_v1  ;;  %12862 = vmatprep.mubr.msk.bf16.mxu1 %vm13904_vm0, %v17106_v35 }
 0x3a5   : > { %12282 = vmatprep.mubr.msk.bf16.mxu0 %vm13904_vm0, %v17106_v35 }
 0x3a6   : > { %v15208_v37 = vpop.f32.mrb[212].mxu1 }
 0x3a7   : > { %v2139_v31 = vpop.f32.mrb[248].mxu0  ;;  %17167 = vst [vmem:[#allocation68_spill] sm:$0xff] %v15208_v37  ;;  %v12624_v51 = vpop.f32.mrb[213].mxu1 }
 0x3a8   : > { %v2220_v16 = vadd.f32 %v2203_v0, %v2139_v31  ;;  %v12100_v41 = vpop.f32.mrb[249].mxu0  ;;  %v15210_v6 = vpop.f32.mrb[214].mxu1  ;;  %v2205_v0 = vld [vmem:[#allocation3 + $0x20] sm:$0xff] }
 0x3a9   : > { %v2142_v46 = vpop.f32.mrb[250].mxu0  ;;  %17168 = vst [vmem:[#allocation69_spill] sm:$0xff] %v15210_v6  ;;  %v12625_v2 = vpop.f32.mrb[215].mxu1 }
 0x3aa   : > { %2237 = vst.msk [vmem:[#allocation3 + $0x10] sm:$0xff] %vm883_vm2, %v2220_v16  ;;  %v2221_v55 = vadd.f32 %v2204_v44, %v2142_v46  ;;  %v12101_v30 = vpop.f32.mrb[251].mxu0  ;;  %v2943_v16 = vld [vmem:[#allocation2 + $0xa5] sm:$0x3] }
 0x3ab   : > { %12863 = vmatmul.mubr.msk.bf16.gmra.mrb[64].mxu1 %vm682_vm1, %v2949_v38  ;;  %v2206_v46 = vld [vmem:[#allocation3 + $0x28] sm:$0xff]  ;;  %v2952_v6 = vpack.c.bf16 %v2943_v16, %v2943_v16 }
 0x3ac   : > { %2238 = vst.msk [vmem:[#allocation3 + $0x18] sm:$0xff] %vm883_vm2, %v2221_v55  ;;  %12283 = vmatmul.mubr.msk.bf16.gmra.mrb[100].mxu0 %vm682_vm1, %v2951_v29  ;;  %12866 = vmatprep.mubr.msk.bf16.mxu1 %vm13904_vm0, %v17106_v35 }
 0x3ad   : > { %12286 = vmatprep.mubr.msk.bf16.mxu0 %vm13904_vm0, %v17106_v35 }
 0x3ae   : > { %v15220_v41 = vpop.f32.mrb[216].mxu1 }
 0x3af   : > { %v2147_v31 = vpop.f32.mrb[252].mxu0  ;;  %17169 = vst [vmem:[#allocation70_spill] sm:$0xff] %v15220_v41  ;;  %v12628_v34 = vpop.f32.mrb[217].mxu1 }
 0x3b0   : > { %v2222_v51 = vadd.f32 %v2205_v0, %v2147_v31  ;;  %v12104_v2 = vpop.f32.mrb[253].mxu0  ;;  %v15222_v44 = vpop.f32.mrb[218].mxu1  ;;  %v2207_v0 = vld [vmem:[#allocation3 + $0x30] sm:$0xff] }
 0x3b1   : > { %v2150_v40 = vpop.f32.mrb[254].mxu0  ;;  %17170 = vst [vmem:[#allocation71_spill] sm:$0xff] %v15222_v44  ;;  %v12629_v30 = vpop.f32.mrb[219].mxu1 }
 0x3b2   : > { %2239 = vst.msk [vmem:[#allocation3 + $0x20] sm:$0xff] %vm883_vm2, %v2222_v51  ;;  %v2223_v38 = vadd.f32 %v2206_v46, %v2150_v40  ;;  %v12105_v55 = vpop.f32.mrb[255].mxu0  ;;  %v2208_v46 = vld [vmem:[#allocation3 + $0x38] sm:$0xff] }
 0x3b3   : > { %12867 = vmatmul.mubr.msk.bf16.gmra.mrb[68].mxu1 %vm682_vm1, %v2950_v1  ;;  %v13702_v1 = vld [vmem:[%s17088_s3 + $0xe0] sm:$0xff]  }
 0x3b4   : > { %2240 = vst.msk [vmem:[#allocation3 + $0x28] sm:$0xff] %vm883_vm2, %v2223_v38  ;;  %12287 = vmatmul.mubr.msk.bf16.gmra.mrb[104].mxu0 %vm682_vm1, %v2952_v6  ;;  %12870 = vmatprep.mubr.msk.bf16.mxu1 %vm13904_vm0, %v17106_v35 }
 0x3b5   : > { %12334 = vmatprep.mubr.msk.bf16.mxu0 %vm13904_vm0, %v17106_v35 }
 0x3b6   : > { %v15232_v2 = vpop.f32.mrb[220].mxu1 }
 0x3b7   : > { %v2155_v31 = vpop.f32.mrb[0].mxu0  ;;  %17171 = vst [vmem:[#allocation72_spill] sm:$0xff] %v15232_v2  ;;  %v12632_v40 = vpop.f32.mrb[221].mxu1 }
 0x3b8   : > { %v2224_v51 = vadd.f32 %v2207_v0, %v2155_v31  ;;  %v12108_v34 = vpop.f32.mrb[1].mxu0  ;;  %v15234_v38 = vpop.f32.mrb[222].mxu1  ;;  %v17173_v31 = vpack.c.bf16 %v14113_v9, %v14118_v12  ;;  %v13703_v0 = vld [vmem:[%s17088_s3 + $0xe8] sm:$0xff]   ;;  %v2209_v9 = vld [vmem:[#allocation3 + $0x40] sm:$0xff] }
 0x3b9   : > { %v2158_v16 = vpop.f32.mrb[2].mxu0  ;;  %17172 = vst [vmem:[#allocation73_spill] sm:$0xff] %v15234_v38  ;;  %v12633_v30 = vpop.f32.mrb[223].mxu1  ;;  %v6312_v40 = vld [vmem:[#allocation2 + $0xa5] sm:$0xff] }
 0x3ba   : > { %2241 = vst.msk [vmem:[#allocation3 + $0x30] sm:$0xff] %vm883_vm2, %v2224_v51  ;;  %v2225_v6 = vadd.f32 %v2208_v46, %v2158_v16  ;;  %v12109_v55 = vpop.f32.mrb[3].mxu0  ;;  %v3380_v51 = vld [vmem:[#allocation2 + $0x42] sm:$0xff] }
 0x3bb   : > { %12871 = vmatmul.mubr.msk.bf16.gmra.mrb[72].mxu1 %vm682_vm1, %v2951_v29  ;;  %v6313_v29 = vld [vmem:[#allocation2 + $0xad] sm:$0xff]  ;;  %v2210_v55 = vld [vmem:[#allocation3 + $0x48] sm:$0xff] }
 0x3bc   : > { %2242 = vst.msk [vmem:[#allocation3 + $0x38] sm:$0xff] %vm883_vm2, %v2225_v6  ;;  %12335 = vmatmul.mubr.msk.bf16.vlgmr.msra.gmra.mrb[108].mxu0 %vm682_vm1, %v17173_v31  ;;  %12874 = vmatprep.mubr.msk.bf16.mxu1 %vm13904_vm0, %v17106_v35  ;;  %v3379_v31 = vld [vmem:[#allocation2 + $0x3a] sm:$0xff]  ;;  %v6324_v56 = vpack.c.bf16 %v6313_v29, %v6312_v40 }
 0x3bd   : > { %12411 = vmatpush3.bf16.msra.mxu0 %v13702_v1  ;;  %12338 = vmatprep.mubr.msk.bf16.mxu0 %vm13904_vm0, %v17106_v35  ;;  %v3395_v37 = vpack.c.bf16 %v3380_v51, %v3379_v31 }
 0x3be   : > { %12412 = vmatprep.subr.bf16.mxu0 %v17106_v35  ;;  %v15254_v12 = vpop.f32.mrb[224].mxu1 }
 0x3bf   : > { %v2163_v34 = vpop.f32.mrb[4].mxu0  ;;  %v12636_v1 = vpop.f32.mrb[225].mxu1 }
 0x3c0   : > { %v2226_v16 = vadd.f32 %v2209_v9, %v2163_v34  ;;  %v12112_v46 = vpop.f32.mrb[5].mxu0  ;;  %v15256_v30 = vpop.f32.mrb[226].mxu1 }
 0x3c1   : > { %v2166_v6 = vpop.f32.mrb[6].mxu0  ;;  %12413 = vmatpush3.bf16.msra.mxu0 %v13703_v0  ;;  %v2432_v38 = vld [vmem:[#allocation3 + $0x30] sm:$0xff]  ;;  %v12637_v41 = vpop.f32.mrb[227].mxu1 }
 0x3c2   : > { %2243 = vst.msk [vmem:[#allocation3 + $0x40] sm:$0xff] %vm883_vm2, %v2226_v16  ;;  %v2227_v2 = vadd.f32 %v2210_v55, %v2166_v6  ;;  %v12113_v44 = vpop.f32.mrb[7].mxu0  ;;  %12490 = vmatprep.subr.bf16.mxu0 %v17106_v35  ;;  %v2449_v34 = vadd.f32 %v2432_v38, %v14444_v59  ;;  %v3381_v41 = vld [vmem:[#allocation2 + $0x4a] sm:$0xff] }
 0x3c3   : > { %v2433_v9 = vld [vmem:[#allocation3 + $0x38] sm:$0xff]  ;;  %12875 = vmatmul.mubr.msk.bf16.gmra.mrb[76].mxu1 %vm682_vm1, %v6324_v56  ;;  %v6315_v56 = vld [vmem:[#allocation2 + $0xbd] sm:$0xff] }
 0x3c4   : > { %2244 = vst.msk [vmem:[#allocation3 + $0x48] sm:$0xff] %vm883_vm2, %v2227_v2  ;;  %12339 = vmatmul.mubr.msk.bf16.gmra.mrb[112].mxu0 %vm682_vm1, %v3395_v37  ;;  %2466 = vst.msk [vmem:[#allocation3 + $0x30] sm:$0xff] %vm883_vm2, %v2449_v34  ;;  %v2450_v0 = vadd.f32 %v2433_v9, %v14447_v3  ;;  %12878 = vmatprep.mubr.msk.bf16.mxu1 %vm13904_vm0, %v17106_v35  ;;  %v3382_v44 = vld [vmem:[#allocation2 + $0x52] sm:$0xff]  ;;  %v2211_v2 = vld [vmem:[#allocation3 + $0x50] sm:$0xff] }
 0x3c5   : > { %12342 = vmatprep.mubr.msk.bf16.mxu0 %vm13904_vm0, %v17106_v35  ;;  %v6314_v37 = vld [vmem:[#allocation2 + $0xb5] sm:$0xff]  ;;  %v3396_v34 = vpack.c.bf16 %v3382_v44, %v3381_v41  ;;  %v3384_v44 = vld [vmem:[#allocation2 + $0x62] sm:$0xff] }
 0x3c6   : > { %2467 = vst.msk [vmem:[#allocation3 + $0x38] sm:$0xff] %vm883_vm2, %v2450_v0  ;;  %v15271_v38 = vpop.f32.mrb[228].mxu1  ;;  %v2212_v16 = vld [vmem:[#allocation3 + $0x58] sm:$0xff]  ;;  %v6325_v9 = vpack.c.bf16 %v6315_v56, %v6314_v37  ;;  %v3383_v41 = vld [vmem:[#allocation2 + $0x5a] sm:$0xff]  ;;  %v6316_v56 = vld [vmem:[#allocation2 + $0xc5] sm:$0xff] }
 0x3c7   : > { %v2171_v59 = vpop.f32.mrb[8].mxu0  ;;  %17174 = vst [vmem:[#allocation74_spill] sm:$0xff] %v15271_v38  ;;  %v12640_v29 = vpop.f32.mrb[229].mxu1 }
 0x3c8   : > { %v2228_v51 = vadd.f32 %v2211_v2, %v2171_v59  ;;  %v12116_v40 = vpop.f32.mrb[9].mxu0  ;;  %v15273_v46 = vpop.f32.mrb[230].mxu1  ;;  %v2213_v2 = vld [vmem:[#allocation3 + $0x60] sm:$0xff] }
 0x3c9   : > { %v2174_v3 = vpop.f32.mrb[10].mxu0  ;;  %v2434_v1 = vld [vmem:[#allocation3 + $0x40] sm:$0xff]  ;;  %v12641_v31 = vpop.f32.mrb[231].mxu1 }
 0x3ca   : > { %2245 = vst.msk [vmem:[#allocation3 + $0x50] sm:$0xff] %vm883_vm2, %v2228_v51  ;;  %v2229_v6 = vadd.f32 %v2212_v16, %v2174_v3  ;;  %v12117_v55 = vpop.f32.mrb[11].mxu0  ;;  %v2451_v0 = vadd.f32 %v2434_v1, %v14457_v13  ;;  %v6317_v51 = vld [vmem:[#allocation2 + $0xcd] sm:$0xff] }
 0x3cb   : > { %v2435_v38 = vld [vmem:[#allocation3 + $0x48] sm:$0xff]  ;;  %12879 = vmatmul.mubr.msk.bf16.gmra.mrb[80].mxu1 %vm682_vm1, %v6325_v9  ;;  %v6326_v9 = vpack.c.bf16 %v6317_v51, %v6316_v56  ;;  %v3386_v56 = vld [vmem:[#allocation2 + $0x72] sm:$0xff] }
 0x3cc   : > { %2246 = vst.msk [vmem:[#allocation3 + $0x58] sm:$0xff] %vm883_vm2, %v2229_v6  ;;  %12343 = vmatmul.mubr.msk.bf16.gmra.mrb[116].mxu0 %vm682_vm1, %v3396_v34  ;;  %2468 = vst.msk [vmem:[#allocation3 + $0x40] sm:$0xff] %vm883_vm2, %v2451_v0  ;;  %v2452_v59 = vadd.f32 %v2435_v38, %v14460_v23  ;;  %12882 = vmatprep.mubr.msk.bf16.mxu1 %vm13904_vm0, %v17106_v35  ;;  %v2214_v38 = vld [vmem:[#allocation3 + $0x68] sm:$0xff]  ;;  %v3397_v34 = vpack.c.bf16 %v3384_v44, %v3383_v41  ;;  %v3385_v41 = vld [vmem:[#allocation2 + $0x6a] sm:$0xff] }
 0x3cd   : > { %12346 = vmatprep.mubr.msk.bf16.mxu0 %vm13904_vm0, %v17106_v35  ;;  %v2215_v44 = vld [vmem:[#allocation3 + $0x70] sm:$0xff]  ;;  %v6318_v51 = vld [vmem:[#allocation2 + $0xd5] sm:$0x3] }
 0x3ce   : > { %2469 = vst.msk [vmem:[#allocation3 + $0x48] sm:$0xff] %vm883_vm2, %v2452_v59  ;;  %v15287_v37 = vpop.f32.mrb[232].mxu1 }
 0x3cf   : > { %v2179_v13 = vpop.f32.mrb[12].mxu0  ;;  %v12644_v3 = vpop.f32.mrb[233].mxu1 }
 0x3d0   : > { %v2230_v40 = vadd.f32 %v2213_v2, %v2179_v13  ;;  %v12120_v29 = vpop.f32.mrb[13].mxu0  ;;  %v15289_v16 = vpop.f32.mrb[234].mxu1 }
 0x3d1   : > { %v2182_v23 = vpop.f32.mrb[14].mxu0  ;;  %v2436_v1 = vld [vmem:[#allocation3 + $0x50] sm:$0xff]  ;;  %v12645_v31 = vpop.f32.mrb[235].mxu1 }
 0x3d2   : > { %2247 = vst.msk [vmem:[#allocation3 + $0x60] sm:$0xff] %vm883_vm2, %v2230_v40  ;;  %v2231_v6 = vadd.f32 %v2214_v38, %v2182_v23  ;;  %v12121_v55 = vpop.f32.mrb[15].mxu0  ;;  %v2453_v0 = vadd.f32 %v2436_v1, %v14470_v36 }
 0x3d3   : > { %v2437_v59 = vld [vmem:[#allocation3 + $0x58] sm:$0xff]  ;;  %12883 = vmatmul.mubr.msk.bf16.gmra.mrb[84].mxu1 %vm682_vm1, %v6326_v9  ;;  %v6327_v9 = vpack.c.bf16 %v6318_v51, %v6318_v51 }
 0x3d4   : > { %2248 = vst.msk [vmem:[#allocation3 + $0x68] sm:$0xff] %vm883_vm2, %v2231_v6  ;;  %12347 = vmatmul.mubr.msk.bf16.gmra.mrb[120].mxu0 %vm682_vm1, %v3397_v34  ;;  %2470 = vst.msk [vmem:[#allocation3 + $0x50] sm:$0xff] %vm883_vm2, %v2453_v0  ;;  %v2454_v13 = vadd.f32 %v2437_v59, %v14473_v50  ;;  %12886 = vmatprep.mubr.msk.bf16.mxu1 %vm13904_vm0, %v17106_v35  ;;  %v2216_v50 = vld [vmem:[#allocation3 + $0x78] sm:$0xff]  ;;  %v3398_v34 = vpack.c.bf16 %v3386_v56, %v3385_v41  ;;  %v3388_v56 = vld [vmem:[#allocation2 + $0x82] sm:$0xff] }
 0x3d5   : > { %12350 = vmatprep.mubr.msk.bf16.mxu0 %vm13904_vm0, %v17106_v35 }
 0x3d6   : > { %2471 = vst.msk [vmem:[#allocation3 + $0x58] sm:$0xff] %vm883_vm2, %v2454_v13  ;;  %v15303_v2 = vpop.f32.mrb[236].mxu1 }
 0x3d7   : > { %v2187_v36 = vpop.f32.mrb[16].mxu0  ;;  %v12648_v3 = vpop.f32.mrb[237].mxu1 }
 0x3d8   : > { %v2232_v40 = vadd.f32 %v2215_v44, %v2187_v36  ;;  %v12124_v29 = vpop.f32.mrb[17].mxu0  ;;  %v5123_v38 = vpop.f32.mrb[238].mxu1  ;;  %v3387_v44 = vld [vmem:[#allocation2 + $0x7a] sm:$0xff] }
 0x3d9   : > { %v2190_v23 = vpop.f32.mrb[18].mxu0  ;;  %v2438_v1 = vld [vmem:[#allocation3 + $0x60] sm:$0xff]  ;;  %v12649_v31 = vpop.f32.mrb[239].mxu1 }
 0x3da   : > { %2249 = vst.msk [vmem:[#allocation3 + $0x70] sm:$0xff] %vm883_vm2, %v2232_v40  ;;  %v2233_v6 = vadd.f32 %v2216_v50, %v2190_v23  ;;  %v12125_v55 = vpop.f32.mrb[19].mxu0  ;;  %v2455_v0 = vadd.f32 %v2438_v1, %v14483_v60  ;;  %v2217_v60 = vld [vmem:[#allocation3 + $0x80] sm:$0x3]  ;;  %v3399_v1 = vpack.c.bf16 %v3388_v56, %v3387_v44 }
 0x3db   : > { %v2439_v59 = vld [vmem:[#allocation3 + $0x68] sm:$0xff]  ;;  %12887 = vmatmul.mubr.msk.bf16.gmra.mrb[88].mxu1 %vm682_vm1, %v6327_v9  ;;  %v2426_v9 = vld [vmem:[#allocation3] sm:$0xff] }
 0x3dc   : > { %2250 = vst.msk [vmem:[#allocation3 + $0x78] sm:$0xff] %vm883_vm2, %v2233_v6  ;;  %12351 = vmatmul.mubr.msk.bf16.gmra.mrb[124].mxu0 %vm682_vm1, %v3398_v34  ;;  %2472 = vst.msk [vmem:[#allocation3 + $0x60] sm:$0xff] %vm883_vm2, %v2455_v0  ;;  %v2456_v13 = vadd.f32 %v2439_v59, %v14486_v5  ;;  %12938 = vmatprep.mubr.msk.bf16.mxu1 %vm13904_vm0, %v17106_v35  ;;  %v3389_v59 = vld [vmem:[#allocation2 + $0x8a] sm:$0xff] }
 0x3dd   : > { %12354 = vmatprep.mubr.msk.bf16.mxu0 %vm13904_vm0, %v17106_v35 }
 0x3de   : > { %2473 = vst.msk [vmem:[#allocation3 + $0x68] sm:$0xff] %vm883_vm2, %v2456_v13  ;;  %v15317_v36 = vpop.f32.mrb[240].mxu1  ;;  %v3390_v13 = vld [vmem:[#allocation2 + $0x92] sm:$0xff] }
 0x3df   : > { %v2195_v41 = vpop.f32.mrb[20].mxu0  ;;  %v12696_v29 = vpop.f32.mrb[241].mxu1 }
 0x3e0   : > { %v2234_v51 = vadd.f32 %v2217_v60, %v2195_v41  ;;  %v12128_v40 = vpop.f32.mrb[21].mxu0  ;;  %v15319_v23 = vpop.f32.mrb[242].mxu1 }
 0x3e1   : > { %v2198_v3 = vpop.f32.mrb[22].mxu0  ;;  %v2440_v5 = vld [vmem:[#allocation3 + $0x70] sm:$0xff]  ;;  %v12697_v38 = vpop.f32.mrb[243].mxu1 }
 0x3e2   : > { %2251 = vst.msk [vmem:[#allocation3 + $0x80] sm:$0x3] %vm900_vm3, %v2234_v51  ;;  %v12129_v50 = vpop.f32.mrb[23].mxu0  ;;  %v2457_v6 = vadd.f32 %v2440_v5, %v14496_v19  ;;  %v2427_v51 = vld [vmem:[#allocation3 + $0x8] sm:$0xff] }
 0x3e3   : > { %v2441_v55 = vld [vmem:[#allocation3 + $0x78] sm:$0xff]  ;;  %v3400_v50 = vpack.c.bf16 %v3390_v13, %v3389_v59 }
 0x3e4   : > { %12355 = vmatmul.mubr.msk.bf16.gmra.mrb[128].mxu0 %vm682_vm1, %v3399_v1  ;;  %2474 = vst.msk [vmem:[#allocation3 + $0x70] sm:$0xff] %vm883_vm2, %v2457_v6  ;;  %v2458_v31 = vadd.f32 %v2441_v55, %v14499_v25  ;;  %v2428_v1 = vld [vmem:[#allocation3 + $0x10] sm:$0xff]  ;;  %v2429_v59 = vld [vmem:[#allocation3 + $0x18] sm:$0xff] }
 0x3e5   : > { %12358 = vmatprep.mubr.msk.bf16.mxu0 %vm13904_vm0, %v17106_v35  ;;  %v3392_v55 = vld [vmem:[#allocation2 + $0xa2] sm:$0xff] }
 0x3e6   : > { %2475 = vst.msk [vmem:[#allocation3 + $0x78] sm:$0xff] %vm883_vm2, %v2458_v31  ;;  %v15329_v0 = vpop.f32.mrb[244].mxu1 }
 0x3e7   : > { %v2356_v34 = vpop.f32.mrb[24].mxu0  ;;  %v12700_v41 = vpop.f32.mrb[245].mxu1 }
 0x3e8   : > { %v2443_v60 = vadd.f32 %v2426_v9, %v2356_v34  ;;  %v12136_v19 = vpop.f32.mrb[25].mxu0  ;;  %v15331_v40 = vpop.f32.mrb[246].mxu1 }
 0x3e9   : > { %v2442_v44 = vld [vmem:[#allocation3 + $0x80] sm:$0x3]  ;;  %v2359_v56 = vpop.f32.mrb[26].mxu0  ;;  %v12701_v5 = vpop.f32.mrb[247].mxu1 }
 0x3ea   : > { %v2459_v25 = vadd.f32 %v2442_v44, %v14509_v47  ;;  %2460 = vst.msk [vmem:[#allocation3] sm:$0xff] %vm883_vm2, %v2443_v60  ;;  %v2444_v29 = vadd.f32 %v2427_v51, %v2359_v56  ;;  %v12137_v3 = vpop.f32.mrb[27].mxu0  ;;  %v3391_v47 = vld [vmem:[#allocation2 + $0x9a] sm:$0xff] }
 0x3eb   : > { %v3401_v56 = vpack.c.bf16 %v3392_v55, %v3391_v47  ;;  %v3393_v3 = vld [vmem:[#allocation2 + $0xaa] sm:$0x3] }
 0x3ec   : > { %2476 = vst.msk [vmem:[#allocation3 + $0x80] sm:$0x3] %vm900_vm3, %v2459_v25  ;;  %12359 = vmatmul.mubr.msk.bf16.gmra.mrb[132].mxu0 %vm682_vm1, %v3400_v50  ;;  %v2430_v25 = vld [vmem:[#allocation3 + $0x20] sm:$0xff] }
 0x3ed   : > { %2461 = vst.msk [vmem:[#allocation3 + $0x8] sm:$0xff] %vm883_vm2, %v2444_v29  ;;  %12362 = vmatprep.mubr.msk.bf16.mxu0 %vm13904_vm0, %v17106_v35 }
 0x3ee   : > { %v15340_v6 = vpop.f32.mrb[248].mxu1 }
 0x3ef   : > { %v2364_v38 = vpop.f32.mrb[28].mxu0  ;;  %v12704_v9 = vpop.f32.mrb[249].mxu1 }
 0x3f0   : > { %v2445_v31 = vadd.f32 %v2428_v1, %v2364_v38  ;;  %v12140_v34 = vpop.f32.mrb[29].mxu0  ;;  %v15342_v13 = vpop.f32.mrb[250].mxu1 }
 0x3f1   : > { %v2367_v60 = vpop.f32.mrb[30].mxu0  ;;  %v12705_v44 = vpop.f32.mrb[251].mxu1 }
 0x3f2   : > { %2462 = vst.msk [vmem:[#allocation3 + $0x10] sm:$0xff] %vm883_vm2, %v2445_v31  ;;  %v2446_v19 = vadd.f32 %v2429_v59, %v2367_v60  ;;  %v12141_v41 = vpop.f32.mrb[31].mxu0  ;;  %v2431_v31 = vld [vmem:[#allocation3 + $0x28] sm:$0xff]  ;;  %v3402_v60 = vpack.c.bf16 %v3393_v3, %v3393_v3 }
 0x3f3   : > { %v13704_v3 = vld [vmem:[%s17088_s3 + $0x100] sm:$0xff]  }
 0x3f4   : > { %2463 = vst.msk [vmem:[#allocation3 + $0x18] sm:$0xff] %vm883_vm2, %v2446_v19  ;;  %12363 = vmatmul.mubr.msk.bf16.gmra.mrb[136].mxu0 %vm682_vm1, %v3401_v56  ;;  %v2651_v19 = vld [vmem:[#allocation3] sm:$0xff] }
 0x3f5   : > { %12366 = vmatprep.mubr.msk.bf16.mxu0 %vm13904_vm0, %v17106_v35 }
 0x3f6   : > { %v15349_v29 = vpop.f32.mrb[252].mxu1 }
 0x3f7   : > { %v2372_v51 = vpop.f32.mrb[32].mxu0  ;;  %v12708_v38 = vpop.f32.mrb[253].mxu1 }
 0x3f8   : > { %v2447_v5 = vadd.f32 %v2430_v25, %v2372_v51  ;;  %v12144_v50 = vpop.f32.mrb[33].mxu0  ;;  %v15351_v34 = vpop.f32.mrb[254].mxu1 }
 0x3f9   : > { %v2375_v1 = vpop.f32.mrb[34].mxu0  ;;  %v12709_v9 = vpop.f32.mrb[255].mxu1 }
 0x3fa   : > { %2464 = vst.msk [vmem:[#allocation3 + $0x20] sm:$0xff] %vm883_vm2, %v2447_v5  ;;  %v2448_v47 = vadd.f32 %v2431_v31, %v2375_v1  ;;  %v12145_v55 = vpop.f32.mrb[35].mxu0  ;;  %v2652_v5 = vld [vmem:[#allocation3 + $0x8] sm:$0xff] }
 0x3fb   : > { %v13705_v55 = vld [vmem:[%s17088_s3 + $0x108] sm:$0xff]  }
 0x3fc   : > { %2465 = vst.msk [vmem:[#allocation3 + $0x28] sm:$0xff] %vm883_vm2, %v2448_v47  ;;  %12367 = vmatmul.mubr.msk.bf16.gmra.mrb[140].mxu0 %vm682_vm1, %v3402_v60  ;;  %v17176_v47 = vpack.c.bf16 %v14115_v10, %v14123_v15  ;;  %v2653_v60 = vld [vmem:[#allocation3 + $0x10] sm:$0xff] }
 0x3fd   : > { %12414 = vmatprep.mubr.msk.bf16.mxu0 %vm13904_vm0, %v17106_v35 }
 0x3fe   : > { %v15358_v41 = vpop.f32.mrb[0].mxu1 }
 0x3ff   : > { %v2581_v59 = vpop.f32.mrb[36].mxu0  ;;  %v12712_v51 = vpop.f32.mrb[1].mxu1 }
 0x400   : > { %v2668_v44 = vadd.f32 %v2651_v19, %v2581_v59  ;;  %v12176_v56 = vpop.f32.mrb[37].mxu0  ;;  %v15360_v50 = vpop.f32.mrb[2].mxu1  ;;  %v3830_v19 = vld [vmem:[#allocation2 + $0x44] sm:$0xff]  ;;  %v2654_v51 = vld [vmem:[#allocation3 + $0x18] sm:$0xff] }
 0x401   : > { %v2584_v25 = vpop.f32.mrb[38].mxu0  ;;  %17175 = vst [vmem:[#allocation75_spill] sm:$0xff] %v15360_v50  ;;  %v12713_v31 = vpop.f32.mrb[3].mxu1 }
 0x402   : > { %2685 = vst.msk [vmem:[#allocation3] sm:$0xff] %vm883_vm2, %v2668_v44  ;;  %v2669_v38 = vadd.f32 %v2652_v5, %v2584_v25  ;;  %v12177_v1 = vpop.f32.mrb[39].mxu0  ;;  %v3829_v5 = vld [vmem:[#allocation2 + $0x3c] sm:$0xff] }
 0x404   : > { %2686 = vst.msk [vmem:[#allocation3 + $0x8] sm:$0xff] %vm883_vm2, %v2669_v38  ;;  %12415 = vmatmul.mubr.msk.bf16.vlgmr.msra.gmra.mrb[144].mxu0 %vm682_vm1, %v17176_v47  ;;  %v3845_v47 = vpack.c.bf16 %v3830_v19, %v3829_v5  ;;  %v2655_v19 = vld [vmem:[#allocation3 + $0x20] sm:$0xff] }
 0x405   : > { %12491 = vmatpush3.bf16.msra.mxu0 %v13704_v3  ;;  %12418 = vmatprep.mubr.msk.bf16.mxu0 %vm13904_vm0, %v17106_v35 }
 0x406   : > { %12492 = vmatprep.subr.bf16.mxu0 %v17106_v35  ;;  %v15377_v59 = vpop.f32.mrb[4].mxu1 }
 0x407   : > { %v2589_v9 = vpop.f32.mrb[40].mxu0  ;;  %v12716_v10 = vpop.f32.mrb[5].mxu1 }
 0x408   : > { %v2670_v44 = vadd.f32 %v2653_v60, %v2589_v9  ;;  %v12180_v56 = vpop.f32.mrb[41].mxu0  ;;  %v15379_v25 = vpop.f32.mrb[6].mxu1 }
 0x409   : > { %v2592_v15 = vpop.f32.mrb[42].mxu0  ;;  %12493 = vmatpush3.bf16.msra.mxu0 %v13705_v55  ;;  %v2876_v3 = vld [vmem:[#allocation3] sm:$0xff]  ;;  %v12717_v31 = vpop.f32.mrb[7].mxu1 }
 0x40a   : > { %2687 = vst.msk [vmem:[#allocation3 + $0x10] sm:$0xff] %vm883_vm2, %v2670_v44  ;;  %v2671_v38 = vadd.f32 %v2654_v51, %v2592_v15  ;;  %v12181_v1 = vpop.f32.mrb[43].mxu0  ;;  %v2893_v50 = vadd.f32 %v2876_v3, %v14520_v63  ;;  %12570 = vmatprep.subr.bf16.mxu0 %v17106_v35  ;;  %v3831_v63 = vld [vmem:[#allocation2 + $0x4c] sm:$0xff]  ;;  %v3832_v56 = vld [vmem:[#allocation2 + $0x54] sm:$0xff]  ;;  %v2656_v3 = vld [vmem:[#allocation3 + $0x28] sm:$0xff] }
 0x40b   : > { %v2877_v9 = vld [vmem:[#allocation3 + $0x8] sm:$0xff] }
 0x40c   : > { %2688 = vst.msk [vmem:[#allocation3 + $0x18] sm:$0xff] %vm883_vm2, %v2671_v38  ;;  %12419 = vmatmul.mubr.msk.bf16.gmra.mrb[148].mxu0 %vm682_vm1, %v3845_v47  ;;  %2910 = vst.msk [vmem:[#allocation3] sm:$0xff] %vm883_vm2, %v2893_v50  ;;  %v2894_v55 = vadd.f32 %v2877_v9, %v14525_v11  ;;  %v3846_v47 = vpack.c.bf16 %v3832_v56, %v3831_v63  ;;  %v3833_v63 = vld [vmem:[#allocation2 + $0x5c] sm:$0xff] }
 0x40d   : > { %12422 = vmatprep.mubr.msk.bf16.mxu0 %vm13904_vm0, %v17106_v35 }
 0x40e   : > { %2911 = vst.msk [vmem:[#allocation3 + $0x8] sm:$0xff] %vm883_vm2, %v2894_v55  ;;  %v15391_v44 = vpop.f32.mrb[8].mxu1 }
 0x40f   : > { %v2597_v60 = vpop.f32.mrb[44].mxu0  ;;  %v12720_v51 = vpop.f32.mrb[9].mxu1 }
 0x410   : > { %v2672_v10 = vadd.f32 %v2655_v19, %v2597_v60  ;;  %v12184_v15 = vpop.f32.mrb[45].mxu0  ;;  %v15393_v38 = vpop.f32.mrb[10].mxu1 }
 0x411   : > { %v2600_v5 = vpop.f32.mrb[46].mxu0  ;;  %v2878_v50 = vld [vmem:[#allocation3 + $0x10] sm:$0xff]  ;;  %v12721_v31 = vpop.f32.mrb[11].mxu1 }
 0x412   : > { %2689 = vst.msk [vmem:[#allocation3 + $0x20] sm:$0xff] %vm883_vm2, %v2672_v10  ;;  %v2673_v11 = vadd.f32 %v2656_v3, %v2600_v5  ;;  %v12185_v1 = vpop.f32.mrb[47].mxu0  ;;  %v2895_v9 = vadd.f32 %v2878_v50, %v14541_v42  ;;  %v2657_v10 = vld [vmem:[#allocation3 + $0x30] sm:$0xff]  ;;  %v2658_v50 = vld [vmem:[#allocation3 + $0x38] sm:$0xff] }
 0x413   : > { %v2879_v55 = vld [vmem:[#allocation3 + $0x18] sm:$0xff]  ;;  %v3834_v42 = vld [vmem:[#allocation2 + $0x64] sm:$0xff] }
 0x414   : > { %2690 = vst.msk [vmem:[#allocation3 + $0x28] sm:$0xff] %vm883_vm2, %v2673_v11  ;;  %12423 = vmatmul.mubr.msk.bf16.gmra.mrb[152].mxu0 %vm682_vm1, %v3846_v47  ;;  %2912 = vst.msk [vmem:[#allocation3 + $0x10] sm:$0xff] %vm883_vm2, %v2895_v9  ;;  %v2896_v60 = vadd.f32 %v2879_v55, %v14544_v58  ;;  %v3847_v9 = vpack.c.bf16 %v3834_v42, %v3833_v63  ;;  %v3835_v63 = vld [vmem:[#allocation2 + $0x6c] sm:$0xff] }
 0x415   : > { %12426 = vmatprep.mubr.msk.bf16.mxu0 %vm13904_vm0, %v17106_v35 }
 0x416   : > { %2913 = vst.msk [vmem:[#allocation3 + $0x18] sm:$0xff] %vm883_vm2, %v2896_v60  ;;  %v15404_v15 = vpop.f32.mrb[12].mxu1 }
 0x417   : > { %v2605_v19 = vpop.f32.mrb[48].mxu0  ;;  %v12724_v5 = vpop.f32.mrb[13].mxu1 }
 0x418   : > { %v2674_v56 = vadd.f32 %v2657_v10, %v2605_v19  ;;  %v12188_v51 = vpop.f32.mrb[49].mxu0  ;;  %v15406_v11 = vpop.f32.mrb[14].mxu1 }
 0x419   : > { %v2608_v3 = vpop.f32.mrb[50].mxu0  ;;  %v2880_v1 = vld [vmem:[#allocation3 + $0x20] sm:$0xff]  ;;  %v12725_v47 = vpop.f32.mrb[15].mxu1 }
 0x41a   : > { %2691 = vst.msk [vmem:[#allocation3 + $0x30] sm:$0xff] %vm883_vm2, %v2674_v56  ;;  %v2675_v58 = vadd.f32 %v2658_v50, %v2608_v3  ;;  %v12189_v31 = vpop.f32.mrb[51].mxu0  ;;  %v2897_v55 = vadd.f32 %v2880_v1, %v14564_v27  ;;  %v2659_v56 = vld [vmem:[#allocation3 + $0x40] sm:$0xff]  ;;  %v2660_v1 = vld [vmem:[#allocation3 + $0x48] sm:$0xff] }
 0x41b   : > { %v2881_v60 = vld [vmem:[#allocation3 + $0x28] sm:$0xff]  ;;  %v3836_v27 = vld [vmem:[#allocation2 + $0x74] sm:$0xff] }
 0x41c   : > { %2692 = vst.msk [vmem:[#allocation3 + $0x38] sm:$0xff] %vm883_vm2, %v2675_v58  ;;  %12427 = vmatmul.mubr.msk.bf16.gmra.mrb[156].mxu0 %vm682_vm1, %v3847_v9  ;;  %2914 = vst.msk [vmem:[#allocation3 + $0x20] sm:$0xff] %vm883_vm2, %v2897_v55  ;;  %v2898_v19 = vadd.f32 %v2881_v60, %v14566_v49  ;;  %v3848_v55 = vpack.c.bf16 %v3836_v27, %v3835_v63  ;;  %v3837_v63 = vld [vmem:[#allocation2 + $0x7c] sm:$0xff] }
 0x41d   : > { %12430 = vmatprep.mubr.msk.bf16.mxu0 %vm13904_vm0, %v17106_v35 }
 0x41e   : > { %2915 = vst.msk [vmem:[#allocation3 + $0x28] sm:$0xff] %vm883_vm2, %v2898_v19  ;;  %v15417_v51 = vpop.f32.mrb[16].mxu1 }
 0x41f   : > { %v2613_v10 = vpop.f32.mrb[52].mxu0  ;;  %v12728_v3 = vpop.f32.mrb[17].mxu1 }
 0x420   : > { %v2676_v42 = vadd.f32 %v2659_v56, %v2613_v10  ;;  %v12192_v5 = vpop.f32.mrb[53].mxu0  ;;  %v5573_v58 = vpop.f32.mrb[18].mxu1 }
 0x421   : > { %v2616_v50 = vpop.f32.mrb[54].mxu0  ;;  %v2882_v31 = vld [vmem:[#allocation3 + $0x30] sm:$0xff]  ;;  %v12729_v9 = vpop.f32.mrb[19].mxu1  ;;  %v2662_v58 = vld [vmem:[#allocation3 + $0x58] sm:$0xff] }
 0x422   : > { %2693 = vst.msk [vmem:[#allocation3 + $0x40] sm:$0xff] %vm883_vm2, %v2676_v42  ;;  %v2677_v49 = vadd.f32 %v2660_v1, %v2616_v50  ;;  %v12193_v47 = vpop.f32.mrb[55].mxu0  ;;  %v2899_v60 = vadd.f32 %v2882_v31, %v14579_v8  ;;  %v2661_v42 = vld [vmem:[#allocation3 + $0x50] sm:$0xff] }
 0x423   : > { %v2883_v19 = vld [vmem:[#allocation3 + $0x38] sm:$0xff]  ;;  %v3838_v8 = vld [vmem:[#allocation2 + $0x84] sm:$0xff] }
 0x424   : > { %2694 = vst.msk [vmem:[#allocation3 + $0x48] sm:$0xff] %vm883_vm2, %v2677_v49  ;;  %12431 = vmatmul.mubr.msk.bf16.gmra.mrb[160].mxu0 %vm682_vm1, %v3848_v55  ;;  %2916 = vst.msk [vmem:[#allocation3 + $0x30] sm:$0xff] %vm883_vm2, %v2899_v60  ;;  %v2900_v10 = vadd.f32 %v2883_v19, %v14581_v28  ;;  %v3849_v55 = vpack.c.bf16 %v3838_v8, %v3837_v63  ;;  %v3839_v63 = vld [vmem:[#allocation2 + $0x8c] sm:$0xff] }
 0x425   : > { %12434 = vmatprep.mubr.msk.bf16.mxu0 %vm13904_vm0, %v17106_v35 }
 0x426   : > { %2917 = vst.msk [vmem:[#allocation3 + $0x38] sm:$0xff] %vm883_vm2, %v2900_v10  ;;  %v15428_v5 = vpop.f32.mrb[20].mxu1 }
 0x427   : > { %v2621_v56 = vpop.f32.mrb[56].mxu0  ;;  %v12776_v50 = vpop.f32.mrb[21].mxu1 }
 0x428   : > { %v2678_v27 = vadd.f32 %v2661_v42, %v2621_v56  ;;  %v12196_v3 = vpop.f32.mrb[57].mxu0  ;;  %v15430_v31 = vpop.f32.mrb[22].mxu1  ;;  %v2663_v42 = vld [vmem:[#allocation3 + $0x60] sm:$0xff] }
 0x429   : > { %v2624_v1 = vpop.f32.mrb[58].mxu0  ;;  %v2884_v49 = vld [vmem:[#allocation3 + $0x40] sm:$0xff]  ;;  %v12777_v9 = vpop.f32.mrb[23].mxu1 }
 0x42a   : > { %2695 = vst.msk [vmem:[#allocation3 + $0x50] sm:$0xff] %vm883_vm2, %v2678_v27  ;;  %v2679_v28 = vadd.f32 %v2662_v58, %v2624_v1  ;;  %v12197_v47 = vpop.f32.mrb[59].mxu0  ;;  %v2901_v60 = vadd.f32 %v2884_v49, %v14593_v62  ;;  %v3840_v62 = vld [vmem:[#allocation2 + $0x94] sm:$0xff]  ;;  %v2664_v58 = vld [vmem:[#allocation3 + $0x68] sm:$0xff] }
 0x42b   : > { %v2885_v19 = vld [vmem:[#allocation3 + $0x48] sm:$0xff] }
 0x42c   : > { %2696 = vst.msk [vmem:[#allocation3 + $0x58] sm:$0xff] %vm883_vm2, %v2679_v28  ;;  %12435 = vmatmul.mubr.msk.bf16.gmra.mrb[164].mxu0 %vm682_vm1, %v3849_v55  ;;  %2918 = vst.msk [vmem:[#allocation3 + $0x40] sm:$0xff] %vm883_vm2, %v2901_v60  ;;  %v2902_v10 = vadd.f32 %v2885_v19, %v14595_v24  ;;  %v3850_v55 = vpack.c.bf16 %v3840_v62, %v3839_v63  ;;  %v3841_v63 = vld [vmem:[#allocation2 + $0x9c] sm:$0xff] }
 0x42d   : > { %12438 = vmatprep.mubr.msk.bf16.mxu0 %vm13904_vm0, %v17106_v35 }
 0x42e   : > { %2919 = vst.msk [vmem:[#allocation3 + $0x48] sm:$0xff] %vm883_vm2, %v2902_v10  ;;  %v15441_v27 = vpop.f32.mrb[24].mxu1 }
 0x42f   : > { %v2629_v56 = vpop.f32.mrb[60].mxu0  ;;  %v12780_v50 = vpop.f32.mrb[25].mxu1 }
 0x430   : > { %v2680_v8 = vadd.f32 %v2663_v42, %v2629_v56  ;;  %v12200_v3 = vpop.f32.mrb[61].mxu0  ;;  %v15443_v49 = vpop.f32.mrb[26].mxu1  ;;  %v2665_v42 = vld [vmem:[#allocation3 + $0x70] sm:$0xff] }
 0x431   : > { %v2632_v1 = vpop.f32.mrb[62].mxu0  ;;  %v2886_v28 = vld [vmem:[#allocation3 + $0x50] sm:$0xff]  ;;  %v12781_v9 = vpop.f32.mrb[27].mxu1 }
 0x432   : > { %2697 = vst.msk [vmem:[#allocation3 + $0x60] sm:$0xff] %vm883_vm2, %v2680_v8  ;;  %v2681_v24 = vadd.f32 %v2664_v58, %v2632_v1  ;;  %v12201_v47 = vpop.f32.mrb[63].mxu0  ;;  %v2903_v60 = vadd.f32 %v2886_v28, %v14607_v22  ;;  %v3842_v22 = vld [vmem:[#allocation2 + $0xa4] sm:$0xff]  ;;  %v2666_v58 = vld [vmem:[#allocation3 + $0x78] sm:$0xff] }
 0x433   : > { %v2887_v19 = vld [vmem:[#allocation3 + $0x58] sm:$0xff] }
 0x434   : > { %2698 = vst.msk [vmem:[#allocation3 + $0x68] sm:$0xff] %vm883_vm2, %v2681_v24  ;;  %12439 = vmatmul.mubr.msk.bf16.gmra.mrb[168].mxu0 %vm682_vm1, %v3850_v55  ;;  %2920 = vst.msk [vmem:[#allocation3 + $0x50] sm:$0xff] %vm883_vm2, %v2903_v60  ;;  %v2904_v10 = vadd.f32 %v2887_v19, %v14609_v43  ;;  %v3851_v55 = vpack.c.bf16 %v3842_v22, %v3841_v63  ;;  %v3843_v63 = vld [vmem:[#allocation2 + $0xac] sm:$0x3] }
 0x435   : > { %12442 = vmatprep.mubr.msk.bf16.mxu0 %vm13904_vm0, %v17106_v35 }
 0x436   : > { %2921 = vst.msk [vmem:[#allocation3 + $0x58] sm:$0xff] %vm883_vm2, %v2904_v10  ;;  %v15454_v8 = vpop.f32.mrb[28].mxu1 }
 0x437   : > { %v2637_v56 = vpop.f32.mrb[64].mxu0  ;;  %v12784_v50 = vpop.f32.mrb[29].mxu1 }
 0x438   : > { %v2682_v62 = vadd.f32 %v2665_v42, %v2637_v56  ;;  %v12204_v3 = vpop.f32.mrb[65].mxu0  ;;  %v15456_v28 = vpop.f32.mrb[30].mxu1  ;;  %v2667_v56 = vld [vmem:[#allocation3 + $0x80] sm:$0x3] }
 0x439   : > { %v2640_v1 = vpop.f32.mrb[66].mxu0  ;;  %v2888_v24 = vld [vmem:[#allocation3 + $0x60] sm:$0xff]  ;;  %v12785_v9 = vpop.f32.mrb[31].mxu1 }
 0x43a   : > { %2699 = vst.msk [vmem:[#allocation3 + $0x70] sm:$0xff] %vm883_vm2, %v2682_v62  ;;  %v2683_v43 = vadd.f32 %v2666_v58, %v2640_v1  ;;  %v12205_v47 = vpop.f32.mrb[67].mxu0  ;;  %v2905_v60 = vadd.f32 %v2888_v24, %v14619_v21 }
 0x43b   : > { %v2889_v19 = vld [vmem:[#allocation3 + $0x68] sm:$0xff] }
 0x43c   : > { %2700 = vst.msk [vmem:[#allocation3 + $0x78] sm:$0xff] %vm883_vm2, %v2683_v43  ;;  %12443 = vmatmul.mubr.msk.bf16.gmra.mrb[172].mxu0 %vm682_vm1, %v3851_v55  ;;  %2922 = vst.msk [vmem:[#allocation3 + $0x60] sm:$0xff] %vm883_vm2, %v2905_v60  ;;  %v2906_v10 = vadd.f32 %v2889_v19, %v14621_v57  ;;  %v3852_v43 = vpack.c.bf16 %v3843_v63, %v3843_v63  ;;  %v3101_v19 = vld [vmem:[#allocation3] sm:$0xff] }
 0x43d   : > { %12446 = vmatprep.mubr.msk.bf16.mxu0 %vm13904_vm0, %v17106_v35 }
 0x43e   : > { %2923 = vst.msk [vmem:[#allocation3 + $0x68] sm:$0xff] %vm883_vm2, %v2906_v10  ;;  %v15467_v62 = vpop.f32.mrb[32].mxu1 }
 0x43f   : > { %v2645_v42 = vpop.f32.mrb[68].mxu0  ;;  %v12788_v3 = vpop.f32.mrb[33].mxu1 }
 0x440   : > { %v2684_v21 = vadd.f32 %v2667_v56, %v2645_v42  ;;  %v12208_v22 = vpop.f32.mrb[69].mxu0  ;;  %v15469_v1 = vpop.f32.mrb[34].mxu1 }
 0x441   : > { %v2648_v50 = vpop.f32.mrb[70].mxu0  ;;  %v2890_v58 = vld [vmem:[#allocation3 + $0x70] sm:$0xff]  ;;  %v12789_v24 = vpop.f32.mrb[35].mxu1  ;;  %v3102_v22 = vld [vmem:[#allocation3 + $0x8] sm:$0xff] }
 0x442   : > { %2701 = vst.msk [vmem:[#allocation3 + $0x80] sm:$0x3] %vm900_vm3, %v2684_v21  ;;  %v12209_v57 = vpop.f32.mrb[71].mxu0  ;;  %v2907_v47 = vadd.f32 %v2890_v58, %v14631_v39  ;;  %v17179_v50 = vld [vmem:[#allocation9_spill] sm:$0xff] }
 0x443   : > { %v2891_v9 = vld [vmem:[#allocation3 + $0x78] sm:$0xff] }
 0x444   : > { %12447 = vmatmul.mubr.msk.bf16.gmra.mrb[176].mxu0 %vm682_vm1, %v3852_v43  ;;  %2924 = vst.msk [vmem:[#allocation3 + $0x70] sm:$0xff] %vm883_vm2, %v2907_v47  ;;  %v2908_v55 = vadd.f32 %v2891_v9, %v14633_v45  ;;  %v13706_v45 = vld [vmem:[%s17088_s3 + $0x120] sm:$0xff]   ;;  %v17180_v47 = vld [vmem:[#allocation8_spill] sm:$0xff]  ;;  %v13707_v9 = vld [vmem:[%s17088_s3 + $0x128] sm:$0xff]  }
 0x445   : > { %12494 = vmatprep.mubr.msk.bf16.mxu0 %vm13904_vm0, %v17106_v35 }
 0x446   : > { %2925 = vst.msk [vmem:[#allocation3 + $0x78] sm:$0xff] %vm883_vm2, %v2908_v55  ;;  %v15479_v10 = vpop.f32.mrb[36].mxu1 }
 0x447   : > { %v3031_v60 = vpop.f32.mrb[72].mxu0  ;;  %17177 = vst [vmem:[#allocation76_spill] sm:$0xff] %v15479_v10  ;;  %v12792_v63 = vpop.f32.mrb[37].mxu1 }
 0x448   : > { %v3118_v56 = vadd.f32 %v3101_v19, %v3031_v60  ;;  %v12256_v42 = vpop.f32.mrb[73].mxu0  ;;  %v15481_v3 = vpop.f32.mrb[38].mxu1  ;;  %v3103_v60 = vld [vmem:[#allocation3 + $0x10] sm:$0xff] }
 0x449   : > { %v2892_v39 = vld [vmem:[#allocation3 + $0x80] sm:$0x3]  ;;  %v3034_v21 = vpop.f32.mrb[74].mxu0  ;;  %17178 = vst [vmem:[#allocation77_spill] sm:$0xff] %v15481_v3  ;;  %v12793_v43 = vpop.f32.mrb[39].mxu1  ;;  %v4280_v42 = vld [vmem:[#allocation2 + $0x49] sm:$0xff] }
 0x44a   : > { %v2909_v58 = vadd.f32 %v2892_v39, %v17179_v50  ;;  %3135 = vst.msk [vmem:[#allocation3] sm:$0xff] %vm883_vm2, %v3118_v56  ;;  %v3119_v57 = vadd.f32 %v3102_v22, %v3034_v21  ;;  %v12257_v24 = vpop.f32.mrb[75].mxu0  ;;  %v4279_v56 = vld [vmem:[#allocation2 + $0x41] sm:$0xff] }
 0x44b   : > { %v17183_v3 = vld [vmem:[#allocation10_spill] sm:$0xff] }
 0x44c   : > { %2926 = vst.msk [vmem:[#allocation3 + $0x80] sm:$0x3] %vm900_vm3, %v2909_v58  ;;  %12495 = vmatmul.mubr.msk.bf16.vlgmr.msra.gmra.mrb[180].mxu0 %vm682_vm1, %v17180_v47  ;;  %v4295_v47 = vpack.c.bf16 %v4280_v42, %v4279_v56  ;;  %v3105_v56 = vld [vmem:[#allocation3 + $0x20] sm:$0xff] }
 0x44d   : > { %3136 = vst.msk [vmem:[#allocation3 + $0x8] sm:$0xff] %vm883_vm2, %v3119_v57  ;;  %12571 = vmatpush3.bf16.msra.mxu0 %v13706_v45  ;;  %12498 = vmatprep.mubr.msk.bf16.mxu0 %vm13904_vm0, %v17106_v35  ;;  %v3104_v45 = vld [vmem:[#allocation3 + $0x18] sm:$0xff] }
 0x44e   : > { %12572 = vmatprep.subr.bf16.mxu0 %v17106_v35  ;;  %v15498_v19 = vpop.f32.mrb[40].mxu1 }
 0x44f   : > { %v3039_v55 = vpop.f32.mrb[76].mxu0  ;;  %17181 = vst [vmem:[#allocation9_spill] sm:$0xff] %v15498_v19  ;;  %v12796_v21 = vpop.f32.mrb[41].mxu1 }
 0x450   : > { %v3120_v63 = vadd.f32 %v3103_v60, %v3039_v55  ;;  %v12260_v39 = vpop.f32.mrb[77].mxu0  ;;  %v15500_v50 = vpop.f32.mrb[42].mxu1  ;;  %v17184_v55 = vld [vmem:[#allocation11_spill] sm:$0xff] }
 0x451   : > { %v3042_v22 = vpop.f32.mrb[78].mxu0  ;;  %17182 = vst [vmem:[#allocation8_spill] sm:$0xff] %v15500_v50  ;;  %12573 = vmatpush3.bf16.msra.mxu0 %v13707_v9  ;;  %v3326_v58 = vld [vmem:[#allocation3] sm:$0xff]  ;;  %v12797_v43 = vpop.f32.mrb[43].mxu1 }
 0x452   : > { %3137 = vst.msk [vmem:[#allocation3 + $0x10] sm:$0xff] %vm883_vm2, %v3120_v63  ;;  %v3121_v57 = vadd.f32 %v3104_v45, %v3042_v22  ;;  %v12261_v24 = vpop.f32.mrb[79].mxu0  ;;  %v3343_v10 = vadd.f32 %v3326_v58, %v17183_v3  ;;  %12650 = vmatprep.subr.bf16.mxu0 %v17106_v35  ;;  %v4281_v3 = vld [vmem:[#allocation2 + $0x51] sm:$0xff]  ;;  %v4282_v63 = vld [vmem:[#allocation2 + $0x59] sm:$0xff] }
 0x453   : > { %v3106_v58 = vld [vmem:[#allocation3 + $0x28] sm:$0xff] }
 0x454   : > { %v3327_v19 = vld [vmem:[#allocation3 + $0x8] sm:$0xff]  ;;  %3138 = vst.msk [vmem:[#allocation3 + $0x18] sm:$0xff] %vm883_vm2, %v3121_v57  ;;  %12499 = vmatmul.mubr.msk.bf16.gmra.mrb[184].mxu0 %vm682_vm1, %v4295_v47  ;;  %3360 = vst.msk [vmem:[#allocation3] sm:$0xff] %vm883_vm2, %v3343_v10  ;;  %v4296_v47 = vpack.c.bf16 %v4282_v63, %v4281_v3  ;;  %v4284_v63 = vld [vmem:[#allocation2 + $0x69] sm:$0xff] }
 0x455   : > { %v3344_v9 = vadd.f32 %v3327_v19, %v17184_v55  ;;  %12502 = vmatprep.mubr.msk.bf16.mxu0 %vm13904_vm0, %v17106_v35  ;;  %v17186_v55 = vld [vmem:[#allocation12_spill] sm:$0xff]  ;;  %v4283_v3 = vld [vmem:[#allocation2 + $0x61] sm:$0xff] }
 0x456   : > { %v15512_v42 = vpop.f32.mrb[44].mxu1 }
 0x457   : > { %3361 = vst.msk [vmem:[#allocation3 + $0x8] sm:$0xff] %vm883_vm2, %v3344_v9  ;;  %v3047_v60 = vpop.f32.mrb[80].mxu0  ;;  %v12800_v22 = vpop.f32.mrb[45].mxu1 }
 0x458   : > { %v3122_v39 = vadd.f32 %v3105_v56, %v3047_v60  ;;  %v12264_v21 = vpop.f32.mrb[81].mxu0  ;;  %v15514_v57 = vpop.f32.mrb[46].mxu1  ;;  %v17187_v60 = vld [vmem:[#allocation13_spill] sm:$0xff] }
 0x459   : > { %v3050_v45 = vpop.f32.mrb[82].mxu0  ;;  %17185 = vst [vmem:[#allocation10_spill] sm:$0xff] %v15514_v57  ;;  %v3328_v10 = vld [vmem:[#allocation3 + $0x10] sm:$0xff]  ;;  %v12801_v43 = vpop.f32.mrb[47].mxu1 }
 0x45a   : > { %3139 = vst.msk [vmem:[#allocation3 + $0x20] sm:$0xff] %vm883_vm2, %v3122_v39  ;;  %v3123_v19 = vadd.f32 %v3106_v58, %v3050_v45  ;;  %v12265_v24 = vpop.f32.mrb[83].mxu0  ;;  %v3345_v9 = vadd.f32 %v3328_v10, %v17186_v55  ;;  %v3107_v21 = vld [vmem:[#allocation3 + $0x30] sm:$0xff] }
 0x45b   : > { %v3329_v50 = vld [vmem:[#allocation3 + $0x18] sm:$0xff] }
 0x45c   : > { %3140 = vst.msk [vmem:[#allocation3 + $0x28] sm:$0xff] %vm883_vm2, %v3123_v19  ;;  %12503 = vmatmul.mubr.msk.bf16.gmra.mrb[188].mxu0 %vm682_vm1, %v4296_v47  ;;  %3362 = vst.msk [vmem:[#allocation3 + $0x10] sm:$0xff] %vm883_vm2, %v3345_v9  ;;  %v3346_v56 = vadd.f32 %v3329_v50, %v17187_v60  ;;  %v3108_v24 = vld [vmem:[#allocation3 + $0x38] sm:$0xff]  ;;  %v4297_v60 = vpack.c.bf16 %v4284_v63, %v4283_v3 }
 0x45d   : > { %12506 = vmatprep.mubr.msk.bf16.mxu0 %vm13904_vm0, %v17106_v35  ;;  %v4285_v3 = vld [vmem:[#allocation2 + $0x71] sm:$0xff] }
 0x45e   : > { %3363 = vst.msk [vmem:[#allocation3 + $0x18] sm:$0xff] %vm883_vm2, %v3346_v56  ;;  %v15525_v22 = vpop.f32.mrb[48].mxu1 }
 0x45f   : > { %v3055_v39 = vpop.f32.mrb[84].mxu0  ;;  %v12804_v10 = vpop.f32.mrb[49].mxu1 }
 0x460   : > { %v3124_v45 = vadd.f32 %v3107_v21, %v3055_v39  ;;  %v12268_v58 = vpop.f32.mrb[85].mxu0  ;;  %v15527_v43 = vpop.f32.mrb[50].mxu1 }
 0x461   : > { %v3058_v19 = vpop.f32.mrb[86].mxu0  ;;  %v3330_v47 = vld [vmem:[#allocation3 + $0x20] sm:$0xff]  ;;  %v12805_v9 = vpop.f32.mrb[51].mxu1 }
 0x462   : > { %3141 = vst.msk [vmem:[#allocation3 + $0x30] sm:$0xff] %vm883_vm2, %v3124_v45  ;;  %v3125_v50 = vadd.f32 %v3108_v24, %v3058_v19  ;;  %v12269_v55 = vpop.f32.mrb[87].mxu0  ;;  %v3347_v56 = vadd.f32 %v3330_v47, %v14692_v7  ;;  %v3109_v45 = vld [vmem:[#allocation3 + $0x40] sm:$0xff]  ;;  %v3110_v47 = vld [vmem:[#allocation3 + $0x48] sm:$0xff] }
 0x463   : > { %v3331_v57 = vld [vmem:[#allocation3 + $0x28] sm:$0xff] }
 0x464   : > { %3142 = vst.msk [vmem:[#allocation3 + $0x38] sm:$0xff] %vm883_vm2, %v3125_v50  ;;  %12507 = vmatmul.mubr.msk.bf16.gmra.mrb[192].mxu0 %vm682_vm1, %v4297_v60  ;;  %3364 = vst.msk [vmem:[#allocation3 + $0x20] sm:$0xff] %vm883_vm2, %v3347_v56  ;;  %v3348_v39 = vadd.f32 %v3331_v57, %v14694_v17  ;;  %v4286_v7 = vld [vmem:[#allocation2 + $0x79] sm:$0xff] }
 0x465   : > { %12510 = vmatprep.mubr.msk.bf16.mxu0 %vm13904_vm0, %v17106_v35  ;;  %v4298_v60 = vpack.c.bf16 %v4286_v7, %v4285_v3  ;;  %v4287_v3 = vld [vmem:[#allocation2 + $0x81] sm:$0xff] }
 0x466   : > { %3365 = vst.msk [vmem:[#allocation3 + $0x28] sm:$0xff] %vm883_vm2, %v3348_v39  ;;  %v15538_v58 = vpop.f32.mrb[52].mxu1 }
 0x467   : > { %v3063_v21 = vpop.f32.mrb[88].mxu0  ;;  %v12808_v19 = vpop.f32.mrb[53].mxu1 }
 0x468   : > { %v3126_v63 = vadd.f32 %v3109_v45, %v3063_v21  ;;  %v12272_v10 = vpop.f32.mrb[89].mxu0  ;;  %v6023_v50 = vpop.f32.mrb[54].mxu1 }
 0x469   : > { %v3066_v24 = vpop.f32.mrb[90].mxu0  ;;  %v3332_v55 = vld [vmem:[#allocation3 + $0x30] sm:$0xff]  ;;  %v12809_v9 = vpop.f32.mrb[55].mxu1  ;;  %v3112_v50 = vld [vmem:[#allocation3 + $0x58] sm:$0xff] }
 0x46a   : > { %3143 = vst.msk [vmem:[#allocation3 + $0x40] sm:$0xff] %vm883_vm2, %v3126_v63  ;;  %v3127_v17 = vadd.f32 %v3110_v47, %v3066_v24  ;;  %v12273_v57 = vpop.f32.mrb[91].mxu0  ;;  %v3349_v56 = vadd.f32 %v3332_v55, %v14705_v53  ;;  %v3111_v63 = vld [vmem:[#allocation3 + $0x50] sm:$0xff] }
 0x46b   : > { %v3333_v39 = vld [vmem:[#allocation3 + $0x38] sm:$0xff] }
 0x46c   : > { %3144 = vst.msk [vmem:[#allocation3 + $0x48] sm:$0xff] %vm883_vm2, %v3127_v17  ;;  %12511 = vmatmul.mubr.msk.bf16.gmra.mrb[196].mxu0 %vm682_vm1, %v4298_v60  ;;  %3366 = vst.msk [vmem:[#allocation3 + $0x30] sm:$0xff] %vm883_vm2, %v3349_v56  ;;  %v3350_v21 = vadd.f32 %v3333_v39, %v14707_v61  ;;  %v4288_v53 = vld [vmem:[#allocation2 + $0x89] sm:$0xff] }
 0x46d   : > { %12514 = vmatprep.mubr.msk.bf16.mxu0 %vm13904_vm0, %v17106_v35  ;;  %v4299_v60 = vpack.c.bf16 %v4288_v53, %v4287_v3  ;;  %v4289_v3 = vld [vmem:[#allocation2 + $0x91] sm:$0xff] }
 0x46e   : > { %3367 = vst.msk [vmem:[#allocation3 + $0x38] sm:$0xff] %vm883_vm2, %v3350_v21  ;;  %v15549_v10 = vpop.f32.mrb[56].mxu1 }
 0x46f   : > { %v3071_v45 = vpop.f32.mrb[92].mxu0  ;;  %v12856_v24 = vpop.f32.mrb[57].mxu1 }
 0x470   : > { %v3128_v7 = vadd.f32 %v3111_v63, %v3071_v45  ;;  %v12276_v19 = vpop.f32.mrb[93].mxu0  ;;  %v15551_v55 = vpop.f32.mrb[58].mxu1  ;;  %v3113_v63 = vld [vmem:[#allocation3 + $0x60] sm:$0xff] }
 0x471   : > { %v3074_v47 = vpop.f32.mrb[94].mxu0  ;;  %v3334_v17 = vld [vmem:[#allocation3 + $0x40] sm:$0xff]  ;;  %v12857_v9 = vpop.f32.mrb[59].mxu1 }
 0x472   : > { %3145 = vst.msk [vmem:[#allocation3 + $0x50] sm:$0xff] %vm883_vm2, %v3128_v7  ;;  %v3129_v61 = vadd.f32 %v3112_v50, %v3074_v47  ;;  %v12277_v57 = vpop.f32.mrb[95].mxu0  ;;  %v3351_v56 = vadd.f32 %v3334_v17, %v14718_v14  ;;  %v4290_v14 = vld [vmem:[#allocation2 + $0x99] sm:$0xff] }
 0x473   : > { %v3335_v39 = vld [vmem:[#allocation3 + $0x48] sm:$0xff] }
 0x474   : > { %3146 = vst.msk [vmem:[#allocation3 + $0x58] sm:$0xff] %vm883_vm2, %v3129_v61  ;;  %12515 = vmatmul.mubr.msk.bf16.gmra.mrb[200].mxu0 %vm682_vm1, %v4299_v60  ;;  %3368 = vst.msk [vmem:[#allocation3 + $0x40] sm:$0xff] %vm883_vm2, %v3351_v56  ;;  %v3352_v21 = vadd.f32 %v3335_v39, %v14720_v33  ;;  %v3114_v50 = vld [vmem:[#allocation3 + $0x68] sm:$0xff]  ;;  %v4300_v60 = vpack.c.bf16 %v4290_v14, %v4289_v3 }
 0x475   : > { %12518 = vmatprep.mubr.msk.bf16.mxu0 %vm13904_vm0, %v17106_v35  ;;  %v4291_v3 = vld [vmem:[#allocation2 + $0xa1] sm:$0xff] }
 0x476   : > { %3369 = vst.msk [vmem:[#allocation3 + $0x48] sm:$0xff] %vm883_vm2, %v3352_v21  ;;  %v15562_v7 = vpop.f32.mrb[60].mxu1 }
 0x477   : > { %v3079_v45 = vpop.f32.mrb[96].mxu0  ;;  %v12860_v24 = vpop.f32.mrb[61].mxu1 }
 0x478   : > { %v3130_v53 = vadd.f32 %v3113_v63, %v3079_v45  ;;  %v12280_v19 = vpop.f32.mrb[97].mxu0  ;;  %v15564_v17 = vpop.f32.mrb[62].mxu1  ;;  %v3115_v63 = vld [vmem:[#allocation3 + $0x70] sm:$0xff] }
 0x479   : > { %v3082_v47 = vpop.f32.mrb[98].mxu0  ;;  %v3336_v61 = vld [vmem:[#allocation3 + $0x50] sm:$0xff]  ;;  %v12861_v9 = vpop.f32.mrb[63].mxu1 }
 0x47a   : > { %3147 = vst.msk [vmem:[#allocation3 + $0x60] sm:$0xff] %vm883_vm2, %v3130_v53  ;;  %v3131_v33 = vadd.f32 %v3114_v50, %v3082_v47  ;;  %v12281_v57 = vpop.f32.mrb[99].mxu0  ;;  %v3353_v56 = vadd.f32 %v3336_v61, %v14733_v4  ;;  %v4292_v4 = vld [vmem:[#allocation2 + $0xa9] sm:$0xff] }
 0x47b   : > { %v3337_v39 = vld [vmem:[#allocation3 + $0x58] sm:$0xff] }
 0x47c   : > { %3148 = vst.msk [vmem:[#allocation3 + $0x68] sm:$0xff] %vm883_vm2, %v3131_v33  ;;  %12519 = vmatmul.mubr.msk.bf16.gmra.mrb[204].mxu0 %vm682_vm1, %v4300_v60  ;;  %3370 = vst.msk [vmem:[#allocation3 + $0x50] sm:$0xff] %vm883_vm2, %v3353_v56  ;;  %v3354_v21 = vadd.f32 %v3337_v39, %v14735_v18  ;;  %v3116_v50 = vld [vmem:[#allocation3 + $0x78] sm:$0xff]  ;;  %v4301_v60 = vpack.c.bf16 %v4292_v4, %v4291_v3  ;;  %v17190_v56 = vld [vmem:[#allocation14_spill] sm:$0xff] }
 0x47d   : > { %12522 = vmatprep.mubr.msk.bf16.mxu0 %vm13904_vm0, %v17106_v35  ;;  %v4293_v3 = vld [vmem:[#allocation2 + $0xb1] sm:$0x3] }
 0x47e   : > { %3371 = vst.msk [vmem:[#allocation3 + $0x58] sm:$0xff] %vm883_vm2, %v3354_v21  ;;  %v15575_v53 = vpop.f32.mrb[64].mxu1 }
 0x47f   : > { %v3087_v45 = vpop.f32.mrb[100].mxu0  ;;  %17188 = vst [vmem:[#allocation11_spill] sm:$0xff] %v15575_v53  ;;  %v12864_v24 = vpop.f32.mrb[65].mxu1 }
 0x480   : > { %v3132_v14 = vadd.f32 %v3115_v63, %v3087_v45  ;;  %v12284_v19 = vpop.f32.mrb[101].mxu0  ;;  %v15577_v61 = vpop.f32.mrb[66].mxu1  ;;  %v17191_v45 = vld [vmem:[#allocation15_spill] sm:$0xff] }
 0x481   : > { %v3090_v47 = vpop.f32.mrb[102].mxu0  ;;  %17189 = vst [vmem:[#allocation12_spill] sm:$0xff] %v15577_v61  ;;  %v3338_v33 = vld [vmem:[#allocation3 + $0x60] sm:$0xff]  ;;  %v12865_v9 = vpop.f32.mrb[67].mxu1 }
 0x482   : > { %3149 = vst.msk [vmem:[#allocation3 + $0x70] sm:$0xff] %vm883_vm2, %v3132_v14  ;;  %v3133_v18 = vadd.f32 %v3116_v50, %v3090_v47  ;;  %v12285_v57 = vpop.f32.mrb[103].mxu0  ;;  %v3355_v39 = vadd.f32 %v3338_v33, %v17190_v56  ;;  %v3117_v19 = vld [vmem:[#allocation3 + $0x80] sm:$0x3]  ;;  %v4302_v56 = vpack.c.bf16 %v4293_v3, %v4293_v3  ;;  %v4728_v3 = vld [vmem:[#allocation2 + $0x50] sm:$0xff] }
 0x483   : > { %v3339_v21 = vld [vmem:[#allocation3 + $0x68] sm:$0xff] }
 0x484   : > { %3150 = vst.msk [vmem:[#allocation3 + $0x78] sm:$0xff] %vm883_vm2, %v3133_v18  ;;  %12523 = vmatmul.mubr.msk.bf16.gmra.mrb[208].mxu0 %vm682_vm1, %v4301_v60  ;;  %3372 = vst.msk [vmem:[#allocation3 + $0x60] sm:$0xff] %vm883_vm2, %v3355_v39  ;;  %v3356_v63 = vadd.f32 %v3339_v21, %v17191_v45  ;;  %v17194_v39 = vld [vmem:[#allocation16_spill] sm:$0xff] }
 0x485   : > { %12526 = vmatprep.mubr.msk.bf16.mxu0 %vm13904_vm0, %v17106_v35 }
 0x486   : > { %3373 = vst.msk [vmem:[#allocation3 + $0x68] sm:$0xff] %vm883_vm2, %v3356_v63  ;;  %v15588_v24 = vpop.f32.mrb[68].mxu1  ;;  %v17195_v63 = vld [vmem:[#allocation17_spill] sm:$0xff] }
 0x487   : > { %v3095_v14 = vpop.f32.mrb[104].mxu0  ;;  %17192 = vst [vmem:[#allocation13_spill] sm:$0xff] %v15588_v24  ;;  %v12868_v50 = vpop.f32.mrb[69].mxu1 }
 0x488   : > { %v3134_v4 = vadd.f32 %v3117_v19, %v3095_v14  ;;  %v12288_v47 = vpop.f32.mrb[105].mxu0  ;;  %v15590_v18 = vpop.f32.mrb[70].mxu1  ;;  %v4727_v50 = vld [vmem:[#allocation2 + $0x48] sm:$0xff] }
 0x489   : > { %v3098_v33 = vpop.f32.mrb[106].mxu0  ;;  %17193 = vst [vmem:[#allocation14_spill] sm:$0xff] %v15590_v18  ;;  %v3340_v57 = vld [vmem:[#allocation3 + $0x70] sm:$0xff]  ;;  %v12869_v60 = vpop.f32.mrb[71].mxu1  ;;  %v3551_v47 = vld [vmem:[#allocation3] sm:$0xff]  ;;  %v4744_v61 = vpack.c.bf16 %v4728_v3, %v4727_v50  ;;  %v4730_v3 = vld [vmem:[#allocation2 + $0x60] sm:$0xff] }
 0x48a   : > { %3151 = vst.msk [vmem:[#allocation3 + $0x80] sm:$0x3] %vm900_vm3, %v3134_v4  ;;  %v12289_v9 = vpop.f32.mrb[107].mxu0  ;;  %v3357_v21 = vadd.f32 %v3340_v57, %v17194_v39  ;;  %v3552_v39 = vld [vmem:[#allocation3 + $0x8] sm:$0xff]  ;;  %v4729_v50 = vld [vmem:[#allocation2 + $0x58] sm:$0xff] }
 0x48b   : > { %v3341_v45 = vld [vmem:[#allocation3 + $0x78] sm:$0xff] }
 0x48c   : > { %12527 = vmatmul.mubr.msk.bf16.gmra.mrb[212].mxu0 %vm682_vm1, %v4302_v56  ;;  %3374 = vst.msk [vmem:[#allocation3 + $0x70] sm:$0xff] %vm883_vm2, %v3357_v21  ;;  %v3358_v14 = vadd.f32 %v3341_v45, %v17195_v63  ;;  %v13708_v45 = vld [vmem:[%s17088_s3 + $0x140] sm:$0xff]  }
 0x48d   : > { %12574 = vmatprep.mubr.msk.bf16.mxu0 %vm13904_vm0, %v17106_v35  ;;  %v17198_v63 = vld [vmem:[#allocation18_spill] sm:$0xff] }
 0x48e   : > { %3375 = vst.msk [vmem:[#allocation3 + $0x78] sm:$0xff] %vm883_vm2, %v3358_v14  ;;  %v15600_v4 = vpop.f32.mrb[72].mxu1 }
 0x48f   : > { %v3481_v19 = vpop.f32.mrb[108].mxu0  ;;  %17196 = vst [vmem:[#allocation15_spill] sm:$0xff] %v15600_v4  ;;  %v12872_v9 = vpop.f32.mrb[73].mxu1 }
 0x490   : > { %v3568_v33 = vadd.f32 %v3551_v47, %v3481_v19  ;;  %v12336_v57 = vpop.f32.mrb[109].mxu0  ;;  %v15602_v21 = vpop.f32.mrb[74].mxu1  ;;  %v13709_v19 = vld [vmem:[%s17088_s3 + $0x148] sm:$0xff]   ;;  %v3554_v9 = vld [vmem:[#allocation3 + $0x18] sm:$0xff] }
 0x491   : > { %v3342_v60 = vld [vmem:[#allocation3 + $0x80] sm:$0x3]  ;;  %v3484_v56 = vpop.f32.mrb[110].mxu0  ;;  %17197 = vst [vmem:[#allocation16_spill] sm:$0xff] %v15602_v21  ;;  %v12873_v24 = vpop.f32.mrb[75].mxu1  ;;  %v17201_v21 = vld [vmem:[#allocation19_spill] sm:$0xff] }
 0x492   : > { %v3359_v14 = vadd.f32 %v3342_v60, %v17198_v63  ;;  %3585 = vst.msk [vmem:[#allocation3] sm:$0xff] %vm883_vm2, %v3568_v33  ;;  %v3569_v18 = vadd.f32 %v3552_v39, %v3484_v56  ;;  %v12337_v4 = vpop.f32.mrb[111].mxu0 }
 0x493   : > { %v3553_v4 = vld [vmem:[#allocation3 + $0x10] sm:$0xff] }
 0x494   : > { %3376 = vst.msk [vmem:[#allocation3 + $0x80] sm:$0x3] %vm900_vm3, %v3359_v14  ;;  %12575 = vmatmul.mubr.msk.bf16.vlgmr.msra.gmra.mrb[216].mxu0 %vm682_vm1, %v4744_v61  ;;  %v4745_v14 = vpack.c.bf16 %v4730_v3, %v4729_v50  ;;  %v3555_v50 = vld [vmem:[#allocation3 + $0x20] sm:$0xff] }
 0x495   : > { %3586 = vst.msk [vmem:[#allocation3 + $0x8] sm:$0xff] %vm883_vm2, %v3569_v18  ;;  %12651 = vmatpush3.bf16.msra.mxu0 %v13708_v45  ;;  %12578 = vmatprep.mubr.msk.bf16.mxu0 %vm13904_vm0, %v17106_v35 }
 0x496   : > { %12652 = vmatprep.subr.bf16.mxu0 %v17106_v35  ;;  %v15618_v24 = vpop.f32.mrb[76].mxu1 }
 0x497   : > { %v3489_v47 = vpop.f32.mrb[112].mxu0  ;;  %17199 = vst [vmem:[#allocation17_spill] sm:$0xff] %v15618_v24  ;;  %v12876_v57 = vpop.f32.mrb[77].mxu1 }
 0x498   : > { %v3570_v33 = vadd.f32 %v3553_v4, %v3489_v47  ;;  %v12340_v18 = vpop.f32.mrb[113].mxu0  ;;  %v15620_v60 = vpop.f32.mrb[78].mxu1  ;;  %v17202_v47 = vld [vmem:[#allocation20_spill] sm:$0xff] }
 0x499   : > { %v3492_v61 = vpop.f32.mrb[114].mxu0  ;;  %17200 = vst [vmem:[#allocation18_spill] sm:$0xff] %v15620_v60  ;;  %12653 = vmatpush3.bf16.msra.mxu0 %v13709_v19  ;;  %v3776_v56 = vld [vmem:[#allocation3] sm:$0xff]  ;;  %v12877_v63 = vpop.f32.mrb[79].mxu1 }
 0x49a   : > { %3587 = vst.msk [vmem:[#allocation3 + $0x10] sm:$0xff] %vm883_vm2, %v3570_v33  ;;  %v3571_v39 = vadd.f32 %v3554_v9, %v3492_v61  ;;  %v12341_v45 = vpop.f32.mrb[115].mxu0  ;;  %v3793_v53 = vadd.f32 %v3776_v56, %v17201_v21  ;;  %12730 = vmatprep.subr.bf16.mxu0 %v17106_v35  ;;  %v4731_v21 = vld [vmem:[#allocation2 + $0x68] sm:$0xff]  ;;  %v4732_v33 = vld [vmem:[#allocation2 + $0x70] sm:$0xff]  ;;  %v3556_v56 = vld [vmem:[#allocation3 + $0x28] sm:$0xff] }
 0x49c   : > { %v3777_v24 = vld [vmem:[#allocation3 + $0x8] sm:$0xff]  ;;  %3588 = vst.msk [vmem:[#allocation3 + $0x18] sm:$0xff] %vm883_vm2, %v3571_v39  ;;  %12579 = vmatmul.mubr.msk.bf16.gmra.mrb[220].mxu0 %vm682_vm1, %v4745_v14  ;;  %3810 = vst.msk [vmem:[#allocation3] sm:$0xff] %vm883_vm2, %v3793_v53  ;;  %v4746_v14 = vpack.c.bf16 %v4732_v33, %v4731_v21  ;;  %v4733_v21 = vld [vmem:[#allocation2 + $0x78] sm:$0xff] }
 0x49d   : > { %v3794_v19 = vadd.f32 %v3777_v24, %v17202_v47  ;;  %12582 = vmatprep.mubr.msk.bf16.mxu0 %vm13904_vm0, %v17106_v35  ;;  %v17205_v47 = vld [vmem:[#allocation21_spill] sm:$0xff] }
 0x49e   : > { %v15632_v3 = vpop.f32.mrb[80].mxu1  ;;  %v4734_v33 = vld [vmem:[#allocation2 + $0x80] sm:$0xff] }
 0x49f   : > { %3811 = vst.msk [vmem:[#allocation3 + $0x8] sm:$0xff] %vm883_vm2, %v3794_v19  ;;  %v3497_v4 = vpop.f32.mrb[116].mxu0  ;;  %17203 = vst [vmem:[#allocation19_spill] sm:$0xff] %v15632_v3  ;;  %v12880_v61 = vpop.f32.mrb[81].mxu1 }
 0x4a0   : > { %v3572_v18 = vadd.f32 %v3555_v50, %v3497_v4  ;;  %v12344_v57 = vpop.f32.mrb[117].mxu0  ;;  %v15634_v39 = vpop.f32.mrb[82].mxu1  ;;  %v17206_v4 = vld [vmem:[#allocation22_spill] sm:$0xff] }
 0x4a1   : > { %v3500_v9 = vpop.f32.mrb[118].mxu0  ;;  %17204 = vst [vmem:[#allocation20_spill] sm:$0xff] %v15634_v39  ;;  %v3778_v53 = vld [vmem:[#allocation3 + $0x10] sm:$0xff]  ;;  %v12881_v63 = vpop.f32.mrb[83].mxu1 }
 0x4a2   : > { %3589 = vst.msk [vmem:[#allocation3 + $0x20] sm:$0xff] %vm883_vm2, %v3572_v18  ;;  %v3573_v24 = vadd.f32 %v3556_v56, %v3500_v9  ;;  %v12345_v45 = vpop.f32.mrb[119].mxu0  ;;  %v3795_v19 = vadd.f32 %v3778_v53, %v17205_v47  ;;  %v3557_v57 = vld [vmem:[#allocation3 + $0x30] sm:$0xff] }
 0x4a3   : > { %v3779_v60 = vld [vmem:[#allocation3 + $0x18] sm:$0xff] }
 0x4a4   : > { %3590 = vst.msk [vmem:[#allocation3 + $0x28] sm:$0xff] %vm883_vm2, %v3573_v24  ;;  %12583 = vmatmul.mubr.msk.bf16.gmra.mrb[224].mxu0 %vm682_vm1, %v4746_v14  ;;  %3812 = vst.msk [vmem:[#allocation3 + $0x10] sm:$0xff] %vm883_vm2, %v3795_v19  ;;  %v3796_v50 = vadd.f32 %v3779_v60, %v17206_v4  ;;  %v3558_v45 = vld [vmem:[#allocation3 + $0x38] sm:$0xff]  ;;  %v4747_v4 = vpack.c.bf16 %v4734_v33, %v4733_v21  ;;  %v4735_v21 = vld [vmem:[#allocation2 + $0x88] sm:$0xff] }
 0x4a5   : > { %12586 = vmatprep.mubr.msk.bf16.mxu0 %vm13904_vm0, %v17106_v35  ;;  %v4736_v33 = vld [vmem:[#allocation2 + $0x90] sm:$0xff] }
 0x4a6   : > { %3813 = vst.msk [vmem:[#allocation3 + $0x18] sm:$0xff] %vm883_vm2, %v3796_v50  ;;  %v15645_v61 = vpop.f32.mrb[84].mxu1  ;;  %v17209_v50 = vld [vmem:[#allocation23_spill] sm:$0xff] }
 0x4a7   : > { %v3505_v18 = vpop.f32.mrb[120].mxu0  ;;  %17207 = vst [vmem:[#allocation21_spill] sm:$0xff] %v15645_v61  ;;  %v12884_v53 = vpop.f32.mrb[85].mxu1 }
 0x4a8   : > { %v3574_v9 = vadd.f32 %v3557_v57, %v3505_v18  ;;  %v12348_v56 = vpop.f32.mrb[121].mxu0  ;;  %v15647_v63 = vpop.f32.mrb[86].mxu1  ;;  %v17210_v18 = vld [vmem:[#allocation24_spill] sm:$0xff] }
 0x4a9   : > { %v3508_v24 = vpop.f32.mrb[122].mxu0  ;;  %17208 = vst [vmem:[#allocation22_spill] sm:$0xff] %v15647_v63  ;;  %v3780_v14 = vld [vmem:[#allocation3 + $0x20] sm:$0xff]  ;;  %v12885_v19 = vpop.f32.mrb[87].mxu1 }
 0x4aa   : > { %3591 = vst.msk [vmem:[#allocation3 + $0x30] sm:$0xff] %vm883_vm2, %v3574_v9  ;;  %v3575_v60 = vadd.f32 %v3558_v45, %v3508_v24  ;;  %v12349_v47 = vpop.f32.mrb[123].mxu0  ;;  %v3797_v39 = vadd.f32 %v3780_v14, %v17209_v50  ;;  %v3559_v56 = vld [vmem:[#allocation3 + $0x40] sm:$0xff] }
 0x4ab   : > { %v3781_v3 = vld [vmem:[#allocation3 + $0x28] sm:$0xff] }
 0x4ac   : > { %3592 = vst.msk [vmem:[#allocation3 + $0x38] sm:$0xff] %vm883_vm2, %v3575_v60  ;;  %12587 = vmatmul.mubr.msk.bf16.gmra.mrb[228].mxu0 %vm682_vm1, %v4747_v4  ;;  %3814 = vst.msk [vmem:[#allocation3 + $0x20] sm:$0xff] %vm883_vm2, %v3797_v39  ;;  %v3798_v57 = vadd.f32 %v3781_v3, %v17210_v18  ;;  %v3560_v47 = vld [vmem:[#allocation3 + $0x48] sm:$0xff]  ;;  %v4748_v18 = vpack.c.bf16 %v4736_v33, %v4735_v21 }
 0x4ad   : > { %12590 = vmatprep.mubr.msk.bf16.mxu0 %vm13904_vm0, %v17106_v35  ;;  %v4738_v21 = vld [vmem:[#allocation2 + $0xa0] sm:$0xff] }
 0x4ae   : > { %3815 = vst.msk [vmem:[#allocation3 + $0x28] sm:$0xff] %vm883_vm2, %v3798_v57  ;;  %v15658_v53 = vpop.f32.mrb[88].mxu1  ;;  %v17211_v57 = vld [vmem:[#allocation25_spill] sm:$0xff] }
 0x4af   : > { %v3513_v9 = vpop.f32.mrb[124].mxu0  ;;  %v12888_v14 = vpop.f32.mrb[89].mxu1 }
 0x4b0   : > { %v3576_v24 = vadd.f32 %v3559_v56, %v3513_v9  ;;  %v12352_v45 = vpop.f32.mrb[125].mxu0  ;;  %v6473_v19 = vpop.f32.mrb[90].mxu1  ;;  %v17212_v9 = vld [vmem:[#allocation26_spill] sm:$0xff]  ;;  %v4737_v14 = vld [vmem:[#allocation2 + $0x98] sm:$0xff] }
 0x4b1   : > { %v3516_v60 = vpop.f32.mrb[126].mxu0  ;;  %v3782_v39 = vld [vmem:[#allocation3 + $0x30] sm:$0xff]  ;;  %v12889_v50 = vpop.f32.mrb[91].mxu1  ;;  %v3562_v19 = vld [vmem:[#allocation3 + $0x58] sm:$0xff] }
 0x4b2   : > { %3593 = vst.msk [vmem:[#allocation3 + $0x40] sm:$0xff] %vm883_vm2, %v3576_v24  ;;  %v3577_v3 = vadd.f32 %v3560_v47, %v3516_v60  ;;  %v12353_v4 = vpop.f32.mrb[127].mxu0  ;;  %v3799_v63 = vadd.f32 %v3782_v39, %v17211_v57  ;;  %v3561_v45 = vld [vmem:[#allocation3 + $0x50] sm:$0xff]  ;;  %v17214_v57 = vld [vmem:[#allocation28_spill] sm:$0xff] }
 0x4b3   : > { %v3783_v61 = vld [vmem:[#allocation3 + $0x38] sm:$0xff]  ;;  %v4749_v4 = vpack.c.bf16 %v4738_v21, %v4737_v14 }
 0x4b4   : > { %3594 = vst.msk [vmem:[#allocation3 + $0x48] sm:$0xff] %vm883_vm2, %v3577_v3  ;;  %12591 = vmatmul.mubr.msk.bf16.gmra.mrb[232].mxu0 %vm682_vm1, %v4748_v18  ;;  %3816 = vst.msk [vmem:[#allocation3 + $0x30] sm:$0xff] %vm883_vm2, %v3799_v63  ;;  %v3800_v56 = vadd.f32 %v3783_v61, %v17212_v9  ;;  %v17213_v61 = vld [vmem:[#allocation27_spill] sm:$0xff] }
 0x4b5   : > { %12594 = vmatprep.mubr.msk.bf16.mxu0 %vm13904_vm0, %v17106_v35  ;;  %v4740_v14 = vld [vmem:[#allocation2 + $0xb0] sm:$0xff] }
 0x4b6   : > { %3817 = vst.msk [vmem:[#allocation3 + $0x38] sm:$0xff] %vm883_vm2, %v3800_v56 }
 0x4b7   : > { %v3521_v24 = vpop.f32.mrb[128].mxu0 }
 0x4b8   : > { %v3578_v33 = vadd.f32 %v3561_v45, %v3521_v24  ;;  %v12356_v60 = vpop.f32.mrb[129].mxu0  ;;  %v3563_v24 = vld [vmem:[#allocation3 + $0x60] sm:$0xff]  ;;  %v4739_v45 = vld [vmem:[#allocation2 + $0xa8] sm:$0xff] }
 0x4b9   : > { %v3524_v47 = vpop.f32.mrb[130].mxu0  ;;  %v3784_v39 = vld [vmem:[#allocation3 + $0x40] sm:$0xff] }
 0x4ba   : > { %3595 = vst.msk [vmem:[#allocation3 + $0x50] sm:$0xff] %vm883_vm2, %v3578_v33  ;;  %v3579_v3 = vadd.f32 %v3562_v19, %v3524_v47  ;;  %v12357_v63 = vpop.f32.mrb[131].mxu0  ;;  %v3801_v50 = vadd.f32 %v3784_v39, %v17213_v61  ;;  %v3564_v47 = vld [vmem:[#allocation3 + $0x68] sm:$0xff] }
 0x4bb   : > { %v3785_v18 = vld [vmem:[#allocation3 + $0x48] sm:$0xff]  ;;  %v4750_v63 = vpack.c.bf16 %v4740_v14, %v4739_v45 }
 0x4bc   : > { %3596 = vst.msk [vmem:[#allocation3 + $0x58] sm:$0xff] %vm883_vm2, %v3579_v3  ;;  %12595 = vmatmul.mubr.msk.bf16.gmra.mrb[236].mxu0 %vm682_vm1, %v4749_v4  ;;  %3818 = vst.msk [vmem:[#allocation3 + $0x40] sm:$0xff] %vm883_vm2, %v3801_v50  ;;  %v3802_v9 = vadd.f32 %v3785_v18, %v17214_v57  ;;  %v17215_v4 = vld [vmem:[#allocation29_spill] sm:$0xff]  ;;  %v17216_v18 = vld [vmem:[#allocation30_spill] sm:$0xff] }
 0x4bd   : > { %12598 = vmatprep.mubr.msk.bf16.mxu0 %vm13904_vm0, %v17106_v35  ;;  %v4742_v45 = vld [vmem:[#allocation2 + $0xc0] sm:$0xff] }
 0x4be   : > { %3819 = vst.msk [vmem:[#allocation3 + $0x48] sm:$0xff] %vm883_vm2, %v3802_v9 }
 0x4bf   : > { %v3529_v56 = vpop.f32.mrb[132].mxu0 }
 0x4c0   : > { %v3580_v21 = vadd.f32 %v3563_v24, %v3529_v56  ;;  %v12360_v33 = vpop.f32.mrb[133].mxu0  ;;  %v3565_v56 = vld [vmem:[#allocation3 + $0x70] sm:$0xff]  ;;  %v4741_v24 = vld [vmem:[#allocation2 + $0xb8] sm:$0xff] }
 0x4c1   : > { %v3532_v60 = vpop.f32.mrb[134].mxu0  ;;  %v3786_v19 = vld [vmem:[#allocation3 + $0x50] sm:$0xff] }
 0x4c2   : > { %3597 = vst.msk [vmem:[#allocation3 + $0x60] sm:$0xff] %vm883_vm2, %v3580_v21  ;;  %v3581_v39 = vadd.f32 %v3564_v47, %v3532_v60  ;;  %v12361_v3 = vpop.f32.mrb[135].mxu0  ;;  %v3803_v61 = vadd.f32 %v3786_v19, %v17215_v4  ;;  %v3566_v60 = vld [vmem:[#allocation3 + $0x78] sm:$0xff] }
 0x4c3   : > { %v3787_v50 = vld [vmem:[#allocation3 + $0x58] sm:$0xff]  ;;  %v4751_v3 = vpack.c.bf16 %v4742_v45, %v4741_v24 }
 0x4c4   : > { %3598 = vst.msk [vmem:[#allocation3 + $0x68] sm:$0xff] %vm883_vm2, %v3581_v39  ;;  %12599 = vmatmul.mubr.msk.bf16.gmra.mrb[240].mxu0 %vm682_vm1, %v4750_v63  ;;  %3820 = vst.msk [vmem:[#allocation3 + $0x50] sm:$0xff] %vm883_vm2, %v3803_v61  ;;  %v3804_v57 = vadd.f32 %v3787_v50, %v17216_v18  ;;  %v17217_v63 = vld [vmem:[#allocation31_spill] sm:$0xff]  ;;  %v17218_v50 = vld [vmem:[#allocation32_spill] sm:$0xff] }
 0x4c5   : > { %12602 = vmatprep.mubr.msk.bf16.mxu0 %vm13904_vm0, %v17106_v35 }
 0x4c6   : > { %3821 = vst.msk [vmem:[#allocation3 + $0x58] sm:$0xff] %vm883_vm2, %v3804_v57 }
 0x4c7   : > { %v3537_v9 = vpop.f32.mrb[136].mxu0 }
 0x4c8   : > { %v3582_v14 = vadd.f32 %v3565_v56, %v3537_v9  ;;  %v12364_v21 = vpop.f32.mrb[137].mxu0  ;;  %v3567_v9 = vld [vmem:[#allocation3 + $0x80] sm:$0x3]  ;;  %v4743_v56 = vld [vmem:[#allocation2 + $0xc8] sm:$0x3] }
 0x4c9   : > { %v3540_v33 = vpop.f32.mrb[138].mxu0  ;;  %v3788_v47 = vld [vmem:[#allocation3 + $0x60] sm:$0xff] }
 0x4ca   : > { %3599 = vst.msk [vmem:[#allocation3 + $0x70] sm:$0xff] %vm883_vm2, %v3582_v14  ;;  %v3583_v19 = vadd.f32 %v3566_v60, %v3540_v33  ;;  %v12365_v39 = vpop.f32.mrb[139].mxu0  ;;  %v3805_v4 = vadd.f32 %v3788_v47, %v17217_v63  ;;  %v4752_v60 = vpack.c.bf16 %v4743_v56, %v4743_v56  ;;  %v17219_v47 = vld [vmem:[#allocation33_spill] sm:$0xff] }
 0x4cb   : > { %v3789_v61 = vld [vmem:[#allocation3 + $0x68] sm:$0xff] }
 0x4cc   : > { %3600 = vst.msk [vmem:[#allocation3 + $0x78] sm:$0xff] %vm883_vm2, %v3583_v19  ;;  %12603 = vmatmul.mubr.msk.bf16.gmra.mrb[244].mxu0 %vm682_vm1, %v4751_v3  ;;  %3822 = vst.msk [vmem:[#allocation3 + $0x60] sm:$0xff] %vm883_vm2, %v3805_v4  ;;  %v3806_v18 = vadd.f32 %v3789_v61, %v17218_v50  ;;  %v17220_v3 = vld [vmem:[#allocation34_spill] sm:$0xff]  ;;  %v4001_v61 = vld [vmem:[#allocation3] sm:$0xff] }
 0x4cd   : > { %12606 = vmatprep.mubr.msk.bf16.mxu0 %vm13904_vm0, %v17106_v35  ;;  %v5177_v50 = vld [vmem:[#allocation2 + $0x4a] sm:$0xff] }
 0x4ce   : > { %3823 = vst.msk [vmem:[#allocation3 + $0x68] sm:$0xff] %vm883_vm2, %v3806_v18  ;;  %v5178_v18 = vld [vmem:[#allocation2 + $0x52] sm:$0xff] }
 0x4cf   : > { %v3545_v57 = vpop.f32.mrb[140].mxu0 }
 0x4d0   : > { %v3584_v24 = vadd.f32 %v3567_v9, %v3545_v57  ;;  %v12368_v45 = vpop.f32.mrb[141].mxu0 }
 0x4d1   : > { %v3548_v14 = vpop.f32.mrb[142].mxu0  ;;  %v3790_v21 = vld [vmem:[#allocation3 + $0x70] sm:$0xff]  ;;  %v4002_v45 = vld [vmem:[#allocation3 + $0x8] sm:$0xff] }
 0x4d2   : > { %3601 = vst.msk [vmem:[#allocation3 + $0x80] sm:$0x3] %vm900_vm3, %v3584_v24  ;;  %v12369_v33 = vpop.f32.mrb[143].mxu0  ;;  %v3807_v19 = vadd.f32 %v3790_v21, %v17219_v47  ;;  %v13710_v14 = vld [vmem:[%s17088_s3 + $0x160] sm:$0xff]   ;;  %v17221_v21 = vld [vmem:[#allocation35_spill] sm:$0xff] }
 0x4d3   : > { %v3791_v39 = vld [vmem:[#allocation3 + $0x78] sm:$0xff] }
 0x4d4   : > { %12607 = vmatmul.mubr.msk.bf16.gmra.mrb[248].mxu0 %vm682_vm1, %v4752_v60  ;;  %3824 = vst.msk [vmem:[#allocation3 + $0x70] sm:$0xff] %vm883_vm2, %v3807_v19  ;;  %v3808_v63 = vadd.f32 %v3791_v39, %v17220_v3  ;;  %v5194_v19 = vpack.c.bf16 %v5178_v18, %v5177_v50  ;;  %v13711_v39 = vld [vmem:[%s17088_s3 + $0x168] sm:$0xff]  }
 0x4d5   : > { %12654 = vmatprep.mubr.msk.bf16.mxu0 %vm13904_vm0, %v17106_v35 }
 0x4d6   : > { %3825 = vst.msk [vmem:[#allocation3 + $0x78] sm:$0xff] %vm883_vm2, %v3808_v63  ;;  %v4003_v63 = vld [vmem:[#allocation3 + $0x10] sm:$0xff] }
 0x4d7   : > { %v3931_v4 = vpop.f32.mrb[144].mxu0 }
 0x4d8   : > { %v4018_v57 = vadd.f32 %v4001_v61, %v3931_v4  ;;  %v12416_v9 = vpop.f32.mrb[145].mxu0  ;;  %v5179_v4 = vld [vmem:[#allocation2 + $0x5a] sm:$0xff]  ;;  %v5180_v61 = vld [vmem:[#allocation2 + $0x62] sm:$0xff] }
 0x4d9   : > { %v3792_v56 = vld [vmem:[#allocation3 + $0x80] sm:$0x3]  ;;  %v3934_v24 = vpop.f32.mrb[146].mxu0  ;;  %v4004_v9 = vld [vmem:[#allocation3 + $0x18] sm:$0xff] }
 0x4da   : > { %v3809_v33 = vadd.f32 %v3792_v56, %v17221_v21  ;;  %4035 = vst.msk [vmem:[#allocation3] sm:$0xff] %vm883_vm2, %v4018_v57  ;;  %v4019_v60 = vadd.f32 %v4002_v45, %v3934_v24  ;;  %v12417_v47 = vpop.f32.mrb[147].mxu0  ;;  %v17222_v21 = vld [vmem:[#allocation36_spill] sm:$0xff] }
 0x4db   : > { %v17223_v47 = vld [vmem:[#allocation37_spill] sm:$0xff] }
 0x4dc   : > { %3826 = vst.msk [vmem:[#allocation3 + $0x80] sm:$0x3] %vm900_vm3, %v3809_v33  ;;  %12655 = vmatmul.mubr.msk.bf16.vlgmr.msra.gmra.mrb[252].mxu0 %vm682_vm1, %v5194_v19 }
 0x4dd   : > { %4036 = vst.msk [vmem:[#allocation3 + $0x8] sm:$0xff] %vm883_vm2, %v4019_v60  ;;  %12731 = vmatpush3.bf16.msra.mxu0 %v13710_v14  ;;  %12658 = vmatprep.mubr.msk.bf16.mxu0 %vm13904_vm0, %v17106_v35  ;;  %v5195_v14 = vpack.c.bf16 %v5180_v61, %v5179_v4  ;;  %v5182_v4 = vld [vmem:[#allocation2 + $0x72] sm:$0xff] }
 0x4de   : > { %12732 = vmatprep.subr.bf16.mxu0 %v17106_v35 }
 0x4df   : > { %v3939_v3 = vpop.f32.mrb[148].mxu0 }
 0x4e0   : > { %v4020_v50 = vadd.f32 %v4003_v63, %v3939_v3  ;;  %v12420_v18 = vpop.f32.mrb[149].mxu0  ;;  %v4005_v3 = vld [vmem:[#allocation3 + $0x20] sm:$0xff]  ;;  %v5181_v63 = vld [vmem:[#allocation2 + $0x6a] sm:$0xff] }
 0x4e1   : > { %v3942_v57 = vpop.f32.mrb[150].mxu0  ;;  %12733 = vmatpush3.bf16.msra.mxu0 %v13711_v39  ;;  %v4226_v56 = vld [vmem:[#allocation3] sm:$0xff] }
 0x4e2   : > { %4037 = vst.msk [vmem:[#allocation3 + $0x10] sm:$0xff] %vm883_vm2, %v4020_v50  ;;  %v4021_v24 = vadd.f32 %v4004_v9, %v3942_v57  ;;  %v12421_v45 = vpop.f32.mrb[151].mxu0  ;;  %v4243_v33 = vadd.f32 %v4226_v56, %v17222_v21  ;;  %12810 = vmatprep.subr.bf16.mxu0 %v17106_v35  ;;  %v4006_v57 = vld [vmem:[#allocation3 + $0x28] sm:$0xff] }
 0x4e3   : > { %v5196_v45 = vpack.c.bf16 %v5182_v4, %v5181_v63  ;;  %v5184_v63 = vld [vmem:[#allocation2 + $0x82] sm:$0xff] }
 0x4e4   : > { %v4227_v60 = vld [vmem:[#allocation3 + $0x8] sm:$0xff]  ;;  %4038 = vst.msk [vmem:[#allocation3 + $0x18] sm:$0xff] %vm883_vm2, %v4021_v24  ;;  %12659 = vmatmul.mubr.msk.bf16.gmra.mrb[0].mxu0 %vm682_vm1, %v5195_v14  ;;  %4260 = vst.msk [vmem:[#allocation3] sm:$0xff] %vm883_vm2, %v4243_v33 }
 0x4e5   : > { %v4244_v19 = vadd.f32 %v4227_v60, %v17223_v47  ;;  %12662 = vmatprep.mubr.msk.bf16.mxu0 %vm13904_vm0, %v17106_v35  ;;  %v17224_v14 = vld [vmem:[#allocation38_spill] sm:$0xff]  ;;  %v17225_v60 = vld [vmem:[#allocation39_spill] sm:$0xff] }
 0x4e7   : > { %4261 = vst.msk [vmem:[#allocation3 + $0x8] sm:$0xff] %vm883_vm2, %v4244_v19  ;;  %v3947_v39 = vpop.f32.mrb[152].mxu0 }
 0x4e8   : > { %v4022_v61 = vadd.f32 %v4005_v3, %v3947_v39  ;;  %v12424_v50 = vpop.f32.mrb[153].mxu0  ;;  %v4007_v39 = vld [vmem:[#allocation3 + $0x30] sm:$0xff]  ;;  %v5183_v3 = vld [vmem:[#allocation2 + $0x7a] sm:$0xff] }
 0x4e9   : > { %v3950_v18 = vpop.f32.mrb[154].mxu0  ;;  %v4228_v9 = vld [vmem:[#allocation3 + $0x10] sm:$0xff] }
 0x4ea   : > { %4039 = vst.msk [vmem:[#allocation3 + $0x20] sm:$0xff] %vm883_vm2, %v4022_v61  ;;  %v4023_v56 = vadd.f32 %v4006_v57, %v3950_v18  ;;  %v12425_v24 = vpop.f32.mrb[155].mxu0  ;;  %v4245_v21 = vadd.f32 %v4228_v9, %v17224_v14  ;;  %v4008_v18 = vld [vmem:[#allocation3 + $0x38] sm:$0xff] }
 0x4eb   : > { %v4229_v33 = vld [vmem:[#allocation3 + $0x18] sm:$0xff]  ;;  %v5197_v24 = vpack.c.bf16 %v5184_v63, %v5183_v3 }
 0x4ec   : > { %4040 = vst.msk [vmem:[#allocation3 + $0x28] sm:$0xff] %vm883_vm2, %v4023_v56  ;;  %12663 = vmatmul.mubr.msk.bf16.gmra.mrb[4].mxu0 %vm682_vm1, %v5196_v45  ;;  %4262 = vst.msk [vmem:[#allocation3 + $0x10] sm:$0xff] %vm883_vm2, %v4245_v21  ;;  %v4246_v47 = vadd.f32 %v4229_v33, %v17225_v60  ;;  %v17226_v45 = vld [vmem:[#allocation40_spill] sm:$0xff]  ;;  %v17227_v33 = vld [vmem:[#allocation41_spill] sm:$0xff] }
 0x4ed   : > { %12666 = vmatprep.mubr.msk.bf16.mxu0 %vm13904_vm0, %v17106_v35  ;;  %v5186_v3 = vld [vmem:[#allocation2 + $0x92] sm:$0xff] }
 0x4ee   : > { %4263 = vst.msk [vmem:[#allocation3 + $0x18] sm:$0xff] %vm883_vm2, %v4246_v47 }
 0x4ef   : > { %v3955_v19 = vpop.f32.mrb[156].mxu0 }
 0x4f0   : > { %v4024_v4 = vadd.f32 %v4007_v39, %v3955_v19  ;;  %v12428_v61 = vpop.f32.mrb[157].mxu0  ;;  %v4009_v19 = vld [vmem:[#allocation3 + $0x40] sm:$0xff]  ;;  %v5185_v39 = vld [vmem:[#allocation2 + $0x8a] sm:$0xff] }
 0x4f1   : > { %v3958_v50 = vpop.f32.mrb[158].mxu0  ;;  %v4230_v57 = vld [vmem:[#allocation3 + $0x20] sm:$0xff] }
 0x4f2   : > { %4041 = vst.msk [vmem:[#allocation3 + $0x30] sm:$0xff] %vm883_vm2, %v4024_v4  ;;  %v4025_v9 = vadd.f32 %v4008_v18, %v3958_v50  ;;  %v12429_v56 = vpop.f32.mrb[159].mxu0  ;;  %v4247_v14 = vadd.f32 %v4230_v57, %v17226_v45  ;;  %v4010_v50 = vld [vmem:[#allocation3 + $0x48] sm:$0xff] }
 0x4f3   : > { %v4231_v21 = vld [vmem:[#allocation3 + $0x28] sm:$0xff]  ;;  %v5198_v56 = vpack.c.bf16 %v5186_v3, %v5185_v39 }
 0x4f4   : > { %4042 = vst.msk [vmem:[#allocation3 + $0x38] sm:$0xff] %vm883_vm2, %v4025_v9  ;;  %12667 = vmatmul.mubr.msk.bf16.gmra.mrb[8].mxu0 %vm682_vm1, %v5197_v24  ;;  %4264 = vst.msk [vmem:[#allocation3 + $0x20] sm:$0xff] %vm883_vm2, %v4247_v14  ;;  %v4248_v60 = vadd.f32 %v4231_v21, %v17227_v33  ;;  %v17228_v24 = vld [vmem:[#allocation42_spill] sm:$0xff]  ;;  %v17229_v21 = vld [vmem:[#allocation43_spill] sm:$0xff] }
 0x4f5   : > { %12670 = vmatprep.mubr.msk.bf16.mxu0 %vm13904_vm0, %v17106_v35  ;;  %v5188_v39 = vld [vmem:[#allocation2 + $0xa2] sm:$0xff] }
 0x4f6   : > { %4265 = vst.msk [vmem:[#allocation3 + $0x28] sm:$0xff] %vm883_vm2, %v4248_v60 }
 0x4f7   : > { %v3963_v47 = vpop.f32.mrb[160].mxu0 }
 0x4f8   : > { %v4026_v63 = vadd.f32 %v4009_v19, %v3963_v47  ;;  %v12432_v4 = vpop.f32.mrb[161].mxu0  ;;  %v4011_v47 = vld [vmem:[#allocation3 + $0x50] sm:$0xff]  ;;  %v5187_v19 = vld [vmem:[#allocation2 + $0x9a] sm:$0xff] }
 0x4f9   : > { %v3966_v61 = vpop.f32.mrb[162].mxu0  ;;  %v4232_v18 = vld [vmem:[#allocation3 + $0x30] sm:$0xff] }
 0x4fa   : > { %4043 = vst.msk [vmem:[#allocation3 + $0x40] sm:$0xff] %vm883_vm2, %v4026_v63  ;;  %v4027_v57 = vadd.f32 %v4010_v50, %v3966_v61  ;;  %v12433_v9 = vpop.f32.mrb[163].mxu0  ;;  %v4249_v45 = vadd.f32 %v4232_v18, %v17228_v24  ;;  %v4012_v61 = vld [vmem:[#allocation3 + $0x58] sm:$0xff] }
 0x4fb   : > { %v4233_v14 = vld [vmem:[#allocation3 + $0x38] sm:$0xff]  ;;  %v5199_v9 = vpack.c.bf16 %v5188_v39, %v5187_v19 }
 0x4fc   : > { %4044 = vst.msk [vmem:[#allocation3 + $0x48] sm:$0xff] %vm883_vm2, %v4027_v57  ;;  %12671 = vmatmul.mubr.msk.bf16.gmra.mrb[12].mxu0 %vm682_vm1, %v5198_v56  ;;  %4266 = vst.msk [vmem:[#allocation3 + $0x30] sm:$0xff] %vm883_vm2, %v4249_v45  ;;  %v4250_v33 = vadd.f32 %v4233_v14, %v17229_v21  ;;  %v17230_v56 = vld [vmem:[#allocation44_spill] sm:$0xff]  ;;  %v17231_v14 = vld [vmem:[#allocation45_spill] sm:$0xff] }
 0x4fd   : > { %12674 = vmatprep.mubr.msk.bf16.mxu0 %vm13904_vm0, %v17106_v35  ;;  %v5190_v19 = vld [vmem:[#allocation2 + $0xb2] sm:$0xff] }
 0x4fe   : > { %4267 = vst.msk [vmem:[#allocation3 + $0x38] sm:$0xff] %vm883_vm2, %v4250_v33 }
 0x4ff   : > { %v3971_v60 = vpop.f32.mrb[164].mxu0 }
 0x500   : > { %v4028_v3 = vadd.f32 %v4011_v47, %v3971_v60  ;;  %v12436_v63 = vpop.f32.mrb[165].mxu0  ;;  %v4013_v60 = vld [vmem:[#allocation3 + $0x60] sm:$0xff]  ;;  %v5189_v47 = vld [vmem:[#allocation2 + $0xaa] sm:$0xff] }
 0x501   : > { %v3974_v4 = vpop.f32.mrb[166].mxu0  ;;  %v4234_v50 = vld [vmem:[#allocation3 + $0x40] sm:$0xff] }
 0x502   : > { %4045 = vst.msk [vmem:[#allocation3 + $0x50] sm:$0xff] %vm883_vm2, %v4028_v3  ;;  %v4029_v18 = vadd.f32 %v4012_v61, %v3974_v4  ;;  %v12437_v57 = vpop.f32.mrb[167].mxu0  ;;  %v4251_v24 = vadd.f32 %v4234_v50, %v17230_v56  ;;  %v4014_v4 = vld [vmem:[#allocation3 + $0x68] sm:$0xff] }
 0x503   : > { %v4235_v45 = vld [vmem:[#allocation3 + $0x48] sm:$0xff]  ;;  %v5200_v57 = vpack.c.bf16 %v5190_v19, %v5189_v47 }
 0x504   : > { %4046 = vst.msk [vmem:[#allocation3 + $0x58] sm:$0xff] %vm883_vm2, %v4029_v18  ;;  %12675 = vmatmul.mubr.msk.bf16.gmra.mrb[16].mxu0 %vm682_vm1, %v5199_v9  ;;  %4268 = vst.msk [vmem:[#allocation3 + $0x40] sm:$0xff] %vm883_vm2, %v4251_v24  ;;  %v4252_v21 = vadd.f32 %v4235_v45, %v17231_v14  ;;  %v17232_v24 = vld [vmem:[#allocation46_spill] sm:$0xff] }
 0x505   : > { %12678 = vmatprep.mubr.msk.bf16.mxu0 %vm13904_vm0, %v17106_v35 }
 0x506   : > { %4269 = vst.msk [vmem:[#allocation3 + $0x48] sm:$0xff] %vm883_vm2, %v4252_v21  ;;  %v4015_v21 = vld [vmem:[#allocation3 + $0x70] sm:$0xff] }
 0x507   : > { %v3979_v33 = vpop.f32.mrb[168].mxu0 }
 0x508   : > { %v4030_v39 = vadd.f32 %v4013_v60, %v3979_v33  ;;  %v12440_v3 = vpop.f32.mrb[169].mxu0  ;;  %v5191_v33 = vld [vmem:[#allocation2 + $0xba] sm:$0xff]  ;;  %v5192_v60 = vld [vmem:[#allocation2 + $0xc2] sm:$0xff] }
 0x509   : > { %v3982_v63 = vpop.f32.mrb[170].mxu0  ;;  %v4236_v61 = vld [vmem:[#allocation3 + $0x50] sm:$0xff] }
 0x50a   : > { %4047 = vst.msk [vmem:[#allocation3 + $0x60] sm:$0xff] %vm883_vm2, %v4030_v39  ;;  %v4031_v50 = vadd.f32 %v4014_v4, %v3982_v63  ;;  %v12441_v18 = vpop.f32.mrb[171].mxu0  ;;  %v4253_v9 = vadd.f32 %v4236_v61, %v15012_v54  ;;  %v4016_v39 = vld [vmem:[#allocation3 + $0x78] sm:$0xff]  ;;  %v5201_v61 = vpack.c.bf16 %v5192_v60, %v5191_v33 }
 0x50b   : > { %v4237_v56 = vld [vmem:[#allocation3 + $0x58] sm:$0xff] }
 0x50c   : > { %4048 = vst.msk [vmem:[#allocation3 + $0x68] sm:$0xff] %vm883_vm2, %v4031_v50  ;;  %12679 = vmatmul.mubr.msk.bf16.gmra.mrb[20].mxu0 %vm682_vm1, %v5200_v57  ;;  %4270 = vst.msk [vmem:[#allocation3 + $0x50] sm:$0xff] %vm883_vm2, %v4253_v9  ;;  %v4254_v45 = vadd.f32 %v4237_v56, %v17232_v24  ;;  %v17233_v50 = vld [vmem:[#allocation47_spill] sm:$0xff]  ;;  %v17234_v9 = vld [vmem:[#allocation48_spill] sm:$0xff] }
 0x50d   : > { %12682 = vmatprep.mubr.msk.bf16.mxu0 %vm13904_vm0, %v17106_v35 }
 0x50e   : > { %4271 = vst.msk [vmem:[#allocation3 + $0x58] sm:$0xff] %vm883_vm2, %v4254_v45  ;;  %v4017_v45 = vld [vmem:[#allocation3 + $0x80] sm:$0x3] }
 0x50f   : > { %v3987_v14 = vpop.f32.mrb[172].mxu0 }
 0x510   : > { %v4032_v47 = vadd.f32 %v4015_v21, %v3987_v14  ;;  %v12444_v54 = vpop.f32.mrb[173].mxu0  ;;  %v5193_v14 = vld [vmem:[#allocation2 + $0xca] sm:$0x3] }
 0x511   : > { %v3990_v19 = vpop.f32.mrb[174].mxu0  ;;  %v4238_v3 = vld [vmem:[#allocation3 + $0x60] sm:$0xff] }
 0x512   : > { %4049 = vst.msk [vmem:[#allocation3 + $0x70] sm:$0xff] %vm883_vm2, %v4032_v47  ;;  %v4033_v63 = vadd.f32 %v4016_v39, %v3990_v19  ;;  %v12445_v4 = vpop.f32.mrb[175].mxu0  ;;  %v4255_v18 = vadd.f32 %v4238_v3, %v17233_v50  ;;  %v5202_v19 = vpack.c.bf16 %v5193_v14, %v5193_v14  ;;  %v5627_v50 = vld [vmem:[#allocation2 + $0x4f] sm:$0xff] }
 0x513   : > { %v4239_v57 = vld [vmem:[#allocation3 + $0x68] sm:$0xff] }
 0x514   : > { %4050 = vst.msk [vmem:[#allocation3 + $0x78] sm:$0xff] %vm883_vm2, %v4033_v63  ;;  %12683 = vmatmul.mubr.msk.bf16.gmra.mrb[24].mxu0 %vm682_vm1, %v5201_v61  ;;  %4272 = vst.msk [vmem:[#allocation3 + $0x60] sm:$0xff] %vm883_vm2, %v4255_v18  ;;  %v4256_v56 = vadd.f32 %v4239_v57, %v17234_v9  ;;  %v4451_v61 = vld [vmem:[#allocation3] sm:$0xff] }
 0x515   : > { %12686 = vmatprep.mubr.msk.bf16.mxu0 %vm13904_vm0, %v17106_v35  ;;  %v5628_v18 = vld [vmem:[#allocation2 + $0x57] sm:$0xff] }
 0x516   : > { %4273 = vst.msk [vmem:[#allocation3 + $0x68] sm:$0xff] %vm883_vm2, %v4256_v56 }
 0x517   : > { %v3995_v24 = vpop.f32.mrb[176].mxu0 }
 0x518   : > { %v4034_v21 = vadd.f32 %v4017_v45, %v3995_v24  ;;  %v12448_v33 = vpop.f32.mrb[177].mxu0  ;;  %v4452_v24 = vld [vmem:[#allocation3 + $0x8] sm:$0xff] }
 0x519   : > { %v3998_v60 = vpop.f32.mrb[178].mxu0  ;;  %v4240_v47 = vld [vmem:[#allocation3 + $0x70] sm:$0xff]  ;;  %v13712_v45 = vld [vmem:[%s17088_s3 + $0x180] sm:$0xff]   ;;  %v5644_v33 = vpack.c.bf16 %v5628_v18, %v5627_v50 }
 0x51a   : > { %4051 = vst.msk [vmem:[#allocation3 + $0x80] sm:$0x3] %vm900_vm3, %v4034_v21  ;;  %v12449_v54 = vpop.f32.mrb[179].mxu0  ;;  %v4257_v39 = vadd.f32 %v4240_v47, %v15037_v48  ;;  %v13713_v60 = vld [vmem:[%s17088_s3 + $0x188] sm:$0xff]  }
 0x51b   : > { %v4241_v3 = vld [vmem:[#allocation3 + $0x78] sm:$0xff]  ;;  %v4453_v47 = vld [vmem:[#allocation3 + $0x10] sm:$0xff]  ;;  %v5629_v54 = vld [vmem:[#allocation2 + $0x5f] sm:$0xff] }
 0x51c   : > { %12687 = vmatmul.mubr.msk.bf16.gmra.mrb[28].mxu0 %vm682_vm1, %v5202_v19  ;;  %4274 = vst.msk [vmem:[#allocation3 + $0x70] sm:$0xff] %vm883_vm2, %v4257_v39  ;;  %v4258_v63 = vadd.f32 %v4241_v3, %v15039_v32  ;;  %v5630_v19 = vld [vmem:[#allocation2 + $0x67] sm:$0xff] }
 0x51d   : > { %12734 = vmatprep.mubr.msk.bf16.mxu0 %vm13904_vm0, %v17106_v35 }
 0x51e   : > { %4275 = vst.msk [vmem:[#allocation3 + $0x78] sm:$0xff] %vm883_vm2, %v4258_v63 }
 0x51f   : > { %v4381_v4 = vpop.f32.mrb[180].mxu0 }
 0x520   : > { %v4468_v57 = vadd.f32 %v4451_v61, %v4381_v4  ;;  %v12496_v9 = vpop.f32.mrb[181].mxu0  ;;  %v4454_v4 = vld [vmem:[#allocation3 + $0x18] sm:$0xff] }
 0x521   : > { %v4242_v56 = vld [vmem:[#allocation3 + $0x80] sm:$0x3]  ;;  %v4384_v48 = vpop.f32.mrb[182].mxu0 }
 0x522   : > { %v4259_v32 = vadd.f32 %v4242_v56, %v15049_v26  ;;  %4485 = vst.msk [vmem:[#allocation3] sm:$0xff] %vm883_vm2, %v4468_v57  ;;  %v4469_v14 = vadd.f32 %v4452_v24, %v4384_v48  ;;  %v12497_v21 = vpop.f32.mrb[183].mxu0  ;;  %v5645_v57 = vpack.c.bf16 %v5630_v19, %v5629_v54  ;;  %v17235_v48 = vld [vmem:[#allocation49_spill] sm:$0xff] }
 0x524   : > { %4276 = vst.msk [vmem:[#allocation3 + $0x80] sm:$0x3] %vm900_vm3, %v4259_v32  ;;  %12735 = vmatmul.mubr.msk.bf16.vlgmr.msra.gmra.mrb[32].mxu0 %vm682_vm1, %v5644_v33  ;;  %v4455_v32 = vld [vmem:[#allocation3 + $0x20] sm:$0xff] }
 0x525   : > { %4486 = vst.msk [vmem:[#allocation3 + $0x8] sm:$0xff] %vm883_vm2, %v4469_v14  ;;  %12811 = vmatpush3.bf16.msra.mxu0 %v13712_v45  ;;  %12738 = vmatprep.mubr.msk.bf16.mxu0 %vm13904_vm0, %v17106_v35  ;;  %v5631_v14 = vld [vmem:[#allocation2 + $0x6f] sm:$0xff] }
 0x526   : > { %12812 = vmatprep.subr.bf16.mxu0 %v17106_v35 }
 0x527   : > { %v4389_v26 = vpop.f32.mrb[184].mxu0 }
 0x528   : > { %v4470_v39 = vadd.f32 %v4453_v47, %v4389_v26  ;;  %v12500_v3 = vpop.f32.mrb[185].mxu0  ;;  %v4456_v26 = vld [vmem:[#allocation3 + $0x28] sm:$0xff] }
 0x529   : > { %v4392_v63 = vpop.f32.mrb[186].mxu0  ;;  %12813 = vmatpush3.bf16.msra.mxu0 %v13713_v60  ;;  %v4676_v61 = vld [vmem:[#allocation3] sm:$0xff]  ;;  %v17236_v3 = vld [vmem:[#allocation50_spill] sm:$0xff] }
 0x52a   : > { %4487 = vst.msk [vmem:[#allocation3 + $0x10] sm:$0xff] %vm883_vm2, %v4470_v39  ;;  %v4471_v50 = vadd.f32 %v4454_v4, %v4392_v63  ;;  %v12501_v18 = vpop.f32.mrb[187].mxu0  ;;  %v4693_v9 = vadd.f32 %v4676_v61, %v15060_v20  ;;  %12890 = vmatprep.subr.bf16.mxu0 %v17106_v35  ;;  %v5632_v20 = vld [vmem:[#allocation2 + $0x77] sm:$0xff]  ;;  %v17237_v61 = vld [vmem:[#allocation51_spill] sm:$0xff] }
 0x52b   : > { %v5646_v39 = vpack.c.bf16 %v5632_v20, %v5631_v14 }
 0x52c   : > { %v4677_v56 = vld [vmem:[#allocation3 + $0x8] sm:$0xff]  ;;  %4488 = vst.msk [vmem:[#allocation3 + $0x18] sm:$0xff] %vm883_vm2, %v4471_v50  ;;  %12739 = vmatmul.mubr.msk.bf16.gmra.mrb[36].mxu0 %vm682_vm1, %v5645_v57  ;;  %4710 = vst.msk [vmem:[#allocation3] sm:$0xff] %vm883_vm2, %v4693_v9  ;;  %v4457_v57 = vld [vmem:[#allocation3 + $0x30] sm:$0xff] }
 0x52d   : > { %v4694_v24 = vadd.f32 %v4677_v56, %v17235_v48  ;;  %12742 = vmatprep.mubr.msk.bf16.mxu0 %vm13904_vm0, %v17106_v35  ;;  %v5633_v9 = vld [vmem:[#allocation2 + $0x7f] sm:$0xff]  ;;  %v5634_v56 = vld [vmem:[#allocation2 + $0x87] sm:$0xff] }
 0x52f   : > { %4711 = vst.msk [vmem:[#allocation3 + $0x8] sm:$0xff] %vm883_vm2, %v4694_v24  ;;  %v4397_v45 = vpop.f32.mrb[188].mxu0 }
 0x530   : > { %v4472_v21 = vadd.f32 %v4455_v32, %v4397_v45  ;;  %v12504_v33 = vpop.f32.mrb[189].mxu0  ;;  %v4458_v32 = vld [vmem:[#allocation3 + $0x38] sm:$0xff] }
 0x531   : > { %v4400_v60 = vpop.f32.mrb[190].mxu0  ;;  %v4678_v47 = vld [vmem:[#allocation3 + $0x10] sm:$0xff]  ;;  %v5647_v33 = vpack.c.bf16 %v5634_v56, %v5633_v9 }
 0x532   : > { %4489 = vst.msk [vmem:[#allocation3 + $0x20] sm:$0xff] %vm883_vm2, %v4472_v21  ;;  %v4473_v54 = vadd.f32 %v4456_v26, %v4400_v60  ;;  %v12505_v19 = vpop.f32.mrb[191].mxu0  ;;  %v4695_v63 = vadd.f32 %v4678_v47, %v17236_v3  ;;  %v17238_v60 = vld [vmem:[#allocation52_spill] sm:$0xff] }
 0x533   : > { %v4679_v4 = vld [vmem:[#allocation3 + $0x18] sm:$0xff]  ;;  %v4459_v3 = vld [vmem:[#allocation3 + $0x40] sm:$0xff] }
 0x534   : > { %4490 = vst.msk [vmem:[#allocation3 + $0x28] sm:$0xff] %vm883_vm2, %v4473_v54  ;;  %12743 = vmatmul.mubr.msk.bf16.gmra.mrb[40].mxu0 %vm682_vm1, %v5646_v39  ;;  %4712 = vst.msk [vmem:[#allocation3 + $0x10] sm:$0xff] %vm883_vm2, %v4695_v63  ;;  %v4696_v50 = vadd.f32 %v4679_v4, %v17237_v61  ;;  %v17239_v54 = vld [vmem:[#allocation53_spill] sm:$0xff]  ;;  %v5635_v63 = vld [vmem:[#allocation2 + $0x8f] sm:$0xff] }
 0x535   : > { %12746 = vmatprep.mubr.msk.bf16.mxu0 %vm13904_vm0, %v17106_v35  ;;  %v5636_v4 = vld [vmem:[#allocation2 + $0x97] sm:$0xff] }
 0x536   : > { %4713 = vst.msk [vmem:[#allocation3 + $0x18] sm:$0xff] %vm883_vm2, %v4696_v50 }
 0x537   : > { %v4405_v18 = vpop.f32.mrb[192].mxu0 }
 0x538   : > { %v4474_v48 = vadd.f32 %v4457_v57, %v4405_v18  ;;  %v12508_v24 = vpop.f32.mrb[193].mxu0  ;;  %v4460_v57 = vld [vmem:[#allocation3 + $0x48] sm:$0xff] }
 0x539   : > { %v4408_v45 = vpop.f32.mrb[194].mxu0  ;;  %v4680_v14 = vld [vmem:[#allocation3 + $0x20] sm:$0xff]  ;;  %v5648_v24 = vpack.c.bf16 %v5636_v4, %v5635_v63 }
 0x53a   : > { %4491 = vst.msk [vmem:[#allocation3 + $0x30] sm:$0xff] %vm883_vm2, %v4474_v48  ;;  %v4475_v20 = vadd.f32 %v4458_v32, %v4408_v45  ;;  %v12509_v21 = vpop.f32.mrb[195].mxu0  ;;  %v4697_v26 = vadd.f32 %v4680_v14, %v17238_v60  ;;  %v17240_v45 = vld [vmem:[#allocation54_spill] sm:$0xff] }
 0x53b   : > { %v4681_v47 = vld [vmem:[#allocation3 + $0x28] sm:$0xff]  ;;  %v4461_v60 = vld [vmem:[#allocation3 + $0x50] sm:$0xff] }
 0x53c   : > { %4492 = vst.msk [vmem:[#allocation3 + $0x38] sm:$0xff] %vm883_vm2, %v4475_v20  ;;  %12747 = vmatmul.mubr.msk.bf16.gmra.mrb[44].mxu0 %vm682_vm1, %v5647_v33  ;;  %4714 = vst.msk [vmem:[#allocation3 + $0x20] sm:$0xff] %vm883_vm2, %v4697_v26  ;;  %v4698_v19 = vadd.f32 %v4681_v47, %v17239_v54  ;;  %v17241_v20 = vld [vmem:[#allocation55_spill] sm:$0xff]  ;;  %v5637_v26 = vld [vmem:[#allocation2 + $0x9f] sm:$0xff] }
 0x53d   : > { %12750 = vmatprep.mubr.msk.bf16.mxu0 %vm13904_vm0, %v17106_v35  ;;  %v5638_v47 = vld [vmem:[#allocation2 + $0xa7] sm:$0xff] }
 0x53e   : > { %4715 = vst.msk [vmem:[#allocation3 + $0x28] sm:$0xff] %vm883_vm2, %v4698_v19 }
 0x53f   : > { %v4413_v39 = vpop.f32.mrb[196].mxu0 }
 0x540   : > { %v4476_v61 = vadd.f32 %v4459_v3, %v4413_v39  ;;  %v12512_v50 = vpop.f32.mrb[197].mxu0  ;;  %v4462_v3 = vld [vmem:[#allocation3 + $0x58] sm:$0xff] }
 0x541   : > { %v4416_v18 = vpop.f32.mrb[198].mxu0  ;;  %v4682_v9 = vld [vmem:[#allocation3 + $0x30] sm:$0xff]  ;;  %v5649_v50 = vpack.c.bf16 %v5638_v47, %v5637_v26 }
 0x542   : > { %4493 = vst.msk [vmem:[#allocation3 + $0x40] sm:$0xff] %vm883_vm2, %v4476_v61  ;;  %v4477_v56 = vadd.f32 %v4460_v57, %v4416_v18  ;;  %v12513_v48 = vpop.f32.mrb[199].mxu0  ;;  %v4699_v32 = vadd.f32 %v4682_v9, %v17240_v45  ;;  %v17242_v18 = vld [vmem:[#allocation56_spill] sm:$0xff] }
 0x543   : > { %v4683_v14 = vld [vmem:[#allocation3 + $0x38] sm:$0xff]  ;;  %v4463_v45 = vld [vmem:[#allocation3 + $0x60] sm:$0xff] }
 0x544   : > { %4494 = vst.msk [vmem:[#allocation3 + $0x48] sm:$0xff] %vm883_vm2, %v4477_v56  ;;  %12751 = vmatmul.mubr.msk.bf16.gmra.mrb[48].mxu0 %vm682_vm1, %v5648_v24  ;;  %4716 = vst.msk [vmem:[#allocation3 + $0x30] sm:$0xff] %vm883_vm2, %v4699_v32  ;;  %v4700_v21 = vadd.f32 %v4683_v14, %v17241_v20  ;;  %v17243_v56 = vld [vmem:[#allocation57_spill] sm:$0xff]  ;;  %v5639_v32 = vld [vmem:[#allocation2 + $0xaf] sm:$0xff] }
 0x545   : > { %12754 = vmatprep.mubr.msk.bf16.mxu0 %vm13904_vm0, %v17106_v35  ;;  %v5640_v14 = vld [vmem:[#allocation2 + $0xb7] sm:$0xff] }
 0x546   : > { %4717 = vst.msk [vmem:[#allocation3 + $0x38] sm:$0xff] %vm883_vm2, %v4700_v21 }
 0x547   : > { %v4421_v33 = vpop.f32.mrb[200].mxu0 }
 0x548   : > { %v4478_v54 = vadd.f32 %v4461_v60, %v4421_v33  ;;  %v12516_v19 = vpop.f32.mrb[201].mxu0  ;;  %v4464_v60 = vld [vmem:[#allocation3 + $0x68] sm:$0xff] }
 0x549   : > { %v4424_v39 = vpop.f32.mrb[202].mxu0  ;;  %v4684_v63 = vld [vmem:[#allocation3 + $0x40] sm:$0xff]  ;;  %v5650_v19 = vpack.c.bf16 %v5640_v14, %v5639_v32 }
 0x54a   : > { %4495 = vst.msk [vmem:[#allocation3 + $0x50] sm:$0xff] %vm883_vm2, %v4478_v54  ;;  %v4479_v4 = vadd.f32 %v4462_v3, %v4424_v39  ;;  %v12517_v61 = vpop.f32.mrb[203].mxu0  ;;  %v4701_v57 = vadd.f32 %v4684_v63, %v17242_v18  ;;  %v17244_v63 = vld [vmem:[#allocation58_spill] sm:$0xff] }
 0x54b   : > { %v4685_v9 = vld [vmem:[#allocation3 + $0x48] sm:$0xff] }
 0x54c   : > { %4496 = vst.msk [vmem:[#allocation3 + $0x58] sm:$0xff] %vm883_vm2, %v4479_v4  ;;  %12755 = vmatmul.mubr.msk.bf16.gmra.mrb[52].mxu0 %vm682_vm1, %v5649_v50  ;;  %4718 = vst.msk [vmem:[#allocation3 + $0x40] sm:$0xff] %vm883_vm2, %v4701_v57  ;;  %v4702_v48 = vadd.f32 %v4685_v9, %v17243_v56  ;;  %v4465_v50 = vld [vmem:[#allocation3 + $0x70] sm:$0xff]  ;;  %v5641_v18 = vld [vmem:[#allocation2 + $0xbf] sm:$0xff] }
 0x54d   : > { %12758 = vmatprep.mubr.msk.bf16.mxu0 %vm13904_vm0, %v17106_v35  ;;  %v5642_v57 = vld [vmem:[#allocation2 + $0xc7] sm:$0xff] }
 0x54e   : > { %4719 = vst.msk [vmem:[#allocation3 + $0x48] sm:$0xff] %vm883_vm2, %v4702_v48  ;;  %v4466_v48 = vld [vmem:[#allocation3 + $0x78] sm:$0xff]  ;;  %v5651_v14 = vpack.c.bf16 %v5642_v57, %v5641_v18  ;;  %v17247_v18 = vld [vmem:[#allocation61_spill] sm:$0xff] }
 0x54f   : > { %v4429_v24 = vpop.f32.mrb[204].mxu0 }
 0x550   : > { %v4480_v20 = vadd.f32 %v4463_v45, %v4429_v24  ;;  %v12520_v21 = vpop.f32.mrb[205].mxu0 }
 0x551   : > { %v4432_v33 = vpop.f32.mrb[206].mxu0  ;;  %v4686_v26 = vld [vmem:[#allocation3 + $0x50] sm:$0xff] }
 0x552   : > { %4497 = vst.msk [vmem:[#allocation3 + $0x60] sm:$0xff] %vm883_vm2, %v4480_v20  ;;  %v4481_v47 = vadd.f32 %v4464_v60, %v4432_v33  ;;  %v12521_v54 = vpop.f32.mrb[207].mxu0  ;;  %v4703_v39 = vadd.f32 %v4686_v26, %v15137_v52  ;;  %v17245_v20 = vld [vmem:[#allocation59_spill] sm:$0xff]  ;;  %v17246_v60 = vld [vmem:[#allocation60_spill] sm:$0xff] }
 0x553   : > { %v4687_v3 = vld [vmem:[#allocation3 + $0x58] sm:$0xff]  ;;  %v4467_v54 = vld [vmem:[#allocation3 + $0x80] sm:$0x3] }
 0x554   : > { %4498 = vst.msk [vmem:[#allocation3 + $0x68] sm:$0xff] %vm883_vm2, %v4481_v47  ;;  %12759 = vmatmul.mubr.msk.bf16.gmra.mrb[56].mxu0 %vm682_vm1, %v5650_v19  ;;  %4720 = vst.msk [vmem:[#allocation3 + $0x50] sm:$0xff] %vm883_vm2, %v4703_v39  ;;  %v4704_v4 = vadd.f32 %v4687_v3, %v17244_v63  ;;  %v5643_v19 = vld [vmem:[#allocation2 + $0xcf] sm:$0x3] }
 0x555   : > { %12762 = vmatprep.mubr.msk.bf16.mxu0 %vm13904_vm0, %v17106_v35 }
 0x556   : > { %4721 = vst.msk [vmem:[#allocation3 + $0x58] sm:$0xff] %vm883_vm2, %v4704_v4 }
 0x557   : > { %v4437_v61 = vpop.f32.mrb[208].mxu0 }
 0x558   : > { %v4482_v9 = vadd.f32 %v4465_v50, %v4437_v61  ;;  %v12524_v52 = vpop.f32.mrb[209].mxu0  ;;  %v5652_v50 = vpack.c.bf16 %v5643_v19, %v5643_v19 }
 0x559   : > { %v4440_v56 = vpop.f32.mrb[210].mxu0  ;;  %v4688_v24 = vld [vmem:[#allocation3 + $0x60] sm:$0xff]  ;;  %v17248_v52 = vld [vmem:[#allocation62_spill] sm:$0xff] }
 0x55a   : > { %4499 = vst.msk [vmem:[#allocation3 + $0x70] sm:$0xff] %vm883_vm2, %v4482_v9  ;;  %v4483_v45 = vadd.f32 %v4466_v48, %v4440_v56  ;;  %v12525_v32 = vpop.f32.mrb[211].mxu0  ;;  %v4705_v21 = vadd.f32 %v4688_v24, %v17245_v20  ;;  %v4901_v24 = vld [vmem:[#allocation3] sm:$0xff] }
 0x55b   : > { %v4689_v33 = vld [vmem:[#allocation3 + $0x68] sm:$0xff] }
 0x55c   : > { %4500 = vst.msk [vmem:[#allocation3 + $0x78] sm:$0xff] %vm883_vm2, %v4483_v45  ;;  %12763 = vmatmul.mubr.msk.bf16.gmra.mrb[60].mxu0 %vm682_vm1, %v5651_v14  ;;  %4722 = vst.msk [vmem:[#allocation3 + $0x60] sm:$0xff] %vm883_vm2, %v4705_v21  ;;  %v4706_v26 = vadd.f32 %v4689_v33, %v17246_v60  ;;  %v6077_v45 = vld [vmem:[#allocation2 + $0x54] sm:$0xff]  ;;  %v6078_v32 = vld [vmem:[#allocation2 + $0x5c] sm:$0xff] }
 0x55d   : > { %12766 = vmatprep.mubr.msk.bf16.mxu0 %vm13904_vm0, %v17106_v35  ;;  %v4902_v60 = vld [vmem:[#allocation3 + $0x8] sm:$0xff] }
 0x55e   : > { %4723 = vst.msk [vmem:[#allocation3 + $0x68] sm:$0xff] %vm883_vm2, %v4706_v26  ;;  %v13714_v26 = vld [vmem:[%s17088_s3 + $0x1a0] sm:$0xff]  }
 0x55f   : > { %v4445_v47 = vpop.f32.mrb[212].mxu0 }
 0x560   : > { %v4484_v39 = vadd.f32 %v4467_v54, %v4445_v47  ;;  %v12528_v3 = vpop.f32.mrb[213].mxu0  ;;  %v17249_v47 = vld [vmem:[#allocation63_spill] sm:$0xff] }
 0x561   : > { %v4448_v63 = vpop.f32.mrb[214].mxu0  ;;  %v4690_v4 = vld [vmem:[#allocation3 + $0x70] sm:$0xff]  ;;  %v6094_v3 = vpack.c.bf16 %v6078_v32, %v6077_v45 }
 0x562   : > { %4501 = vst.msk [vmem:[#allocation3 + $0x80] sm:$0x3] %vm900_vm3, %v4484_v39  ;;  %v12529_v61 = vpop.f32.mrb[215].mxu0  ;;  %v4707_v57 = vadd.f32 %v4690_v4, %v17247_v18  ;;  %v13715_v63 = vld [vmem:[%s17088_s3 + $0x1a8] sm:$0xff]  }
 0x563   : > { %v4691_v9 = vld [vmem:[#allocation3 + $0x78] sm:$0xff]  ;;  %v4903_v61 = vld [vmem:[#allocation3 + $0x10] sm:$0xff] }
 0x564   : > { %12767 = vmatmul.mubr.msk.bf16.gmra.mrb[64].mxu0 %vm682_vm1, %v5652_v50  ;;  %4724 = vst.msk [vmem:[#allocation3 + $0x70] sm:$0xff] %vm883_vm2, %v4707_v57  ;;  %v4708_v56 = vadd.f32 %v4691_v9, %v17248_v52  ;;  %v6079_v50 = vld [vmem:[#allocation2 + $0x64] sm:$0xff]  ;;  %v6080_v18 = vld [vmem:[#allocation2 + $0x6c] sm:$0xff] }
 0x565   : > { %12814 = vmatprep.mubr.msk.bf16.mxu0 %vm13904_vm0, %v17106_v35  ;;  %v6095_v32 = vpack.c.bf16 %v6080_v18, %v6079_v50 }
 0x566   : > { %4725 = vst.msk [vmem:[#allocation3 + $0x78] sm:$0xff] %vm883_vm2, %v4708_v56  ;;  %v4904_v56 = vld [vmem:[#allocation3 + $0x18] sm:$0xff] }
 0x567   : > { %v4831_v48 = vpop.f32.mrb[216].mxu0 }
 0x568   : > { %v4918_v14 = vadd.f32 %v4901_v24, %v4831_v48  ;;  %v12576_v20 = vpop.f32.mrb[217].mxu0 }
 0x569   : > { %v4692_v21 = vld [vmem:[#allocation3 + $0x80] sm:$0x3]  ;;  %v4834_v33 = vpop.f32.mrb[218].mxu0 }
 0x56a   : > { %v4709_v54 = vadd.f32 %v4692_v21, %v17249_v47  ;;  %4935 = vst.msk [vmem:[#allocation3] sm:$0xff] %vm883_vm2, %v4918_v14  ;;  %v4919_v19 = vadd.f32 %v4902_v60, %v4834_v33  ;;  %v12577_v39 = vpop.f32.mrb[219].mxu0  ;;  %v17250_v14 = vld [vmem:[#allocation64_spill] sm:$0xff]  ;;  %v17251_v33 = vld [vmem:[#allocation65_spill] sm:$0xff] }
 0x56b   : > { %v4905_v47 = vld [vmem:[#allocation3 + $0x20] sm:$0xff] }
 0x56c   : > { %4726 = vst.msk [vmem:[#allocation3 + $0x80] sm:$0x3] %vm900_vm3, %v4709_v54  ;;  %12815 = vmatmul.mubr.msk.bf16.vlgmr.msra.gmra.mrb[68].mxu0 %vm682_vm1, %v6094_v3  ;;  %v6081_v54 = vld [vmem:[#allocation2 + $0x74] sm:$0xff] }
 0x56d   : > { %4936 = vst.msk [vmem:[#allocation3 + $0x8] sm:$0xff] %vm883_vm2, %v4919_v19  ;;  %12891 = vmatpush3.bf16.msra.mxu0 %v13714_v26  ;;  %12818 = vmatprep.mubr.msk.bf16.mxu0 %vm13904_vm0, %v17106_v35  ;;  %v6082_v19 = vld [vmem:[#allocation2 + $0x7c] sm:$0xff] }
 0x56e   : > { %12892 = vmatprep.subr.bf16.mxu0 %v17106_v35 }
 0x56f   : > { %v4839_v4 = vpop.f32.mrb[220].mxu0 }
 0x570   : > { %v4920_v57 = vadd.f32 %v4903_v61, %v4839_v4  ;;  %v12580_v9 = vpop.f32.mrb[221].mxu0  ;;  %v4906_v4 = vld [vmem:[#allocation3 + $0x28] sm:$0xff] }
 0x571   : > { %v4842_v52 = vpop.f32.mrb[222].mxu0  ;;  %12893 = vmatpush3.bf16.msra.mxu0 %v13715_v63  ;;  %v5126_v48 = vld [vmem:[#allocation3] sm:$0xff]  ;;  %v17252_v9 = vld [vmem:[#allocation66_spill] sm:$0xff] }
 0x572   : > { %4937 = vst.msk [vmem:[#allocation3 + $0x10] sm:$0xff] %vm883_vm2, %v4920_v57  ;;  %v4921_v24 = vadd.f32 %v4904_v56, %v4842_v52  ;;  %v12581_v45 = vpop.f32.mrb[223].mxu0  ;;  %v5143_v20 = vadd.f32 %v5126_v48, %v17250_v14  ;;  %13470 = vmatprep.subr.bf16.mxu0 %v17106_v35  ;;  %v6096_v57 = vpack.c.bf16 %v6082_v19, %v6081_v54  ;;  %v17253_v48 = vld [vmem:[#allocation67_spill] sm:$0xff] }
 0x573   : > { %v6083_v14 = vld [vmem:[#allocation2 + $0x84] sm:$0xff] }
 0x574   : > { %v5127_v21 = vld [vmem:[#allocation3 + $0x8] sm:$0xff]  ;;  %4938 = vst.msk [vmem:[#allocation3 + $0x18] sm:$0xff] %vm883_vm2, %v4921_v24  ;;  %12819 = vmatmul.mubr.msk.bf16.gmra.mrb[72].mxu0 %vm682_vm1, %v6095_v32  ;;  %5160 = vst.msk [vmem:[#allocation3] sm:$0xff] %vm883_vm2, %v5143_v20  ;;  %v4907_v32 = vld [vmem:[#allocation3 + $0x30] sm:$0xff] }
 0x575   : > { %v5144_v60 = vadd.f32 %v5127_v21, %v17251_v33  ;;  %12822 = vmatprep.mubr.msk.bf16.mxu0 %vm13904_vm0, %v17106_v35  ;;  %v6084_v20 = vld [vmem:[#allocation2 + $0x8c] sm:$0xff] }
 0x577   : > { %5161 = vst.msk [vmem:[#allocation3 + $0x8] sm:$0xff] %vm883_vm2, %v5144_v60  ;;  %v4847_v26 = vpop.f32.mrb[224].mxu0 }
 0x578   : > { %v4922_v39 = vadd.f32 %v4905_v47, %v4847_v26  ;;  %v12584_v3 = vpop.f32.mrb[225].mxu0  ;;  %v4908_v26 = vld [vmem:[#allocation3 + $0x38] sm:$0xff] }
 0x579   : > { %v4850_v63 = vpop.f32.mrb[226].mxu0  ;;  %v5128_v61 = vld [vmem:[#allocation3 + $0x10] sm:$0xff]  ;;  %v17254_v3 = vld [vmem:[#allocation68_spill] sm:$0xff] }
 0x57a   : > { %4939 = vst.msk [vmem:[#allocation3 + $0x20] sm:$0xff] %vm883_vm2, %v4922_v39  ;;  %v4923_v50 = vadd.f32 %v4906_v4, %v4850_v63  ;;  %v12585_v18 = vpop.f32.mrb[227].mxu0  ;;  %v5145_v52 = vadd.f32 %v5128_v61, %v17252_v9  ;;  %v6097_v39 = vpack.c.bf16 %v6084_v20, %v6083_v14  ;;  %v17255_v61 = vld [vmem:[#allocation69_spill] sm:$0xff] }
 0x57b   : > { %v5129_v56 = vld [vmem:[#allocation3 + $0x18] sm:$0xff] }
 0x57c   : > { %4940 = vst.msk [vmem:[#allocation3 + $0x28] sm:$0xff] %vm883_vm2, %v4923_v50  ;;  %12823 = vmatmul.mubr.msk.bf16.gmra.mrb[76].mxu0 %vm682_vm1, %v6096_v57  ;;  %5162 = vst.msk [vmem:[#allocation3 + $0x10] sm:$0xff] %vm883_vm2, %v5145_v52  ;;  %v5146_v24 = vadd.f32 %v5129_v56, %v17253_v48  ;;  %v4909_v57 = vld [vmem:[#allocation3 + $0x40] sm:$0xff] }
 0x57d   : > { %12826 = vmatprep.mubr.msk.bf16.mxu0 %vm13904_vm0, %v17106_v35  ;;  %v6085_v9 = vld [vmem:[#allocation2 + $0x94] sm:$0xff]  ;;  %v6086_v52 = vld [vmem:[#allocation2 + $0x9c] sm:$0xff] }
 0x57e   : > { %5163 = vst.msk [vmem:[#allocation3 + $0x18] sm:$0xff] %vm883_vm2, %v5146_v24 }
 0x57f   : > { %v4855_v45 = vpop.f32.mrb[228].mxu0 }
 0x580   : > { %v4924_v21 = vadd.f32 %v4907_v32, %v4855_v45  ;;  %v12588_v33 = vpop.f32.mrb[229].mxu0  ;;  %v4910_v45 = vld [vmem:[#allocation3 + $0x48] sm:$0xff] }
 0x581   : > { %v4858_v60 = vpop.f32.mrb[230].mxu0  ;;  %v5130_v47 = vld [vmem:[#allocation3 + $0x20] sm:$0xff]  ;;  %v17256_v33 = vld [vmem:[#allocation70_spill] sm:$0xff] }
 0x582   : > { %4941 = vst.msk [vmem:[#allocation3 + $0x30] sm:$0xff] %vm883_vm2, %v4924_v21  ;;  %v4925_v54 = vadd.f32 %v4908_v26, %v4858_v60  ;;  %v12589_v19 = vpop.f32.mrb[231].mxu0  ;;  %v5147_v63 = vadd.f32 %v5130_v47, %v17254_v3  ;;  %v6098_v21 = vpack.c.bf16 %v6086_v52, %v6085_v9  ;;  %v17257_v47 = vld [vmem:[#allocation71_spill] sm:$0xff] }
 0x583   : > { %v5131_v4 = vld [vmem:[#allocation3 + $0x28] sm:$0xff] }
 0x584   : > { %4942 = vst.msk [vmem:[#allocation3 + $0x38] sm:$0xff] %vm883_vm2, %v4925_v54  ;;  %12827 = vmatmul.mubr.msk.bf16.gmra.mrb[80].mxu0 %vm682_vm1, %v6097_v39  ;;  %5164 = vst.msk [vmem:[#allocation3 + $0x20] sm:$0xff] %vm883_vm2, %v5147_v63  ;;  %v5148_v50 = vadd.f32 %v5131_v4, %v17255_v61  ;;  %v4911_v39 = vld [vmem:[#allocation3 + $0x50] sm:$0xff] }
 0x585   : > { %12830 = vmatprep.mubr.msk.bf16.mxu0 %vm13904_vm0, %v17106_v35  ;;  %v6087_v3 = vld [vmem:[#allocation2 + $0xa4] sm:$0xff]  ;;  %v6088_v63 = vld [vmem:[#allocation2 + $0xac] sm:$0xff] }
 0x586   : > { %5165 = vst.msk [vmem:[#allocation3 + $0x28] sm:$0xff] %vm883_vm2, %v5148_v50 }
 0x587   : > { %v4863_v18 = vpop.f32.mrb[232].mxu0 }
 0x588   : > { %v4926_v56 = vadd.f32 %v4909_v57, %v4863_v18  ;;  %v12592_v48 = vpop.f32.mrb[233].mxu0  ;;  %v4912_v18 = vld [vmem:[#allocation3 + $0x58] sm:$0xff] }
 0x589   : > { %v4866_v24 = vpop.f32.mrb[234].mxu0  ;;  %v5132_v32 = vld [vmem:[#allocation3 + $0x30] sm:$0xff]  ;;  %v17258_v48 = vld [vmem:[#allocation72_spill] sm:$0xff] }
 0x58a   : > { %4943 = vst.msk [vmem:[#allocation3 + $0x40] sm:$0xff] %vm883_vm2, %v4926_v56  ;;  %v4927_v14 = vadd.f32 %v4910_v45, %v4866_v24  ;;  %v12593_v20 = vpop.f32.mrb[235].mxu0  ;;  %v5149_v60 = vadd.f32 %v5132_v32, %v17256_v33  ;;  %v6099_v56 = vpack.c.bf16 %v6088_v63, %v6087_v3  ;;  %v17259_v32 = vld [vmem:[#allocation73_spill] sm:$0xff] }
 0x58b   : > { %v5133_v26 = vld [vmem:[#allocation3 + $0x38] sm:$0xff] }
 0x58c   : > { %4944 = vst.msk [vmem:[#allocation3 + $0x48] sm:$0xff] %vm883_vm2, %v4927_v14  ;;  %12831 = vmatmul.mubr.msk.bf16.gmra.mrb[84].mxu0 %vm682_vm1, %v6098_v21  ;;  %5166 = vst.msk [vmem:[#allocation3 + $0x30] sm:$0xff] %vm883_vm2, %v5149_v60  ;;  %v5150_v54 = vadd.f32 %v5133_v26, %v17257_v47  ;;  %v4913_v21 = vld [vmem:[#allocation3 + $0x60] sm:$0xff] }
 0x58d   : > { %12834 = vmatprep.mubr.msk.bf16.mxu0 %vm13904_vm0, %v17106_v35  ;;  %v6089_v33 = vld [vmem:[#allocation2 + $0xb4] sm:$0xff]  ;;  %v6090_v60 = vld [vmem:[#allocation2 + $0xbc] sm:$0xff] }
 0x58e   : > { %5167 = vst.msk [vmem:[#allocation3 + $0x38] sm:$0xff] %vm883_vm2, %v5150_v54 }
 0x58f   : > { %v4871_v19 = vpop.f32.mrb[236].mxu0 }
 0x590   : > { %v4928_v4 = vadd.f32 %v4911_v39, %v4871_v19  ;;  %v12596_v61 = vpop.f32.mrb[237].mxu0  ;;  %v4914_v19 = vld [vmem:[#allocation3 + $0x68] sm:$0xff] }
 0x591   : > { %v4874_v50 = vpop.f32.mrb[238].mxu0  ;;  %v5134_v57 = vld [vmem:[#allocation3 + $0x40] sm:$0xff] }
 0x592   : > { %4945 = vst.msk [vmem:[#allocation3 + $0x50] sm:$0xff] %vm883_vm2, %v4928_v4  ;;  %v4929_v9 = vadd.f32 %v4912_v18, %v4874_v50  ;;  %v12597_v52 = vpop.f32.mrb[239].mxu0  ;;  %v5151_v24 = vadd.f32 %v5134_v57, %v17258_v48  ;;  %v6100_v4 = vpack.c.bf16 %v6090_v60, %v6089_v33 }
 0x593   : > { %v5135_v45 = vld [vmem:[#allocation3 + $0x48] sm:$0xff] }
 0x594   : > { %4946 = vst.msk [vmem:[#allocation3 + $0x58] sm:$0xff] %vm883_vm2, %v4929_v9  ;;  %12835 = vmatmul.mubr.msk.bf16.gmra.mrb[88].mxu0 %vm682_vm1, %v6099_v56  ;;  %5168 = vst.msk [vmem:[#allocation3 + $0x40] sm:$0xff] %vm883_vm2, %v5151_v24  ;;  %v5152_v14 = vadd.f32 %v5135_v45, %v17259_v32  ;;  %v4915_v9 = vld [vmem:[#allocation3 + $0x70] sm:$0xff]  ;;  %v4916_v45 = vld [vmem:[#allocation3 + $0x78] sm:$0xff] }
 0x595   : > { %12838 = vmatprep.mubr.msk.bf16.mxu0 %vm13904_vm0, %v17106_v35  ;;  %v6091_v52 = vld [vmem:[#allocation2 + $0xc4] sm:$0xff]  ;;  %v6092_v56 = vld [vmem:[#allocation2 + $0xcc] sm:$0xff] }
 0x596   : > { %5169 = vst.msk [vmem:[#allocation3 + $0x48] sm:$0xff] %vm883_vm2, %v5152_v14 }
 0x597   : > { %v4879_v20 = vpop.f32.mrb[240].mxu0 }
 0x598   : > { %v4930_v26 = vadd.f32 %v4913_v21, %v4879_v20  ;;  %v12600_v47 = vpop.f32.mrb[241].mxu0  ;;  %v6101_v21 = vpack.c.bf16 %v6092_v56, %v6091_v52  ;;  %v5351_v52 = vld [vmem:[#allocation3] sm:$0xff] }
 0x599   : > { %v4882_v54 = vpop.f32.mrb[242].mxu0  ;;  %v5136_v39 = vld [vmem:[#allocation3 + $0x50] sm:$0xff]  ;;  %v6527_v56 = vld [vmem:[#allocation2 + $0x56] sm:$0xff] }
 0x59a   : > { %4947 = vst.msk [vmem:[#allocation3 + $0x60] sm:$0xff] %vm883_vm2, %v4930_v26  ;;  %v4931_v3 = vadd.f32 %v4914_v19, %v4882_v54  ;;  %v12601_v63 = vpop.f32.mrb[243].mxu0  ;;  %v5153_v61 = vadd.f32 %v5136_v39, %v15254_v12  ;;  %v4917_v54 = vld [vmem:[#allocation3 + $0x80] sm:$0x3]  ;;  %v6093_v19 = vld [vmem:[#allocation2 + $0xd4] sm:$0x3] }
 0x59b   : > { %v5137_v50 = vld [vmem:[#allocation3 + $0x58] sm:$0xff] }
 0x59c   : > { %4948 = vst.msk [vmem:[#allocation3 + $0x68] sm:$0xff] %vm883_vm2, %v4931_v3  ;;  %12839 = vmatmul.mubr.msk.bf16.gmra.mrb[92].mxu0 %vm682_vm1, %v6100_v4  ;;  %5170 = vst.msk [vmem:[#allocation3 + $0x50] sm:$0xff] %vm883_vm2, %v5153_v61  ;;  %v5154_v18 = vadd.f32 %v5137_v50, %v15256_v30  ;;  %v17260_v30 = vld [vmem:[#allocation74_spill] sm:$0xff]  ;;  %v6102_v50 = vpack.c.bf16 %v6093_v19, %v6093_v19  ;;  %v5354_v19 = vld [vmem:[#allocation3 + $0x18] sm:$0xff] }
 0x59d   : > { %12842 = vmatprep.mubr.msk.bf16.mxu0 %vm13904_vm0, %v17106_v35 }
 0x59e   : > { %5171 = vst.msk [vmem:[#allocation3 + $0x58] sm:$0xff] %vm883_vm2, %v5154_v18 }
 0x59f   : > { %v4887_v57 = vpop.f32.mrb[244].mxu0 }
 0x5a0   : > { %v4932_v48 = vadd.f32 %v4915_v9, %v4887_v57  ;;  %v12604_v12 = vpop.f32.mrb[245].mxu0 }
 0x5a1   : > { %v4890_v24 = vpop.f32.mrb[246].mxu0  ;;  %v5138_v32 = vld [vmem:[#allocation3 + $0x60] sm:$0xff] }
 0x5a2   : > { %4949 = vst.msk [vmem:[#allocation3 + $0x70] sm:$0xff] %vm883_vm2, %v4932_v48  ;;  %v4933_v14 = vadd.f32 %v4916_v45, %v4890_v24  ;;  %v12605_v20 = vpop.f32.mrb[247].mxu0  ;;  %v5155_v33 = vadd.f32 %v5138_v32, %v17260_v30  ;;  %v6528_v48 = vld [vmem:[#allocation2 + $0x5e] sm:$0xff] }
 0x5a3   : > { %v5139_v60 = vld [vmem:[#allocation3 + $0x68] sm:$0xff] }
 0x5a4   : > { %4950 = vst.msk [vmem:[#allocation3 + $0x78] sm:$0xff] %vm883_vm2, %v4933_v14  ;;  %12843 = vmatmul.mubr.msk.bf16.gmra.mrb[96].mxu0 %vm682_vm1, %v6101_v21  ;;  %5172 = vst.msk [vmem:[#allocation3 + $0x60] sm:$0xff] %vm883_vm2, %v5155_v33  ;;  %v5156_v26 = vadd.f32 %v5139_v60, %v15273_v46  ;;  %v5352_v32 = vld [vmem:[#allocation3 + $0x8] sm:$0xff]  ;;  %v6544_v21 = vpack.c.bf16 %v6528_v48, %v6527_v56  ;;  %v5353_v33 = vld [vmem:[#allocation3 + $0x10] sm:$0xff] }
 0x5a5   : > { %12846 = vmatprep.mubr.msk.bf16.mxu0 %vm13904_vm0, %v17106_v35  ;;  %v6529_v60 = vld [vmem:[#allocation2 + $0x66] sm:$0xff] }
 0x5a6   : > { %5173 = vst.msk [vmem:[#allocation3 + $0x68] sm:$0xff] %vm883_vm2, %v5156_v26  ;;  %v6530_v26 = vld [vmem:[#allocation2 + $0x6e] sm:$0xff] }
 0x5a7   : > { %v4895_v47 = vpop.f32.mrb[248].mxu0 }
 0x5a8   : > { %v4934_v39 = vadd.f32 %v4917_v54, %v4895_v47  ;;  %v12608_v3 = vpop.f32.mrb[249].mxu0 }
 0x5a9   : > { %v4898_v63 = vpop.f32.mrb[250].mxu0  ;;  %v5140_v4 = vld [vmem:[#allocation3 + $0x70] sm:$0xff] }
 0x5aa   : > { %4951 = vst.msk [vmem:[#allocation3 + $0x80] sm:$0x3] %vm900_vm3, %v4934_v39  ;;  %v12609_v61 = vpop.f32.mrb[251].mxu0  ;;  %v5157_v18 = vadd.f32 %v5140_v4, %v15287_v37  ;;  %v6545_v4 = vpack.c.bf16 %v6530_v26, %v6529_v60 }
 0x5ab   : > { %v5141_v57 = vld [vmem:[#allocation3 + $0x78] sm:$0xff] }
 0x5ac   : > { %12847 = vmatmul.mubr.msk.bf16.gmra.mrb[100].mxu0 %vm682_vm1, %v6102_v50  ;;  %5174 = vst.msk [vmem:[#allocation3 + $0x70] sm:$0xff] %vm883_vm2, %v5157_v18  ;;  %v5158_v46 = vadd.f32 %v5141_v57, %v15289_v16 }
 0x5ad   : > { %12894 = vmatprep.mubr.msk.bf16.mxu0 %vm13904_vm0, %v17106_v35 }
 0x5ae   : > { %5175 = vst.msk [vmem:[#allocation3 + $0x78] sm:$0xff] %vm883_vm2, %v5158_v46  ;;  %v5355_v46 = vld [vmem:[#allocation3 + $0x20] sm:$0xff] }
 0x5af   : > { %v5281_v9 = vpop.f32.mrb[252].mxu0 }
 0x5b0   : > { %v5368_v12 = vadd.f32 %v5351_v52, %v5281_v9  ;;  %v12656_v24 = vpop.f32.mrb[253].mxu0  ;;  %v6531_v9 = vld [vmem:[#allocation2 + $0x76] sm:$0xff]  ;;  %v6532_v52 = vld [vmem:[#allocation2 + $0x7e] sm:$0xff] }
 0x5b1   : > { %v5142_v45 = vld [vmem:[#allocation3 + $0x80] sm:$0x3]  ;;  %v5284_v37 = vpop.f32.mrb[254].mxu0 }
 0x5b2   : > { %v5159_v14 = vadd.f32 %v5142_v45, %v15303_v2  ;;  %5385 = vst.msk [vmem:[#allocation3] sm:$0xff] %vm883_vm2, %v5368_v12  ;;  %v5369_v20 = vadd.f32 %v5352_v32, %v5284_v37  ;;  %v12657_v16 = vpop.f32.mrb[255].mxu0  ;;  %v5356_v12 = vld [vmem:[#allocation3 + $0x28] sm:$0xff]  ;;  %v6546_v32 = vpack.c.bf16 %v6532_v52, %v6531_v9 }
 0x5b3   : > { %v5360_v9 = vld [vmem:[#allocation3 + $0x48] sm:$0xff] }
 0x5b4   : > { %5176 = vst.msk [vmem:[#allocation3 + $0x80] sm:$0x3] %vm900_vm3, %v5159_v14  ;;  %12895 = vmatmul.mubr.msk.bf16.vlgmr.msra.gmra.mrb[104].mxu0 %vm682_vm1, %v6544_v21  ;;  %v5357_v21 = vld [vmem:[#allocation3 + $0x30] sm:$0xff] }
 0x5b5   : > { %5386 = vst.msk [vmem:[#allocation3 + $0x8] sm:$0xff] %vm883_vm2, %v5369_v20  ;;  %12898 = vmatprep.mubr.msk.bf16.mxu0 %vm13904_vm0, %v17106_v35 }
 0x5b7   : > { %v5289_v30 = vpop.f32.mrb[0].mxu0 }
 0x5b8   : > { %v5370_v47 = vadd.f32 %v5353_v33, %v5289_v30  ;;  %v12660_v2 = vpop.f32.mrb[1].mxu0  ;;  %v6533_v30 = vld [vmem:[#allocation2 + $0x86] sm:$0xff]  ;;  %v6534_v33 = vld [vmem:[#allocation2 + $0x8e] sm:$0xff] }
 0x5b9   : > { %v5292_v54 = vpop.f32.mrb[2].mxu0  ;;  %v5576_v39 = vld [vmem:[#allocation3] sm:$0xff] }
 0x5ba   : > { %5387 = vst.msk [vmem:[#allocation3 + $0x10] sm:$0xff] %vm883_vm2, %v5370_v47  ;;  %v5371_v3 = vadd.f32 %v5354_v19, %v5292_v54  ;;  %v12661_v63 = vpop.f32.mrb[3].mxu0  ;;  %v5593_v61 = vadd.f32 %v5576_v39, %v15317_v36  ;;  %v5358_v47 = vld [vmem:[#allocation3 + $0x38] sm:$0xff]  ;;  %v6547_v39 = vpack.c.bf16 %v6534_v33, %v6533_v30 }
 0x5bc   : > { %v5577_v50 = vld [vmem:[#allocation3 + $0x8] sm:$0xff]  ;;  %5388 = vst.msk [vmem:[#allocation3 + $0x18] sm:$0xff] %vm883_vm2, %v5371_v3  ;;  %12899 = vmatmul.mubr.msk.bf16.gmra.mrb[108].mxu0 %vm682_vm1, %v6545_v4  ;;  %5610 = vst.msk [vmem:[#allocation3] sm:$0xff] %vm883_vm2, %v5593_v61  ;;  %v5359_v61 = vld [vmem:[#allocation3 + $0x40] sm:$0xff] }
 0x5bd   : > { %v5594_v18 = vadd.f32 %v5577_v50, %v15319_v23  ;;  %12902 = vmatprep.mubr.msk.bf16.mxu0 %vm13904_vm0, %v17106_v35  ;;  %v6535_v50 = vld [vmem:[#allocation2 + $0x96] sm:$0xff] }
 0x5bf   : > { %5611 = vst.msk [vmem:[#allocation3 + $0x8] sm:$0xff] %vm883_vm2, %v5594_v18  ;;  %v5297_v57 = vpop.f32.mrb[4].mxu0  ;;  %v6536_v18 = vld [vmem:[#allocation2 + $0x9e] sm:$0xff] }
 0x5c0   : > { %v5372_v56 = vadd.f32 %v5355_v46, %v5297_v57  ;;  %v12664_v36 = vpop.f32.mrb[5].mxu0 }
 0x5c1   : > { %v5300_v48 = vpop.f32.mrb[6].mxu0  ;;  %v5578_v24 = vld [vmem:[#allocation3 + $0x10] sm:$0xff] }
 0x5c2   : > { %5389 = vst.msk [vmem:[#allocation3 + $0x20] sm:$0xff] %vm883_vm2, %v5372_v56  ;;  %v5373_v45 = vadd.f32 %v5356_v12, %v5300_v48  ;;  %v12665_v37 = vpop.f32.mrb[7].mxu0  ;;  %v5595_v23 = vadd.f32 %v5578_v24, %v15329_v0  ;;  %v6548_v48 = vpack.c.bf16 %v6536_v18, %v6535_v50 }
 0x5c3   : > { %v5579_v14 = vld [vmem:[#allocation3 + $0x18] sm:$0xff]  ;;  %v5361_v37 = vld [vmem:[#allocation3 + $0x50] sm:$0xff] }
 0x5c4   : > { %5390 = vst.msk [vmem:[#allocation3 + $0x28] sm:$0xff] %vm883_vm2, %v5373_v45  ;;  %12903 = vmatmul.mubr.msk.bf16.gmra.mrb[112].mxu0 %vm682_vm1, %v6546_v32  ;;  %5612 = vst.msk [vmem:[#allocation3 + $0x10] sm:$0xff] %vm883_vm2, %v5595_v23  ;;  %v5596_v20 = vadd.f32 %v5579_v14, %v15331_v40  ;;  %v6537_v32 = vld [vmem:[#allocation2 + $0xa6] sm:$0xff]  ;;  %v6538_v23 = vld [vmem:[#allocation2 + $0xae] sm:$0xff] }
 0x5c5   : > { %12906 = vmatprep.mubr.msk.bf16.mxu0 %vm13904_vm0, %v17106_v35 }
 0x5c6   : > { %5613 = vst.msk [vmem:[#allocation3 + $0x18] sm:$0xff] %vm883_vm2, %v5596_v20 }
 0x5c7   : > { %v5305_v16 = vpop.f32.mrb[8].mxu0 }
 0x5c8   : > { %v5374_v60 = vadd.f32 %v5357_v21, %v5305_v16  ;;  %v12668_v0 = vpop.f32.mrb[9].mxu0  ;;  %v5362_v16 = vld [vmem:[#allocation3 + $0x58] sm:$0xff] }
 0x5c9   : > { %v5308_v26 = vpop.f32.mrb[10].mxu0  ;;  %v5580_v2 = vld [vmem:[#allocation3 + $0x20] sm:$0xff] }
 0x5ca   : > { %5391 = vst.msk [vmem:[#allocation3 + $0x30] sm:$0xff] %vm883_vm2, %v5374_v60  ;;  %v5375_v54 = vadd.f32 %v5358_v47, %v5308_v26  ;;  %v12669_v19 = vpop.f32.mrb[11].mxu0  ;;  %v5597_v40 = vadd.f32 %v5580_v2, %v15340_v6  ;;  %v6549_v60 = vpack.c.bf16 %v6538_v23, %v6537_v32  ;;  %v17261_v26 = vld [vmem:[#allocation75_spill] sm:$0xff]  ;;  %v13716_v2 = vld [vmem:[%s17090_s5] sm:$0xff]  }
 0x5cb   : > { %v5581_v3 = vld [vmem:[#allocation3 + $0x28] sm:$0xff]  ;;  %12931 = vmatpush3.bf16.msra.mxu1 %v13716_v2  ;;  %v6539_v19 = vld [vmem:[#allocation2 + $0xb6] sm:$0xff] }
 0x5cc   : > { %5392 = vst.msk [vmem:[#allocation3 + $0x38] sm:$0xff] %vm883_vm2, %v5375_v54  ;;  %12907 = vmatmul.mubr.msk.bf16.gmra.mrb[116].mxu0 %vm682_vm1, %v6547_v39  ;;  %5614 = vst.msk [vmem:[#allocation3 + $0x20] sm:$0xff] %vm883_vm2, %v5597_v40  ;;  %v5598_v63 = vadd.f32 %v5581_v3, %v15342_v13  ;;  %v5363_v54 = vld [vmem:[#allocation3 + $0x60] sm:$0xff]  ;;  %12932 = vmatprep.subr.bf16.mxu1 %v17106_v35 }
 0x5cd   : > { %12910 = vmatprep.mubr.msk.bf16.mxu0 %vm13904_vm0, %v17106_v35  ;;  %v6540_v39 = vld [vmem:[#allocation2 + $0xbe] sm:$0xff] }
 0x5ce   : > { %5615 = vst.msk [vmem:[#allocation3 + $0x28] sm:$0xff] %vm883_vm2, %v5598_v63 }
 0x5cf   : > { %v5313_v4 = vpop.f32.mrb[12].mxu0 }
 0x5d0   : > { %v5376_v57 = vadd.f32 %v5359_v61, %v5313_v4  ;;  %v12672_v6 = vpop.f32.mrb[13].mxu0  ;;  %v5364_v4 = vld [vmem:[#allocation3 + $0x68] sm:$0xff] }
 0x5d1   : > { %v5316_v46 = vpop.f32.mrb[14].mxu0  ;;  %v5582_v52 = vld [vmem:[#allocation3 + $0x30] sm:$0xff] }
 0x5d2   : > { %5393 = vst.msk [vmem:[#allocation3 + $0x40] sm:$0xff] %vm883_vm2, %v5376_v57  ;;  %v5377_v56 = vadd.f32 %v5360_v9, %v5316_v46  ;;  %v12673_v36 = vpop.f32.mrb[15].mxu0  ;;  %v5599_v13 = vadd.f32 %v5582_v52, %v15349_v29  ;;  %v6550_v57 = vpack.c.bf16 %v6540_v39, %v6539_v19 }
 0x5d3   : > { %v5583_v12 = vld [vmem:[#allocation3 + $0x38] sm:$0xff]  ;;  %v6541_v36 = vld [vmem:[#allocation2 + $0xc6] sm:$0xff] }
 0x5d4   : > { %5394 = vst.msk [vmem:[#allocation3 + $0x48] sm:$0xff] %vm883_vm2, %v5377_v56  ;;  %12911 = vmatmul.mubr.msk.bf16.gmra.mrb[120].mxu0 %vm682_vm1, %v6548_v48  ;;  %5616 = vst.msk [vmem:[#allocation3 + $0x30] sm:$0xff] %vm883_vm2, %v5599_v13  ;;  %v5600_v24 = vadd.f32 %v5583_v12, %v15351_v34  ;;  %v5365_v56 = vld [vmem:[#allocation3 + $0x70] sm:$0xff] }
 0x5d5   : > { %12914 = vmatprep.mubr.msk.bf16.mxu0 %vm13904_vm0, %v17106_v35  ;;  %v6542_v48 = vld [vmem:[#allocation2 + $0xce] sm:$0xff] }
 0x5d6   : > { %5617 = vst.msk [vmem:[#allocation3 + $0x38] sm:$0xff] %vm883_vm2, %v5600_v24  ;;  %v5366_v24 = vld [vmem:[#allocation3 + $0x78] sm:$0xff]  ;;  %v6551_v23 = vpack.c.bf16 %v6542_v48, %v6541_v36 }
 0x5d7   : > { %v5321_v45 = vpop.f32.mrb[16].mxu0 }
 0x5d8   : > { %v5378_v14 = vadd.f32 %v5361_v37, %v5321_v45  ;;  %v12676_v29 = vpop.f32.mrb[17].mxu0 }
 0x5d9   : > { %v5324_v20 = vpop.f32.mrb[18].mxu0  ;;  %v5584_v21 = vld [vmem:[#allocation3 + $0x40] sm:$0xff] }
 0x5da   : > { %5395 = vst.msk [vmem:[#allocation3 + $0x50] sm:$0xff] %vm883_vm2, %v5378_v14  ;;  %v5379_v30 = vadd.f32 %v5362_v16, %v5324_v20  ;;  %v12677_v33 = vpop.f32.mrb[19].mxu0  ;;  %v5601_v34 = vadd.f32 %v5584_v21, %v15358_v41  ;;  %v13717_v20 = vld [vmem:[%s17090_s5 + $0x8] sm:$0xff]   ;;  %v5367_v16 = vld [vmem:[#allocation3 + $0x80] sm:$0x3] }
 0x5db   : > { %v5585_v0 = vld [vmem:[#allocation3 + $0x48] sm:$0xff]  ;;  %12933 = vmatpush3.bf16.msra.mxu1 %v13717_v20  ;;  %v6543_v21 = vld [vmem:[#allocation2 + $0xd6] sm:$0x3] }
 0x5dc   : > { %5396 = vst.msk [vmem:[#allocation3 + $0x58] sm:$0xff] %vm883_vm2, %v5379_v30  ;;  %12915 = vmatmul.mubr.msk.bf16.gmra.mrb[124].mxu0 %vm682_vm1, %v6549_v60  ;;  %5618 = vst.msk [vmem:[#allocation3 + $0x40] sm:$0xff] %vm883_vm2, %v5601_v34  ;;  %v5602_v47 = vadd.f32 %v5585_v0, %v17261_v26  ;;  %12934 = vmatprep.subr.bf16.mxu1 %v17106_v35  ;;  %v6552_v0 = vpack.c.bf16 %v6543_v21, %v6543_v21 }
 0x5dd   : > { %12918 = vmatprep.mubr.msk.bf16.mxu0 %vm13904_vm0, %v17106_v35 }
 0x5de   : > { %5619 = vst.msk [vmem:[#allocation3 + $0x48] sm:$0xff] %vm883_vm2, %v5602_v47 }
 0x5df   : > { %v5329_v41 = vpop.f32.mrb[20].mxu0 }
 0x5e0   : > { %v5380_v40 = vadd.f32 %v5363_v54, %v5329_v41  ;;  %v12680_v3 = vpop.f32.mrb[21].mxu0  ;;  %v5801_v54 = vld [vmem:[#allocation3] sm:$0xff] }
 0x5e1   : > { %v5332_v63 = vpop.f32.mrb[22].mxu0  ;;  %v5586_v61 = vld [vmem:[#allocation3 + $0x50] sm:$0xff] }
 0x5e2   : > { %5397 = vst.msk [vmem:[#allocation3 + $0x60] sm:$0xff] %vm883_vm2, %v5380_v40  ;;  %v5381_v50 = vadd.f32 %v5364_v4, %v5332_v63  ;;  %v12681_v18 = vpop.f32.mrb[23].mxu0  ;;  %v5603_v6 = vadd.f32 %v5586_v61, %v15377_v59  ;;  %v5802_v63 = vld [vmem:[#allocation3 + $0x8] sm:$0xff] }
 0x5e3   : > { %v5587_v46 = vld [vmem:[#allocation3 + $0x58] sm:$0xff]  ;;  %v5803_v18 = vld [vmem:[#allocation3 + $0x10] sm:$0xff] }
 0x5e4   : > { %5398 = vst.msk [vmem:[#allocation3 + $0x68] sm:$0xff] %vm883_vm2, %v5381_v50  ;;  %12919 = vmatmul.mubr.msk.bf16.gmra.mrb[128].mxu0 %vm682_vm1, %v6550_v57  ;;  %5620 = vst.msk [vmem:[#allocation3 + $0x50] sm:$0xff] %vm883_vm2, %v5603_v6  ;;  %v5604_v9 = vadd.f32 %v5587_v46, %v15379_v25  ;;  %v5804_v46 = vld [vmem:[#allocation3 + $0x18] sm:$0xff] }
 0x5e5   : > { %12922 = vmatprep.mubr.msk.bf16.mxu0 %vm13904_vm0, %v17106_v35 }
 0x5e6   : > { %5621 = vst.msk [vmem:[#allocation3 + $0x58] sm:$0xff] %vm883_vm2, %v5604_v9 }
 0x5e7   : > { %v5337_v52 = vpop.f32.mrb[24].mxu0 }
 0x5e8   : > { %v5382_v13 = vadd.f32 %v5365_v56, %v5337_v52  ;;  %v12684_v59 = vpop.f32.mrb[25].mxu0 }
 0x5e9   : > { %v5340_v12 = vpop.f32.mrb[26].mxu0  ;;  %v5588_v45 = vld [vmem:[#allocation3 + $0x60] sm:$0xff] }
 0x5ea   : > { %5399 = vst.msk [vmem:[#allocation3 + $0x70] sm:$0xff] %vm883_vm2, %v5382_v13  ;;  %v5383_v37 = vadd.f32 %v5366_v24, %v5340_v12  ;;  %v12685_v32 = vpop.f32.mrb[27].mxu0  ;;  %v5605_v25 = vadd.f32 %v5588_v45, %v15391_v44  ;;  %v5805_v12 = vld [vmem:[#allocation3 + $0x20] sm:$0xff] }
 0x5eb   : > { %v5589_v14 = vld [vmem:[#allocation3 + $0x68] sm:$0xff] }
 0x5ec   : > { %5400 = vst.msk [vmem:[#allocation3 + $0x78] sm:$0xff] %vm883_vm2, %v5383_v37  ;;  %12923 = vmatmul.mubr.msk.bf16.gmra.mrb[132].mxu0 %vm682_vm1, %v6551_v23  ;;  %5622 = vst.msk [vmem:[#allocation3 + $0x60] sm:$0xff] %vm883_vm2, %v5605_v25  ;;  %v5606_v29 = vadd.f32 %v5589_v14, %v15393_v38  ;;  %v5806_v32 = vld [vmem:[#allocation3 + $0x28] sm:$0xff] }
 0x5ed   : > { %12926 = vmatprep.mubr.msk.bf16.mxu0 %vm13904_vm0, %v17106_v35 }
 0x5ee   : > { %5623 = vst.msk [vmem:[#allocation3 + $0x68] sm:$0xff] %vm883_vm2, %v5606_v29 }
 0x5ef   : > { %v5345_v44 = vpop.f32.mrb[28].mxu0 }
 0x5f0   : > { %v5384_v30 = vadd.f32 %v5367_v16, %v5345_v44  ;;  %v12688_v33 = vpop.f32.mrb[29].mxu0  ;;  %v5807_v44 = vld [vmem:[#allocation3 + $0x30] sm:$0xff] }
 0x5f1   : > { %v5348_v60 = vpop.f32.mrb[30].mxu0  ;;  %v5590_v34 = vld [vmem:[#allocation3 + $0x70] sm:$0xff]  ;;  %v5808_v33 = vld [vmem:[#allocation3 + $0x38] sm:$0xff] }
 0x5f2   : > { %5401 = vst.msk [vmem:[#allocation3 + $0x80] sm:$0x3] %vm900_vm3, %v5384_v30  ;;  %v12689_v38 = vpop.f32.mrb[31].mxu0  ;;  %v5607_v26 = vadd.f32 %v5590_v34, %v15404_v15 }
 0x5f3   : > { %v5591_v47 = vld [vmem:[#allocation3 + $0x78] sm:$0xff] }
 0x5f4   : > { %12927 = vmatmul.mubr.msk.bf16.gmra.mrb[136].mxu0 %vm682_vm1, %v6552_v0  ;;  %5624 = vst.msk [vmem:[#allocation3 + $0x70] sm:$0xff] %vm883_vm2, %v5607_v26  ;;  %v5608_v2 = vadd.f32 %v5591_v47, %v15406_v11  ;;  %v13718_v11 = vld [vmem:[%s17090_s5 + $0x10] sm:$0xff]   ;;  %v5809_v47 = vld [vmem:[#allocation3 + $0x40] sm:$0xff] }
 0x5f5   : > { %13486 = vmatprep.mubr.msk.bf16.mxu0 %vm13904_vm0, %v17106_v35  ;;  %12935 = vmatpush3.bf16.msra.mxu1 %v13718_v11 }
 0x5f6   : > { %5625 = vst.msk [vmem:[#allocation3 + $0x78] sm:$0xff] %vm883_vm2, %v5608_v2  ;;  %12936 = vmatprep.subr.bf16.mxu1 %v17106_v35 }
 0x5f7   : > { %v5731_v41 = vpop.f32.mrb[32].mxu0 }
 0x5f8   : > { %v5818_v19 = vadd.f32 %v5801_v54, %v5731_v41  ;;  %v12736_v39 = vpop.f32.mrb[33].mxu0 }
 0x5f9   : > { %v5592_v40 = vld [vmem:[#allocation3 + $0x80] sm:$0x3]  ;;  %v5734_v3 = vpop.f32.mrb[34].mxu0 }
 0x5fa   : > { %v5609_v15 = vadd.f32 %v5592_v40, %v15417_v51  ;;  %5835 = vst.msk [vmem:[#allocation3] sm:$0xff] %vm883_vm2, %v5818_v19  ;;  %v5819_v4 = vadd.f32 %v5802_v63, %v5734_v3  ;;  %v12737_v61 = vpop.f32.mrb[35].mxu0  ;;  %v5810_v19 = vld [vmem:[#allocation3 + $0x48] sm:$0xff] }
 0x5fc   : > { %5626 = vst.msk [vmem:[#allocation3 + $0x80] sm:$0x3] %vm900_vm3, %v5609_v15 }
 0x5fd   : > { %5836 = vst.msk [vmem:[#allocation3 + $0x8] sm:$0xff] %vm883_vm2, %v5819_v4  ;;  %v5811_v4 = vld [vmem:[#allocation3 + $0x50] sm:$0xff] }
 0x5ff   : > { %v5739_v50 = vpop.f32.mrb[36].mxu0 }
 0x600   : > { %v5820_v57 = vadd.f32 %v5803_v18, %v5739_v50  ;;  %v12740_v6 = vpop.f32.mrb[37].mxu0  ;;  %v5812_v18 = vld [vmem:[#allocation3 + $0x58] sm:$0xff] }
 0x601   : > { %v5742_v51 = vpop.f32.mrb[38].mxu0  ;;  %v6026_v9 = vld [vmem:[#allocation3] sm:$0xff] }
 0x602   : > { %5837 = vst.msk [vmem:[#allocation3 + $0x10] sm:$0xff] %vm883_vm2, %v5820_v57  ;;  %v5821_v52 = vadd.f32 %v5804_v46, %v5742_v51  ;;  %v12741_v56 = vpop.f32.mrb[39].mxu0  ;;  %v6043_v36 = vadd.f32 %v6026_v9, %v15428_v5  ;;  %v17262_v51 = vld [vmem:[#allocation76_spill] sm:$0xff] }
 0x604   : > { %v6027_v48 = vld [vmem:[#allocation3 + $0x8] sm:$0xff]  ;;  %5838 = vst.msk [vmem:[#allocation3 + $0x18] sm:$0xff] %vm883_vm2, %v5821_v52  ;;  %6060 = vst.msk [vmem:[#allocation3] sm:$0xff] %vm883_vm2, %v6043_v36  ;;  %v5813_v36 = vld [vmem:[#allocation3 + $0x60] sm:$0xff] }
 0x605   : > { %v6044_v13 = vadd.f32 %v6027_v48, %v15430_v31  ;;  %v13719_v48 = vld [vmem:[%s17090_s5 + $0x18] sm:$0xff]  }
 0x606   : > { %12937 = vmatpush3.bf16.msra.mxu1 %v13719_v48 }
 0x607   : > { %6061 = vst.msk [vmem:[#allocation3 + $0x8] sm:$0xff] %vm883_vm2, %v6044_v13  ;;  %v5747_v59 = vpop.f32.mrb[40].mxu0  ;;  %12950 = vmatprep.subr.bf16.mxu1 %v17106_v35 }
 0x608   : > { %v5822_v24 = vadd.f32 %v5805_v12, %v5747_v59  ;;  %v12744_v45 = vpop.f32.mrb[41].mxu0 }
 0x609   : > { %v5750_v37 = vpop.f32.mrb[42].mxu0  ;;  %v6028_v23 = vld [vmem:[#allocation3 + $0x10] sm:$0xff] }
 0x60a   : > { %5839 = vst.msk [vmem:[#allocation3 + $0x20] sm:$0xff] %vm883_vm2, %v5822_v24  ;;  %v5823_v25 = vadd.f32 %v5806_v32, %v5750_v37  ;;  %v12745_v5 = vpop.f32.mrb[43].mxu0  ;;  %v6045_v14 = vadd.f32 %v6028_v23, %v15441_v27  ;;  %v5814_v24 = vld [vmem:[#allocation3 + $0x68] sm:$0xff] }
 0x60b   : > { %v6029_v29 = vld [vmem:[#allocation3 + $0x18] sm:$0xff]  ;;  %v17264_v23 = vld [vmem:[#allocation9_spill] sm:$0xff] }
 0x60c   : > { %5840 = vst.msk [vmem:[#allocation3 + $0x28] sm:$0xff] %vm883_vm2, %v5823_v25  ;;  %6062 = vst.msk [vmem:[#allocation3 + $0x10] sm:$0xff] %vm883_vm2, %v6045_v14  ;;  %v6046_v31 = vadd.f32 %v6029_v29, %v15443_v49  ;;  %v17265_v14 = vld [vmem:[#allocation8_spill] sm:$0xff] }
 0x60e   : > { %6063 = vst.msk [vmem:[#allocation3 + $0x18] sm:$0xff] %vm883_vm2, %v6046_v31 }
 0x60f   : > { %v5755_v20 = vpop.f32.mrb[44].mxu0 }
 0x610   : > { %v5824_v16 = vadd.f32 %v5807_v44, %v5755_v20  ;;  %v12748_v21 = vpop.f32.mrb[45].mxu0  ;;  %v5815_v20 = vld [vmem:[#allocation3 + $0x70] sm:$0xff] }
 0x611   : > { %v5758_v30 = vpop.f32.mrb[46].mxu0  ;;  %v6030_v60 = vld [vmem:[#allocation3 + $0x20] sm:$0xff] }
 0x612   : > { %5841 = vst.msk [vmem:[#allocation3 + $0x30] sm:$0xff] %vm883_vm2, %v5824_v16  ;;  %v5825_v34 = vadd.f32 %v5808_v33, %v5758_v30  ;;  %v12749_v27 = vpop.f32.mrb[47].mxu0  ;;  %v6047_v38 = vadd.f32 %v6030_v60, %v15454_v8  ;;  %v5816_v30 = vld [vmem:[#allocation3 + $0x78] sm:$0xff] }
 0x613   : > { %v6031_v0 = vld [vmem:[#allocation3 + $0x28] sm:$0xff] }
 0x614   : > { %5842 = vst.msk [vmem:[#allocation3 + $0x38] sm:$0xff] %vm883_vm2, %v5825_v34  ;;  %6064 = vst.msk [vmem:[#allocation3 + $0x20] sm:$0xff] %vm883_vm2, %v6047_v38  ;;  %v6048_v49 = vadd.f32 %v6031_v0, %v15456_v28  ;;  %v17266_v0 = vld [vmem:[#allocation10_spill] sm:$0xff] }
 0x616   : > { %6065 = vst.msk [vmem:[#allocation3 + $0x28] sm:$0xff] %vm883_vm2, %v6048_v49 }
 0x617   : > { %v5763_v26 = vpop.f32.mrb[48].mxu0 }
 0x618   : > { %v5826_v2 = vadd.f32 %v5809_v47, %v5763_v26  ;;  %v12752_v41 = vpop.f32.mrb[49].mxu0  ;;  %v5817_v47 = vld [vmem:[#allocation3 + $0x80] sm:$0x3] }
 0x619   : > { %v5766_v54 = vpop.f32.mrb[50].mxu0  ;;  %v6032_v39 = vld [vmem:[#allocation3 + $0x30] sm:$0xff] }
 0x61a   : > { %5843 = vst.msk [vmem:[#allocation3 + $0x40] sm:$0xff] %vm883_vm2, %v5826_v2  ;;  %v5827_v40 = vadd.f32 %v5810_v19, %v5766_v54  ;;  %v12753_v8 = vpop.f32.mrb[51].mxu0  ;;  %v6049_v3 = vadd.f32 %v6032_v39, %v15467_v62 }
 0x61b   : > { %v6033_v63 = vld [vmem:[#allocation3 + $0x38] sm:$0xff] }
 0x61c   : > { %5844 = vst.msk [vmem:[#allocation3 + $0x48] sm:$0xff] %vm883_vm2, %v5827_v40  ;;  %6066 = vst.msk [vmem:[#allocation3 + $0x30] sm:$0xff] %vm883_vm2, %v6049_v3  ;;  %v6050_v28 = vadd.f32 %v6033_v63, %v15469_v1  ;;  %v17263_v1 = vld [vmem:[#allocation77_spill] sm:$0xff] }
 0x61d   : > { %v6251_v63 = vld [vmem:[#allocation3] sm:$0xff] }
 0x61e   : > { %6067 = vst.msk [vmem:[#allocation3 + $0x38] sm:$0xff] %vm883_vm2, %v6050_v28 }
 0x61f   : > { %v5771_v15 = vpop.f32.mrb[52].mxu0 }
 0x620   : > { %v5828_v61 = vadd.f32 %v5811_v4, %v5771_v15  ;;  %v12756_v11 = vpop.f32.mrb[53].mxu0 }
 0x621   : > { %v5774_v50 = vpop.f32.mrb[54].mxu0  ;;  %v6034_v57 = vld [vmem:[#allocation3 + $0x40] sm:$0xff]  ;;  %v6252_v11 = vld [vmem:[#allocation3 + $0x8] sm:$0xff] }
 0x622   : > { %5845 = vst.msk [vmem:[#allocation3 + $0x50] sm:$0xff] %vm883_vm2, %v5828_v61  ;;  %v5829_v6 = vadd.f32 %v5812_v18, %v5774_v50  ;;  %v12757_v62 = vpop.f32.mrb[55].mxu0  ;;  %v6051_v46 = vadd.f32 %v6034_v57, %v17262_v51  ;;  %v6253_v57 = vld [vmem:[#allocation3 + $0x10] sm:$0xff] }
 0x623   : > { %v6035_v9 = vld [vmem:[#allocation3 + $0x48] sm:$0xff] }
 0x624   : > { %5846 = vst.msk [vmem:[#allocation3 + $0x58] sm:$0xff] %vm883_vm2, %v5829_v6  ;;  %6068 = vst.msk [vmem:[#allocation3 + $0x40] sm:$0xff] %vm883_vm2, %v6051_v46  ;;  %v6052_v52 = vadd.f32 %v6035_v9, %v17263_v1  ;;  %v6254_v46 = vld [vmem:[#allocation3 + $0x18] sm:$0xff] }
 0x626   : > { %6069 = vst.msk [vmem:[#allocation3 + $0x48] sm:$0xff] %vm883_vm2, %v6052_v52 }
 0x627   : > { %v5779_v56 = vpop.f32.mrb[56].mxu0 }
 0x628   : > { %v5830_v13 = vadd.f32 %v5813_v36, %v5779_v56  ;;  %v12760_v59 = vpop.f32.mrb[57].mxu0 }
 0x629   : > { %v5782_v12 = vpop.f32.mrb[58].mxu0  ;;  %v6036_v45 = vld [vmem:[#allocation3 + $0x50] sm:$0xff] }
 0x62a   : > { %5847 = vst.msk [vmem:[#allocation3 + $0x60] sm:$0xff] %vm883_vm2, %v5830_v13  ;;  %v5831_v37 = vadd.f32 %v5814_v24, %v5782_v12  ;;  %v12761_v32 = vpop.f32.mrb[59].mxu0  ;;  %v6053_v25 = vadd.f32 %v6036_v45, %v17264_v23  ;;  %v6255_v13 = vld [vmem:[#allocation3 + $0x20] sm:$0xff]  ;;  %v6256_v45 = vld [vmem:[#allocation3 + $0x28] sm:$0xff] }
 0x62b   : > { %v6037_v5 = vld [vmem:[#allocation3 + $0x58] sm:$0xff] }
 0x62c   : > { %5848 = vst.msk [vmem:[#allocation3 + $0x68] sm:$0xff] %vm883_vm2, %v5831_v37  ;;  %6070 = vst.msk [vmem:[#allocation3 + $0x50] sm:$0xff] %vm883_vm2, %v6053_v25  ;;  %v6054_v29 = vadd.f32 %v6037_v5, %v17265_v14  ;;  %v6257_v14 = vld [vmem:[#allocation3 + $0x30] sm:$0xff] }
 0x62e   : > { %6071 = vst.msk [vmem:[#allocation3 + $0x58] sm:$0xff] %vm883_vm2, %v6054_v29 }
 0x62f   : > { %v5787_v31 = vpop.f32.mrb[60].mxu0 }
 0x630   : > { %v5832_v44 = vadd.f32 %v5815_v20, %v5787_v31  ;;  %v12764_v16 = vpop.f32.mrb[61].mxu0 }
 0x631   : > { %v5790_v21 = vpop.f32.mrb[62].mxu0  ;;  %v6038_v33 = vld [vmem:[#allocation3 + $0x60] sm:$0xff] }
 0x632   : > { %5849 = vst.msk [vmem:[#allocation3 + $0x70] sm:$0xff] %vm883_vm2, %v5832_v44  ;;  %v5833_v60 = vadd.f32 %v5816_v30, %v5790_v21  ;;  %v12765_v34 = vpop.f32.mrb[63].mxu0  ;;  %v6055_v27 = vadd.f32 %v6038_v33, %v15512_v42  ;;  %v6258_v44 = vld [vmem:[#allocation3 + $0x38] sm:$0xff] }
 0x633   : > { %v6039_v38 = vld [vmem:[#allocation3 + $0x68] sm:$0xff]  ;;  %v17267_v30 = vld [vmem:[#allocation11_spill] sm:$0xff] }
 0x634   : > { %5850 = vst.msk [vmem:[#allocation3 + $0x78] sm:$0xff] %vm883_vm2, %v5833_v60  ;;  %6072 = vst.msk [vmem:[#allocation3 + $0x60] sm:$0xff] %vm883_vm2, %v6055_v27  ;;  %v6056_v49 = vadd.f32 %v6039_v38, %v17266_v0  ;;  %v6259_v38 = vld [vmem:[#allocation3 + $0x40] sm:$0xff] }
 0x636   : > { %6073 = vst.msk [vmem:[#allocation3 + $0x68] sm:$0xff] %vm883_vm2, %v6056_v49 }
 0x637   : > { %v5795_v26 = vpop.f32.mrb[64].mxu0 }
 0x638   : > { %v5834_v2 = vadd.f32 %v5817_v47, %v5795_v26  ;;  %v12768_v41 = vpop.f32.mrb[65].mxu0  ;;  %v6260_v47 = vld [vmem:[#allocation3 + $0x48] sm:$0xff] }
 0x639   : > { %v5798_v54 = vpop.f32.mrb[66].mxu0  ;;  %v6040_v19 = vld [vmem:[#allocation3 + $0x70] sm:$0xff] }
 0x63a   : > { %5851 = vst.msk [vmem:[#allocation3 + $0x80] sm:$0x3] %vm900_vm3, %v5834_v2  ;;  %v12769_v39 = vpop.f32.mrb[67].mxu0  ;;  %v6057_v42 = vadd.f32 %v6040_v19, %v15525_v22  ;;  %v17269_v19 = vld [vmem:[#allocation13_spill] sm:$0xff] }
 0x63b   : > { %v6041_v40 = vld [vmem:[#allocation3 + $0x78] sm:$0xff] }
 0x63c   : > { %6074 = vst.msk [vmem:[#allocation3 + $0x70] sm:$0xff] %vm883_vm2, %v6057_v42  ;;  %v6058_v8 = vadd.f32 %v6041_v40, %v15527_v43  ;;  %v17270_v40 = vld [vmem:[#allocation14_spill] sm:$0xff] }
 0x63e   : > { %6075 = vst.msk [vmem:[#allocation3 + $0x78] sm:$0xff] %vm883_vm2, %v6058_v8 }
 0x63f   : > { %v6181_v3 = vpop.f32.mrb[68].mxu0 }
 0x640   : > { %v6268_v28 = vadd.f32 %v6251_v63, %v6181_v3  ;;  %v12816_v15 = vpop.f32.mrb[69].mxu0  ;;  %v6261_v63 = vld [vmem:[#allocation3 + $0x50] sm:$0xff] }
 0x641   : > { %v6042_v4 = vld [vmem:[#allocation3 + $0x80] sm:$0x3]  ;;  %v6184_v61 = vpop.f32.mrb[70].mxu0 }
 0x642   : > { %v6059_v50 = vadd.f32 %v6042_v4, %v15538_v58  ;;  %6285 = vst.msk [vmem:[#allocation3] sm:$0xff] %vm883_vm2, %v6268_v28  ;;  %v6269_v18 = vadd.f32 %v6252_v11, %v6184_v61  ;;  %v12817_v22 = vpop.f32.mrb[71].mxu0  ;;  %v6262_v61 = vld [vmem:[#allocation3 + $0x58] sm:$0xff] }
 0x643   : > { %v17271_v22 = vld [vmem:[#allocation15_spill] sm:$0xff] }
 0x644   : > { %6076 = vst.msk [vmem:[#allocation3 + $0x80] sm:$0x3] %vm900_vm3, %v6059_v50 }
 0x645   : > { %6286 = vst.msk [vmem:[#allocation3 + $0x8] sm:$0xff] %vm883_vm2, %v6269_v18 }
 0x647   : > { %v6189_v43 = vpop.f32.mrb[72].mxu0 }
 0x648   : > { %v6270_v6 = vadd.f32 %v6253_v57, %v6189_v43  ;;  %v12820_v62 = vpop.f32.mrb[73].mxu0 }
 0x649   : > { %v6192_v51 = vpop.f32.mrb[74].mxu0  ;;  %v6476_v9 = vld [vmem:[#allocation3] sm:$0xff] }
 0x64a   : > { %6287 = vst.msk [vmem:[#allocation3 + $0x10] sm:$0xff] %vm883_vm2, %v6270_v6  ;;  %v6271_v1 = vadd.f32 %v6254_v46, %v6192_v51  ;;  %v12821_v52 = vpop.f32.mrb[75].mxu0  ;;  %v6493_v58 = vadd.f32 %v6476_v9, %v15549_v10  ;;  %v17272_v6 = vld [vmem:[#allocation16_spill] sm:$0xff] }
 0x64b   : > { %v6263_v46 = vld [vmem:[#allocation3 + $0x60] sm:$0xff] }
 0x64c   : > { %v6477_v56 = vld [vmem:[#allocation3 + $0x8] sm:$0xff]  ;;  %6288 = vst.msk [vmem:[#allocation3 + $0x18] sm:$0xff] %vm883_vm2, %v6271_v1  ;;  %6510 = vst.msk [vmem:[#allocation3] sm:$0xff] %vm883_vm2, %v6493_v58 }
 0x64d   : > { %v6494_v36 = vadd.f32 %v6477_v56, %v15551_v55  ;;  %v6264_v58 = vld [vmem:[#allocation3 + $0x68] sm:$0xff] }
 0x64f   : > { %6511 = vst.msk [vmem:[#allocation3 + $0x8] sm:$0xff] %vm883_vm2, %v6494_v36  ;;  %v6197_v48 = vpop.f32.mrb[76].mxu0 }
 0x650   : > { %v6272_v59 = vadd.f32 %v6255_v13, %v6197_v48  ;;  %v12824_v12 = vpop.f32.mrb[77].mxu0  ;;  %v17273_v13 = vld [vmem:[#allocation17_spill] sm:$0xff] }
 0x651   : > { %v6200_v24 = vpop.f32.mrb[78].mxu0  ;;  %v6478_v37 = vld [vmem:[#allocation3 + $0x10] sm:$0xff] }
 0x652   : > { %6289 = vst.msk [vmem:[#allocation3 + $0x20] sm:$0xff] %vm883_vm2, %v6272_v59  ;;  %v6273_v32 = vadd.f32 %v6256_v45, %v6200_v24  ;;  %v12825_v10 = vpop.f32.mrb[79].mxu0  ;;  %v6495_v23 = vadd.f32 %v6478_v37, %v15562_v7  ;;  %v17274_v24 = vld [vmem:[#allocation18_spill] sm:$0xff] }
 0x653   : > { %v6479_v25 = vld [vmem:[#allocation3 + $0x18] sm:$0xff] }
 0x654   : > { %6290 = vst.msk [vmem:[#allocation3 + $0x28] sm:$0xff] %vm883_vm2, %v6273_v32  ;;  %6512 = vst.msk [vmem:[#allocation3 + $0x10] sm:$0xff] %vm883_vm2, %v6495_v23  ;;  %v6496_v55 = vadd.f32 %v6479_v25, %v15564_v17  ;;  %v17268_v17 = vld [vmem:[#allocation12_spill] sm:$0xff]  ;;  %v6265_v32 = vld [vmem:[#allocation3 + $0x70] sm:$0xff] }
 0x656   : > { %6513 = vst.msk [vmem:[#allocation3 + $0x18] sm:$0xff] %vm883_vm2, %v6496_v55  ;;  %v6266_v55 = vld [vmem:[#allocation3 + $0x78] sm:$0xff] }
 0x657   : > { %v6205_v5 = vpop.f32.mrb[80].mxu0 }
 0x658   : > { %v6274_v29 = vadd.f32 %v6257_v14, %v6205_v5  ;;  %v12828_v31 = vpop.f32.mrb[81].mxu0 }
 0x659   : > { %v6208_v20 = vpop.f32.mrb[82].mxu0  ;;  %v6480_v16 = vld [vmem:[#allocation3 + $0x20] sm:$0xff]  ;;  %v17275_v31 = vld [vmem:[#allocation19_spill] sm:$0xff] }
 0x65a   : > { %6291 = vst.msk [vmem:[#allocation3 + $0x30] sm:$0xff] %vm883_vm2, %v6274_v29  ;;  %v6275_v21 = vadd.f32 %v6258_v44, %v6208_v20  ;;  %v12829_v7 = vpop.f32.mrb[83].mxu0  ;;  %v6497_v33 = vadd.f32 %v6480_v16, %v17267_v30  ;;  %v17276_v16 = vld [vmem:[#allocation20_spill] sm:$0xff] }
 0x65b   : > { %v6481_v60 = vld [vmem:[#allocation3 + $0x28] sm:$0xff]  ;;  %v6267_v30 = vld [vmem:[#allocation3 + $0x80] sm:$0x3] }
 0x65c   : > { %6292 = vst.msk [vmem:[#allocation3 + $0x38] sm:$0xff] %vm883_vm2, %v6275_v21  ;;  %6514 = vst.msk [vmem:[#allocation3 + $0x20] sm:$0xff] %vm883_vm2, %v6497_v33  ;;  %v6498_v34 = vadd.f32 %v6481_v60, %v17268_v17 }
 0x65e   : > { %6515 = vst.msk [vmem:[#allocation3 + $0x28] sm:$0xff] %vm883_vm2, %v6498_v34 }
 0x65f   : > { %v6213_v27 = vpop.f32.mrb[84].mxu0 }
 0x660   : > { %v6276_v0 = vadd.f32 %v6259_v38, %v6213_v27  ;;  %v12832_v49 = vpop.f32.mrb[85].mxu0  ;;  %v17277_v38 = vld [vmem:[#allocation21_spill] sm:$0xff] }
 0x661   : > { %v6216_v26 = vpop.f32.mrb[86].mxu0  ;;  %v6482_v2 = vld [vmem:[#allocation3 + $0x30] sm:$0xff] }
 0x662   : > { %6293 = vst.msk [vmem:[#allocation3 + $0x40] sm:$0xff] %vm883_vm2, %v6276_v0  ;;  %v6277_v41 = vadd.f32 %v6260_v47, %v6216_v26  ;;  %v12833_v54 = vpop.f32.mrb[87].mxu0  ;;  %v6499_v39 = vadd.f32 %v6482_v2, %v17269_v19  ;;  %v17278_v26 = vld [vmem:[#allocation22_spill] sm:$0xff] }
 0x663   : > { %v6483_v42 = vld [vmem:[#allocation3 + $0x38] sm:$0xff] }
 0x664   : > { %6294 = vst.msk [vmem:[#allocation3 + $0x48] sm:$0xff] %vm883_vm2, %v6277_v41  ;;  %6516 = vst.msk [vmem:[#allocation3 + $0x30] sm:$0xff] %vm883_vm2, %v6499_v39  ;;  %v6500_v8 = vadd.f32 %v6483_v42, %v17270_v40  ;;  %v6701_v41 = vld [vmem:[#allocation3] sm:$0xff]  ;;  %v6702_v40 = vld [vmem:[#allocation3 + $0x8] sm:$0xff] }
 0x666   : > { %6517 = vst.msk [vmem:[#allocation3 + $0x38] sm:$0xff] %vm883_vm2, %v6500_v8 }
 0x667   : > { %v6221_v3 = vpop.f32.mrb[88].mxu0 }
 0x668   : > { %v6278_v28 = vadd.f32 %v6261_v63, %v6221_v3  ;;  %v12836_v15 = vpop.f32.mrb[89].mxu0 }
 0x669   : > { %v6224_v4 = vpop.f32.mrb[90].mxu0  ;;  %v6484_v11 = vld [vmem:[#allocation3 + $0x40] sm:$0xff] }
 0x66a   : > { %6295 = vst.msk [vmem:[#allocation3 + $0x50] sm:$0xff] %vm883_vm2, %v6278_v28  ;;  %v6279_v50 = vadd.f32 %v6262_v61, %v6224_v4  ;;  %v12837_v18 = vpop.f32.mrb[91].mxu0  ;;  %v6501_v43 = vadd.f32 %v6484_v11, %v17271_v22  ;;  %v16165_v28 = vld [vmem:[%s17089_s4] ss:$0 sm:$0xff]  ;;  %v6703_v4 = vld [vmem:[#allocation3 + $0x10] sm:$0xff] }
 0x66b   : > { %v6485_v57 = vld [vmem:[#allocation3 + $0x48] sm:$0xff] }
 0x66c   : > { %6296 = vst.msk [vmem:[#allocation3 + $0x58] sm:$0xff] %vm883_vm2, %v6279_v50  ;;  %6518 = vst.msk [vmem:[#allocation3 + $0x40] sm:$0xff] %vm883_vm2, %v6501_v43  ;;  %v6502_v62 = vadd.f32 %v6485_v57, %v17272_v6 }
 0x66e   : > { %6519 = vst.msk [vmem:[#allocation3 + $0x48] sm:$0xff] %vm883_vm2, %v6502_v62 }
 0x66f   : > { %v6229_v51 = vpop.f32.mrb[92].mxu0 }
 0x670   : > { %v6280_v9 = vadd.f32 %v6263_v46, %v6229_v51  ;;  %v12840_v1 = vpop.f32.mrb[93].mxu0 }
 0x671   : > { %v6232_v52 = vpop.f32.mrb[94].mxu0  ;;  %v6486_v56 = vld [vmem:[#allocation3 + $0x50] sm:$0xff]  ;;  %v6705_v1 = vld [vmem:[#allocation3 + $0x20] sm:$0xff] }
 0x672   : > { %6297 = vst.msk [vmem:[#allocation3 + $0x60] sm:$0xff] %vm883_vm2, %v6280_v9  ;;  %v6281_v36 = vadd.f32 %v6264_v58, %v6232_v52  ;;  %v12841_v48 = vpop.f32.mrb[95].mxu0  ;;  %v6503_v59 = vadd.f32 %v6486_v56, %v17273_v13 }
 0x673   : > { %v6487_v12 = vld [vmem:[#allocation3 + $0x58] sm:$0xff]  ;;  %v6706_v48 = vld [vmem:[#allocation3 + $0x28] sm:$0xff] }
 0x674   : > { %6298 = vst.msk [vmem:[#allocation3 + $0x68] sm:$0xff] %vm883_vm2, %v6281_v36  ;;  %6520 = vst.msk [vmem:[#allocation3 + $0x50] sm:$0xff] %vm883_vm2, %v6503_v59  ;;  %v6504_v45 = vadd.f32 %v6487_v12, %v17274_v24 }
 0x676   : > { %6521 = vst.msk [vmem:[#allocation3 + $0x58] sm:$0xff] %vm883_vm2, %v6504_v45 }
 0x677   : > { %v6237_v37 = vpop.f32.mrb[96].mxu0 }
 0x678   : > { %v6282_v10 = vadd.f32 %v6265_v32, %v6237_v37  ;;  %v12844_v23 = vpop.f32.mrb[97].mxu0 }
 0x679   : > { %v6240_v25 = vpop.f32.mrb[98].mxu0  ;;  %v6488_v5 = vld [vmem:[#allocation3 + $0x60] sm:$0xff] }
 0x67a   : > { %6299 = vst.msk [vmem:[#allocation3 + $0x70] sm:$0xff] %vm883_vm2, %v6282_v10  ;;  %v6283_v14 = vadd.f32 %v6266_v55, %v6240_v25  ;;  %v12845_v29 = vpop.f32.mrb[99].mxu0  ;;  %v6505_v20 = vadd.f32 %v6488_v5, %v17275_v31  ;;  %v13720_v10 = vld [vmem:[%s17090_s5 + $0x20] sm:$0xff]   ;;  %v6707_v5 = vld [vmem:[#allocation3 + $0x30] sm:$0xff] }
 0x67b   : > { %v6489_v44 = vld [vmem:[#allocation3 + $0x68] sm:$0xff] }
 0x67c   : > { %6300 = vst.msk [vmem:[#allocation3 + $0x78] sm:$0xff] %vm883_vm2, %v6283_v14  ;;  %6522 = vst.msk [vmem:[#allocation3 + $0x60] sm:$0xff] %vm883_vm2, %v6505_v20  ;;  %v6506_v21 = vadd.f32 %v6489_v44, %v17276_v16  ;;  %v6708_v16 = vld [vmem:[#allocation3 + $0x38] sm:$0xff] }
 0x67e   : > { %6523 = vst.msk [vmem:[#allocation3 + $0x68] sm:$0xff] %vm883_vm2, %v6506_v21 }
 0x67f   : > { %v6245_v7 = vpop.f32.mrb[100].mxu0 }
 0x680   : > { %v6284_v33 = vadd.f32 %v6267_v30, %v6245_v7  ;;  %v12848_v60 = vpop.f32.mrb[101].mxu0 }
 0x681   : > { %v6248_v17 = vpop.f32.mrb[102].mxu0  ;;  %v6490_v34 = vld [vmem:[#allocation3 + $0x70] sm:$0xff] }
 0x682   : > { %6301 = vst.msk [vmem:[#allocation3 + $0x80] sm:$0x3] %vm900_vm3, %v6284_v33  ;;  %v12849_v27 = vpop.f32.mrb[103].mxu0  ;;  %v6507_v0 = vadd.f32 %v6490_v34, %v17277_v38  ;;  %v13721_v60 = vld [vmem:[%s17090_s5 + $0x28] sm:$0xff]  }
 0x683   : > { %v6491_v49 = vld [vmem:[#allocation3 + $0x78] sm:$0xff] }
 0x684   : > { %6524 = vst.msk [vmem:[#allocation3 + $0x70] sm:$0xff] %vm883_vm2, %v6507_v0  ;;  %v6508_v47 = vadd.f32 %v6491_v49, %v17278_v26  ;;  %v6709_v26 = vld [vmem:[#allocation3 + $0x40] sm:$0xff] }
 0x686   : > { %6525 = vst.msk [vmem:[#allocation3 + $0x78] sm:$0xff] %vm883_vm2, %v6508_v47  ;;  %v13722_v47 = vld [vmem:[%s17090_s5 + $0x30] sm:$0xff]  }
 0x687   : > { %v6631_v2 = vpop.f32.mrb[104].mxu0 }
 0x688   : > { %v6718_v54 = vadd.f32 %v6701_v41, %v6631_v2  ;;  %v12896_v19 = vpop.f32.mrb[105].mxu0 }
 0x689   : > { %v6492_v39 = vld [vmem:[#allocation3 + $0x80] sm:$0x3]  ;;  %v6634_v42 = vpop.f32.mrb[106].mxu0 }
 0x68a   : > { %v6509_v8 = vadd.f32 %v6492_v39, %v15658_v53  ;;  %6735 = vst.msk [vmem:[#allocation3] sm:$0xff] %vm883_vm2, %v6718_v54  ;;  %v6719_v3 = vadd.f32 %v6702_v40, %v6634_v42  ;;  %v12897_v63 = vpop.f32.mrb[107].mxu0  ;;  %v6704_v53 = vld [vmem:[#allocation3 + $0x18] sm:$0xff] }
 0x68c   : > { %6526 = vst.msk [vmem:[#allocation3 + $0x80] sm:$0x3] %vm900_vm3, %v6509_v8 }
 0x68d   : > { %6736 = vst.msk [vmem:[#allocation3 + $0x8] sm:$0xff] %vm883_vm2, %v6719_v3  ;;  %v6710_v3 = vld [vmem:[#allocation3 + $0x48] sm:$0xff] }
 0x68f   : > { %v6639_v15 = vpop.f32.mrb[108].mxu0 }
 0x690   : > { %v6720_v61 = vadd.f32 %v6703_v4, %v6639_v15  ;;  %v12900_v11 = vpop.f32.mrb[109].mxu0 }
 0x691   : > { %v6752_v50 = vld [vmem:[#allocation3] sm:$0xff]  ;;  %v6642_v18 = vpop.f32.mrb[110].mxu0 }
 0x692   : > { %v6776_v22 = vadd.f32 %v16165_v28, %v6752_v50  ;;  %6737 = vst.msk [vmem:[#allocation3 + $0x10] sm:$0xff] %vm883_vm2, %v6720_v61  ;;  %v6721_v43 = vadd.f32 %v6704_v53, %v6642_v18  ;;  %v12901_v57 = vpop.f32.mrb[111].mxu0  ;;  %v13723_v53 = vld [vmem:[%s17090_s5 + $0x38] sm:$0xff]  }
 0x694   : > { %v6753_v6 = vld [vmem:[#allocation3 + $0x8] sm:$0xff]  ;;  %v6793_v62 = vmax.f32 %v6776_v22, 0.0  ;;  %6738 = vst.msk [vmem:[#allocation3 + $0x18] sm:$0xff] %vm883_vm2, %v6721_v43 }
 0x695   : > { %v6777_v51 = vadd.f32 %v16165_v28, %v6753_v6 }
 0x696   : > { %6810 = vst.msk [vmem:[#allocation3] sm:$0xff] %vm883_vm2, %v6793_v62 }
 0x697   : > { %v6794_v46 = vmax.f32 %v6777_v51, 0.0  ;;  %v6647_v9 = vpop.f32.mrb[112].mxu0  ;;  %v6711_v51 = vld [vmem:[#allocation3 + $0x50] sm:$0xff] }
 0x698   : > { %v6722_v52 = vadd.f32 %v6705_v1, %v6647_v9  ;;  %v12904_v58 = vpop.f32.mrb[113].mxu0 }
 0x699   : > { %6811 = vst.msk [vmem:[#allocation3 + $0x8] sm:$0xff] %vm883_vm2, %v6794_v46  ;;  %v6754_v56 = vld [vmem:[#allocation3 + $0x10] sm:$0xff]  ;;  %v6650_v36 = vpop.f32.mrb[114].mxu0 }
 0x69a   : > { %v6778_v13 = vadd.f32 %v16165_v28, %v6754_v56  ;;  %6739 = vst.msk [vmem:[#allocation3 + $0x20] sm:$0xff] %vm883_vm2, %v6722_v52  ;;  %v6723_v59 = vadd.f32 %v6706_v48, %v6650_v36  ;;  %v12905_v12 = vpop.f32.mrb[115].mxu0  ;;  %v6712_v48 = vld [vmem:[#allocation3 + $0x58] sm:$0xff] }
 0x69b   : > { %v6755_v24 = vld [vmem:[#allocation3 + $0x18] sm:$0xff] }
 0x69c   : > { %v6795_v45 = vmax.f32 %v6778_v13, 0.0  ;;  %v6779_v37 = vadd.f32 %v16165_v28, %v6755_v24  ;;  %6740 = vst.msk [vmem:[#allocation3 + $0x28] sm:$0xff] %vm883_vm2, %v6723_v59 }
 0x69d   : > { %v6827_v23 = vld [vmem:[#allocation3] sm:$0xff] }
 0x69e   : > { %6812 = vst.msk [vmem:[#allocation3 + $0x10] sm:$0xff] %vm883_vm2, %v6795_v45  ;;  %v6796_v32 = vmax.f32 %v6779_v37, 0.0 }
 0x69f   : > { %v6655_v55 = vpop.f32.mrb[116].mxu0 }
 0x6a0   : > { %v16181_v25 = vld [vmem:[#allocation3 + $0x8] sm:$0xff]  ;;  %6813 = vst.msk [vmem:[#allocation3 + $0x18] sm:$0xff] %vm883_vm2, %v6796_v32  ;;  %v6724_v29 = vadd.f32 %v6707_v5, %v6655_v55  ;;  %v12908_v31 = vpop.f32.mrb[117].mxu0 }
 0x6a1   : > { %v6833_v14 = vpack.c.bf16 %v16181_v25, %v6827_v23  ;;  %v6756_v20 = vld [vmem:[#allocation3 + $0x20] sm:$0xff]  ;;  %v6658_v44 = vpop.f32.mrb[118].mxu0 }
 0x6a2   : > { %v6780_v21 = vadd.f32 %v16165_v28, %v6756_v20  ;;  %6741 = vst.msk [vmem:[#allocation3 + $0x30] sm:$0xff] %vm883_vm2, %v6724_v29  ;;  %v6725_v7 = vadd.f32 %v6708_v16, %v6658_v44  ;;  %v12909_v30 = vpop.f32.mrb[119].mxu0  ;;  %v6713_v29 = vld [vmem:[#allocation3 + $0x60] sm:$0xff] }
 0x6a3   : > { %12939 = vmatmul.mubr.msk.bf16.vlgmr.msra.gmra.mrb[92].mxu1 %vm883_vm2, %v6833_v14  ;;  %v6757_v33 = vld [vmem:[#allocation3 + $0x28] sm:$0xff] }
 0x6a4   : > { %12951 = vmatpush3.bf16.msra.mxu1 %v13720_v10  ;;  %12942 = vmatprep.mubr.msk.bf16.mxu1 %vm13904_vm0, %v17106_v35  ;;  %v6797_v17 = vmax.f32 %v6780_v21, 0.0  ;;  %v6781_v34 = vadd.f32 %v16165_v28, %v6757_v33  ;;  %6742 = vst.msk [vmem:[#allocation3 + $0x38] sm:$0xff] %vm883_vm2, %v6725_v7  ;;  %v6940_v31 = vld [vmem:[#allocation3 + $0x1] sm:$0xff] }
 0x6a5   : > { %12952 = vmatprep.subr.bf16.mxu1 %v17106_v35  ;;  %v16196_v27 = vld [vmem:[#allocation3 + $0x10] sm:$0xff]  ;;  %v13724_v21 = vld [vmem:[%s17090_s5 + $0x40] sm:$0xff]  }
 0x6a6   : > { %6814 = vst.msk [vmem:[#allocation3 + $0x20] sm:$0xff] %vm883_vm2, %v6797_v17  ;;  %v6798_v38 = vmax.f32 %v6781_v34, 0.0  ;;  %v7450_v0 = vpack.c.bf16 %v16196_v27, %v16181_v25  ;;  %v16204_v2 = vld [vmem:[#allocation3 + $0xe] sm:$0xff]  ;;  %v13743_v25 = vld [vmem:[%s17090_s5 + $0xd8] sm:$0xff]  }
 0x6a7   : > { %v6663_v49 = vpop.f32.mrb[120].mxu0  ;;  %v16206_v41 = vld [vmem:[#allocation3 + $0x16] sm:$0xff]  ;;  %v6941_v10 = vld [vmem:[#allocation3 + $0x9] sm:$0xff] }
 0x6a8   : > { %12953 = vmatpush3.bf16.msra.mxu1 %v13721_v60  ;;  %6815 = vst.msk [vmem:[#allocation3 + $0x28] sm:$0xff] %vm883_vm2, %v6798_v38  ;;  %v6726_v54 = vadd.f32 %v6709_v26, %v6663_v49  ;;  %v12912_v19 = vpop.f32.mrb[121].mxu0  ;;  %v16209_v39 = vld [vmem:[#allocation3 + $0x18] sm:$0xff]  ;;  %v7828_v42 = vpack.c.bf16 %v16206_v41, %v16204_v2  ;;  %v6946_v7 = vpack.c.bf16 %v6941_v10, %v6940_v31  ;;  %v6714_v60 = vld [vmem:[#allocation3 + $0x68] sm:$0xff] }
 0x6a9   : > { %12954 = vmatprep.subr.bf16.mxu1 %v17106_v35  ;;  %v6758_v40 = vld [vmem:[#allocation3 + $0x30] sm:$0xff]  ;;  %v6666_v8 = vpop.f32.mrb[122].mxu0  ;;  %v6834_v63 = vpack.c.bf16 %v16209_v39, %v16196_v27 }
 0x6aa   : > { %v6782_v15 = vadd.f32 %v16165_v28, %v6758_v40  ;;  %6743 = vst.msk [vmem:[#allocation3 + $0x40] sm:$0xff] %vm883_vm2, %v6726_v54  ;;  %v6727_v4 = vadd.f32 %v6710_v3, %v6666_v8  ;;  %v12913_v61 = vpop.f32.mrb[123].mxu0  ;;  %v13725_v54 = vld [vmem:[%s17090_s5 + $0x48] sm:$0xff]  }
 0x6ab   : > { %v6759_v11 = vld [vmem:[#allocation3 + $0x38] sm:$0xff]  ;;  %12943 = vmatmul.mubr.msk.bf16.gmra.mrb[96].mxu1 %vm883_vm2, %v6834_v63  ;;  %v6715_v3 = vld [vmem:[#allocation3 + $0x70] sm:$0xff] }
 0x6ac   : > { %v6799_v50 = vmax.f32 %v6782_v15, 0.0  ;;  %v6783_v18 = vadd.f32 %v16165_v28, %v6759_v11  ;;  %6744 = vst.msk [vmem:[#allocation3 + $0x48] sm:$0xff] %vm883_vm2, %v6727_v4  ;;  %12955 = vmatpush3.bf16.msra.mxu1 %v13722_v47  ;;  %12946 = vmatprep.mubr.msk.bf16.mxu1 %vm13904_vm0, %v17106_v35  ;;  %v6942_v11 = vld [vmem:[#allocation3 + $0x11] sm:$0xff] }
 0x6ad   : > { %v16226_v22 = vld [vmem:[#allocation3 + $0x20] sm:$0xff]  ;;  %12956 = vmatprep.subr.bf16.mxu1 %v17106_v35 }
 0x6ae   : > { %6816 = vst.msk [vmem:[#allocation3 + $0x30] sm:$0xff] %vm883_vm2, %v6799_v50  ;;  %v6800_v43 = vmax.f32 %v6783_v18, 0.0  ;;  %v7451_v57 = vpack.c.bf16 %v16226_v22, %v16209_v39  ;;  %v16234_v46 = vld [vmem:[#allocation3 + $0x1e] sm:$0xff]  ;;  %v7571_v39 = vld [vmem:[#allocation3 + $0x14] sm:$0xff] }
 0x6af   : > { %v16232_v6 = vld [vmem:[#allocation3 + $0x26] sm:$0xff]  ;;  %v6671_v62 = vpop.f32.mrb[124].mxu0  ;;  %v6943_v40 = vld [vmem:[#allocation3 + $0x19] sm:$0xff] }
 0x6b0   : > { %6817 = vst.msk [vmem:[#allocation3 + $0x38] sm:$0xff] %vm883_vm2, %v6800_v43  ;;  %v6728_v9 = vadd.f32 %v6711_v51, %v6671_v62  ;;  %v12916_v1 = vpop.f32.mrb[125].mxu0  ;;  %v6832_v52 = vld [vmem:[#allocation3 + $0x28] sm:$0xf]  ;;  %12957 = vmatpush3.bf16.msra.mxu1 %v13723_v53  ;;  %v7829_v58 = vpack.c.bf16 %v16232_v6, %v16234_v46  ;;  %v13726_v50 = vld [vmem:[%s17090_s5 + $0x50] sm:$0xff]   ;;  %v6947_v51 = vpack.c.bf16 %v6943_v40, %v6942_v11 }
 0x6b1   : > { %v6760_v56 = vld [vmem:[#allocation3 + $0x40] sm:$0xff]  ;;  %v6674_v36 = vpop.f32.mrb[126].mxu0  ;;  %v6835_v13 = vpack.c.bf16 %v6832_v52, %v16226_v22  ;;  %12970 = vmatprep.subr.bf16.mxu1 %v17106_v35  ;;  %v6716_v62 = vld [vmem:[#allocation3 + $0x78] sm:$0xff]  ;;  %v7570_v22 = vld [vmem:[#allocation3 + $0xc] sm:$0xff] }
 0x6b2   : > { %v6784_v59 = vadd.f32 %v16165_v28, %v6760_v56  ;;  %6745 = vst.msk [vmem:[#allocation3 + $0x50] sm:$0xff] %vm883_vm2, %v6728_v9  ;;  %v6729_v12 = vadd.f32 %v6712_v48, %v6674_v36  ;;  %v12917_v24 = vpop.f32.mrb[127].mxu0 }
 0x6b3   : > { %v6761_v45 = vld [vmem:[#allocation3 + $0x48] sm:$0xff]  ;;  %12947 = vmatmul.mubr.msk.bf16.gmra.mrb[100].mxu1 %vm883_vm2, %v6835_v13  ;;  %v13727_v13 = vld [vmem:[%s17090_s5 + $0x58] sm:$0xff]  }
 0x6b4   : > { %v6801_v37 = vmax.f32 %v6784_v59, 0.0  ;;  %v6785_v32 = vadd.f32 %v16165_v28, %v6761_v45  ;;  %6746 = vst.msk [vmem:[#allocation3 + $0x58] sm:$0xff] %vm883_vm2, %v6729_v12  ;;  %12958 = vmatprep.mubr.msk.bf16.mxu1 %vm13904_vm0, %v17106_v35  ;;  %v6944_v12 = vld [vmem:[#allocation3 + $0x21] sm:$0xff]  ;;  %v6945_v24 = vld [vmem:[#allocation3 + $0x29] sm:$0xf] }
 0x6b5   : > { %v16249_v55 = vld [vmem:[#allocation3 + $0x2c] sm:$0xff] }
 0x6b6   : > { %6818 = vst.msk [vmem:[#allocation3 + $0x40] sm:$0xff] %vm883_vm2, %v6801_v37  ;;  %v6802_v23 = vmax.f32 %v6785_v32, 0.0  ;;  %v6717_v37 = vld [vmem:[#allocation3 + $0x80] sm:$0x3]  ;;  %v7449_v27 = vld [vmem:[#allocation3 + $0x30] sm:$0xf] }
 0x6b7   : > { %v16251_v5 = vld [vmem:[#allocation3 + $0x34] sm:$0xff]  ;;  %v6679_v14 = vpop.f32.mrb[128].mxu0 }
 0x6b8   : > { %v8584_v20 = vpack.c.bf16 %v16251_v5, %v16249_v55  ;;  %6819 = vst.msk [vmem:[#allocation3 + $0x48] sm:$0xff] %vm883_vm2, %v6802_v23  ;;  %v6730_v44 = vadd.f32 %v6713_v29, %v6679_v14  ;;  %v12920_v16 = vpop.f32.mrb[129].mxu0  ;;  %v6948_v29 = vpack.c.bf16 %v6945_v24, %v6944_v12  ;;  %v7199_v12 = vpack.c.bf16 %v16234_v46, %v16206_v41  ;;  %v13735_v24 = vld [vmem:[%s17090_s5 + $0x98] sm:$0xff]   ;;  %v7827_v41 = vld [vmem:[#allocation3 + $0x36] sm:$0xf] }
 0x6b9   : > { %v6762_v30 = vld [vmem:[#allocation3 + $0x50] sm:$0xff]  ;;  %v6682_v33 = vpop.f32.mrb[130].mxu0 }
 0x6ba   : > { %v6786_v17 = vadd.f32 %v16165_v28, %v6762_v30  ;;  %6747 = vst.msk [vmem:[#allocation3 + $0x60] sm:$0xff] %vm883_vm2, %v6730_v44  ;;  %v6731_v34 = vadd.f32 %v6714_v60, %v6682_v33  ;;  %v12921_v38 = vpop.f32.mrb[131].mxu0 }
 0x6bb   : > { %v6763_v49 = vld [vmem:[#allocation3 + $0x58] sm:$0xff]  ;;  %12959 = vmatmul.mubr.msk.bf16.vlgmr.msra.gmra.mrb[104].mxu1 %vm883_vm2, %v6946_v7  ;;  %v7066_v38 = vld [vmem:[#allocation3 + $0x2] sm:$0xff] }
 0x6bc   : > { %v6803_v26 = vmax.f32 %v6786_v17, 0.0  ;;  %v6787_v47 = vadd.f32 %v16165_v28, %v6763_v49  ;;  %6748 = vst.msk [vmem:[#allocation3 + $0x68] sm:$0xff] %vm883_vm2, %v6731_v34  ;;  %12971 = vmatpush3.bf16.msra.mxu1 %v13724_v21  ;;  %12962 = vmatprep.mubr.msk.bf16.mxu1 %vm13904_vm0, %v17106_v35  ;;  %v7067_v17 = vld [vmem:[#allocation3 + $0xa] sm:$0xff] }
 0x6bd   : > { %12972 = vmatprep.subr.bf16.mxu1 %v17106_v35  ;;  %v16271_v63 = vld [vmem:[#allocation3 + $0x3c] sm:$0xff]  ;;  %v13728_v49 = vld [vmem:[%s17090_s5 + $0x60] sm:$0xff]  }
 0x6be   : > { %6820 = vst.msk [vmem:[#allocation3 + $0x50] sm:$0xff] %vm883_vm2, %v6803_v26  ;;  %v6804_v19 = vmax.f32 %v6787_v47, 0.0  ;;  %v7072_v26 = vpack.c.bf16 %v7067_v17, %v7066_v38  ;;  %v7323_v17 = vld [vmem:[#allocation3 + $0x2f] sm:$0xf] }
 0x6bf   : > { %v6687_v8 = vpop.f32.mrb[132].mxu0  ;;  %v16273_v15 = vld [vmem:[#allocation3 + $0x44] sm:$0xff] }
 0x6c0   : > { %6821 = vst.msk [vmem:[#allocation3 + $0x58] sm:$0xff] %vm883_vm2, %v6804_v19  ;;  %v6732_v4 = vadd.f32 %v6715_v3, %v6687_v8  ;;  %v12924_v61 = vpop.f32.mrb[133].mxu0  ;;  %12973 = vmatpush3.bf16.msra.mxu1 %v13725_v54  ;;  %v8585_v18 = vpack.c.bf16 %v16273_v15, %v16271_v63  ;;  %v16298_v16 = vld [vmem:[#allocation3 + $0x42] sm:$0xff] }
 0x6c1   : > { %v6764_v53 = vld [vmem:[#allocation3 + $0x60] sm:$0xff]  ;;  %v6690_v43 = vpop.f32.mrb[134].mxu0  ;;  %12974 = vmatprep.subr.bf16.mxu1 %v17106_v35 }
 0x6c2   : > { %v6788_v9 = vadd.f32 %v16165_v28, %v6764_v53  ;;  %6749 = vst.msk [vmem:[#allocation3 + $0x70] sm:$0xff] %vm883_vm2, %v6732_v4  ;;  %v6733_v1 = vadd.f32 %v6716_v62, %v6690_v43  ;;  %v12925_v52 = vpop.f32.mrb[135].mxu0  ;;  %v13729_v4 = vld [vmem:[%s17090_s5 + $0x68] sm:$0xff]   ;;  %v7069_v61 = vld [vmem:[#allocation3 + $0x1a] sm:$0xff] }
 0x6c3   : > { %v6765_v56 = vld [vmem:[#allocation3 + $0x68] sm:$0xff]  ;;  %12963 = vmatmul.mubr.msk.bf16.gmra.mrb[96].mxu1 %vm883_vm2, %v6947_v51  ;;  %v7068_v53 = vld [vmem:[#allocation3 + $0x12] sm:$0xff]  ;;  %v13731_v51 = vld [vmem:[%s17090_s5 + $0x78] sm:$0xff]  }
 0x6c4   : > { %v6805_v36 = vmax.f32 %v6788_v9, 0.0  ;;  %v6789_v48 = vadd.f32 %v16165_v28, %v6765_v56  ;;  %6750 = vst.msk [vmem:[#allocation3 + $0x78] sm:$0xff] %vm883_vm2, %v6733_v1  ;;  %12975 = vmatpush3.bf16.msra.mxu1 %v13726_v50  ;;  %12966 = vmatprep.mubr.msk.bf16.mxu1 %vm13904_vm0, %v17106_v35  ;;  %v13730_v43 = vld [vmem:[%s17090_s5 + $0x70] sm:$0xff]   ;;  %v7073_v62 = vpack.c.bf16 %v7069_v61, %v7068_v53  ;;  %v7070_v9 = vld [vmem:[#allocation3 + $0x22] sm:$0xff]  ;;  %v7071_v1 = vld [vmem:[#allocation3 + $0x2a] sm:$0xf] }
 0x6c5   : > { %12976 = vmatprep.subr.bf16.mxu1 %v17106_v35  ;;  %v16300_v21 = vld [vmem:[#allocation3 + $0x4a] sm:$0xff]  ;;  %v7074_v52 = vpack.c.bf16 %v7071_v1, %v7070_v9  ;;  %v7572_v53 = vld [vmem:[#allocation3 + $0x1c] sm:$0xff]  ;;  %v7575_v9 = vld [vmem:[#allocation3 + $0x34] sm:$0xf] }
 0x6c6   : > { %6822 = vst.msk [vmem:[#allocation3 + $0x60] sm:$0xff] %vm883_vm2, %v6805_v36  ;;  %v6806_v59 = vmax.f32 %v6789_v48, 0.0  ;;  %v8963_v30 = vpack.c.bf16 %v16300_v21, %v16298_v16  ;;  %v7192_v56 = vld [vmem:[#allocation3 + $0x6] sm:$0xff]  ;;  %v7578_v1 = vpack.c.bf16 %v7575_v9, %v16249_v55  ;;  %v8076_v9 = vld [vmem:[#allocation3 + $0x35] sm:$0xff] }
 0x6c7   : > { %v6695_v45 = vpop.f32.mrb[136].mxu0  ;;  %v13732_v36 = vld [vmem:[%s17090_s5 + $0x80] sm:$0xff]   ;;  %v7198_v48 = vpack.c.bf16 %v16204_v2, %v7192_v56  ;;  %v13755_v2 = vld [vmem:[%s17090_s5 + $0x138] sm:$0xff]  }
 0x6c8   : > { %6823 = vst.msk [vmem:[#allocation3 + $0x68] sm:$0xff] %vm883_vm2, %v6806_v59  ;;  %v6734_v32 = vadd.f32 %v6717_v37, %v6695_v45  ;;  %v12928_v10 = vpop.f32.mrb[137].mxu0  ;;  %12977 = vmatpush3.bf16.msra.mxu1 %v13727_v13  ;;  %v13733_v13 = vld [vmem:[%s17090_s5 + $0x88] sm:$0xff]   ;;  %v13734_v59 = vld [vmem:[%s17090_s5 + $0x90] sm:$0xff]   ;;  %v16444_v61 = vld [vmem:[#allocation3 + $0x24] sm:$0xff] }
 0x6c9   : > { %v6766_v23 = vld [vmem:[#allocation3 + $0x70] sm:$0xff]  ;;  %v6698_v14 = vpop.f32.mrb[138].mxu0  ;;  %12990 = vmatprep.subr.bf16.mxu1 %v17106_v35  ;;  %v7318_v10 = vld [vmem:[#allocation3 + $0x7] sm:$0xff] }
 0x6ca   : > { %v6790_v31 = vadd.f32 %v16165_v28, %v6766_v23  ;;  %6751 = vst.msk [vmem:[#allocation3 + $0x80] sm:$0x3] %vm900_vm3, %v6734_v32  ;;  %v12929_v44 = vpop.f32.mrb[139].mxu0  ;;  %v7197_v45 = vld [vmem:[#allocation3 + $0x2e] sm:$0xf] }
 0x6cb   : > { %v6767_v7 = vld [vmem:[#allocation3 + $0x78] sm:$0xff]  ;;  %12967 = vmatmul.mubr.msk.bf16.gmra.mrb[108].mxu1 %vm883_vm2, %v6948_v29  ;;  %v7200_v37 = vpack.c.bf16 %v7197_v45, %v16232_v6  ;;  %v7319_v32 = vld [vmem:[#allocation3 + $0xf] sm:$0xff] }
 0x6cc   : > { %v6807_v33 = vmax.f32 %v6790_v31, 0.0  ;;  %v6791_v60 = vadd.f32 %v16165_v28, %v6767_v7  ;;  %12978 = vmatprep.mubr.msk.bf16.mxu1 %vm13904_vm0, %v17106_v35  ;;  %v13736_v23 = vld [vmem:[%s17090_s5 + $0xa0] sm:$0xff]   ;;  %v7324_v14 = vpack.c.bf16 %v7319_v32, %v7318_v10  ;;  %v13737_v29 = vld [vmem:[%s17090_s5 + $0xa8] sm:$0xff]   ;;  %v7321_v31 = vld [vmem:[#allocation3 + $0x1f] sm:$0xff] }
 0x6cd   : > { %v16313_v54 = vld [vmem:[#allocation3 + $0x60] sm:$0xff]  ;;  %v7320_v44 = vld [vmem:[#allocation3 + $0x17] sm:$0xff]  ;;  %v7696_v56 = vld [vmem:[#allocation3 + $0xd] sm:$0xff] }
 0x6ce   : > { %6824 = vst.msk [vmem:[#allocation3 + $0x70] sm:$0xff] %vm883_vm2, %v6807_v33  ;;  %v6808_v34 = vmax.f32 %v6791_v60, 0.0  ;;  %v13738_v7 = vld [vmem:[%s17090_s5 + $0xb0] sm:$0xff]   ;;  %v7325_v33 = vpack.c.bf16 %v7321_v31, %v7320_v44  ;;  %v13739_v60 = vld [vmem:[%s17090_s5 + $0xb8] sm:$0xff]   ;;  %v16487_v10 = vld [vmem:[#allocation3 + $0x2d] sm:$0xff] }
 0x6cf   : > { %v16315_v19 = vld [vmem:[#allocation3 + $0x68] sm:$0xff]  ;;  %v7701_v32 = vld [vmem:[#allocation3 + $0x35] sm:$0xf] }
 0x6d0   : > { %6825 = vst.msk [vmem:[#allocation3 + $0x78] sm:$0xff] %vm883_vm2, %v6808_v34  ;;  %v9719_v8 = vpack.c.bf16 %v16315_v19, %v16313_v54  ;;  %v7322_v34 = vld [vmem:[#allocation3 + $0x27] sm:$0xff]  ;;  %v13754_v31 = vld [vmem:[%s17090_s5 + $0x130] sm:$0xff]  }
 0x6d1   : > { %v6768_v47 = vld [vmem:[#allocation3 + $0x80] sm:$0x3]  ;;  %v7326_v38 = vpack.c.bf16 %v7323_v17, %v7322_v34  ;;  %v7954_v17 = vpack.c.bf16 %v16249_v55, %v16444_v61  ;;  %v13757_v34 = vld [vmem:[%s17090_s5 + $0x148] sm:$0xff]  }
 0x6d2   : > { %v6792_v40 = vadd.f32 %v16165_v28, %v6768_v47  ;;  %v16328_v28 = vld [vmem:[#allocation3 + $0x66] sm:$0xff]  ;;  %v13742_v47 = vld [vmem:[%s17090_s5 + $0xd0] sm:$0xff]  }
 0x6d3   : > { %12979 = vmatmul.mubr.msk.bf16.vlgmr.msra.gmra.mrb[112].mxu1 %vm883_vm2, %v7072_v26  ;;  %v13741_v26 = vld [vmem:[%s17090_s5 + $0xc8] sm:$0xff]   ;;  %v13779_v55 = vld [vmem:[%s17090_s5 + $0x1f8] sm:$0xff]  }
 0x6d4   : > { %v6809_v3 = vmax.f32 %v6792_v40, 0.0  ;;  %12991 = vmatpush3.bf16.msra.mxu1 %v13728_v49  ;;  %12982 = vmatprep.mubr.msk.bf16.mxu1 %vm13904_vm0, %v17106_v35  ;;  %v13740_v49 = vld [vmem:[%s17090_s5 + $0xc0] sm:$0xff]  }
 0x6d5   : > { %12992 = vmatprep.subr.bf16.mxu1 %v17106_v35  ;;  %v16330_v11 = vld [vmem:[#allocation3 + $0x6e] sm:$0xff] }
 0x6d6   : > { %6826 = vst.msk [vmem:[#allocation3 + $0x80] sm:$0x3] %vm900_vm3, %v6809_v3  ;;  %v10097_v50 = vpack.c.bf16 %v16330_v11, %v16328_v28  ;;  %v7576_v3 = vpack.c.bf16 %v7571_v39, %v7570_v22 }
 0x6d8   : > { %12993 = vmatpush3.bf16.msra.mxu1 %v13729_v4  ;;  %v13745_v4 = vld [vmem:[%s17090_s5 + $0xe8] sm:$0xff]  }
 0x6d9   : > { %12994 = vmatprep.subr.bf16.mxu1 %v17106_v35 }
 0x6db   : > { %12983 = vmatmul.mubr.msk.bf16.gmra.mrb[96].mxu1 %vm883_vm2, %v7073_v62  ;;  %v7577_v62 = vpack.c.bf16 %v16444_v61, %v7572_v53  ;;  %v13760_v61 = vld [vmem:[%s17090_s5 + $0x160] sm:$0xff]  }
 0x6dc   : > { %12995 = vmatpush3.bf16.msra.mxu1 %v13730_v43  ;;  %12986 = vmatprep.mubr.msk.bf16.mxu1 %vm13904_vm0, %v17106_v35  ;;  %v13746_v43 = vld [vmem:[%s17090_s5 + $0xf0] sm:$0xff]  }
 0x6dd   : > { %12996 = vmatprep.subr.bf16.mxu1 %v17106_v35 }
 0x6e0   : > { %12997 = vmatpush3.bf16.msra.mxu1 %v13731_v51  ;;  %v13747_v51 = vld [vmem:[%s17090_s5 + $0xf8] sm:$0xff]  }
 0x6e1   : > { %13010 = vmatprep.subr.bf16.mxu1 %v17106_v35 }
 0x6e3   : > { %12987 = vmatmul.mubr.msk.bf16.gmra.mrb[116].mxu1 %vm883_vm2, %v7074_v52  ;;  %v7697_v52 = vld [vmem:[#allocation3 + $0x15] sm:$0xff] }
 0x6e4   : > { %12998 = vmatprep.mubr.msk.bf16.mxu1 %vm13904_vm0, %v17106_v35 }
 0x6eb   : > { %12999 = vmatmul.mubr.msk.bf16.vlgmr.msra.gmra.mrb[120].mxu1 %vm883_vm2, %v7198_v48  ;;  %v7702_v48 = vpack.c.bf16 %v7697_v52, %v7696_v56  ;;  %v13763_v56 = vld [vmem:[%s17090_s5 + $0x178] sm:$0xff]  }
 0x6ec   : > { %13011 = vmatpush3.bf16.msra.mxu1 %v13732_v36  ;;  %13002 = vmatprep.mubr.msk.bf16.mxu1 %vm13904_vm0, %v17106_v35  ;;  %v13748_v36 = vld [vmem:[%s17090_s5 + $0x100] sm:$0xff]  }
 0x6ed   : > { %13012 = vmatprep.subr.bf16.mxu1 %v17106_v35 }
 0x6f0   : > { %13013 = vmatpush3.bf16.msra.mxu1 %v13733_v13  ;;  %v13749_v13 = vld [vmem:[%s17090_s5 + $0x108] sm:$0xff]  }
 0x6f1   : > { %13014 = vmatprep.subr.bf16.mxu1 %v17106_v35 }
 0x6f3   : > { %13003 = vmatmul.mubr.msk.bf16.gmra.mrb[96].mxu1 %vm883_vm2, %v7199_v12  ;;  %v7698_v12 = vld [vmem:[#allocation3 + $0x1d] sm:$0xff] }
 0x6f4   : > { %13015 = vmatpush3.bf16.msra.mxu1 %v13734_v59  ;;  %13006 = vmatprep.mubr.msk.bf16.mxu1 %vm13904_vm0, %v17106_v35  ;;  %v16473_v59 = vld [vmem:[#allocation3 + $0x25] sm:$0xff] }
 0x6f5   : > { %13016 = vmatprep.subr.bf16.mxu1 %v17106_v35  ;;  %v7703_v45 = vpack.c.bf16 %v16473_v59, %v7698_v12  ;;  %v8080_v53 = vpack.c.bf16 %v16487_v10, %v16473_v59 }
 0x6f8   : > { %13017 = vmatpush3.bf16.msra.mxu1 %v13735_v24  ;;  %v13750_v24 = vld [vmem:[%s17090_s5 + $0x110] sm:$0xff]  }
 0x6f9   : > { %13030 = vmatprep.subr.bf16.mxu1 %v17106_v35 }
 0x6fb   : > { %13007 = vmatmul.mubr.msk.bf16.gmra.mrb[124].mxu1 %vm883_vm2, %v7200_v37  ;;  %v13751_v37 = vld [vmem:[%s17090_s5 + $0x118] sm:$0xff]  }
 0x6fc   : > { %13018 = vmatprep.mubr.msk.bf16.mxu1 %vm13904_vm0, %v17106_v35 }
 0x703   : > { %13019 = vmatmul.mubr.msk.bf16.vlgmr.msra.gmra.mrb[128].mxu1 %vm883_vm2, %v7324_v14  ;;  %v13752_v14 = vld [vmem:[%s17090_s5 + $0x120] sm:$0xff]  }
 0x704   : > { %13031 = vmatpush3.bf16.msra.mxu1 %v13736_v23  ;;  %13022 = vmatprep.mubr.msk.bf16.mxu1 %vm13904_vm0, %v17106_v35  ;;  %v7704_v23 = vpack.c.bf16 %v7701_v32, %v16487_v10 }
 0x705   : > { %13032 = vmatprep.subr.bf16.mxu1 %v17106_v35 }
 0x708   : > { %13033 = vmatpush3.bf16.msra.mxu1 %v13737_v29  ;;  %v13753_v29 = vld [vmem:[%s17090_s5 + $0x128] sm:$0xff]  }
 0x709   : > { %13034 = vmatprep.subr.bf16.mxu1 %v17106_v35 }
 0x70b   : > { %13023 = vmatmul.mubr.msk.bf16.gmra.mrb[96].mxu1 %vm883_vm2, %v7325_v33 }
 0x70c   : > { %13035 = vmatpush3.bf16.msra.mxu1 %v13738_v7  ;;  %13026 = vmatprep.mubr.msk.bf16.mxu1 %vm13904_vm0, %v17106_v35 }
 0x70d   : > { %13036 = vmatprep.subr.bf16.mxu1 %v17106_v35 }
 0x710   : > { %13037 = vmatpush3.bf16.msra.mxu1 %v13739_v60  ;;  %v13756_v60 = vld [vmem:[%s17090_s5 + $0x140] sm:$0xff]  }
 0x711   : > { %13050 = vmatprep.subr.bf16.mxu1 %v17106_v35 }
 0x713   : > { %13027 = vmatmul.mubr.msk.bf16.gmra.mrb[132].mxu1 %vm883_vm2, %v7326_v38  ;;  %v13758_v38 = vld [vmem:[%s17090_s5 + $0x150] sm:$0xff]  }
 0x714   : > { %13038 = vmatprep.mubr.msk.bf16.mxu1 %vm13904_vm0, %v17106_v35 }
 0x71b   : > { %13039 = vmatmul.mubr.msk.bf16.vlgmr.msra.gmra.mrb[136].mxu1 %vm883_vm2, %v7450_v0  ;;  %v7448_v0 = vld [vmem:[#allocation3 + $0x28] sm:$0xff] }
 0x71c   : > { %13051 = vmatpush3.bf16.msra.mxu1 %v13740_v49  ;;  %13042 = vmatprep.mubr.msk.bf16.mxu1 %vm13904_vm0, %v17106_v35  ;;  %v7452_v40 = vpack.c.bf16 %v7449_v27, %v7448_v0  ;;  %v7955_v49 = vpack.c.bf16 %v16271_v63, %v16251_v5 }
 0x71d   : > { %13052 = vmatprep.subr.bf16.mxu1 %v17106_v35 }
 0x720   : > { %13053 = vmatpush3.bf16.msra.mxu1 %v13741_v26  ;;  %v13759_v26 = vld [vmem:[%s17090_s5 + $0x158] sm:$0xff]  }
 0x721   : > { %13054 = vmatprep.subr.bf16.mxu1 %v17106_v35 }
 0x723   : > { %13043 = vmatmul.mubr.msk.bf16.gmra.mrb[96].mxu1 %vm883_vm2, %v7451_v57  ;;  %v13744_v57 = vld [vmem:[%s17090_s5 + $0xe0] sm:$0xff]  }
 0x724   : > { %13055 = vmatpush3.bf16.msra.mxu1 %v13742_v47  ;;  %13046 = vmatprep.mubr.msk.bf16.mxu1 %vm13904_vm0, %v17106_v35 }
 0x725   : > { %13056 = vmatprep.subr.bf16.mxu1 %v17106_v35 }
 0x728   : > { %13057 = vmatpush3.bf16.msra.mxu1 %v13743_v25  ;;  %v7953_v25 = vld [vmem:[#allocation3 + $0x4c] sm:$0xf] }
 0x729   : > { %13070 = vmatprep.subr.bf16.mxu1 %v17106_v35  ;;  %v7956_v39 = vpack.c.bf16 %v7953_v25, %v16273_v15 }
 0x72b   : > { %13047 = vmatmul.mubr.msk.bf16.gmra.mrb[140].mxu1 %vm883_vm2, %v7452_v40 }
 0x72c   : > { %13058 = vmatprep.mubr.msk.bf16.mxu1 %vm13904_vm0, %v17106_v35 }
 0x733   : > { %13059 = vmatmul.mubr.msk.bf16.vlgmr.msra.gmra.mrb[144].mxu1 %vm883_vm2, %v7576_v3 }
 0x734   : > { %13071 = vmatpush3.bf16.msra.mxu1 %v13744_v57  ;;  %13062 = vmatprep.mubr.msk.bf16.mxu1 %vm13904_vm0, %v17106_v35 }
 0x735   : > { %13072 = vmatprep.subr.bf16.mxu1 %v17106_v35 }
 0x738   : > { %13073 = vmatpush3.bf16.msra.mxu1 %v13745_v4 }
 0x739   : > { %13074 = vmatprep.subr.bf16.mxu1 %v17106_v35 }
 0x73b   : > { %13063 = vmatmul.mubr.msk.bf16.gmra.mrb[96].mxu1 %vm883_vm2, %v7577_v62  ;;  %v13761_v62 = vld [vmem:[%s17090_s5 + $0x168] sm:$0xff]  }
 0x73c   : > { %13075 = vmatpush3.bf16.msra.mxu1 %v13746_v43  ;;  %13066 = vmatprep.mubr.msk.bf16.mxu1 %vm13904_vm0, %v17106_v35 }
 0x73d   : > { %13076 = vmatprep.subr.bf16.mxu1 %v17106_v35 }
 0x740   : > { %13077 = vmatpush3.bf16.msra.mxu1 %v13747_v51  ;;  %v8077_v51 = vld [vmem:[#allocation3 + $0x3d] sm:$0xff] }
 0x741   : > { %13090 = vmatprep.subr.bf16.mxu1 %v17106_v35  ;;  %v8081_v52 = vpack.c.bf16 %v8077_v51, %v8076_v9  ;;  %v8328_v51 = vld [vmem:[#allocation3 + $0x3a] sm:$0xff] }
 0x742   : > { %v13770_v9 = vld [vmem:[%s17090_s5 + $0x1b0] sm:$0xff]  }
 0x743   : > { %13067 = vmatmul.mubr.msk.bf16.gmra.mrb[148].mxu1 %vm883_vm2, %v7578_v1  ;;  %v13762_v1 = vld [vmem:[%s17090_s5 + $0x170] sm:$0xff]  }
 0x744   : > { %13078 = vmatprep.mubr.msk.bf16.mxu1 %vm13904_vm0, %v17106_v35 }
 0x74b   : > { %13079 = vmatmul.mubr.msk.bf16.vlgmr.msra.gmra.mrb[152].mxu1 %vm883_vm2, %v7702_v48  ;;  %v8079_v48 = vld [vmem:[#allocation3 + $0x4d] sm:$0xf] }
 0x74c   : > { %13091 = vmatpush3.bf16.msra.mxu1 %v13748_v36  ;;  %13082 = vmatprep.mubr.msk.bf16.mxu1 %vm13904_vm0, %v17106_v35 }
 0x74d   : > { %13092 = vmatprep.subr.bf16.mxu1 %v17106_v35 }
 0x750   : > { %13093 = vmatpush3.bf16.msra.mxu1 %v13749_v13 }
 0x751   : > { %13094 = vmatprep.subr.bf16.mxu1 %v17106_v35 }
 0x753   : > { %13083 = vmatmul.mubr.msk.bf16.gmra.mrb[96].mxu1 %vm883_vm2, %v7703_v45  ;;  %v8078_v45 = vld [vmem:[#allocation3 + $0x45] sm:$0xff] }
 0x754   : > { %13095 = vmatpush3.bf16.msra.mxu1 %v13750_v24  ;;  %13086 = vmatprep.mubr.msk.bf16.mxu1 %vm13904_vm0, %v17106_v35  ;;  %v8082_v10 = vpack.c.bf16 %v8079_v48, %v8078_v45 }
 0x755   : > { %13096 = vmatprep.subr.bf16.mxu1 %v17106_v35 }
 0x758   : > { %13097 = vmatpush3.bf16.msra.mxu1 %v13751_v37 }
 0x759   : > { %13110 = vmatprep.subr.bf16.mxu1 %v17106_v35 }
 0x75b   : > { %13087 = vmatmul.mubr.msk.bf16.gmra.mrb[156].mxu1 %vm883_vm2, %v7704_v23 }
 0x75c   : > { %13098 = vmatprep.mubr.msk.bf16.mxu1 %vm13904_vm0, %v17106_v35 }
 0x763   : > { %13099 = vmatmul.mubr.msk.bf16.vlgmr.msra.gmra.mrb[160].mxu1 %vm883_vm2, %v7828_v42  ;;  %v16521_v42 = vld [vmem:[#allocation3 + $0x2e] sm:$0xff] }
 0x764   : > { %13111 = vmatpush3.bf16.msra.mxu1 %v13752_v14  ;;  %13102 = vmatprep.mubr.msk.bf16.mxu1 %vm13904_vm0, %v17106_v35  ;;  %v7830_v44 = vpack.c.bf16 %v7827_v41, %v16521_v42  ;;  %v8206_v41 = vpack.c.bf16 %v16521_v42, %v16232_v6  ;;  %v13766_v6 = vld [vmem:[%s17090_s5 + $0x190] sm:$0xff]  }
 0x765   : > { %13112 = vmatprep.subr.bf16.mxu1 %v17106_v35 }
 0x768   : > { %13113 = vmatpush3.bf16.msra.mxu1 %v13753_v29 }
 0x769   : > { %13114 = vmatprep.subr.bf16.mxu1 %v17106_v35 }
 0x76b   : > { %13103 = vmatmul.mubr.msk.bf16.gmra.mrb[96].mxu1 %vm883_vm2, %v7829_v58 }
 0x76c   : > { %13115 = vmatpush3.bf16.msra.mxu1 %v13754_v31  ;;  %13106 = vmatprep.mubr.msk.bf16.mxu1 %vm13904_vm0, %v17106_v35 }
 0x76d   : > { %13116 = vmatprep.subr.bf16.mxu1 %v17106_v35 }
 0x770   : > { %13117 = vmatpush3.bf16.msra.mxu1 %v13755_v2  ;;  %v13764_v2 = vld [vmem:[%s17090_s5 + $0x180] sm:$0xff]  }
 0x771   : > { %13130 = vmatprep.subr.bf16.mxu1 %v17106_v35 }
 0x773   : > { %13107 = vmatmul.mubr.msk.bf16.gmra.mrb[164].mxu1 %vm883_vm2, %v7830_v44 }
 0x774   : > { %13118 = vmatprep.mubr.msk.bf16.mxu1 %vm13904_vm0, %v17106_v35 }
 0x776   : > { %v6911_v46 = vpop.f32.mrb[92].mxu1 }
 0x777   : > { %v12940_v58 = vpop.f32.mrb[93].mxu1 }
 0x778   : > { %v6914_v7 = vpop.f32.mrb[94].mxu1  ;;  %v8203_v58 = vld [vmem:[#allocation3 + $0x3e] sm:$0xff] }
 0x779   : > { %v12941_v33 = vpop.f32.mrb[95].mxu1  ;;  %v8202_v7 = vld [vmem:[#allocation3 + $0x36] sm:$0xff] }
 0x77a   : > { %v8207_v42 = vpack.c.bf16 %v8203_v58, %v8202_v7  ;;  %v13767_v33 = vld [vmem:[%s17090_s5 + $0x198] sm:$0xff]  }
 0x77b   : > { %13119 = vmatmul.mubr.msk.bf16.vlgmr.msra.gmra.mrb[168].mxu1 %vm883_vm2, %v7954_v17  ;;  %v8205_v17 = vld [vmem:[#allocation3 + $0x4e] sm:$0xf]  ;;  %v8455_v58 = vld [vmem:[#allocation3 + $0x43] sm:$0xff]  ;;  %v8454_v7 = vld [vmem:[#allocation3 + $0x3b] sm:$0xff] }
 0x77c   : > { %13131 = vmatpush3.bf16.msra.mxu1 %v13756_v60  ;;  %13122 = vmatprep.mubr.msk.bf16.mxu1 %vm13904_vm0, %v17106_v35 }
 0x77d   : > { %13132 = vmatprep.subr.bf16.mxu1 %v17106_v35 }
 0x780   : > { %13133 = vmatpush3.bf16.msra.mxu1 %v13757_v34 }
 0x781   : > { %13134 = vmatprep.subr.bf16.mxu1 %v17106_v35 }
 0x783   : > { %13123 = vmatmul.mubr.msk.bf16.gmra.mrb[96].mxu1 %vm883_vm2, %v7955_v49 }
 0x784   : > { %13135 = vmatpush3.bf16.msra.mxu1 %v13758_v38  ;;  %13126 = vmatprep.mubr.msk.bf16.mxu1 %vm13904_vm0, %v17106_v35 }
 0x785   : > { %13136 = vmatprep.subr.bf16.mxu1 %v17106_v35 }
 0x786   : > { %v6927_v47 = vpop.f32.mrb[100].mxu1 }
 0x787   : > { %v12948_v27 = vpop.f32.mrb[101].mxu1 }
 0x788   : > { %v6930_v0 = vpop.f32.mrb[102].mxu1  ;;  %13137 = vmatpush3.bf16.msra.mxu1 %v13759_v26 }
 0x789   : > { %6939 = vst [vmem:[#allocation4 + $0x28] sm:$0xf] %v6930_v0  ;;  %v12949_v40 = vpop.f32.mrb[103].mxu1  ;;  %13150 = vmatprep.subr.bf16.mxu1 %v17106_v35 }
 0x78a   : > { %v16612_v40 = vld [vmem:[#allocation3 + $0x32] sm:$0xff] }
 0x78b   : > { %13127 = vmatmul.mubr.msk.bf16.gmra.mrb[172].mxu1 %vm883_vm2, %v7956_v39 }
 0x78c   : > { %13138 = vmatprep.mubr.msk.bf16.mxu1 %vm13904_vm0, %v17106_v35 }
 0x78e   : > { %v7025_v22 = vpop.f32.mrb[104].mxu1 }
 0x78f   : > { %v7054_v57 = vadd.f32 %v7025_v22, %v6911_v46  ;;  %v12960_v3 = vpop.f32.mrb[105].mxu1  ;;  %v13765_v46 = vld [vmem:[%s17090_s5 + $0x188] sm:$0xff]  }
 0x790   : > { %v7028_v4 = vpop.f32.mrb[106].mxu1  ;;  %v7053_v12 = vld [vmem:[#allocation4 + $0x28] sm:$0xf] }
 0x791   : > { %v12961_v43 = vpop.f32.mrb[107].mxu1  ;;  %v8326_v3 = vld [vmem:[#allocation3 + $0x2a] sm:$0xff] }
 0x793   : > { %13139 = vmatmul.mubr.msk.bf16.vlgmr.msra.gmra.mrb[176].mxu1 %vm883_vm2, %v8080_v53  ;;  %v8332_v53 = vpack.c.bf16 %v16612_v40, %v8326_v3 }
 0x794   : > { %13151 = vmatpush3.bf16.msra.mxu1 %v13760_v61  ;;  %13142 = vmatprep.mubr.msk.bf16.mxu1 %vm13904_vm0, %v17106_v35  ;;  %v13768_v61 = vld [vmem:[%s17090_s5 + $0x1a0] sm:$0xff]  }
 0x795   : > { %13152 = vmatprep.subr.bf16.mxu1 %v17106_v35 }
 0x798   : > { %13153 = vmatpush3.bf16.msra.mxu1 %v13761_v62  ;;  %v13769_v62 = vld [vmem:[%s17090_s5 + $0x1a8] sm:$0xff]  }
 0x799   : > { %13154 = vmatprep.subr.bf16.mxu1 %v17106_v35 }
 0x79b   : > { %13143 = vmatmul.mubr.msk.bf16.gmra.mrb[96].mxu1 %vm883_vm2, %v8081_v52  ;;  %v13771_v52 = vld [vmem:[%s17090_s5 + $0x1b8] sm:$0xff]  }
 0x79c   : > { %13155 = vmatpush3.bf16.msra.mxu1 %v13762_v1  ;;  %13146 = vmatprep.mubr.msk.bf16.mxu1 %vm13904_vm0, %v17106_v35  ;;  %v8333_v1 = vpack.c.bf16 %v16298_v16, %v8328_v51 }
 0x79d   : > { %13156 = vmatprep.subr.bf16.mxu1 %v17106_v35 }
 0x79e   : > { %v7041_v36 = vpop.f32.mrb[108].mxu1 }
 0x79f   : > { %v7058_v13 = vadd.f32 %v7041_v36, %v6927_v47  ;;  %v12968_v59 = vpop.f32.mrb[109].mxu1  ;;  %v8204_v47 = vld [vmem:[#allocation3 + $0x46] sm:$0xff]  ;;  %v8331_v36 = vld [vmem:[#allocation3 + $0x52] sm:$0xf] }
 0x7a0   : > { %v7044_v24 = vpop.f32.mrb[110].mxu1  ;;  %13157 = vmatpush3.bf16.msra.mxu1 %v13763_v56  ;;  %v8208_v0 = vpack.c.bf16 %v8205_v17, %v8204_v47  ;;  %v8456_v17 = vld [vmem:[#allocation3 + $0x4b] sm:$0xff] }
 0x7a1   : > { %v7059_v37 = vadd.f32 %v7053_v12, %v7044_v24  ;;  %v12969_v32 = vpop.f32.mrb[111].mxu1  ;;  %13170 = vmatprep.subr.bf16.mxu1 %v17106_v35 }
 0x7a2   : > { %v8453_v32 = vld [vmem:[#allocation3 + $0x33] sm:$0xff] }
 0x7a3   : > { %7065 = vst [vmem:[#allocation4 + $0x28] sm:$0xf] %v7059_v37  ;;  %13147 = vmatmul.mubr.msk.bf16.gmra.mrb[180].mxu1 %vm883_vm2, %v8082_v10  ;;  %v8334_v37 = vpack.c.bf16 %v8331_v36, %v16300_v21 }
 0x7a4   : > { %13158 = vmatprep.mubr.msk.bf16.mxu1 %vm13904_vm0, %v17106_v35 }
 0x7a6   : > { %v7151_v23 = vpop.f32.mrb[112].mxu1 }
 0x7a7   : > { %v7180_v14 = vadd.f32 %v7151_v23, %v7054_v57  ;;  %v12980_v29 = vpop.f32.mrb[113].mxu1 }
 0x7a8   : > { %v7154_v31 = vpop.f32.mrb[114].mxu1  ;;  %v8452_v29 = vld [vmem:[#allocation3 + $0x2b] sm:$0xff] }
 0x7a9   : > { %v12981_v44 = vpop.f32.mrb[115].mxu1 }
 0x7aa   : > { %v7179_v49 = vld [vmem:[#allocation4 + $0x28] sm:$0xf] }
 0x7ab   : > { %13159 = vmatmul.mubr.msk.bf16.vlgmr.msra.gmra.mrb[184].mxu1 %vm883_vm2, %v8206_v41  ;;  %v8458_v41 = vpack.c.bf16 %v8453_v32, %v8452_v29  ;;  %v13781_v32 = vld [vmem:[%s17090_s5 + $0x208] sm:$0xff]  }
 0x7ac   : > { %13171 = vmatpush3.bf16.msra.mxu1 %v13764_v2  ;;  %13162 = vmatprep.mubr.msk.bf16.mxu1 %vm13904_vm0, %v17106_v35  ;;  %v13772_v2 = vld [vmem:[%s17090_s5 + $0x1c0] sm:$0xff]  }
 0x7ad   : > { %13172 = vmatprep.subr.bf16.mxu1 %v17106_v35 }
 0x7b0   : > { %13173 = vmatpush3.bf16.msra.mxu1 %v13765_v46  ;;  %v13773_v46 = vld [vmem:[%s17090_s5 + $0x1c8] sm:$0xff]  }
 0x7b1   : > { %13174 = vmatprep.subr.bf16.mxu1 %v17106_v35 }
 0x7b3   : > { %13163 = vmatmul.mubr.msk.bf16.gmra.mrb[96].mxu1 %vm883_vm2, %v8207_v42  ;;  %v8459_v42 = vpack.c.bf16 %v8455_v58, %v8454_v7 }
 0x7b4   : > { %13175 = vmatpush3.bf16.msra.mxu1 %v13766_v6  ;;  %13166 = vmatprep.mubr.msk.bf16.mxu1 %vm13904_vm0, %v17106_v35  ;;  %v13774_v6 = vld [vmem:[%s17090_s5 + $0x1d0] sm:$0xff]  }
 0x7b5   : > { %13176 = vmatprep.subr.bf16.mxu1 %v17106_v35 }
 0x7b6   : > { %v7167_v60 = vpop.f32.mrb[116].mxu1 }
 0x7b7   : > { %v7184_v34 = vadd.f32 %v7167_v60, %v7058_v13  ;;  %v12988_v38 = vpop.f32.mrb[117].mxu1 }
 0x7b8   : > { %v7170_v26 = vpop.f32.mrb[118].mxu1  ;;  %13177 = vmatpush3.bf16.msra.mxu1 %v13767_v33  ;;  %v13775_v33 = vld [vmem:[%s17090_s5 + $0x1d8] sm:$0xff]  }
 0x7b9   : > { %v7185_v25 = vadd.f32 %v7179_v49, %v7170_v26  ;;  %v12989_v27 = vpop.f32.mrb[119].mxu1  ;;  %13190 = vmatprep.subr.bf16.mxu1 %v17106_v35 }
 0x7bb   : > { %7191 = vst [vmem:[#allocation4 + $0x28] sm:$0xf] %v7185_v25  ;;  %13167 = vmatmul.mubr.msk.bf16.gmra.mrb[188].mxu1 %vm883_vm2, %v8208_v0 }
 0x7bc   : > { %13178 = vmatprep.mubr.msk.bf16.mxu1 %vm13904_vm0, %v17106_v35 }
 0x7be   : > { %v7277_v39 = vpop.f32.mrb[120].mxu1 }
 0x7bf   : > { %v7306_v22 = vadd.f32 %v7277_v39, %v7180_v14  ;;  %v13000_v57 = vpop.f32.mrb[121].mxu1 }
 0x7c0   : > { %v7280_v4 = vpop.f32.mrb[122].mxu1 }
 0x7c1   : > { %v13001_v43 = vpop.f32.mrb[123].mxu1  ;;  %v13776_v4 = vld [vmem:[%s17090_s5 + $0x1e0] sm:$0xff]  }
 0x7c2   : > { %v7305_v59 = vld [vmem:[#allocation4 + $0x28] sm:$0xf]  ;;  %v13778_v43 = vld [vmem:[%s17090_s5 + $0x1f0] sm:$0xff]  }
 0x7c3   : > { %13179 = vmatmul.mubr.msk.bf16.vlgmr.msra.gmra.mrb[192].mxu1 %vm883_vm2, %v8332_v53  ;;  %v13777_v53 = vld [vmem:[%s17090_s5 + $0x1e8] sm:$0xff]  }
 0x7c4   : > { %13191 = vmatpush3.bf16.msra.mxu1 %v13768_v61  ;;  %13182 = vmatprep.mubr.msk.bf16.mxu1 %vm13904_vm0, %v17106_v35 }
 0x7c5   : > { %13192 = vmatprep.subr.bf16.mxu1 %v17106_v35 }
 0x7c8   : > { %13193 = vmatpush3.bf16.msra.mxu1 %v13769_v62  ;;  %v8583_v62 = vld [vmem:[#allocation3 + $0x54] sm:$0xf] }
 0x7c9   : > { %13194 = vmatprep.subr.bf16.mxu1 %v17106_v35 }
 0x7cb   : > { %13183 = vmatmul.mubr.msk.bf16.gmra.mrb[96].mxu1 %vm883_vm2, %v8333_v1 }
 0x7cc   : > { %13195 = vmatpush3.bf16.msra.mxu1 %v13770_v9  ;;  %13186 = vmatprep.mubr.msk.bf16.mxu1 %vm13904_vm0, %v17106_v35 }
 0x7cd   : > { %13196 = vmatprep.subr.bf16.mxu1 %v17106_v35 }
 0x7ce   : > { %v7293_v56 = vpop.f32.mrb[124].mxu1 }
 0x7cf   : > { %v7310_v48 = vadd.f32 %v7293_v56, %v7184_v34  ;;  %v13008_v13 = vpop.f32.mrb[125].mxu1  ;;  %v8457_v34 = vld [vmem:[#allocation3 + $0x53] sm:$0xf]  ;;  %v8705_v56 = vld [vmem:[#allocation3 + $0x38] sm:$0xff] }
 0x7d0   : > { %v7296_v12 = vpop.f32.mrb[126].mxu1  ;;  %13197 = vmatpush3.bf16.msra.mxu1 %v13771_v52  ;;  %v8460_v0 = vpack.c.bf16 %v8457_v34, %v8456_v17  ;;  %v8831_v17 = vld [vmem:[#allocation3 + $0x39] sm:$0xff] }
 0x7d1   : > { %v7311_v24 = vadd.f32 %v7305_v59, %v7296_v12  ;;  %v13009_v45 = vpop.f32.mrb[127].mxu1  ;;  %13210 = vmatprep.subr.bf16.mxu1 %v17106_v35  ;;  %v8704_v59 = vld [vmem:[#allocation3 + $0x30] sm:$0xff] }
 0x7d2   : > { %v8710_v45 = vpack.c.bf16 %v8705_v56, %v8704_v59 }
 0x7d3   : > { %7317 = vst [vmem:[#allocation4 + $0x28] sm:$0xf] %v7311_v24  ;;  %13187 = vmatmul.mubr.msk.bf16.gmra.mrb[196].mxu1 %vm883_vm2, %v8334_v37  ;;  %v13780_v24 = vld [vmem:[%s17090_s5 + $0x200] sm:$0xff]  }
 0x7d4   : > { %13198 = vmatprep.mubr.msk.bf16.mxu1 %vm13904_vm0, %v17106_v35 }
 0x7d6   : > { %v7403_v10 = vpop.f32.mrb[128].mxu1 }
 0x7d7   : > { %v7432_v23 = vadd.f32 %v7403_v10, %v7306_v22  ;;  %v13020_v14 = vpop.f32.mrb[129].mxu1  ;;  %v8707_v10 = vld [vmem:[#allocation3 + $0x48] sm:$0xff] }
 0x7d8   : > { %v7406_v31 = vpop.f32.mrb[130].mxu1  ;;  %v13782_v14 = vld [vmem:[%s17090_s5 + $0x210] sm:$0xff]  }
 0x7d9   : > { %v13021_v44 = vpop.f32.mrb[131].mxu1  ;;  %v13783_v31 = vld [vmem:[%s17090_s5 + $0x218] sm:$0xff]  }
 0x7da   : > { %v7431_v26 = vld [vmem:[#allocation4 + $0x28] sm:$0xf] }
 0x7db   : > { %13199 = vmatmul.mubr.msk.bf16.vlgmr.msra.gmra.mrb[200].mxu1 %vm883_vm2, %v8458_v41  ;;  %v8709_v41 = vld [vmem:[#allocation3 + $0x58] sm:$0xf] }
 0x7dc   : > { %13211 = vmatpush3.bf16.msra.mxu1 %v13772_v2  ;;  %13202 = vmatprep.mubr.msk.bf16.mxu1 %vm13904_vm0, %v17106_v35 }
 0x7dd   : > { %13212 = vmatprep.subr.bf16.mxu1 %v17106_v35 }
 0x7e0   : > { %13213 = vmatpush3.bf16.msra.mxu1 %v13773_v46 }
 0x7e1   : > { %13214 = vmatprep.subr.bf16.mxu1 %v17106_v35 }
 0x7e3   : > { %13203 = vmatmul.mubr.msk.bf16.gmra.mrb[96].mxu1 %vm883_vm2, %v8459_v42 }
 0x7e4   : > { %13215 = vmatpush3.bf16.msra.mxu1 %v13774_v6  ;;  %13206 = vmatprep.mubr.msk.bf16.mxu1 %vm13904_vm0, %v17106_v35  ;;  %v8708_v6 = vld [vmem:[#allocation3 + $0x50] sm:$0xff] }
 0x7e5   : > { %13216 = vmatprep.subr.bf16.mxu1 %v17106_v35 }
 0x7e6   : > { %v7419_v60 = vpop.f32.mrb[132].mxu1 }
 0x7e7   : > { %v7436_v38 = vadd.f32 %v7419_v60, %v7310_v48  ;;  %v13028_v49 = vpop.f32.mrb[133].mxu1  ;;  %v8712_v60 = vpack.c.bf16 %v8709_v41, %v8708_v6 }
 0x7e8   : > { %v7422_v47 = vpop.f32.mrb[134].mxu1  ;;  %13217 = vmatpush3.bf16.msra.mxu1 %v13775_v33 }
 0x7e9   : > { %v7437_v25 = vadd.f32 %v7431_v26, %v7422_v47  ;;  %v13029_v27 = vpop.f32.mrb[135].mxu1  ;;  %13230 = vmatprep.subr.bf16.mxu1 %v17106_v35  ;;  %v8830_v26 = vld [vmem:[#allocation3 + $0x31] sm:$0xff] }
 0x7ea   : > { %v8836_v27 = vpack.c.bf16 %v8831_v17, %v8830_v26  ;;  %v13794_v17 = vld [vmem:[%s17090_s5 + $0x270] sm:$0xff]  }
 0x7eb   : > { %7443 = vst [vmem:[#allocation4 + $0x28] sm:$0xf] %v7437_v25  ;;  %13207 = vmatmul.mubr.msk.bf16.gmra.mrb[204].mxu1 %vm883_vm2, %v8460_v0  ;;  %v13784_v25 = vld [vmem:[%s17090_s5 + $0x220] sm:$0xff]  }
 0x7ec   : > { %13218 = vmatprep.mubr.msk.bf16.mxu1 %vm13904_vm0, %v17106_v35 }
 0x7ee   : > { %v7529_v39 = vpop.f32.mrb[136].mxu1 }
 0x7ef   : > { %v7558_v22 = vadd.f32 %v7529_v39, %v7432_v23  ;;  %v13040_v57 = vpop.f32.mrb[137].mxu1  ;;  %v8706_v23 = vld [vmem:[#allocation3 + $0x40] sm:$0xff]  ;;  %v13785_v39 = vld [vmem:[%s17090_s5 + $0x228] sm:$0xff]  }
 0x7f0   : > { %v7532_v3 = vpop.f32.mrb[138].mxu1  ;;  %v8711_v29 = vpack.c.bf16 %v8707_v10, %v8706_v23  ;;  %v8832_v57 = vld [vmem:[#allocation3 + $0x41] sm:$0xff] }
 0x7f1   : > { %v13041_v61 = vpop.f32.mrb[139].mxu1  ;;  %v13786_v3 = vld [vmem:[%s17090_s5 + $0x230] sm:$0xff]  }
 0x7f2   : > { %v7557_v1 = vld [vmem:[#allocation4 + $0x28] sm:$0xf]  ;;  %v13787_v61 = vld [vmem:[%s17090_s5 + $0x238] sm:$0xff]  }
 0x7f3   : > { %13219 = vmatmul.mubr.msk.bf16.vlgmr.msra.gmra.mrb[208].mxu1 %vm883_vm2, %v8584_v20  ;;  %v8582_v20 = vld [vmem:[#allocation3 + $0x4c] sm:$0xff] }
 0x7f4   : > { %13231 = vmatpush3.bf16.msra.mxu1 %v13776_v4  ;;  %13222 = vmatprep.mubr.msk.bf16.mxu1 %vm13904_vm0, %v17106_v35 }
 0x7f5   : > { %13232 = vmatprep.subr.bf16.mxu1 %v17106_v35 }
 0x7f8   : > { %13233 = vmatpush3.bf16.msra.mxu1 %v13777_v53 }
 0x7f9   : > { %13234 = vmatprep.subr.bf16.mxu1 %v17106_v35 }
 0x7fb   : > { %13223 = vmatmul.mubr.msk.bf16.gmra.mrb[96].mxu1 %vm883_vm2, %v8585_v18  ;;  %v8586_v18 = vpack.c.bf16 %v8583_v62, %v8582_v20 }
 0x7fc   : > { %13235 = vmatpush3.bf16.msra.mxu1 %v13778_v43  ;;  %13226 = vmatprep.mubr.msk.bf16.mxu1 %vm13904_vm0, %v17106_v35  ;;  %v8834_v43 = vld [vmem:[#allocation3 + $0x51] sm:$0xff] }
 0x7fd   : > { %13236 = vmatprep.subr.bf16.mxu1 %v17106_v35 }
 0x7fe   : > { %v7545_v5 = vpop.f32.mrb[140].mxu1 }
 0x7ff   : > { %v7562_v51 = vadd.f32 %v7545_v5, %v7436_v38  ;;  %v13048_v9 = vpop.f32.mrb[141].mxu1 }
 0x800   : > { %v7548_v52 = vpop.f32.mrb[142].mxu1  ;;  %13237 = vmatpush3.bf16.msra.mxu1 %v13779_v55  ;;  %v8835_v55 = vld [vmem:[#allocation3 + $0x59] sm:$0xf] }
 0x801   : > { %v7563_v63 = vadd.f32 %v7557_v1, %v7548_v52  ;;  %v13049_v15 = vpop.f32.mrb[143].mxu1  ;;  %13250 = vmatprep.subr.bf16.mxu1 %v17106_v35  ;;  %v8838_v52 = vpack.c.bf16 %v8835_v55, %v8834_v43 }
 0x803   : > { %7569 = vst [vmem:[#allocation4 + $0x28] sm:$0xf] %v7563_v63  ;;  %13227 = vmatmul.mubr.msk.bf16.gmra.mrb[212].mxu1 %vm883_vm2, %v8586_v18  ;;  %v8957_v63 = vld [vmem:[#allocation3 + $0x3a] sm:$0xff] }
 0x804   : > { %13238 = vmatprep.mubr.msk.bf16.mxu1 %vm13904_vm0, %v17106_v35 }
 0x806   : > { %v7655_v36 = vpop.f32.mrb[144].mxu1 }
 0x807   : > { %v7684_v48 = vadd.f32 %v7655_v36, %v7558_v22  ;;  %v13060_v13 = vpop.f32.mrb[145].mxu1  ;;  %v8833_v22 = vld [vmem:[#allocation3 + $0x49] sm:$0xff] }
 0x808   : > { %v7658_v12 = vpop.f32.mrb[146].mxu1  ;;  %v8837_v4 = vpack.c.bf16 %v8833_v22, %v8832_v57  ;;  %v8962_v13 = vpack.c.bf16 %v8957_v63, %v16612_v40  ;;  %v13791_v40 = vld [vmem:[%s17090_s5 + $0x258] sm:$0xff]  }
 0x809   : > { %v13061_v37 = vpop.f32.mrb[147].mxu1  ;;  %v13789_v12 = vld [vmem:[%s17090_s5 + $0x248] sm:$0xff]   ;;  %v9210_v63 = vld [vmem:[#allocation3 + $0x59] sm:$0xff] }
 0x80a   : > { %v7683_v58 = vld [vmem:[#allocation4 + $0x28] sm:$0xf] }
 0x80b   : > { %13239 = vmatmul.mubr.msk.bf16.vlgmr.msra.gmra.mrb[216].mxu1 %vm883_vm2, %v8710_v45  ;;  %v8960_v37 = vld [vmem:[#allocation3 + $0x52] sm:$0xff] }
 0x80c   : > { %13251 = vmatpush3.bf16.msra.mxu1 %v13780_v24  ;;  %13242 = vmatprep.mubr.msk.bf16.mxu1 %vm13904_vm0, %v17106_v35  ;;  %v13790_v24 = vld [vmem:[%s17090_s5 + $0x250] sm:$0xff]  }
 0x80d   : > { %13252 = vmatprep.subr.bf16.mxu1 %v17106_v35 }
 0x810   : > { %13253 = vmatpush3.bf16.msra.mxu1 %v13781_v32  ;;  %v8961_v32 = vld [vmem:[#allocation3 + $0x5a] sm:$0xf] }
 0x811   : > { %13254 = vmatprep.subr.bf16.mxu1 %v17106_v35 }
 0x813   : > { %13243 = vmatmul.mubr.msk.bf16.gmra.mrb[96].mxu1 %vm883_vm2, %v8711_v29 }
 0x814   : > { %13255 = vmatpush3.bf16.msra.mxu1 %v13782_v14  ;;  %13246 = vmatprep.mubr.msk.bf16.mxu1 %vm13904_vm0, %v17106_v35 }
 0x815   : > { %13256 = vmatprep.subr.bf16.mxu1 %v17106_v35 }
 0x816   : > { %v7671_v2 = vpop.f32.mrb[148].mxu1 }
 0x817   : > { %v7688_v44 = vadd.f32 %v7671_v2, %v7562_v51  ;;  %v13068_v46 = vpop.f32.mrb[149].mxu1 }
 0x818   : > { %v7674_v7 = vpop.f32.mrb[150].mxu1  ;;  %13257 = vmatpush3.bf16.msra.mxu1 %v13783_v31  ;;  %v16777_v31 = vld [vmem:[#allocation3 + $0x50] sm:$0xff]  ;;  %v9082_v46 = vld [vmem:[#allocation3 + $0x48] sm:$0xff] }
 0x819   : > { %v7689_v42 = vadd.f32 %v7683_v58, %v7674_v7  ;;  %v13069_v33 = vpop.f32.mrb[151].mxu1  ;;  %13270 = vmatprep.subr.bf16.mxu1 %v17106_v35  ;;  %v13792_v7 = vld [vmem:[%s17090_s5 + $0x260] sm:$0xff]   ;;  %v9088_v6 = vpack.c.bf16 %v16777_v31, %v9082_v46 }
 0x81a   : > { %v13793_v33 = vld [vmem:[%s17090_s5 + $0x268] sm:$0xff]   ;;  %v9337_v46 = vld [vmem:[#allocation3 + $0x62] sm:$0xff] }
 0x81b   : > { %7695 = vst [vmem:[#allocation4 + $0x28] sm:$0xf] %v7689_v42  ;;  %13247 = vmatmul.mubr.msk.bf16.gmra.mrb[220].mxu1 %vm883_vm2, %v8712_v60  ;;  %v9084_v60 = vld [vmem:[#allocation3 + $0x58] sm:$0xff] }
 0x81c   : > { %13258 = vmatprep.mubr.msk.bf16.mxu1 %vm13904_vm0, %v17106_v35 }
 0x81e   : > { %v7781_v34 = vpop.f32.mrb[152].mxu1 }
 0x81f   : > { %v7810_v38 = vadd.f32 %v7781_v34, %v7684_v48  ;;  %v13080_v49 = vpop.f32.mrb[153].mxu1  ;;  %v13788_v48 = vld [vmem:[%s17090_s5 + $0x240] sm:$0xff]   ;;  %v13835_v34 = vld [vmem:[#allocation3 + $0x60] sm:$0xff] }
 0x820   : > { %v7784_v47 = vpop.f32.mrb[154].mxu1  ;;  %v13795_v49 = vld [vmem:[%s17090_s5 + $0x278] sm:$0xff]  }
 0x821   : > { %v13081_v0 = vpop.f32.mrb[155].mxu1  ;;  %v9087_v47 = vld [vmem:[#allocation3 + $0x70] sm:$0xf] }
 0x822   : > { %v7809_v62 = vld [vmem:[#allocation4 + $0x28] sm:$0xf] }
 0x823   : > { %13259 = vmatmul.mubr.msk.bf16.vlgmr.msra.gmra.mrb[224].mxu1 %vm883_vm2, %v8836_v27 }
 0x824   : > { %13271 = vmatpush3.bf16.msra.mxu1 %v13784_v25  ;;  %13262 = vmatprep.mubr.msk.bf16.mxu1 %vm13904_vm0, %v17106_v35 }
 0x825   : > { %13272 = vmatprep.subr.bf16.mxu1 %v17106_v35 }
 0x828   : > { %13273 = vmatpush3.bf16.msra.mxu1 %v13785_v39 }
 0x829   : > { %13274 = vmatprep.subr.bf16.mxu1 %v17106_v35 }
 0x82b   : > { %13263 = vmatmul.mubr.msk.bf16.gmra.mrb[96].mxu1 %vm883_vm2, %v8837_v4 }
 0x82c   : > { %13275 = vmatpush3.bf16.msra.mxu1 %v13786_v3  ;;  %13266 = vmatprep.mubr.msk.bf16.mxu1 %vm13904_vm0, %v17106_v35  ;;  %v13836_v3 = vld [vmem:[#allocation3 + $0x68] sm:$0xff] }
 0x82d   : > { %13276 = vmatprep.subr.bf16.mxu1 %v17106_v35  ;;  %v9090_v4 = vpack.c.bf16 %v9087_v47, %v13836_v3  ;;  %v9460_v3 = vld [vmem:[#allocation3 + $0x4e] sm:$0xff] }
 0x82e   : > { %v7797_v53 = vpop.f32.mrb[156].mxu1 }
 0x82f   : > { %v7814_v5 = vadd.f32 %v7797_v53, %v7688_v44  ;;  %v13088_v20 = vpop.f32.mrb[157].mxu1 }
 0x830   : > { %v7800_v51 = vpop.f32.mrb[158].mxu1  ;;  %13277 = vmatpush3.bf16.msra.mxu1 %v13787_v61  ;;  %v9209_v61 = vld [vmem:[#allocation3 + $0x51] sm:$0xff] }
 0x831   : > { %v7815_v9 = vadd.f32 %v7809_v62, %v7800_v51  ;;  %v13089_v1 = vpop.f32.mrb[159].mxu1  ;;  %13290 = vmatprep.subr.bf16.mxu1 %v17106_v35  ;;  %v13796_v62 = vld [vmem:[%s17090_s5 + $0x280] sm:$0xff]  }
 0x832   : > { %v13797_v1 = vld [vmem:[%s17090_s5 + $0x288] sm:$0xff]  }
 0x833   : > { %7821 = vst [vmem:[#allocation4 + $0x28] sm:$0xf] %v7815_v9  ;;  %13267 = vmatmul.mubr.msk.bf16.gmra.mrb[228].mxu1 %vm883_vm2, %v8838_v52  ;;  %v9211_v52 = vld [vmem:[#allocation3 + $0x61] sm:$0xff] }
 0x834   : > { %13278 = vmatprep.mubr.msk.bf16.mxu1 %vm13904_vm0, %v17106_v35 }
 0x836   : > { %v7907_v15 = vpop.f32.mrb[160].mxu1 }
 0x837   : > { %v7936_v18 = vadd.f32 %v7907_v15, %v7810_v38  ;;  %v13100_v56 = vpop.f32.mrb[161].mxu1  ;;  %v9089_v38 = vpack.c.bf16 %v13835_v34, %v9084_v60  ;;  %v13798_v15 = vld [vmem:[%s17090_s5 + $0x290] sm:$0xff]   ;;  %v9338_v60 = vld [vmem:[#allocation3 + $0x6a] sm:$0xff] }
 0x838   : > { %v7910_v36 = vpop.f32.mrb[162].mxu1  ;;  %v13799_v56 = vld [vmem:[%s17090_s5 + $0x298] sm:$0xff]  }
 0x839   : > { %v13101_v59 = vpop.f32.mrb[163].mxu1 }
 0x83a   : > { %v7935_v14 = vld [vmem:[#allocation4 + $0x28] sm:$0xf] }
 0x83b   : > { %13279 = vmatmul.mubr.msk.bf16.vlgmr.msra.gmra.mrb[232].mxu1 %vm883_vm2, %v8962_v13  ;;  %v9213_v13 = vld [vmem:[#allocation3 + $0x71] sm:$0xf] }
 0x83c   : > { %13291 = vmatpush3.bf16.msra.mxu1 %v13788_v48  ;;  %13282 = vmatprep.mubr.msk.bf16.mxu1 %vm13904_vm0, %v17106_v35  ;;  %v9212_v48 = vld [vmem:[#allocation3 + $0x69] sm:$0xff] }
 0x83d   : > { %13292 = vmatprep.subr.bf16.mxu1 %v17106_v35 }
 0x840   : > { %13293 = vmatpush3.bf16.msra.mxu1 %v13789_v12 }
 0x841   : > { %13294 = vmatprep.subr.bf16.mxu1 %v17106_v35 }
 0x843   : > { %13283 = vmatmul.mubr.msk.bf16.gmra.mrb[96].mxu1 %vm883_vm2, %v8963_v30  ;;  %v8964_v30 = vpack.c.bf16 %v8961_v32, %v8960_v37  ;;  %v9216_v32 = vpack.c.bf16 %v9213_v13, %v9212_v48  ;;  %v13838_v13 = vld [vmem:[#allocation3 + $0x6e] sm:$0xff] }
 0x844   : > { %13295 = vmatpush3.bf16.msra.mxu1 %v13790_v24  ;;  %13286 = vmatprep.mubr.msk.bf16.mxu1 %vm13904_vm0, %v17106_v35 }
 0x845   : > { %13296 = vmatprep.subr.bf16.mxu1 %v17106_v35 }
 0x846   : > { %v7923_v45 = vpop.f32.mrb[164].mxu1 }
 0x847   : > { %v7940_v10 = vadd.f32 %v7923_v45, %v7814_v5  ;;  %v13108_v23 = vpop.f32.mrb[165].mxu1  ;;  %v9208_v5 = vld [vmem:[#allocation3 + $0x49] sm:$0xff] }
 0x848   : > { %v7926_v29 = vpop.f32.mrb[166].mxu1  ;;  %13297 = vmatpush3.bf16.msra.mxu1 %v13791_v40  ;;  %v9214_v51 = vpack.c.bf16 %v9209_v61, %v9208_v5  ;;  %v13804_v61 = vld [vmem:[%s17090_s5 + $0x2c0] sm:$0xff]   ;;  %v9462_v5 = vld [vmem:[#allocation3 + $0x5e] sm:$0xff] }
 0x849   : > { %v7941_v16 = vadd.f32 %v7935_v14, %v7926_v29  ;;  %v13109_v21 = vpop.f32.mrb[167].mxu1  ;;  %13310 = vmatprep.subr.bf16.mxu1 %v17106_v35 }
 0x84b   : > { %7947 = vst [vmem:[#allocation4 + $0x28] sm:$0xf] %v7941_v16  ;;  %13287 = vmatmul.mubr.msk.bf16.gmra.mrb[236].mxu1 %vm883_vm2, %v8964_v30  ;;  %v9334_v16 = vld [vmem:[#allocation3 + $0x4a] sm:$0xff] }
 0x84c   : > { %13298 = vmatprep.mubr.msk.bf16.mxu1 %vm13904_vm0, %v17106_v35  ;;  %v13800_v30 = vld [vmem:[%s17090_s5 + $0x2a0] sm:$0xff]  }
 0x84e   : > { %v8033_v2 = vpop.f32.mrb[168].mxu1 }
 0x84f   : > { %v8062_v41 = vadd.f32 %v8033_v2, %v7936_v18  ;;  %v13120_v44 = vpop.f32.mrb[169].mxu1  ;;  %v9215_v18 = vpack.c.bf16 %v9211_v52, %v9210_v63  ;;  %v9465_v52 = vld [vmem:[#allocation3 + $0x76] sm:$0xf] }
 0x850   : > { %v8036_v58 = vpop.f32.mrb[170].mxu1  ;;  %v13801_v44 = vld [vmem:[%s17090_s5 + $0x2a8] sm:$0xff]  }
 0x851   : > { %v13121_v42 = vpop.f32.mrb[171].mxu1  ;;  %v9336_v58 = vld [vmem:[#allocation3 + $0x5a] sm:$0xff] }
 0x852   : > { %v8061_v0 = vld [vmem:[#allocation4 + $0x28] sm:$0xf]  ;;  %v13803_v42 = vld [vmem:[%s17090_s5 + $0x2b8] sm:$0xff]  }
 0x853   : > { %13299 = vmatmul.mubr.msk.bf16.vlgmr.msra.gmra.mrb[240].mxu1 %vm883_vm2, %v9088_v6  ;;  %v9341_v6 = vpack.c.bf16 %v9337_v46, %v9336_v58  ;;  %v9591_v46 = vld [vmem:[#allocation3 + $0x77] sm:$0xf] }
 0x854   : > { %13311 = vmatpush3.bf16.msra.mxu1 %v13792_v7  ;;  %13302 = vmatprep.mubr.msk.bf16.mxu1 %vm13904_vm0, %v17106_v35  ;;  %v13802_v7 = vld [vmem:[%s17090_s5 + $0x2b0] sm:$0xff]  }
 0x855   : > { %13312 = vmatprep.subr.bf16.mxu1 %v17106_v35 }
 0x858   : > { %13313 = vmatpush3.bf16.msra.mxu1 %v13793_v33 }
 0x859   : > { %13314 = vmatprep.subr.bf16.mxu1 %v17106_v35 }
 0x85b   : > { %13303 = vmatmul.mubr.msk.bf16.gmra.mrb[96].mxu1 %vm883_vm2, %v9089_v38 }
 0x85c   : > { %13315 = vmatpush3.bf16.msra.mxu1 %v13794_v17  ;;  %13306 = vmatprep.mubr.msk.bf16.mxu1 %vm13904_vm0, %v17106_v35  ;;  %v9339_v17 = vld [vmem:[#allocation3 + $0x72] sm:$0xf] }
 0x85d   : > { %13316 = vmatprep.subr.bf16.mxu1 %v17106_v35 }
 0x85e   : > { %v8049_v26 = vpop.f32.mrb[172].mxu1 }
 0x85f   : > { %v8066_v25 = vadd.f32 %v8049_v26, %v7940_v10  ;;  %v13128_v27 = vpop.f32.mrb[173].mxu1  ;;  %v9335_v10 = vld [vmem:[#allocation3 + $0x52] sm:$0xff] }
 0x860   : > { %v8052_v39 = vpop.f32.mrb[174].mxu1  ;;  %13317 = vmatpush3.bf16.msra.mxu1 %v13795_v49  ;;  %v9340_v2 = vpack.c.bf16 %v9335_v10, %v9334_v16  ;;  %v9342_v27 = vpack.c.bf16 %v9339_v17, %v9338_v60  ;;  %v13808_v10 = vld [vmem:[%s17090_s5 + $0x2e0] sm:$0xff]  }
 0x861   : > { %v8067_v22 = vadd.f32 %v8061_v0, %v8052_v39  ;;  %v13129_v57 = vpop.f32.mrb[175].mxu1  ;;  %13330 = vmatprep.subr.bf16.mxu1 %v17106_v35  ;;  %v16855_v0 = vld [vmem:[#allocation3 + $0x56] sm:$0xff]  ;;  %v9589_v16 = vld [vmem:[#allocation3 + $0x67] sm:$0xff] }
 0x863   : > { %8073 = vst [vmem:[#allocation4 + $0x28] sm:$0xf] %v8067_v22  ;;  %13307 = vmatmul.mubr.msk.bf16.gmra.mrb[244].mxu1 %vm883_vm2, %v9090_v4 }
 0x864   : > { %13318 = vmatprep.mubr.msk.bf16.mxu1 %vm13904_vm0, %v17106_v35 }
 0x866   : > { %v8159_v53 = vpop.f32.mrb[176].mxu1 }
 0x867   : > { %v8188_v43 = vadd.f32 %v8159_v53, %v8062_v41  ;;  %v13140_v55 = vpop.f32.mrb[177].mxu1  ;;  %v9466_v53 = vpack.c.bf16 %v16855_v0, %v9460_v3  ;;  %v13814_v3 = vld [vmem:[%s17090_s5 + $0x310] sm:$0xff]  }
 0x868   : > { %v8162_v20 = vpop.f32.mrb[178].mxu1  ;;  %v13805_v55 = vld [vmem:[%s17090_s5 + $0x2c8] sm:$0xff]  }
 0x869   : > { %v13141_v9 = vpop.f32.mrb[179].mxu1  ;;  %v13806_v20 = vld [vmem:[%s17090_s5 + $0x2d0] sm:$0xff]  }
 0x86a   : > { %v8187_v40 = vld [vmem:[#allocation4 + $0x28] sm:$0xf]  ;;  %v13807_v9 = vld [vmem:[%s17090_s5 + $0x2d8] sm:$0xff]  }
 0x86b   : > { %13319 = vmatmul.mubr.msk.bf16.vlgmr.msra.gmra.mrb[248].mxu1 %vm883_vm2, %v9214_v51 }
 0x86c   : > { %13331 = vmatpush3.bf16.msra.mxu1 %v13796_v62  ;;  %13322 = vmatprep.mubr.msk.bf16.mxu1 %vm13904_vm0, %v17106_v35  ;;  %v13837_v62 = vld [vmem:[#allocation3 + $0x66] sm:$0xff] }
 0x86d   : > { %13332 = vmatprep.subr.bf16.mxu1 %v17106_v35  ;;  %v9467_v51 = vpack.c.bf16 %v13837_v62, %v9462_v5  ;;  %v9839_v62 = vld [vmem:[#allocation3 + $0x5c] sm:$0xff] }
 0x870   : > { %13333 = vmatpush3.bf16.msra.mxu1 %v13797_v1 }
 0x871   : > { %13334 = vmatprep.subr.bf16.mxu1 %v17106_v35 }
 0x873   : > { %13323 = vmatmul.mubr.msk.bf16.gmra.mrb[96].mxu1 %vm883_vm2, %v9215_v18 }
 0x874   : > { %13335 = vmatpush3.bf16.msra.mxu1 %v13798_v15  ;;  %13326 = vmatprep.mubr.msk.bf16.mxu1 %vm13904_vm0, %v17106_v35 }
 0x875   : > { %13336 = vmatprep.subr.bf16.mxu1 %v17106_v35 }
 0x876   : > { %v8175_v36 = vpop.f32.mrb[180].mxu1 }
 0x877   : > { %v8192_v59 = vadd.f32 %v8175_v36, %v8066_v25  ;;  %v13148_v12 = vpop.f32.mrb[181].mxu1 }
 0x878   : > { %v8178_v24 = vpop.f32.mrb[182].mxu1  ;;  %13337 = vmatpush3.bf16.msra.mxu1 %v13799_v56  ;;  %v9587_v12 = vld [vmem:[#allocation3 + $0x57] sm:$0xff] }
 0x879   : > { %v8193_v45 = vadd.f32 %v8187_v40, %v8178_v24  ;;  %v13149_v37 = vpop.f32.mrb[183].mxu1  ;;  %13350 = vmatprep.subr.bf16.mxu1 %v17106_v35 }
 0x87a   : > { %v9586_v37 = vld [vmem:[#allocation3 + $0x4f] sm:$0xff] }
 0x87b   : > { %8199 = vst [vmem:[#allocation4 + $0x28] sm:$0xf] %v8193_v45  ;;  %13327 = vmatmul.mubr.msk.bf16.gmra.mrb[252].mxu1 %vm883_vm2, %v9216_v32 }
 0x87c   : > { %13338 = vmatprep.mubr.msk.bf16.mxu1 %vm13904_vm0, %v17106_v35 }
 0x87e   : > { %v8285_v23 = vpop.f32.mrb[184].mxu1 }
 0x87f   : > { %v8314_v14 = vadd.f32 %v8285_v23, %v8188_v43  ;;  %v13160_v29 = vpop.f32.mrb[185].mxu1  ;;  %v9592_v23 = vpack.c.bf16 %v9587_v12, %v9586_v37  ;;  %v9843_v37 = vld [vmem:[#allocation3 + $0x7c] sm:$0xf] }
 0x880   : > { %v8288_v21 = vpop.f32.mrb[186].mxu1  ;;  %v13809_v29 = vld [vmem:[%s17090_s5 + $0x2e8] sm:$0xff]  }
 0x881   : > { %v13161_v41 = vpop.f32.mrb[187].mxu1  ;;  %v9588_v21 = vld [vmem:[#allocation3 + $0x5f] sm:$0xff] }
 0x882   : > { %v8313_v26 = vld [vmem:[#allocation4 + $0x28] sm:$0xf]  ;;  %v13811_v41 = vld [vmem:[%s17090_s5 + $0x2f8] sm:$0xff]  }
 0x883   : > { %13339 = vmatmul.mubr.msk.bf16.vlgmr.msra.gmra.mrb[0].mxu1 %vm883_vm2, %v9340_v2  ;;  %v9593_v2 = vpack.c.bf16 %v9589_v16, %v9588_v21 }
 0x884   : > { %13351 = vmatpush3.bf16.msra.mxu1 %v13800_v30  ;;  %13342 = vmatprep.mubr.msk.bf16.mxu1 %vm13904_vm0, %v17106_v35  ;;  %v13810_v30 = vld [vmem:[%s17090_s5 + $0x2f0] sm:$0xff]  }
 0x885   : > { %13352 = vmatprep.subr.bf16.mxu1 %v17106_v35 }
 0x888   : > { %13353 = vmatpush3.bf16.msra.mxu1 %v13801_v44 }
 0x889   : > { %13354 = vmatprep.subr.bf16.mxu1 %v17106_v35 }
 0x88b   : > { %13343 = vmatmul.mubr.msk.bf16.gmra.mrb[96].mxu1 %vm883_vm2, %v9341_v6 }
 0x88c   : > { %13355 = vmatpush3.bf16.msra.mxu1 %v13802_v7  ;;  %13346 = vmatprep.mubr.msk.bf16.mxu1 %vm13904_vm0, %v17106_v35 }
 0x88d   : > { %13356 = vmatprep.subr.bf16.mxu1 %v17106_v35 }
 0x88e   : > { %v8301_v33 = vpop.f32.mrb[188].mxu1 }
 0x88f   : > { %v8318_v34 = vadd.f32 %v8301_v33, %v8192_v59  ;;  %v13168_v38 = vpop.f32.mrb[189].mxu1  ;;  %v9468_v59 = vpack.c.bf16 %v9465_v52, %v13838_v13  ;;  %v9590_v33 = vld [vmem:[#allocation3 + $0x6f] sm:$0xff]  ;;  %v9840_v13 = vld [vmem:[#allocation3 + $0x64] sm:$0xff] }
 0x890   : > { %v8304_v49 = vpop.f32.mrb[190].mxu1  ;;  %13357 = vmatpush3.bf16.msra.mxu1 %v13803_v42  ;;  %v9713_v38 = vld [vmem:[#allocation3 + $0x58] sm:$0xff] }
 0x891   : > { %v8319_v47 = vadd.f32 %v8313_v26, %v8304_v49  ;;  %v13169_v25 = vpop.f32.mrb[191].mxu1  ;;  %13370 = vmatprep.subr.bf16.mxu1 %v17106_v35  ;;  %v9838_v52 = vld [vmem:[#allocation3 + $0x54] sm:$0xff] }
 0x893   : > { %8325 = vst [vmem:[#allocation4 + $0x28] sm:$0xf] %v8319_v47  ;;  %13347 = vmatmul.mubr.msk.bf16.gmra.mrb[4].mxu1 %vm883_vm2, %v9342_v27  ;;  %v13812_v27 = vld [vmem:[%s17090_s5 + $0x300] sm:$0xff]  }
 0x894   : > { %13358 = vmatprep.mubr.msk.bf16.mxu1 %vm13904_vm0, %v17106_v35 }
 0x896   : > { %v8411_v39 = vpop.f32.mrb[192].mxu1 }
 0x897   : > { %v8440_v22 = vadd.f32 %v8411_v39, %v8314_v14  ;;  %v13180_v57 = vpop.f32.mrb[193].mxu1  ;;  %v9718_v39 = vpack.c.bf16 %v9713_v38, %v16777_v31  ;;  %v13815_v31 = vld [vmem:[%s17090_s5 + $0x318] sm:$0xff]  }
 0x898   : > { %v8414_v4 = vpop.f32.mrb[194].mxu1  ;;  %v13813_v57 = vld [vmem:[%s17090_s5 + $0x308] sm:$0xff]  }
 0x899   : > { %v13181_v43 = vpop.f32.mrb[195].mxu1 }
 0x89a   : > { %v8439_v56 = vld [vmem:[#allocation4 + $0x28] sm:$0xf] }
 0x89b   : > { %13359 = vmatmul.mubr.msk.bf16.vlgmr.msra.gmra.mrb[8].mxu1 %vm883_vm2, %v9466_v53 }
 0x89c   : > { %13371 = vmatpush3.bf16.msra.mxu1 %v13804_v61  ;;  %13362 = vmatprep.mubr.msk.bf16.mxu1 %vm13904_vm0, %v17106_v35  ;;  %v9717_v61 = vld [vmem:[#allocation3 + $0x78] sm:$0xf] }
 0x89d   : > { %13372 = vmatprep.subr.bf16.mxu1 %v17106_v35 }
 0x8a0   : > { %13373 = vmatpush3.bf16.msra.mxu1 %v13805_v55 }
 0x8a1   : > { %13374 = vmatprep.subr.bf16.mxu1 %v17106_v35 }
 0x8a3   : > { %13363 = vmatmul.mubr.msk.bf16.gmra.mrb[96].mxu1 %vm883_vm2, %v9467_v51 }
 0x8a4   : > { %13375 = vmatpush3.bf16.msra.mxu1 %v13806_v20  ;;  %13366 = vmatprep.mubr.msk.bf16.mxu1 %vm13904_vm0, %v17106_v35  ;;  %v9716_v20 = vld [vmem:[#allocation3 + $0x70] sm:$0xff] }
 0x8a5   : > { %13376 = vmatprep.subr.bf16.mxu1 %v17106_v35 }
 0x8a6   : > { %v8427_v1 = vpop.f32.mrb[196].mxu1 }
 0x8a7   : > { %v8444_v63 = vadd.f32 %v8427_v1, %v8318_v34  ;;  %v13188_v15 = vpop.f32.mrb[197].mxu1  ;;  %v9594_v34 = vpack.c.bf16 %v9591_v46, %v9590_v33  ;;  %v9964_v46 = vld [vmem:[#allocation3 + $0x55] sm:$0xff] }
 0x8a8   : > { %v8430_v18 = vpop.f32.mrb[198].mxu1  ;;  %13377 = vmatpush3.bf16.msra.mxu1 %v13807_v9  ;;  %v13816_v15 = vld [vmem:[%s17090_s5 + $0x320] sm:$0xff]   ;;  %v13821_v33 = vld [vmem:[%s17090_s5 + $0x348] sm:$0xff]  }
 0x8a9   : > { %v8445_v36 = vadd.f32 %v8439_v56, %v8430_v18  ;;  %v13189_v48 = vpop.f32.mrb[199].mxu1  ;;  %13390 = vmatprep.subr.bf16.mxu1 %v17106_v35  ;;  %v9844_v18 = vpack.c.bf16 %v9839_v62, %v9838_v52 }
 0x8aa   : > { %v9841_v48 = vld [vmem:[#allocation3 + $0x6c] sm:$0xff] }
 0x8ab   : > { %8451 = vst [vmem:[#allocation4 + $0x28] sm:$0xf] %v8445_v36  ;;  %13367 = vmatmul.mubr.msk.bf16.gmra.mrb[12].mxu1 %vm883_vm2, %v9468_v59  ;;  %v13817_v36 = vld [vmem:[%s17090_s5 + $0x328] sm:$0xff]   ;;  %v13818_v59 = vld [vmem:[%s17090_s5 + $0x330] sm:$0xff]   ;;  %v9845_v12 = vpack.c.bf16 %v9841_v48, %v9840_v13 }
 0x8ac   : > { %13378 = vmatprep.mubr.msk.bf16.mxu1 %vm13904_vm0, %v17106_v35 }
 0x8ae   : > { %v8537_v24 = vpop.f32.mrb[200].mxu1 }
 0x8af   : > { %v8566_v40 = vadd.f32 %v8537_v24, %v8440_v22  ;;  %v13200_v45 = vpop.f32.mrb[201].mxu1  ;;  %v13819_v24 = vld [vmem:[%s17090_s5 + $0x338] sm:$0xff]  }
 0x8b0   : > { %v8540_v32 = vpop.f32.mrb[202].mxu1  ;;  %v9842_v45 = vld [vmem:[#allocation3 + $0x74] sm:$0xff] }
 0x8b1   : > { %v13201_v14 = vpop.f32.mrb[203].mxu1  ;;  %v9846_v21 = vpack.c.bf16 %v9843_v37, %v9842_v45 }
 0x8b2   : > { %v8565_v42 = vld [vmem:[#allocation4 + $0x28] sm:$0xf] }
 0x8b3   : > { %13379 = vmatmul.mubr.msk.bf16.vlgmr.msra.gmra.mrb[16].mxu1 %vm883_vm2, %v9592_v23 }
 0x8b4   : > { %13391 = vmatpush3.bf16.msra.mxu1 %v13808_v10  ;;  %13382 = vmatprep.mubr.msk.bf16.mxu1 %vm13904_vm0, %v17106_v35 }
 0x8b5   : > { %13392 = vmatprep.subr.bf16.mxu1 %v17106_v35 }
 0x8b8   : > { %13393 = vmatpush3.bf16.msra.mxu1 %v13809_v29 }
 0x8b9   : > { %13394 = vmatprep.subr.bf16.mxu1 %v17106_v35 }
 0x8bb   : > { %13383 = vmatmul.mubr.msk.bf16.gmra.mrb[96].mxu1 %vm883_vm2, %v9593_v2 }
 0x8bc   : > { %13395 = vmatpush3.bf16.msra.mxu1 %v13810_v30  ;;  %13386 = vmatprep.mubr.msk.bf16.mxu1 %vm13904_vm0, %v17106_v35  ;;  %v9965_v30 = vld [vmem:[#allocation3 + $0x5d] sm:$0xff] }
 0x8bd   : > { %13396 = vmatprep.subr.bf16.mxu1 %v17106_v35 }
 0x8be   : > { %v8553_v44 = vpop.f32.mrb[204].mxu1 }
 0x8bf   : > { %v8570_v58 = vadd.f32 %v8553_v44, %v8444_v63  ;;  %v13208_v7 = vpop.f32.mrb[205].mxu1 }
 0x8c0   : > { %v8556_v6 = vpop.f32.mrb[206].mxu1  ;;  %13397 = vmatpush3.bf16.msra.mxu1 %v13811_v41  ;;  %v13820_v7 = vld [vmem:[%s17090_s5 + $0x340] sm:$0xff]  }
 0x8c1   : > { %v8571_v60 = vadd.f32 %v8565_v42, %v8556_v6  ;;  %v13209_v17 = vpop.f32.mrb[207].mxu1  ;;  %13410 = vmatprep.subr.bf16.mxu1 %v17106_v35  ;;  %v9970_v6 = vpack.c.bf16 %v9965_v30, %v9964_v46  ;;  %v13825_v46 = vld [vmem:[%s17092_s7 + $0x8] sm:$0xff]  }
 0x8c2   : > { %v9966_v17 = vld [vmem:[#allocation3 + $0x65] sm:$0xff] }
 0x8c3   : > { %8577 = vst [vmem:[#allocation4 + $0x28] sm:$0xf] %v8571_v60  ;;  %13387 = vmatmul.mubr.msk.bf16.gmra.mrb[20].mxu1 %vm883_vm2, %v9594_v34  ;;  %v9967_v60 = vld [vmem:[#allocation3 + $0x6d] sm:$0xff]  ;;  %v13822_v34 = vld [vmem:[%s17090_s5 + $0x350] sm:$0xff]  }
 0x8c4   : > { %13398 = vmatprep.mubr.msk.bf16.mxu1 %vm13904_vm0, %v17106_v35  ;;  %v9971_v38 = vpack.c.bf16 %v9967_v60, %v9966_v17 }
 0x8c6   : > { %v8663_v49 = vpop.f32.mrb[208].mxu1 }
 0x8c7   : > { %v8692_v26 = vadd.f32 %v8663_v49, %v8566_v40  ;;  %v13220_v47 = vpop.f32.mrb[209].mxu1  ;;  %v13823_v49 = vld [vmem:[%s17090_s5 + $0x358] sm:$0xff]  }
 0x8c8   : > { %v8666_v25 = vpop.f32.mrb[210].mxu1  ;;  %v9969_v47 = vld [vmem:[#allocation3 + $0x7d] sm:$0xf] }
 0x8c9   : > { %v13221_v22 = vpop.f32.mrb[211].mxu1 }
 0x8ca   : > { %v8691_v5 = vld [vmem:[#allocation4 + $0x28] sm:$0xf] }
 0x8cb   : > { %13399 = vmatmul.mubr.msk.bf16.vlgmr.msra.gmra.mrb[24].mxu1 %vm883_vm2, %v9718_v39 }
 0x8cc   : > { %13411 = vmatpush3.bf16.msra.mxu1 %v13812_v27  ;;  %13402 = vmatprep.mubr.msk.bf16.mxu1 %vm13904_vm0, %v17106_v35 }
 0x8cd   : > { %13412 = vmatprep.subr.bf16.mxu1 %v17106_v35 }
 0x8d0   : > { %13413 = vmatpush3.bf16.msra.mxu1 %v13813_v57  ;;  %v9968_v57 = vld [vmem:[#allocation3 + $0x75] sm:$0xff] }
 0x8d1   : > { %13414 = vmatprep.subr.bf16.mxu1 %v17106_v35 }
 0x8d3   : > { %13403 = vmatmul.mubr.msk.bf16.gmra.mrb[96].mxu1 %vm883_vm2, %v9719_v8  ;;  %v9720_v8 = vpack.c.bf16 %v9717_v61, %v9716_v20  ;;  %v10091_v61 = vld [vmem:[#allocation3 + $0x5e] sm:$0xff] }
 0x8d4   : > { %13415 = vmatpush3.bf16.msra.mxu1 %v13814_v3  ;;  %13406 = vmatprep.mubr.msk.bf16.mxu1 %vm13904_vm0, %v17106_v35  ;;  %v10096_v20 = vpack.c.bf16 %v10091_v61, %v16855_v0 }
 0x8d5   : > { %13416 = vmatprep.subr.bf16.mxu1 %v17106_v35 }
 0x8d6   : > { %v8679_v4 = vpop.f32.mrb[212].mxu1 }
 0x8d7   : > { %v8696_v53 = vadd.f32 %v8679_v4, %v8570_v58  ;;  %v13228_v43 = vpop.f32.mrb[213].mxu1  ;;  %v9972_v4 = vpack.c.bf16 %v9969_v47, %v9968_v57 }
 0x8d8   : > { %v8682_v55 = vpop.f32.mrb[214].mxu1  ;;  %13417 = vmatpush3.bf16.msra.mxu1 %v13815_v31 }
 0x8d9   : > { %v8697_v54 = vadd.f32 %v8691_v5, %v8682_v55  ;;  %v13229_v19 = vpop.f32.mrb[215].mxu1  ;;  %13430 = vmatprep.subr.bf16.mxu1 %v17106_v35 }
 0x8db   : > { %8703 = vst [vmem:[#allocation4 + $0x28] sm:$0xf] %v8697_v54  ;;  %13407 = vmatmul.mubr.msk.bf16.gmra.mrb[28].mxu1 %vm883_vm2, %v9720_v8  ;;  %v10095_v8 = vld [vmem:[#allocation3 + $0x7e] sm:$0xf] }
 0x8dc   : > { %13418 = vmatprep.mubr.msk.bf16.mxu1 %vm13904_vm0, %v17106_v35 }
 0x8de   : > { %v8789_v51 = vpop.f32.mrb[216].mxu1 }
 0x8df   : > { %v8818_v9 = vadd.f32 %v8789_v51, %v8692_v26  ;;  %v13240_v1 = vpop.f32.mrb[217].mxu1 }
 0x8e0   : > { %v8792_v63 = vpop.f32.mrb[218].mxu1  ;;  %v10094_v1 = vld [vmem:[#allocation3 + $0x76] sm:$0xff] }
 0x8e1   : > { %v13241_v56 = vpop.f32.mrb[219].mxu1 }
 0x8e2   : > { %v8817_v14 = vld [vmem:[#allocation4 + $0x28] sm:$0xf] }
 0x8e3   : > { %13419 = vmatmul.mubr.msk.bf16.vlgmr.msra.gmra.mrb[32].mxu1 %vm883_vm2, %v9844_v18 }
 0x8e4   : > { %13431 = vmatpush3.bf16.msra.mxu1 %v13816_v15  ;;  %13422 = vmatprep.mubr.msk.bf16.mxu1 %vm13904_vm0, %v17106_v35  ;;  %v10098_v15 = vpack.c.bf16 %v10095_v8, %v10094_v1  ;;  %v13830_v1 = vld [vmem:[%s17092_s7 + $0x30] sm:$0xff]  }
 0x8e5   : > { %13432 = vmatprep.subr.bf16.mxu1 %v17106_v35 }
 0x8e8   : > { %13433 = vmatpush3.bf16.msra.mxu1 %v13817_v36 }
 0x8e9   : > { %13434 = vmatprep.subr.bf16.mxu1 %v17106_v35 }
 0x8eb   : > { %13423 = vmatmul.mubr.msk.bf16.gmra.mrb[96].mxu1 %vm883_vm2, %v9845_v12 }
 0x8ec   : > { %13435 = vmatpush3.bf16.msra.mxu1 %v13818_v59  ;;  %13426 = vmatprep.mubr.msk.bf16.mxu1 %vm13904_vm0, %v17106_v35 }
 0x8ed   : > { %13436 = vmatprep.subr.bf16.mxu1 %v17106_v35 }
 0x8ee   : > { %v8805_v40 = vpop.f32.mrb[220].mxu1 }
 0x8ef   : > { %v8822_v32 = vadd.f32 %v8805_v40, %v8696_v53  ;;  %v13248_v10 = vpop.f32.mrb[221].mxu1 }
 0x8f0   : > { %v8808_v23 = vpop.f32.mrb[222].mxu1  ;;  %13437 = vmatpush3.bf16.msra.mxu1 %v13819_v24 }
 0x8f1   : > { %v8823_v29 = vadd.f32 %v8817_v14, %v8808_v23  ;;  %v13249_v16 = vpop.f32.mrb[223].mxu1  ;;  %13450 = vmatprep.subr.bf16.mxu1 %v17106_v35 }
 0x8f3   : > { %8829 = vst [vmem:[#allocation4 + $0x28] sm:$0xf] %v8823_v29  ;;  %13427 = vmatmul.mubr.msk.bf16.gmra.mrb[36].mxu1 %vm883_vm2, %v9846_v21 }
 0x8f4   : > { %13438 = vmatprep.mubr.msk.bf16.mxu1 %vm13904_vm0, %v17106_v35 }
 0x8f6   : > { %v8915_v2 = vpop.f32.mrb[224].mxu1 }
 0x8f7   : > { %v8944_v41 = vadd.f32 %v8915_v2, %v8818_v9  ;;  %v13260_v44 = vpop.f32.mrb[225].mxu1 }
 0x8f8   : > { %v8918_v58 = vpop.f32.mrb[226].mxu1  ;;  %v13824_v44 = vld [vmem:[%s17092_s7] sm:$0xff]  }
 0x8f9   : > { %v13261_v42 = vpop.f32.mrb[227].mxu1  ;;  %13471 = vmatpush3.bf16.msra.mxu0 %v13824_v44 }
 0x8fa   : > { %v8943_v22 = vld [vmem:[#allocation4 + $0x28] sm:$0xf]  ;;  %13472 = vmatprep.subr.bf16.mxu0 %v17106_v35 }
 0x8fb   : > { %13439 = vmatmul.mubr.msk.bf16.vlgmr.msra.gmra.mrb[40].mxu1 %vm883_vm2, %v9970_v6 }
 0x8fc   : > { %13451 = vmatpush3.bf16.msra.mxu1 %v13820_v7  ;;  %13442 = vmatprep.mubr.msk.bf16.mxu1 %vm13904_vm0, %v17106_v35 }
 0x8fd   : > { %13452 = vmatprep.subr.bf16.mxu1 %v17106_v35  ;;  %13473 = vmatpush3.bf16.msra.mxu0 %v13825_v46 }
 0x8fe   : > { %13474 = vmatprep.subr.bf16.mxu0 %v17106_v35 }
 0x900   : > { %13453 = vmatpush3.bf16.msra.mxu1 %v13821_v33 }
 0x901   : > { %13454 = vmatprep.subr.bf16.mxu1 %v17106_v35 }
 0x903   : > { %13443 = vmatmul.mubr.msk.bf16.gmra.mrb[96].mxu1 %vm883_vm2, %v9971_v38 }
 0x904   : > { %13455 = vmatpush3.bf16.msra.mxu1 %v13822_v34  ;;  %13446 = vmatprep.mubr.msk.bf16.mxu1 %vm13904_vm0, %v17106_v35 }
 0x905   : > { %13456 = vmatprep.subr.bf16.mxu1 %v17106_v35 }
 0x906   : > { %v8931_v26 = vpop.f32.mrb[228].mxu1 }
 0x907   : > { %v8948_v25 = vadd.f32 %v8931_v26, %v8822_v32  ;;  %v13268_v27 = vpop.f32.mrb[229].mxu1 }
 0x908   : > { %v8934_v39 = vpop.f32.mrb[230].mxu1  ;;  %13457 = vmatpush3.bf16.msra.mxu1 %v13823_v49 }
 0x909   : > { %v8949_v3 = vadd.f32 %v8943_v22, %v8934_v39  ;;  %v13269_v31 = vpop.f32.mrb[231].mxu1 }
 0x90a   : > { %v13827_v31 = vld [vmem:[%s17092_s7 + $0x18] sm:$0xff]  }
 0x90b   : > { %8955 = vst [vmem:[#allocation4 + $0x28] sm:$0xf] %v8949_v3  ;;  %13447 = vmatmul.mubr.msk.bf16.gmra.mrb[44].mxu1 %vm883_vm2, %v9972_v4  ;;  %v13826_v3 = vld [vmem:[%s17092_s7 + $0x10] sm:$0xff]  }
 0x90c   : > { %13458 = vmatprep.mubr.msk.bf16.mxu1 %vm13904_vm0, %v17106_v35  ;;  %13475 = vmatpush3.bf16.msra.mxu0 %v13826_v3 }
 0x90d   : > { %13476 = vmatprep.subr.bf16.mxu0 %v17106_v35 }
 0x90e   : > { %v9041_v53 = vpop.f32.mrb[232].mxu1 }
 0x90f   : > { %v9070_v43 = vadd.f32 %v9041_v53, %v8944_v41  ;;  %v13280_v55 = vpop.f32.mrb[233].mxu1 }
 0x910   : > { %v9044_v5 = vpop.f32.mrb[234].mxu1  ;;  %13477 = vmatpush3.bf16.msra.mxu0 %v13827_v31 }
 0x911   : > { %v13281_v54 = vpop.f32.mrb[235].mxu1  ;;  %13478 = vmatprep.subr.bf16.mxu0 %v17106_v35 }
 0x912   : > { %v9069_v0 = vld [vmem:[#allocation4 + $0x28] sm:$0xf] }
 0x913   : > { %13459 = vmatmul.mubr.msk.bf16.vlgmr.msra.gmra.mrb[48].mxu1 %vm883_vm2, %v10096_v20 }
 0x914   : > { %13462 = vmatprep.mubr.msk.bf16.mxu1 %vm13904_vm0, %v17106_v35 }
 0x91b   : > { %13463 = vmatmul.mubr.msk.bf16.gmra.mrb[96].mxu1 %vm883_vm2, %v10097_v50 }
 0x91c   : > { %13466 = vmatprep.mubr.msk.bf16.mxu1 %vm13904_vm0, %v17106_v35 }
 0x91e   : > { %v9057_v19 = vpop.f32.mrb[236].mxu1 }
 0x91f   : > { %v9074_v62 = vadd.f32 %v9057_v19, %v8948_v25  ;;  %v13288_v51 = vpop.f32.mrb[237].mxu1 }
 0x920   : > { %v9060_v9 = vpop.f32.mrb[238].mxu1 }
 0x921   : > { %v9075_v52 = vadd.f32 %v9069_v0, %v9060_v9  ;;  %v13289_v63 = vpop.f32.mrb[239].mxu1  ;;  %v13828_v9 = vld [vmem:[%s17092_s7 + $0x20] sm:$0xff]   ;;  %v13829_v0 = vld [vmem:[%s17092_s7 + $0x28] sm:$0xff]  }
 0x922   : > { %13479 = vmatpush3.bf16.msra.mxu0 %v13828_v9 }
 0x923   : > { %9081 = vst [vmem:[#allocation4 + $0x28] sm:$0xf] %v9075_v52  ;;  %13467 = vmatmul.mubr.msk.bf16.gmra.mrb[52].mxu1 %vm883_vm2, %v10098_v15  ;;  %13480 = vmatprep.subr.bf16.mxu0 %v17106_v35  ;;  %v13831_v52 = vld [vmem:[%s17092_s7 + $0x38] sm:$0xff]  }
 0x926   : > { %v9167_v18 = vpop.f32.mrb[240].mxu1  ;;  %13481 = vmatpush3.bf16.msra.mxu0 %v13829_v0 }
 0x927   : > { %v9196_v28 = vadd.f32 %v9167_v18, %v9070_v43  ;;  %v13300_v11 = vpop.f32.mrb[241].mxu1  ;;  %13482 = vmatprep.subr.bf16.mxu0 %v17106_v35 }
 0x928   : > { %v9170_v50 = vpop.f32.mrb[242].mxu1 }
 0x929   : > { %v13301_v56 = vpop.f32.mrb[243].mxu1 }
 0x92a   : > { %v9195_v12 = vld [vmem:[#allocation4 + $0x28] sm:$0xf]  ;;  %13483 = vmatpush3.bf16.msra.mxu0 %v13830_v1 }
 0x92b   : > { %13484 = vmatprep.subr.bf16.mxu0 %v17106_v35 }
 0x92e   : > { %13485 = vmatpush3.bf16.msra.mxu0 %v13831_v52 }
 0x936   : > { %v9183_v36 = vpop.f32.mrb[244].mxu1 }
 0x937   : > { %v9200_v48 = vadd.f32 %v9183_v36, %v9074_v62  ;;  %v13308_v13 = vpop.f32.mrb[245].mxu1 }
 0x938   : > { %v9186_v59 = vpop.f32.mrb[246].mxu1 }
 0x939   : > { %v9201_v24 = vadd.f32 %v9195_v12, %v9186_v59  ;;  %v13309_v40 = vpop.f32.mrb[247].mxu1 }
 0x93b   : > { %9207 = vst [vmem:[#allocation4 + $0x28] sm:$0xf] %v9201_v24 }
 0x93e   : > { %v9293_v45 = vpop.f32.mrb[248].mxu1 }
 0x93f   : > { %v9322_v37 = vadd.f32 %v9293_v45, %v9196_v28  ;;  %v13320_v32 = vpop.f32.mrb[249].mxu1 }
 0x940   : > { %v9296_v10 = vpop.f32.mrb[250].mxu1 }
 0x941   : > { %v13321_v23 = vpop.f32.mrb[251].mxu1 }
 0x942   : > { %v9321_v30 = vld [vmem:[#allocation4 + $0x28] sm:$0xf] }
 0x94e   : > { %v9309_v14 = vpop.f32.mrb[252].mxu1 }
 0x94f   : > { %v9326_v29 = vadd.f32 %v9309_v14, %v9200_v48  ;;  %v13328_v16 = vpop.f32.mrb[253].mxu1 }
 0x950   : > { %v9312_v21 = vpop.f32.mrb[254].mxu1 }
 0x951   : > { %v9327_v2 = vadd.f32 %v9321_v30, %v9312_v21  ;;  %v13329_v41 = vpop.f32.mrb[255].mxu1 }
 0x953   : > { %9333 = vst [vmem:[#allocation4 + $0x28] sm:$0xf] %v9327_v2 }
 0x956   : > { %v9419_v58 = vpop.f32.mrb[0].mxu1 }
 0x957   : > { %v9448_v7 = vadd.f32 %v9419_v58, %v9322_v37  ;;  %v13340_v6 = vpop.f32.mrb[1].mxu1 }
 0x958   : > { %v9422_v42 = vpop.f32.mrb[2].mxu1 }
 0x959   : > { %v13341_v33 = vpop.f32.mrb[3].mxu1 }
 0x95a   : > { %v9447_v49 = vld [vmem:[#allocation4 + $0x28] sm:$0xf] }
 0x966   : > { %v9435_v60 = vpop.f32.mrb[4].mxu1 }
 0x967   : > { %v9452_v17 = vadd.f32 %v9435_v60, %v9326_v29  ;;  %v13348_v34 = vpop.f32.mrb[5].mxu1 }
 0x968   : > { %v9438_v38 = vpop.f32.mrb[6].mxu1 }
 0x969   : > { %v9453_v26 = vadd.f32 %v9447_v49, %v9438_v38  ;;  %v13349_v47 = vpop.f32.mrb[7].mxu1 }
 0x96b   : > { %9459 = vst [vmem:[#allocation4 + $0x28] sm:$0xf] %v9453_v26 }
 0x96e   : > { %v9545_v25 = vpop.f32.mrb[8].mxu1 }
 0x96f   : > { %v9574_v27 = vadd.f32 %v9545_v25, %v9448_v7  ;;  %v13360_v39 = vpop.f32.mrb[9].mxu1 }
 0x970   : > { %v9548_v22 = vpop.f32.mrb[10].mxu1 }
 0x971   : > { %v13361_v57 = vpop.f32.mrb[11].mxu1  ;;  %v11277_v22 = vld [vmem:[%s17091_s6] ss:$0 sm:$0xff] }
 0x972   : > { %v9573_v55 = vld [vmem:[#allocation4 + $0x28] sm:$0xf] }
 0x97e   : > { %v9561_v4 = vpop.f32.mrb[12].mxu1 }
 0x97f   : > { %v9578_v61 = vadd.f32 %v9561_v4, %v9452_v17  ;;  %v13368_v53 = vpop.f32.mrb[13].mxu1 }
 0x980   : > { %v9564_v43 = vpop.f32.mrb[14].mxu1 }
 0x981   : > { %v9579_v5 = vadd.f32 %v9573_v55, %v9564_v43  ;;  %v13369_v20 = vpop.f32.mrb[15].mxu1 }
 0x983   : > { %9585 = vst [vmem:[#allocation4 + $0x28] sm:$0xf] %v9579_v5 }
 0x986   : > { %v9671_v54 = vpop.f32.mrb[16].mxu1 }
 0x987   : > { %v9700_v19 = vadd.f32 %v9671_v54, %v9574_v27  ;;  %v13380_v8 = vpop.f32.mrb[17].mxu1 }
 0x988   : > { %v9674_v62 = vpop.f32.mrb[18].mxu1 }
 0x989   : > { %v13381_v51 = vpop.f32.mrb[19].mxu1 }
 0x98a   : > { %v9699_v11 = vld [vmem:[#allocation4 + $0x28] sm:$0xf] }
 0x996   : > { %v9687_v63 = vpop.f32.mrb[20].mxu1 }
 0x997   : > { %v9704_v15 = vadd.f32 %v9687_v63, %v9578_v61  ;;  %v13388_v18 = vpop.f32.mrb[21].mxu1 }
 0x998   : > { %v9690_v28 = vpop.f32.mrb[22].mxu1 }
 0x999   : > { %v9705_v50 = vadd.f32 %v9699_v11, %v9690_v28  ;;  %v13389_v56 = vpop.f32.mrb[23].mxu1 }
 0x99b   : > { %9711 = vst [vmem:[#allocation4 + $0x28] sm:$0xf] %v9705_v50 }
 0x99e   : > { %v9797_v36 = vpop.f32.mrb[24].mxu1 }
 0x99f   : > { %v9826_v48 = vadd.f32 %v9797_v36, %v9700_v19  ;;  %v13400_v13 = vpop.f32.mrb[25].mxu1 }
 0x9a0   : > { %v9800_v59 = vpop.f32.mrb[26].mxu1 }
 0x9a1   : > { %v13401_v12 = vpop.f32.mrb[27].mxu1 }
 0x9a2   : > { %v9825_v32 = vld [vmem:[#allocation4 + $0x28] sm:$0xf] }
 0x9ae   : > { %v9813_v24 = vpop.f32.mrb[28].mxu1 }
 0x9af   : > { %v9830_v40 = vadd.f32 %v9813_v24, %v9704_v15  ;;  %v13408_v45 = vpop.f32.mrb[29].mxu1 }
 0x9b0   : > { %v9816_v37 = vpop.f32.mrb[30].mxu1 }
 0x9b1   : > { %v9831_v35 = vadd.f32 %v9825_v32, %v9816_v37  ;;  %v13409_v10 = vpop.f32.mrb[31].mxu1 }
 0x9b3   : > { %9837 = vst [vmem:[#allocation4 + $0x28] sm:$0xf] %v9831_v35 }
 0x9b6   : > { %v9923_v23 = vpop.f32.mrb[32].mxu1 }
 0x9b7   : > { %v9952_v14 = vadd.f32 %v9923_v23, %v9826_v48  ;;  %v13420_v29 = vpop.f32.mrb[33].mxu1 }
 0x9b8   : > { %v9926_v16 = vpop.f32.mrb[34].mxu1 }
 0x9b9   : > { %v13421_v21 = vpop.f32.mrb[35].mxu1 }
 0x9ba   : > { %v9951_v46 = vld [vmem:[#allocation4 + $0x28] sm:$0xf] }
 0x9c6   : > { %v9939_v30 = vpop.f32.mrb[36].mxu1 }
 0x9c7   : > { %v9956_v2 = vadd.f32 %v9939_v30, %v9830_v40  ;;  %v13428_v41 = vpop.f32.mrb[37].mxu1 }
 0x9c8   : > { %v9942_v44 = vpop.f32.mrb[38].mxu1 }
 0x9c9   : > { %v9957_v58 = vadd.f32 %v9951_v46, %v9942_v44  ;;  %v13429_v7 = vpop.f32.mrb[39].mxu1 }
 0x9cb   : > { %9963 = vst [vmem:[#allocation4 + $0x28] sm:$0xf] %v9957_v58 }
 0x9ce   : > { %v10049_v6 = vpop.f32.mrb[40].mxu1 }
 0x9cf   : > { %v10078_v42 = vadd.f32 %v10049_v6, %v9952_v14  ;;  %v13440_v33 = vpop.f32.mrb[41].mxu1 }
 0x9d0   : > { %v10052_v60 = vpop.f32.mrb[42].mxu1 }
 0x9d1   : > { %v13441_v17 = vpop.f32.mrb[43].mxu1 }
 0x9d2   : > { %v10077_v47 = vld [vmem:[#allocation4 + $0x28] sm:$0xf] }
 0x9de   : > { %v10065_v34 = vpop.f32.mrb[44].mxu1 }
 0x9df   : > { %v10082_v38 = vadd.f32 %v10065_v34, %v9956_v2  ;;  %v13448_v49 = vpop.f32.mrb[45].mxu1 }
 0x9e0   : > { %v10068_v26 = vpop.f32.mrb[46].mxu1 }
 0x9e1   : > { %v10083_v25 = vadd.f32 %v10077_v47, %v10068_v26  ;;  %v13449_v27 = vpop.f32.mrb[47].mxu1  ;;  %v10292_v26 = vld [vmem:[%s17093_s8] sm:$0x1] }
 0x9e3   : > { %10089 = vst [vmem:[#allocation4 + $0x28] sm:$0xf] %v10083_v25 }
 0x9e6   : > { %v10175_v39 = vpop.f32.mrb[48].mxu1 }
 0x9e7   : > { %v10204_v57 = vadd.f32 %v10175_v39, %v10078_v42  ;;  %v13460_v3 = vpop.f32.mrb[49].mxu1 }
 0x9e8   : > { %v10178_v31 = vpop.f32.mrb[50].mxu1 }
 0x9e9   : > { %v10226_v4 = vadd.f32 %v11277_v22, %v10204_v57  ;;  %v13461_v61 = vpop.f32.mrb[51].mxu1 }
 0x9ea   : > { %v10203_v18 = vld [vmem:[#allocation4 + $0x28] sm:$0xf] }
 0x9eb   : > { %v10229_v53 = vmax.f32 %v10226_v4, 0.0 }
 0x9ed   : > { %v10242_v43 = vrot.slane %v10229_v53, 6  ;;  %v10233_v19 = vsel %vm10232_vm4, %v10229_v53, 0.0 }
 0x9ee   : > { %v10183_v55 = vpop.f32.mrb[96].mxu1  ;;  %v10234_v51 = vrot.slane %v10233_v19, 4 }
 0x9ef   : > { %v10244_v5 = vsel %vm10232_vm4, %v10242_v43, 0.0  ;;  %v13464_v20 = vpop.f32.mrb[97].mxu1 }
 0x9f0   : > { %v10186_v54 = vpop.f32.mrb[98].mxu1  ;;  %v10245_v62 = vrot.slane %v10244_v5, 4  ;;  %v10235_v63 = vadd.f32 %v10234_v51, %v10233_v19 }
 0x9f1   : > { %v13465_v8 = vpop.f32.mrb[99].mxu1 }
 0x9f2   : > { %v10246_v9 = vadd.f32 %v10245_v62, %v10244_v5  ;;  %v10236_v48 = vrot.slane %v10235_v63, 2 }
 0x9f4   : > { %v10247_v56 = vrot.slane %v10246_v9, 2  ;;  %v10237_v24 = vadd.f32 %v10236_v48, %v10235_v63 }
 0x9f6   : > { %v10191_v0 = vpop.f32.mrb[52].mxu1  ;;  %v10248_v59 = vadd.f32 %v10247_v56, %v10246_v9  ;;  %v10238_v10 = vrot.slane %v10237_v24, 1 }
 0x9f7   : > { %v10208_v1 = vadd.f32 %v10191_v0, %v10082_v38  ;;  %v13468_v52 = vpop.f32.mrb[53].mxu1 }
 0x9f8   : > { %v10194_v15 = vpop.f32.mrb[54].mxu1  ;;  %v10249_v45 = vrot.slane %v10248_v59, 1  ;;  %v10239_v30 = vadd.f32 %v10238_v10, %v10237_v24 }
 0x9f9   : > { %v10227_v28 = vadd.f32 %v11277_v22, %v10208_v1  ;;  %v10209_v11 = vadd.f32 %v10203_v18, %v10194_v15  ;;  %v13469_v50 = vpop.f32.mrb[55].mxu1 }
 0x9fa   : > { %v10250_v29 = vadd.f32 %v10249_v45, %v10248_v59 }
 0x9fb   : > { %v10230_v36 = vmax.f32 %v10227_v28, 0.0  ;;  %10215 = vst [vmem:[#allocation4 + $0x28] sm:$0xf] %v10209_v11 }
 0x9fc   : > { %v10251_v46 = vadd.f32 %v10250_v29, %v10239_v30 }
 0x9fd   : > { %v10253_v13 = vrot.slane %v10230_v36, 4 }
 0x9ff   : > { %v10255_v12 = vsel %vm10232_vm4, %v10253_v13, 0.0 }
 0xa00   : > { %v10256_v40 = vrot.slane %v10255_v12, 4 }
 0xa02   : > { %v10257_v37 = vadd.f32 %v10256_v40, %v10255_v12  ;;  %v10218_v32 = vld [vmem:[#allocation4 + $0x28] sm:$0xf] }
 0xa03   : > { %v10228_v35 = vadd.f32 %v11277_v22, %v10218_v32 }
 0xa04   : > { %v10258_v23 = vrot.slane %v10257_v37, 2 }
 0xa05   : > { %v10231_v14 = vmax.f32 %v10228_v35, 0.0 }
 0xa06   : > { %v10259_v16 = vadd.f32 %v10258_v23, %v10257_v37 }
 0xa07   : > { %v10264_v21 = vrot.slane %v10231_v14, 2 }
 0xa08   : > { %v10260_v2 = vrot.slane %v10259_v16, 1 }
 0xa09   : > { %v10266_v41 = vsel %vm10232_vm4, %v10264_v21, 0.0 }
 0xa0a   : > { %v10261_v44 = vadd.f32 %v10260_v2, %v10259_v16  ;;  %v10267_v58 = vrot.slane %v10266_v41, 4 }
 0xa0c   : > { %v10262_v7 = vadd.f32 %v10261_v44, %v10251_v46  ;;  %v10268_v6 = vadd.f32 %v10267_v58, %v10266_v41 }
 0xa0e   : > { %v10269_v42 = vrot.slane %v10268_v6, 2 }
 0xa10   : > { %v10270_v33 = vadd.f32 %v10269_v42, %v10268_v6 }
 0xa12   : > { %v10271_v60 = vrot.slane %v10270_v33, 1 }
 0xa14   : > { %v10272_v17 = vadd.f32 %v10271_v60, %v10270_v33 }
 0xa16   : > { %v10273_v34 = vadd.f32 %v10272_v17, %v10262_v7 }
 0xa18   : > { %v10274_v38 = vmul.f32 0.125, %v10273_v34 }
 0xa1a   : > { %v10275_v49 = vpack.c.bf16 %v10274_v38, %v10274_v38 }
 0xa1c   : > { %13487 = vmatmul.mubr.bf16.vlgmr.msra.gmra.mrb[140].mxu0 %v10275_v49 }
 0xaef   : > { %v10375_v47 = vpop.f32.mrb[140].mxu0 }
 0xaf0   : > { %v10376_v25 = vadd.f32 %v10375_v47, %v10292_v26  ;;  %v13488_v27 = vpop.f32.mrb[141].mxu0 }
 0xaf1   : > { %v10378_v39 = vpop.f32.mrb[142].mxu0 }
 0xaf2   : > { %10381 = vst [vmem:[%s324_s25] sm:$0x1] %v10376_v25  ;;  %v13489_v22 = vpop.f32.mrb[143].mxu0 }
 0xaf3   : > { %13852 = shalt.err (!%p13849_p3)
}
 0xaf4   : > { %s13853_s21 = scalar_lea.hbm %s17043_s28, 16  ;;  %s13857_s25 = scalar_lea.hbm %s17094_s9, 32 }
 0xaf5   : > { %p13854_p4 = scmp.ne.s32.totalorder %s17043_s28, %s13853_s21  ;;  %p13858_p9 = scmp.lt.u32.totalorder %s17043_s28, %s17094_s9 }
 0xaf6   : > { %p13859_p10 = scmp.lt.u32.totalorder %s13857_s25, %s13853_s21  ;;  %p13861_p12 = scmp.lt.u32.totalorder %s13853_s21, %s17043_s28 }
 0xaf7   : > { %p13855_p7 = pnand %p13854_p4, %p13994_p5 }
 0xaf8   : > { %p13860_p11 = por %p13859_p10, %p13858_p9 }
 0xaf9   : > { %p13856_p8 = pneg %p13855_p7 }
 0xafa   : > { %p13862_p13 = por %p13861_p12, %p13860_p11 }
 0xafc   : > { %p13863_p0 = pnand %p13862_p13, %p13856_p8 }
 0xafe   : > { %13866 = shalt.err (!%p13863_p0)
}
 0xaff   : > { %13599 = dma.vmem_to_hbm [thread:$0]  (%p13994_p5), %s17045_s26, 16, %s17043_s28, %s10383_s29  }
 0xb00 PF: > { %p13605_p1 = scmp.ge.s32.totalorder %s13901_s12, 2  ;;  %s10407_s13 = sand.u32 1, %s13889_s30  }
 0xb01   : > { %s10408_s14 = scalar_lea.sflag [#allocation6], %s10407_s13 }
 0xb02   : > { %p13602_p2 = pnand %p13605_p1, %p13998_p6 }
 0xb04   : > { %13884 = dma.done.wait (!%p13602_p2), %s10408_s14, 16  }
 0xb05   : > { %13886 = vsyncadd (!%p13602_p2), %s10408_s14, 4294967280  ;;  %p19_p3 = scmp.ge.s32.totalorder %s13981_s15, 4   ;;  %s17279_s30 = smov %s13893_s10 }
 0xb06   : > { %s17280_s10 = smov %s13897_s11  ;;  %s17281_s11 = smov %s13992_s18 }
 0xb07   : > { %s17282_s12 = smov %s13981_s15  ;;  %21 = sbr.rel (!%p19_p3) target bundleno = 3 (0x3), region = 143 }
 0xb0e   :  { %10412 = vsyncpa [#allocation6], 1 }
 0xb0f   :  { %10414 = vsyncpa [#allocation6 + $0x1], 1 }

</bundles_post_ra>
